<compile_context>
chip_gen: v5e
topology: v5e:2x2
jax: 0.10.0
libtpu: 0.0.40
codegen_flags: <defaults>
</compile_context>

<pallas_src>
import math
import jax
import jax.numpy as jnp
from jax.experimental import pallas as pl
from jax.experimental.pallas import tpu as pltpu

# ------------------------- small synthetic dims -------------------------
SEQ = 16          # stands in for max_seq_length=128
DIM = 32          # stands in for ALBERT hidden dim 768
FFN = 64          # stands in for ALBERT intermediate 3072
HEADS = 2         # stands in for 12 heads
HEAD_DIM = DIM // HEADS
NUM_LAYERS = 2    # ALBERT shares one layer's weights across layers
VOCAB = 100
LN_EPS = 1e-12
NEG_INF = -10000.0
D_BLK = 8         # documents per grid step -> merged M dim = D_BLK*SEQ = 128


# ------------------------------ Pallas kernel ------------------------------
def albert_block_kernel(x_ref, am_ref, wqkv_ref, bqkv_ref, wout_ref, vec_ref,
                        w1_ref, b1_ref, w2_ref, wp_ref, out_ref):
    # x_ref:   (D_BLK, SEQ, DIM)  f32 embedded tokens for D_BLK documents
    # am_ref:  (D_BLK, 1, SEQ)    f32 additive attention mask ((1-m) * -1e4)
    # wqkv_ref:(3, HEADS, DIM, HEAD_DIM) bf16  per-head Wq/Wk/Wv column slices
    # bqkv_ref:(3, HEADS, 1, HEAD_DIM)   f32   per-head bq/bk/bv slices
    # wout_ref:(HEADS, HEAD_DIM, DIM)    bf16  per-head Wo row slices
    # vec_ref: (7, DIM) f32  rows: bo, ln1_g, ln1_b, b2, ln2_g, ln2_b, bp
    # w1/b1/w2/wp: FFN + pooler weights (bf16 weights, f32 biases)
    # out_ref: (D_BLK, DIM) f32 pooled features (lane-dense block)
    rows = D_BLK * SEQ
    x = x_ref[...].reshape(rows, DIM)            # (rows, DIM) f32 residual stream
    am = am_ref[...]                             # (D_BLK, 1, SEQ)

    # Hoisted weight/bias loads (read once, reused across layers and heads).
    w_q = [wqkv_ref[0, h] for h in range(HEADS)]     # (DIM, HEAD_DIM) bf16
    w_k = [wqkv_ref[1, h] for h in range(HEADS)]
    w_v = [wqkv_ref[2, h] for h in range(HEADS)]
    b_q = [bqkv_ref[0, h] for h in range(HEADS)]     # (1, HEAD_DIM) f32
    b_k = [bqkv_ref[1, h] for h in range(HEADS)]
    b_v = [bqkv_ref[2, h] for h in range(HEADS)]
    w_o = [wout_ref[h] for h in range(HEADS)]        # (HEAD_DIM, DIM) bf16

    vec = vec_ref[...]                               # (7, DIM) f32
    bo, ln1g, ln1b, b2, ln2g, ln2b, bp = (vec[i:i + 1] for i in range(7))
    w1 = w1_ref[...]                                 # (DIM, FFN) bf16
    b1 = b1_ref[...]                                 # (1, FFN)   f32
    w2 = w2_ref[...]                                 # (FFN, DIM) bf16
    wp = wp_ref[...]                                 # (DIM, DIM) bf16

    inv_sqrt_dh = 1.0 / math.sqrt(HEAD_DIM)

    def layer_norm(y, g, b):                         # f32 statistics
        mu = jnp.mean(y, axis=-1, keepdims=True)
        var = jnp.mean((y - mu) ** 2, axis=-1, keepdims=True)
        return (y - mu) * jax.lax.rsqrt(var + LN_EPS) * g + b

    # ALBERT shares one layer's parameters across layers.  NUM_LAYERS is tiny
    # here so a static unroll is fine; at real depth (12) switch to
    # lax.fori_loop to bound vreg live ranges.
    for _ in range(NUM_LAYERS):
        xb = x.astype(jnp.bfloat16)
        attn_out = jnp.zeros((rows, DIM), jnp.float32)
        for h in range(HEADS):
            # Per-head projections on the merged (rows, DIM) slab; per-head
            # weight slices avoid in-kernel lane slicing of activations.
            qh = jnp.dot(xb, w_q[h], preferred_element_type=jnp.float32) + b_q[h]
            kh = jnp.dot(xb, w_k[h], preferred_element_type=jnp.float32) + b_k[h]
            vh = jnp.dot(xb, w_v[h], preferred_element_type=jnp.float32) + b_v[h]
            q3 = qh.reshape(D_BLK, SEQ, HEAD_DIM).astype(jnp.bfloat16)
            k3 = kh.reshape(D_BLK, SEQ, HEAD_DIM).astype(jnp.bfloat16)
            v3 = vh.reshape(D_BLK, SEQ, HEAD_DIM).astype(jnp.bfloat16)
            # Batched-over-docs attention (single batch dim, MXU-friendly).
            s = jnp.einsum("bqd,bkd->bqk", q3, k3,
                           preferred_element_type=jnp.float32)
            s = s * inv_sqrt_dh + am                 # mask broadcast over queries
            p = jax.nn.softmax(s, axis=-1).astype(jnp.bfloat16)
            ctx = jnp.einsum("bqk,bkd->bqd", p, v3,
                             preferred_element_type=jnp.float32)
            ctx2 = ctx.reshape(rows, HEAD_DIM).astype(jnp.bfloat16)
            # concat(head_ctx) @ Wo  ==  sum_h head_ctx_h @ Wo[h]
            attn_out = attn_out + jnp.dot(ctx2, w_o[h],
                                          preferred_element_type=jnp.float32)
        x = layer_norm(x + attn_out + bo, ln1g, ln1b)

        xb2 = x.astype(jnp.bfloat16)
        hmid = jax.nn.gelu(
            jnp.dot(xb2, w1, preferred_element_type=jnp.float32) + b1,
            approximate=True)
        ffn_out = jnp.dot(hmid.astype(jnp.bfloat16), w2,
                          preferred_element_type=jnp.float32) + b2
        x = layer_norm(x + ffn_out, ln2g, ln2b)

    # ALBERT pooler: tanh(W_pool @ CLS + b_pool) for each document.
    # CLS rows are gathered with a one-hot selection matmul (MXU gather).
    doc_iota = jax.lax.broadcasted_iota(jnp.int32, (D_BLK, rows), 0)
    row_iota = jax.lax.broadcasted_iota(jnp.int32, (D_BLK, rows), 1)
    sel = (row_iota == doc_iota * SEQ).astype(jnp.float32).astype(jnp.bfloat16)
    cls = jnp.dot(sel, x.astype(jnp.bfloat16),
                  preferred_element_type=jnp.float32)          # (D_BLK, DIM)
    pooled = jnp.tanh(
        jnp.dot(cls.astype(jnp.bfloat16), wp,
                preferred_element_type=jnp.float32) + bp)
    out_ref[...] = pooled                                       # lane-dense store


# -------------------------- host-side weight packing --------------------------
def _pack_weights(params):
    bf16 = jnp.bfloat16

    def split_cols(w):   # (DIM, DIM) -> (HEADS, DIM, HEAD_DIM): head column slices
        return jnp.transpose(w.reshape(DIM, HEADS, HEAD_DIM), (1, 0, 2))

    def split_bias(b):   # (1, DIM) -> (HEADS, 1, HEAD_DIM)
        return jnp.transpose(b.reshape(1, HEADS, HEAD_DIM), (1, 0, 2))

    w_qkv = jnp.stack([split_cols(params["wq"]),
                       split_cols(params["wk"]),
                       split_cols(params["wv"])], axis=0).astype(bf16)
    b_qkv = jnp.stack([split_bias(params["bq"]),
                       split_bias(params["bk"]),
                       split_bias(params["bv"])], axis=0).astype(jnp.float32)
    w_out = params["wo"].reshape(HEADS, HEAD_DIM, DIM).astype(bf16)
    vec = jnp.concatenate([params["bo"], params["ln1_g"], params["ln1_b"],
                           params["b2"], params["ln2_g"], params["ln2_b"],
                           params["bp"]], axis=0).astype(jnp.float32)   # (7, DIM)
    return (w_qkv, b_qkv, w_out, vec,
            params["w1"].astype(bf16), params["b1"].astype(jnp.float32),
            params["w2"].astype(bf16), params["wp"].astype(bf16))


def encode_docs(params, input_ids, segment_ids, input_mask):
    """ALBERT-like encoder for all documents at once -> (N, DIM) pooled feats."""
    n_docs = input_ids.shape[0]
    n_blocks = (n_docs + D_BLK - 1) // D_BLK
    n_pad = n_blocks * D_BLK
    pad = n_pad - n_docs
    if pad:
        input_ids = jnp.concatenate(
            [input_ids, jnp.zeros((pad, SEQ), input_ids.dtype)], axis=0)
        segment_ids = jnp.concatenate(
            [segment_ids, jnp.zeros((pad, SEQ), segment_ids.dtype)], axis=0)
        input_mask = jnp.concatenate(
            [input_mask, jnp.zeros((pad, SEQ), input_mask.dtype)], axis=0)

    # ---------------- embedding (glue, plain JAX) ----------------
    emb = (params["word_emb"][input_ids]
           + params["type_emb"][segment_ids]
           + params["pos_emb"][None, :, :])
    mu = jnp.mean(emb, axis=-1, keepdims=True)
    var = jnp.mean((emb - mu) ** 2, axis=-1, keepdims=True)
    emb = ((emb - mu) * jax.lax.rsqrt(var + LN_EPS)
           * params["emb_ln_g"] + params["emb_ln_b"]).astype(jnp.float32)

    add_mask = ((1.0 - input_mask.astype(jnp.float32)) * NEG_INF)[:, None, :]

    packed = _pack_weights(params)

    def const_spec(w):
        rank = w.ndim
        return pl.BlockSpec(w.shape, lambda i, r=rank: (0,) * r)

    weight_specs = [const_spec(w) for w in packed]
    # NOTE: at real ALBERT dims (~28 MB of weights) add
    # pipeline_mode=pl.Buffered(1) to these constant specs and keep them bf16
    # so the resident weight set fits v7x's 64 MiB VMEM.

    pooled = pl.pallas_call(
        albert_block_kernel,
        out_shape=jax.ShapeDtypeStruct((n_pad, DIM), jnp.float32),
        grid_spec=pltpu.PrefetchScalarGridSpec(
            num_scalar_prefetch=0,
            grid=(n_blocks,),
            in_specs=[
                pl.BlockSpec((D_BLK, SEQ, DIM), lambda i: (i, 0, 0)),
                pl.BlockSpec((D_BLK, 1, SEQ), lambda i: (i, 0, 0)),
            ] + weight_specs,
            out_specs=pl.BlockSpec((D_BLK, DIM), lambda i: (i, 0)),
        ),
        compiler_params=pltpu.CompilerParams(
            dimension_semantics=("parallel",),
            vmem_limit_bytes=32 * 1024 * 1024),
    )(emb, add_mask, *packed)

    return pooled[:n_docs]                              # (N, DIM)


# --------------------------- LRM_Albert.forward ---------------------------
def lrm_albert_forward(params, batch_data):
    max_n = max(len(bd["labels"]) for bd in batch_data)

    input_ids = jnp.concatenate([bd["input_ids"] for bd in batch_data], axis=0)
    segment_ids = jnp.concatenate([bd["segment_ids"] for bd in batch_data], axis=0)
    input_mask = jnp.concatenate([bd["input_mask"] for bd in batch_data], axis=0)

    feats = encode_docs(params, input_ids, segment_ids, input_mask)  # (N, DIM)

    features, labels, mask = [], [], []
    off = 0
    for bd in batch_data:
        n = bd["input_ids"].shape[0]
        f = feats[off:off + n]
        off += n
        pad = max_n - n
        f = jnp.concatenate(
            [f, jnp.zeros((pad, DIM), dtype=jnp.float32)], axis=0)
        features.append(f)
        labels.append(list(bd["labels"]) + [-10.0] * pad)
        mask.append([1.0] * n + [0.0] * pad)

    features = jnp.stack(features, axis=0)                     # (B, max_n, DIM)
    labels = jnp.asarray(labels, dtype=jnp.float32)            # (B, max_n)
    mask = jnp.asarray(mask, dtype=jnp.float32)                # (B, max_n)
    return features, labels, mask


# ------------------------------ param init ------------------------------
def init_params(key):
    keys = jax.random.split(key, 24)
    s = 0.02
    p = {
        "word_emb": jax.random.normal(keys[0], (VOCAB, DIM), jnp.float32) * s,
        "pos_emb": jax.random.normal(keys[1], (SEQ, DIM), jnp.float32) * s,
        "type_emb": jax.random.normal(keys[2], (2, DIM), jnp.float32) * s,
        "emb_ln_g": jnp.ones((1, DIM), jnp.float32),
        "emb_ln_b": jnp.zeros((1, DIM), jnp.float32),
        "wq": jax.random.normal(keys[3], (DIM, DIM), jnp.float32) * s,
        "bq": jnp.zeros((1, DIM), jnp.float32),
        "wk": jax.random.normal(keys[4], (DIM, DIM), jnp.float32) * s,
        "bk": jnp.zeros((1, DIM), jnp.float32),
        "wv": jax.random.normal(keys[5], (DIM, DIM), jnp.float32) * s,
        "bv": jnp.zeros((1, DIM), jnp.float32),
        "wo": jax.random.normal(keys[6], (DIM, DIM), jnp.float32) * s,
        "bo": jnp.zeros((1, DIM), jnp.float32),
        "ln1_g": jnp.ones((1, DIM), jnp.float32),
        "ln1_b": jnp.zeros((1, DIM), jnp.float32),
        "w1": jax.random.normal(keys[7], (DIM, FFN), jnp.float32) * s,
        "b1": jnp.zeros((1, FFN), jnp.float32),
        "w2": jax.random.normal(keys[8], (FFN, DIM), jnp.float32) * s,
        "b2": jnp.zeros((1, DIM), jnp.float32),
        "ln2_g": jnp.ones((1, DIM), jnp.float32),
        "ln2_b": jnp.zeros((1, DIM), jnp.float32),
        "wp": jax.random.normal(keys[9], (DIM, DIM), jnp.float32) * s,
        "bp": jnp.zeros((1, DIM), jnp.float32),
    }
    return p


def make_batch_data(key):
    """Synthetic tokenized candidate docs (stand-in for the AlbertTokenizer)."""
    batch_data = []
    num_nodes = [3, 2]                 # docs per batch item -> max_n = 3
    lengths = [[10, 7, 12], [9, 5]]    # valid token counts per doc
    k = key
    for b, n in enumerate(num_nodes):
        k, sub = jax.random.split(k)
        ids = jax.random.randint(sub, (n, SEQ), 0, VOCAB, dtype=jnp.int32)
        seg = jnp.zeros((n, SEQ), jnp.int32)
        msk = jnp.zeros((n, SEQ), jnp.int32)
        for d in range(n):
            L = lengths[b][d]
            seg = seg.at[d, L // 2:L].set(1)          # second segment
            msk = msk.at[d, :L].set(1)                # valid tokens
            ids = ids.at[d, L:].set(0)                # padding ids
        batch_data.append({
            "input_ids": ids,
            "segment_ids": seg,
            "input_mask": msk,
            "labels": [float((d + b) % 2) for d in range(n)],
        })
    return batch_data


if __name__ == "__main__":
    key = jax.random.PRNGKey(0)
    pkey, dkey = jax.random.split(key)
    params = init_params(pkey)
    batch_data = make_batch_data(dkey)

    features, labels, mask = lrm_albert_forward(params, batch_data)
    jax.block_until_ready(features)
    jax.block_until_ready(labels)
    jax.block_until_ready(mask)

    assert features.shape == (2, 3, DIM)
    assert labels.shape == (2, 3)
    assert mask.shape == (2, 3)
    assert bool(jnp.all(jnp.isfinite(features)))
    print("KERNEL_OK")
</pallas_src>

<mosaic_0001>
module attributes {stable_mosaic.version = 11 : i64} {
  func.func @albert_block_kernel(%arg0: i32, %arg1: memref<8x16x32xf32, #tpu.memory_space<vmem>>, %arg2: memref<8x1x16xf32, #tpu.memory_space<vmem>>, %arg3: memref<3x2x32x16xbf16, #tpu.memory_space<vmem>>, %arg4: memref<3x2x1x16xf32, #tpu.memory_space<vmem>>, %arg5: memref<2x16x32xbf16, #tpu.memory_space<vmem>>, %arg6: memref<7x32xf32, #tpu.memory_space<vmem>>, %arg7: memref<32x64xbf16, #tpu.memory_space<vmem>>, %arg8: memref<1x64xf32, #tpu.memory_space<vmem>>, %arg9: memref<64x32xbf16, #tpu.memory_space<vmem>>, %arg10: memref<32x32xbf16, #tpu.memory_space<vmem>>, %arg11: memref<8x32xf32, #tpu.memory_space<vmem>>) attributes {dimension_semantics = [#tpu.dimension_semantics<parallel>], iteration_bounds = array<i64: 1>, scalar_prefetch = 0 : i64, scratch_operands = 0 : i64, tpu.core_type = #tpu.core_type<tc>, window_params = [{transform_indices = @transform_0, window_bounds = array<i64: 8, 16, 32>}, {transform_indices = @transform_1, window_bounds = array<i64: 8, 1, 16>}, {pipeline_mode = #tpu.pipeline_mode<synchronous>, transform_indices = @transform_2, window_bounds = array<i64: 3, 2, 32, 16>}, {pipeline_mode = #tpu.pipeline_mode<synchronous>, transform_indices = @transform_3, window_bounds = array<i64: 3, 2, 1, 16>}, {pipeline_mode = #tpu.pipeline_mode<synchronous>, transform_indices = @transform_4, window_bounds = array<i64: 2, 16, 32>}, {pipeline_mode = #tpu.pipeline_mode<synchronous>, transform_indices = @transform_5, window_bounds = array<i64: 7, 32>}, {pipeline_mode = #tpu.pipeline_mode<synchronous>, transform_indices = @transform_6, window_bounds = array<i64: 32, 64>}, {pipeline_mode = #tpu.pipeline_mode<synchronous>, transform_indices = @transform_7, window_bounds = array<i64: 1, 64>}, {pipeline_mode = #tpu.pipeline_mode<synchronous>, transform_indices = @transform_8, window_bounds = array<i64: 64, 32>}, {pipeline_mode = #tpu.pipeline_mode<synchronous>, transform_indices = @transform_9, window_bounds = array<i64: 32, 32>}, {transform_indices = @transform_10, window_bounds = array<i64: 8, 32>}]} {
    %c0 = arith.constant 0 : index
    %c0_0 = arith.constant 0 : index
    %c0_1 = arith.constant 0 : index
    %0 = vector.load %arg1[%c0, %c0_0, %c0_1] : memref<8x16x32xf32, #tpu.memory_space<vmem>>, vector<8x16x32xf32>
    %1 = vector.shape_cast %0 : vector<8x16x32xf32> to vector<128x32xf32>
    %c0_2 = arith.constant 0 : index
    %c0_3 = arith.constant 0 : index
    %c0_4 = arith.constant 0 : index
    %2 = vector.load %arg2[%c0_2, %c0_3, %c0_4] : memref<8x1x16xf32, #tpu.memory_space<vmem>>, vector<8x1x16xf32>
    %c0_5 = arith.constant 0 : index
    %c0_6 = arith.constant 0 : index
    %c0_7 = arith.constant 0 : index
    %c0_8 = arith.constant 0 : index
    %3 = vector.load %arg3[%c0_5, %c0_6, %c0_7, %c0_8] : memref<3x2x32x16xbf16, #tpu.memory_space<vmem>>, vector<1x1x32x16xbf16>
    %4 = vector.shape_cast %3 : vector<1x1x32x16xbf16> to vector<32x16xbf16>
    %c0_9 = arith.constant 0 : index
    %c1 = arith.constant 1 : index
    %c0_10 = arith.constant 0 : index
    %c0_11 = arith.constant 0 : index
    %5 = vector.load %arg3[%c0_9, %c1, %c0_10, %c0_11] : memref<3x2x32x16xbf16, #tpu.memory_space<vmem>>, vector<1x1x32x16xbf16>
    %6 = vector.shape_cast %5 : vector<1x1x32x16xbf16> to vector<32x16xbf16>
    %c1_12 = arith.constant 1 : index
    %c0_13 = arith.constant 0 : index
    %c0_14 = arith.constant 0 : index
    %c0_15 = arith.constant 0 : index
    %7 = vector.load %arg3[%c1_12, %c0_13, %c0_14, %c0_15] : memref<3x2x32x16xbf16, #tpu.memory_space<vmem>>, vector<1x1x32x16xbf16>
    %8 = vector.shape_cast %7 : vector<1x1x32x16xbf16> to vector<32x16xbf16>
    %c1_16 = arith.constant 1 : index
    %c1_17 = arith.constant 1 : index
    %c0_18 = arith.constant 0 : index
    %c0_19 = arith.constant 0 : index
    %9 = vector.load %arg3[%c1_16, %c1_17, %c0_18, %c0_19] : memref<3x2x32x16xbf16, #tpu.memory_space<vmem>>, vector<1x1x32x16xbf16>
    %10 = vector.shape_cast %9 : vector<1x1x32x16xbf16> to vector<32x16xbf16>
    %c2 = arith.constant 2 : index
    %c0_20 = arith.constant 0 : index
    %c0_21 = arith.constant 0 : index
    %c0_22 = arith.constant 0 : index
    %11 = vector.load %arg3[%c2, %c0_20, %c0_21, %c0_22] : memref<3x2x32x16xbf16, #tpu.memory_space<vmem>>, vector<1x1x32x16xbf16>
    %12 = vector.shape_cast %11 : vector<1x1x32x16xbf16> to vector<32x16xbf16>
    %c2_23 = arith.constant 2 : index
    %c1_24 = arith.constant 1 : index
    %c0_25 = arith.constant 0 : index
    %c0_26 = arith.constant 0 : index
    %13 = vector.load %arg3[%c2_23, %c1_24, %c0_25, %c0_26] : memref<3x2x32x16xbf16, #tpu.memory_space<vmem>>, vector<1x1x32x16xbf16>
    %14 = vector.shape_cast %13 : vector<1x1x32x16xbf16> to vector<32x16xbf16>
    %c0_27 = arith.constant 0 : index
    %c0_28 = arith.constant 0 : index
    %c0_29 = arith.constant 0 : index
    %c0_30 = arith.constant 0 : index
    %15 = vector.load %arg4[%c0_27, %c0_28, %c0_29, %c0_30] : memref<3x2x1x16xf32, #tpu.memory_space<vmem>>, vector<1x1x1x16xf32>
    %16 = vector.shape_cast %15 : vector<1x1x1x16xf32> to vector<1x16xf32>
    %c0_31 = arith.constant 0 : index
    %c1_32 = arith.constant 1 : index
    %c0_33 = arith.constant 0 : index
    %c0_34 = arith.constant 0 : index
    %17 = vector.load %arg4[%c0_31, %c1_32, %c0_33, %c0_34] : memref<3x2x1x16xf32, #tpu.memory_space<vmem>>, vector<1x1x1x16xf32>
    %18 = vector.shape_cast %17 : vector<1x1x1x16xf32> to vector<1x16xf32>
    %c1_35 = arith.constant 1 : index
    %c0_36 = arith.constant 0 : index
    %c0_37 = arith.constant 0 : index
    %c0_38 = arith.constant 0 : index
    %19 = vector.load %arg4[%c1_35, %c0_36, %c0_37, %c0_38] : memref<3x2x1x16xf32, #tpu.memory_space<vmem>>, vector<1x1x1x16xf32>
    %20 = vector.shape_cast %19 : vector<1x1x1x16xf32> to vector<1x16xf32>
    %c1_39 = arith.constant 1 : index
    %c1_40 = arith.constant 1 : index
    %c0_41 = arith.constant 0 : index
    %c0_42 = arith.constant 0 : index
    %21 = vector.load %arg4[%c1_39, %c1_40, %c0_41, %c0_42] : memref<3x2x1x16xf32, #tpu.memory_space<vmem>>, vector<1x1x1x16xf32>
    %22 = vector.shape_cast %21 : vector<1x1x1x16xf32> to vector<1x16xf32>
    %c2_43 = arith.constant 2 : index
    %c0_44 = arith.constant 0 : index
    %c0_45 = arith.constant 0 : index
    %c0_46 = arith.constant 0 : index
    %23 = vector.load %arg4[%c2_43, %c0_44, %c0_45, %c0_46] : memref<3x2x1x16xf32, #tpu.memory_space<vmem>>, vector<1x1x1x16xf32>
    %24 = vector.shape_cast %23 : vector<1x1x1x16xf32> to vector<1x16xf32>
    %c2_47 = arith.constant 2 : index
    %c1_48 = arith.constant 1 : index
    %c0_49 = arith.constant 0 : index
    %c0_50 = arith.constant 0 : index
    %25 = vector.load %arg4[%c2_47, %c1_48, %c0_49, %c0_50] : memref<3x2x1x16xf32, #tpu.memory_space<vmem>>, vector<1x1x1x16xf32>
    %26 = vector.shape_cast %25 : vector<1x1x1x16xf32> to vector<1x16xf32>
    %c0_51 = arith.constant 0 : index
    %c0_52 = arith.constant 0 : index
    %c0_53 = arith.constant 0 : index
    %27 = vector.load %arg5[%c0_51, %c0_52, %c0_53] : memref<2x16x32xbf16, #tpu.memory_space<vmem>>, vector<1x16x32xbf16>
    %28 = vector.shape_cast %27 : vector<1x16x32xbf16> to vector<16x32xbf16>
    %c1_54 = arith.constant 1 : index
    %c0_55 = arith.constant 0 : index
    %c0_56 = arith.constant 0 : index
    %29 = vector.load %arg5[%c1_54, %c0_55, %c0_56] : memref<2x16x32xbf16, #tpu.memory_space<vmem>>, vector<1x16x32xbf16>
    %30 = vector.shape_cast %29 : vector<1x16x32xbf16> to vector<16x32xbf16>
    %c0_57 = arith.constant 0 : index
    %c0_58 = arith.constant 0 : index
    %31 = vector.load %arg6[%c0_57, %c0_58] : memref<7x32xf32, #tpu.memory_space<vmem>>, vector<7x32xf32>
    %32 = vector.extract_strided_slice %31 {offsets = [0, 0], sizes = [1, 32], strides = [1, 1]} : vector<7x32xf32> to vector<1x32xf32>
    %33 = vector.extract_strided_slice %31 {offsets = [1, 0], sizes = [1, 32], strides = [1, 1]} : vector<7x32xf32> to vector<1x32xf32>
    %34 = vector.extract_strided_slice %31 {offsets = [2, 0], sizes = [1, 32], strides = [1, 1]} : vector<7x32xf32> to vector<1x32xf32>
    %35 = vector.extract_strided_slice %31 {offsets = [3, 0], sizes = [1, 32], strides = [1, 1]} : vector<7x32xf32> to vector<1x32xf32>
    %36 = vector.extract_strided_slice %31 {offsets = [4, 0], sizes = [1, 32], strides = [1, 1]} : vector<7x32xf32> to vector<1x32xf32>
    %37 = vector.extract_strided_slice %31 {offsets = [5, 0], sizes = [1, 32], strides = [1, 1]} : vector<7x32xf32> to vector<1x32xf32>
    %38 = vector.extract_strided_slice %31 {offsets = [6, 0], sizes = [1, 32], strides = [1, 1]} : vector<7x32xf32> to vector<1x32xf32>
    %c0_59 = arith.constant 0 : index
    %c0_60 = arith.constant 0 : index
    %39 = vector.load %arg7[%c0_59, %c0_60] : memref<32x64xbf16, #tpu.memory_space<vmem>>, vector<32x64xbf16>
    %c0_61 = arith.constant 0 : index
    %c0_62 = arith.constant 0 : index
    %40 = vector.load %arg8[%c0_61, %c0_62] : memref<1x64xf32, #tpu.memory_space<vmem>>, vector<1x64xf32>
    %c0_63 = arith.constant 0 : index
    %c0_64 = arith.constant 0 : index
    %41 = vector.load %arg9[%c0_63, %c0_64] : memref<64x32xbf16, #tpu.memory_space<vmem>>, vector<64x32xbf16>
    %c0_65 = arith.constant 0 : index
    %c0_66 = arith.constant 0 : index
    %42 = vector.load %arg10[%c0_65, %c0_66] : memref<32x32xbf16, #tpu.memory_space<vmem>>, vector<32x32xbf16>
    %43 = arith.truncf %1 : vector<128x32xf32> to vector<128x32xbf16>
    %cst = arith.constant 0.000000e+00 : f32
    %44 = vector.broadcast %cst : f32 to vector<128x32xf32>
    %cst_67 = arith.constant dense<0.000000e+00> : vector<128x16xf32>
    %45 = tpu.matmul %43, %4, %cst_67 {dimension_numbers = #tpu.dot_dimension_numbers<[1], [0], [0], [1], [0, 0, 1, 1], [], []>} : vector<128x32xbf16>, vector<32x16xbf16>, vector<128x16xf32> -> vector<128x16xf32>
    %46 = vector.broadcast %16 : vector<1x16xf32> to vector<128x16xf32>
    %47 = arith.addf %45, %46 : vector<128x16xf32>
    %cst_68 = arith.constant dense<0.000000e+00> : vector<128x16xf32>
    %48 = tpu.matmul %43, %8, %cst_68 {dimension_numbers = #tpu.dot_dimension_numbers<[1], [0], [0], [1], [0, 0, 1, 1], [], []>} : vector<128x32xbf16>, vector<32x16xbf16>, vector<128x16xf32> -> vector<128x16xf32>
    %49 = vector.broadcast %20 : vector<1x16xf32> to vector<128x16xf32>
    %50 = arith.addf %48, %49 : vector<128x16xf32>
    %cst_69 = arith.constant dense<0.000000e+00> : vector<128x16xf32>
    %51 = tpu.matmul %43, %12, %cst_69 {dimension_numbers = #tpu.dot_dimension_numbers<[1], [0], [0], [1], [0, 0, 1, 1], [], []>} : vector<128x32xbf16>, vector<32x16xbf16>, vector<128x16xf32> -> vector<128x16xf32>
    %52 = vector.broadcast %24 : vector<1x16xf32> to vector<128x16xf32>
    %53 = arith.addf %51, %52 : vector<128x16xf32>
    %54 = vector.shape_cast %47 : vector<128x16xf32> to vector<8x16x16xf32>
    %55 = arith.truncf %54 : vector<8x16x16xf32> to vector<8x16x16xbf16>
    %56 = vector.shape_cast %50 : vector<128x16xf32> to vector<8x16x16xf32>
    %57 = arith.truncf %56 : vector<8x16x16xf32> to vector<8x16x16xbf16>
    %58 = vector.shape_cast %53 : vector<128x16xf32> to vector<8x16x16xf32>
    %59 = arith.truncf %58 : vector<8x16x16xf32> to vector<8x16x16xbf16>
    "tpu.trace_start"() <{level = 10 : i32, message = "bqd,bkd->bqk"}> : () -> ()
    %cst_70 = arith.constant dense<0.000000e+00> : vector<8x16x16xf32>
    %60 = tpu.matmul %55, %57, %cst_70 {dimension_numbers = #tpu.dot_dimension_numbers<[2], [2], [1], [1], [0, 0, 0, 1, 1, 1], [0], [0]>} : vector<8x16x16xbf16>, vector<8x16x16xbf16>, vector<8x16x16xf32> -> vector<8x16x16xf32>
    "tpu.trace_stop"() : () -> ()
    %cst_71 = arith.constant 2.500000e-01 : f32
    %61 = vector.broadcast %cst_71 : f32 to vector<8x16x16xf32>
    %62 = arith.mulf %60, %61 : vector<8x16x16xf32>
    %63 = vector.broadcast %2 : vector<8x1x16xf32> to vector<8x16x16xf32>
    %64 = arith.addf %62, %63 : vector<8x16x16xf32>
    %cst_72 = arith.constant dense<0xFF800000> : vector<8x16xf32>
    %65 = vector.multi_reduction <maximumf>, %64, %cst_72 [2] : vector<8x16x16xf32> to vector<8x16xf32>
    %cst_73 = arith.constant 0xFF800000 : f32
    %66 = vector.broadcast %cst_73 : f32 to vector<8x16xf32>
    %67 = arith.maximumf %66, %65 : vector<8x16xf32>
    %68 = vector.shape_cast %67 : vector<8x16xf32> to vector<8x16x1xf32>
    %69 = vector.broadcast %68 : vector<8x16x1xf32> to vector<8x16x16xf32>
    %70 = arith.subf %64, %69 : vector<8x16x16xf32>
    %71 = math.exp %70 : vector<8x16x16xf32>
    %cst_74 = arith.constant dense<0.000000e+00> : vector<8x16xf32>
    %72 = vector.multi_reduction <add>, %71, %cst_74 [2] : vector<8x16x16xf32> to vector<8x16xf32>
    %73 = vector.shape_cast %72 : vector<8x16xf32> to vector<8x16x1xf32>
    %74 = vector.broadcast %73 : vector<8x16x1xf32> to vector<8x16x16xf32>
    %75 = arith.divf %71, %74 : vector<8x16x16xf32>
    %76 = arith.truncf %75 : vector<8x16x16xf32> to vector<8x16x16xbf16>
    "tpu.trace_start"() <{level = 10 : i32, message = "bqk,bkd->bqd"}> : () -> ()
    %cst_75 = arith.constant dense<0.000000e+00> : vector<8x16x16xf32>
    %77 = tpu.matmul %76, %59, %cst_75 {dimension_numbers = #tpu.dot_dimension_numbers<[2], [1], [1], [2], [0, 0, 0, 1, 1, 2], [0], [0]>} : vector<8x16x16xbf16>, vector<8x16x16xbf16>, vector<8x16x16xf32> -> vector<8x16x16xf32>
    "tpu.trace_stop"() : () -> ()
    %78 = vector.shape_cast %77 : vector<8x16x16xf32> to vector<128x16xf32>
    %79 = arith.truncf %78 : vector<128x16xf32> to vector<128x16xbf16>
    %cst_76 = arith.constant dense<0.000000e+00> : vector<128x32xf32>
    %80 = tpu.matmul %79, %28, %cst_76 {dimension_numbers = #tpu.dot_dimension_numbers<[1], [0], [0], [1], [0, 0, 1, 1], [], []>} : vector<128x16xbf16>, vector<16x32xbf16>, vector<128x32xf32> -> vector<128x32xf32>
    %81 = arith.addf %44, %80 : vector<128x32xf32>
    %cst_77 = arith.constant dense<0.000000e+00> : vector<128x16xf32>
    %82 = tpu.matmul %43, %6, %cst_77 {dimension_numbers = #tpu.dot_dimension_numbers<[1], [0], [0], [1], [0, 0, 1, 1], [], []>} : vector<128x32xbf16>, vector<32x16xbf16>, vector<128x16xf32> -> vector<128x16xf32>
    %83 = vector.broadcast %18 : vector<1x16xf32> to vector<128x16xf32>
    %84 = arith.addf %82, %83 : vector<128x16xf32>
    %cst_78 = arith.constant dense<0.000000e+00> : vector<128x16xf32>
    %85 = tpu.matmul %43, %10, %cst_78 {dimension_numbers = #tpu.dot_dimension_numbers<[1], [0], [0], [1], [0, 0, 1, 1], [], []>} : vector<128x32xbf16>, vector<32x16xbf16>, vector<128x16xf32> -> vector<128x16xf32>
    %86 = vector.broadcast %22 : vector<1x16xf32> to vector<128x16xf32>
    %87 = arith.addf %85, %86 : vector<128x16xf32>
    %cst_79 = arith.constant dense<0.000000e+00> : vector<128x16xf32>
    %88 = tpu.matmul %43, %14, %cst_79 {dimension_numbers = #tpu.dot_dimension_numbers<[1], [0], [0], [1], [0, 0, 1, 1], [], []>} : vector<128x32xbf16>, vector<32x16xbf16>, vector<128x16xf32> -> vector<128x16xf32>
    %89 = vector.broadcast %26 : vector<1x16xf32> to vector<128x16xf32>
    %90 = arith.addf %88, %89 : vector<128x16xf32>
    %91 = vector.shape_cast %84 : vector<128x16xf32> to vector<8x16x16xf32>
    %92 = arith.truncf %91 : vector<8x16x16xf32> to vector<8x16x16xbf16>
    %93 = vector.shape_cast %87 : vector<128x16xf32> to vector<8x16x16xf32>
    %94 = arith.truncf %93 : vector<8x16x16xf32> to vector<8x16x16xbf16>
    %95 = vector.shape_cast %90 : vector<128x16xf32> to vector<8x16x16xf32>
    %96 = arith.truncf %95 : vector<8x16x16xf32> to vector<8x16x16xbf16>
    "tpu.trace_start"() <{level = 10 : i32, message = "bqd,bkd->bqk"}> : () -> ()
    %cst_80 = arith.constant dense<0.000000e+00> : vector<8x16x16xf32>
    %97 = tpu.matmul %92, %94, %cst_80 {dimension_numbers = #tpu.dot_dimension_numbers<[2], [2], [1], [1], [0, 0, 0, 1, 1, 1], [0], [0]>} : vector<8x16x16xbf16>, vector<8x16x16xbf16>, vector<8x16x16xf32> -> vector<8x16x16xf32>
    "tpu.trace_stop"() : () -> ()
    %cst_81 = arith.constant 2.500000e-01 : f32
    %98 = vector.broadcast %cst_81 : f32 to vector<8x16x16xf32>
    %99 = arith.mulf %97, %98 : vector<8x16x16xf32>
    %100 = vector.broadcast %2 : vector<8x1x16xf32> to vector<8x16x16xf32>
    %101 = arith.addf %99, %100 : vector<8x16x16xf32>
    %cst_82 = arith.constant dense<0xFF800000> : vector<8x16xf32>
    %102 = vector.multi_reduction <maximumf>, %101, %cst_82 [2] : vector<8x16x16xf32> to vector<8x16xf32>
    %cst_83 = arith.constant 0xFF800000 : f32
    %103 = vector.broadcast %cst_83 : f32 to vector<8x16xf32>
    %104 = arith.maximumf %103, %102 : vector<8x16xf32>
    %105 = vector.shape_cast %104 : vector<8x16xf32> to vector<8x16x1xf32>
    %106 = vector.broadcast %105 : vector<8x16x1xf32> to vector<8x16x16xf32>
    %107 = arith.subf %101, %106 : vector<8x16x16xf32>
    %108 = math.exp %107 : vector<8x16x16xf32>
    %cst_84 = arith.constant dense<0.000000e+00> : vector<8x16xf32>
    %109 = vector.multi_reduction <add>, %108, %cst_84 [2] : vector<8x16x16xf32> to vector<8x16xf32>
    %110 = vector.shape_cast %109 : vector<8x16xf32> to vector<8x16x1xf32>
    %111 = vector.broadcast %110 : vector<8x16x1xf32> to vector<8x16x16xf32>
    %112 = arith.divf %108, %111 : vector<8x16x16xf32>
    %113 = arith.truncf %112 : vector<8x16x16xf32> to vector<8x16x16xbf16>
    "tpu.trace_start"() <{level = 10 : i32, message = "bqk,bkd->bqd"}> : () -> ()
    %cst_85 = arith.constant dense<0.000000e+00> : vector<8x16x16xf32>
    %114 = tpu.matmul %113, %96, %cst_85 {dimension_numbers = #tpu.dot_dimension_numbers<[2], [1], [1], [2], [0, 0, 0, 1, 1, 2], [0], [0]>} : vector<8x16x16xbf16>, vector<8x16x16xbf16>, vector<8x16x16xf32> -> vector<8x16x16xf32>
    "tpu.trace_stop"() : () -> ()
    %115 = vector.shape_cast %114 : vector<8x16x16xf32> to vector<128x16xf32>
    %116 = arith.truncf %115 : vector<128x16xf32> to vector<128x16xbf16>
    %cst_86 = arith.constant dense<0.000000e+00> : vector<128x32xf32>
    %117 = tpu.matmul %116, %30, %cst_86 {dimension_numbers = #tpu.dot_dimension_numbers<[1], [0], [0], [1], [0, 0, 1, 1], [], []>} : vector<128x16xbf16>, vector<16x32xbf16>, vector<128x32xf32> -> vector<128x32xf32>
    %118 = arith.addf %81, %117 : vector<128x32xf32>
    %119 = arith.addf %1, %118 : vector<128x32xf32>
    %120 = vector.broadcast %32 : vector<1x32xf32> to vector<128x32xf32>
    %121 = arith.addf %119, %120 : vector<128x32xf32>
    %cst_87 = arith.constant dense<0.000000e+00> : vector<128xf32>
    %122 = vector.multi_reduction <add>, %121, %cst_87 [1] : vector<128x32xf32> to vector<128xf32>
    %123 = vector.shape_cast %122 : vector<128xf32> to vector<128x1xf32>
    %cst_88 = arith.constant 3.200000e+01 : f32
    %124 = vector.broadcast %cst_88 : f32 to vector<128x1xf32>
    %125 = arith.divf %123, %124 : vector<128x1xf32>
    %126 = vector.broadcast %125 : vector<128x1xf32> to vector<128x32xf32>
    %127 = arith.subf %121, %126 : vector<128x32xf32>
    %128 = arith.mulf %127, %127 : vector<128x32xf32>
    %cst_89 = arith.constant dense<0.000000e+00> : vector<128xf32>
    %129 = vector.multi_reduction <add>, %128, %cst_89 [1] : vector<128x32xf32> to vector<128xf32>
    %130 = vector.shape_cast %129 : vector<128xf32> to vector<128x1xf32>
    %cst_90 = arith.constant 3.200000e+01 : f32
    %131 = vector.broadcast %cst_90 : f32 to vector<128x1xf32>
    %132 = arith.divf %130, %131 : vector<128x1xf32>
    %133 = vector.broadcast %125 : vector<128x1xf32> to vector<128x32xf32>
    %134 = arith.subf %121, %133 : vector<128x32xf32>
    %cst_91 = arith.constant 9.99999996E-13 : f32
    %135 = vector.broadcast %cst_91 : f32 to vector<128x1xf32>
    %136 = arith.addf %132, %135 : vector<128x1xf32>
    %137 = math.rsqrt %136 : vector<128x1xf32>
    %138 = vector.broadcast %137 : vector<128x1xf32> to vector<128x32xf32>
    %139 = arith.mulf %134, %138 : vector<128x32xf32>
    %140 = vector.broadcast %33 : vector<1x32xf32> to vector<128x32xf32>
    %141 = arith.mulf %139, %140 : vector<128x32xf32>
    %142 = vector.broadcast %34 : vector<1x32xf32> to vector<128x32xf32>
    %143 = arith.addf %141, %142 : vector<128x32xf32>
    %144 = arith.truncf %143 : vector<128x32xf32> to vector<128x32xbf16>
    %cst_92 = arith.constant dense<0.000000e+00> : vector<128x64xf32>
    %145 = tpu.matmul %144, %39, %cst_92 {dimension_numbers = #tpu.dot_dimension_numbers<[1], [0], [0], [1], [0, 0, 1, 1], [], []>} : vector<128x32xbf16>, vector<32x64xbf16>, vector<128x64xf32> -> vector<128x64xf32>
    %146 = vector.broadcast %40 : vector<1x64xf32> to vector<128x64xf32>
    %147 = arith.addf %145, %146 : vector<128x64xf32>
    %148 = arith.mulf %147, %147 : vector<128x64xf32>
    %149 = arith.mulf %147, %148 : vector<128x64xf32>
    %cst_93 = arith.constant 4.471500e-02 : f32
    %150 = vector.broadcast %cst_93 : f32 to vector<128x64xf32>
    %151 = arith.mulf %150, %149 : vector<128x64xf32>
    %152 = arith.addf %147, %151 : vector<128x64xf32>
    %cst_94 = arith.constant 0.797884583 : f32
    %153 = vector.broadcast %cst_94 : f32 to vector<128x64xf32>
    %154 = arith.mulf %153, %152 : vector<128x64xf32>
    %155 = math.tanh %154 : vector<128x64xf32>
    %cst_95 = arith.constant 1.000000e+00 : f32
    %156 = vector.broadcast %cst_95 : f32 to vector<128x64xf32>
    %157 = arith.addf %156, %155 : vector<128x64xf32>
    %cst_96 = arith.constant 5.000000e-01 : f32
    %158 = vector.broadcast %cst_96 : f32 to vector<128x64xf32>
    %159 = arith.mulf %158, %157 : vector<128x64xf32>
    %160 = arith.mulf %147, %159 : vector<128x64xf32>
    %161 = arith.truncf %160 : vector<128x64xf32> to vector<128x64xbf16>
    %cst_97 = arith.constant dense<0.000000e+00> : vector<128x32xf32>
    %162 = tpu.matmul %161, %41, %cst_97 {dimension_numbers = #tpu.dot_dimension_numbers<[1], [0], [0], [1], [0, 0, 1, 1], [], []>} : vector<128x64xbf16>, vector<64x32xbf16>, vector<128x32xf32> -> vector<128x32xf32>
    %163 = vector.broadcast %35 : vector<1x32xf32> to vector<128x32xf32>
    %164 = arith.addf %162, %163 : vector<128x32xf32>
    %165 = arith.addf %143, %164 : vector<128x32xf32>
    %cst_98 = arith.constant dense<0.000000e+00> : vector<128xf32>
    %166 = vector.multi_reduction <add>, %165, %cst_98 [1] : vector<128x32xf32> to vector<128xf32>
    %167 = vector.shape_cast %166 : vector<128xf32> to vector<128x1xf32>
    %cst_99 = arith.constant 3.200000e+01 : f32
    %168 = vector.broadcast %cst_99 : f32 to vector<128x1xf32>
    %169 = arith.divf %167, %168 : vector<128x1xf32>
    %170 = vector.broadcast %169 : vector<128x1xf32> to vector<128x32xf32>
    %171 = arith.subf %165, %170 : vector<128x32xf32>
    %172 = arith.mulf %171, %171 : vector<128x32xf32>
    %cst_100 = arith.constant dense<0.000000e+00> : vector<128xf32>
    %173 = vector.multi_reduction <add>, %172, %cst_100 [1] : vector<128x32xf32> to vector<128xf32>
    %174 = vector.shape_cast %173 : vector<128xf32> to vector<128x1xf32>
    %cst_101 = arith.constant 3.200000e+01 : f32
    %175 = vector.broadcast %cst_101 : f32 to vector<128x1xf32>
    %176 = arith.divf %174, %175 : vector<128x1xf32>
    %177 = vector.broadcast %169 : vector<128x1xf32> to vector<128x32xf32>
    %178 = arith.subf %165, %177 : vector<128x32xf32>
    %cst_102 = arith.constant 9.99999996E-13 : f32
    %179 = vector.broadcast %cst_102 : f32 to vector<128x1xf32>
    %180 = arith.addf %176, %179 : vector<128x1xf32>
    %181 = math.rsqrt %180 : vector<128x1xf32>
    %182 = vector.broadcast %181 : vector<128x1xf32> to vector<128x32xf32>
    %183 = arith.mulf %178, %182 : vector<128x32xf32>
    %184 = vector.broadcast %36 : vector<1x32xf32> to vector<128x32xf32>
    %185 = arith.mulf %183, %184 : vector<128x32xf32>
    %186 = vector.broadcast %37 : vector<1x32xf32> to vector<128x32xf32>
    %187 = arith.addf %185, %186 : vector<128x32xf32>
    %188 = arith.truncf %187 : vector<128x32xf32> to vector<128x32xbf16>
    %cst_103 = arith.constant 0.000000e+00 : f32
    %189 = vector.broadcast %cst_103 : f32 to vector<128x32xf32>
    %cst_104 = arith.constant dense<0.000000e+00> : vector<128x16xf32>
    %190 = tpu.matmul %188, %4, %cst_104 {dimension_numbers = #tpu.dot_dimension_numbers<[1], [0], [0], [1], [0, 0, 1, 1], [], []>} : vector<128x32xbf16>, vector<32x16xbf16>, vector<128x16xf32> -> vector<128x16xf32>
    %191 = vector.broadcast %16 : vector<1x16xf32> to vector<128x16xf32>
    %192 = arith.addf %190, %191 : vector<128x16xf32>
    %cst_105 = arith.constant dense<0.000000e+00> : vector<128x16xf32>
    %193 = tpu.matmul %188, %8, %cst_105 {dimension_numbers = #tpu.dot_dimension_numbers<[1], [0], [0], [1], [0, 0, 1, 1], [], []>} : vector<128x32xbf16>, vector<32x16xbf16>, vector<128x16xf32> -> vector<128x16xf32>
    %194 = vector.broadcast %20 : vector<1x16xf32> to vector<128x16xf32>
    %195 = arith.addf %193, %194 : vector<128x16xf32>
    %cst_106 = arith.constant dense<0.000000e+00> : vector<128x16xf32>
    %196 = tpu.matmul %188, %12, %cst_106 {dimension_numbers = #tpu.dot_dimension_numbers<[1], [0], [0], [1], [0, 0, 1, 1], [], []>} : vector<128x32xbf16>, vector<32x16xbf16>, vector<128x16xf32> -> vector<128x16xf32>
    %197 = vector.broadcast %24 : vector<1x16xf32> to vector<128x16xf32>
    %198 = arith.addf %196, %197 : vector<128x16xf32>
    %199 = vector.shape_cast %192 : vector<128x16xf32> to vector<8x16x16xf32>
    %200 = arith.truncf %199 : vector<8x16x16xf32> to vector<8x16x16xbf16>
    %201 = vector.shape_cast %195 : vector<128x16xf32> to vector<8x16x16xf32>
    %202 = arith.truncf %201 : vector<8x16x16xf32> to vector<8x16x16xbf16>
    %203 = vector.shape_cast %198 : vector<128x16xf32> to vector<8x16x16xf32>
    %204 = arith.truncf %203 : vector<8x16x16xf32> to vector<8x16x16xbf16>
    "tpu.trace_start"() <{level = 10 : i32, message = "bqd,bkd->bqk"}> : () -> ()
    %cst_107 = arith.constant dense<0.000000e+00> : vector<8x16x16xf32>
    %205 = tpu.matmul %200, %202, %cst_107 {dimension_numbers = #tpu.dot_dimension_numbers<[2], [2], [1], [1], [0, 0, 0, 1, 1, 1], [0], [0]>} : vector<8x16x16xbf16>, vector<8x16x16xbf16>, vector<8x16x16xf32> -> vector<8x16x16xf32>
    "tpu.trace_stop"() : () -> ()
    %cst_108 = arith.constant 2.500000e-01 : f32
    %206 = vector.broadcast %cst_108 : f32 to vector<8x16x16xf32>
    %207 = arith.mulf %205, %206 : vector<8x16x16xf32>
    %208 = vector.broadcast %2 : vector<8x1x16xf32> to vector<8x16x16xf32>
    %209 = arith.addf %207, %208 : vector<8x16x16xf32>
    %cst_109 = arith.constant dense<0xFF800000> : vector<8x16xf32>
    %210 = vector.multi_reduction <maximumf>, %209, %cst_109 [2] : vector<8x16x16xf32> to vector<8x16xf32>
    %cst_110 = arith.constant 0xFF800000 : f32
    %211 = vector.broadcast %cst_110 : f32 to vector<8x16xf32>
    %212 = arith.maximumf %211, %210 : vector<8x16xf32>
    %213 = vector.shape_cast %212 : vector<8x16xf32> to vector<8x16x1xf32>
    %214 = vector.broadcast %213 : vector<8x16x1xf32> to vector<8x16x16xf32>
    %215 = arith.subf %209, %214 : vector<8x16x16xf32>
    %216 = math.exp %215 : vector<8x16x16xf32>
    %cst_111 = arith.constant dense<0.000000e+00> : vector<8x16xf32>
    %217 = vector.multi_reduction <add>, %216, %cst_111 [2] : vector<8x16x16xf32> to vector<8x16xf32>
    %218 = vector.shape_cast %217 : vector<8x16xf32> to vector<8x16x1xf32>
    %219 = vector.broadcast %218 : vector<8x16x1xf32> to vector<8x16x16xf32>
    %220 = arith.divf %216, %219 : vector<8x16x16xf32>
    %221 = arith.truncf %220 : vector<8x16x16xf32> to vector<8x16x16xbf16>
    "tpu.trace_start"() <{level = 10 : i32, message = "bqk,bkd->bqd"}> : () -> ()
    %cst_112 = arith.constant dense<0.000000e+00> : vector<8x16x16xf32>
    %222 = tpu.matmul %221, %204, %cst_112 {dimension_numbers = #tpu.dot_dimension_numbers<[2], [1], [1], [2], [0, 0, 0, 1, 1, 2], [0], [0]>} : vector<8x16x16xbf16>, vector<8x16x16xbf16>, vector<8x16x16xf32> -> vector<8x16x16xf32>
    "tpu.trace_stop"() : () -> ()
    %223 = vector.shape_cast %222 : vector<8x16x16xf32> to vector<128x16xf32>
    %224 = arith.truncf %223 : vector<128x16xf32> to vector<128x16xbf16>
    %cst_113 = arith.constant dense<0.000000e+00> : vector<128x32xf32>
    %225 = tpu.matmul %224, %28, %cst_113 {dimension_numbers = #tpu.dot_dimension_numbers<[1], [0], [0], [1], [0, 0, 1, 1], [], []>} : vector<128x16xbf16>, vector<16x32xbf16>, vector<128x32xf32> -> vector<128x32xf32>
    %226 = arith.addf %189, %225 : vector<128x32xf32>
    %cst_114 = arith.constant dense<0.000000e+00> : vector<128x16xf32>
    %227 = tpu.matmul %188, %6, %cst_114 {dimension_numbers = #tpu.dot_dimension_numbers<[1], [0], [0], [1], [0, 0, 1, 1], [], []>} : vector<128x32xbf16>, vector<32x16xbf16>, vector<128x16xf32> -> vector<128x16xf32>
    %228 = vector.broadcast %18 : vector<1x16xf32> to vector<128x16xf32>
    %229 = arith.addf %227, %228 : vector<128x16xf32>
    %cst_115 = arith.constant dense<0.000000e+00> : vector<128x16xf32>
    %230 = tpu.matmul %188, %10, %cst_115 {dimension_numbers = #tpu.dot_dimension_numbers<[1], [0], [0], [1], [0, 0, 1, 1], [], []>} : vector<128x32xbf16>, vector<32x16xbf16>, vector<128x16xf32> -> vector<128x16xf32>
    %231 = vector.broadcast %22 : vector<1x16xf32> to vector<128x16xf32>
    %232 = arith.addf %230, %231 : vector<128x16xf32>
    %cst_116 = arith.constant dense<0.000000e+00> : vector<128x16xf32>
    %233 = tpu.matmul %188, %14, %cst_116 {dimension_numbers = #tpu.dot_dimension_numbers<[1], [0], [0], [1], [0, 0, 1, 1], [], []>} : vector<128x32xbf16>, vector<32x16xbf16>, vector<128x16xf32> -> vector<128x16xf32>
    %234 = vector.broadcast %26 : vector<1x16xf32> to vector<128x16xf32>
    %235 = arith.addf %233, %234 : vector<128x16xf32>
    %236 = vector.shape_cast %229 : vector<128x16xf32> to vector<8x16x16xf32>
    %237 = arith.truncf %236 : vector<8x16x16xf32> to vector<8x16x16xbf16>
    %238 = vector.shape_cast %232 : vector<128x16xf32> to vector<8x16x16xf32>
    %239 = arith.truncf %238 : vector<8x16x16xf32> to vector<8x16x16xbf16>
    %240 = vector.shape_cast %235 : vector<128x16xf32> to vector<8x16x16xf32>
    %241 = arith.truncf %240 : vector<8x16x16xf32> to vector<8x16x16xbf16>
    "tpu.trace_start"() <{level = 10 : i32, message = "bqd,bkd->bqk"}> : () -> ()
    %cst_117 = arith.constant dense<0.000000e+00> : vector<8x16x16xf32>
    %242 = tpu.matmul %237, %239, %cst_117 {dimension_numbers = #tpu.dot_dimension_numbers<[2], [2], [1], [1], [0, 0, 0, 1, 1, 1], [0], [0]>} : vector<8x16x16xbf16>, vector<8x16x16xbf16>, vector<8x16x16xf32> -> vector<8x16x16xf32>
    "tpu.trace_stop"() : () -> ()
    %cst_118 = arith.constant 2.500000e-01 : f32
    %243 = vector.broadcast %cst_118 : f32 to vector<8x16x16xf32>
    %244 = arith.mulf %242, %243 : vector<8x16x16xf32>
    %245 = vector.broadcast %2 : vector<8x1x16xf32> to vector<8x16x16xf32>
    %246 = arith.addf %244, %245 : vector<8x16x16xf32>
    %cst_119 = arith.constant dense<0xFF800000> : vector<8x16xf32>
    %247 = vector.multi_reduction <maximumf>, %246, %cst_119 [2] : vector<8x16x16xf32> to vector<8x16xf32>
    %cst_120 = arith.constant 0xFF800000 : f32
    %248 = vector.broadcast %cst_120 : f32 to vector<8x16xf32>
    %249 = arith.maximumf %248, %247 : vector<8x16xf32>
    %250 = vector.shape_cast %249 : vector<8x16xf32> to vector<8x16x1xf32>
    %251 = vector.broadcast %250 : vector<8x16x1xf32> to vector<8x16x16xf32>
    %252 = arith.subf %246, %251 : vector<8x16x16xf32>
    %253 = math.exp %252 : vector<8x16x16xf32>
    %cst_121 = arith.constant dense<0.000000e+00> : vector<8x16xf32>
    %254 = vector.multi_reduction <add>, %253, %cst_121 [2] : vector<8x16x16xf32> to vector<8x16xf32>
    %255 = vector.shape_cast %254 : vector<8x16xf32> to vector<8x16x1xf32>
    %256 = vector.broadcast %255 : vector<8x16x1xf32> to vector<8x16x16xf32>
    %257 = arith.divf %253, %256 : vector<8x16x16xf32>
    %258 = arith.truncf %257 : vector<8x16x16xf32> to vector<8x16x16xbf16>
    "tpu.trace_start"() <{level = 10 : i32, message = "bqk,bkd->bqd"}> : () -> ()
    %cst_122 = arith.constant dense<0.000000e+00> : vector<8x16x16xf32>
    %259 = tpu.matmul %258, %241, %cst_122 {dimension_numbers = #tpu.dot_dimension_numbers<[2], [1], [1], [2], [0, 0, 0, 1, 1, 2], [0], [0]>} : vector<8x16x16xbf16>, vector<8x16x16xbf16>, vector<8x16x16xf32> -> vector<8x16x16xf32>
    "tpu.trace_stop"() : () -> ()
    %260 = vector.shape_cast %259 : vector<8x16x16xf32> to vector<128x16xf32>
    %261 = arith.truncf %260 : vector<128x16xf32> to vector<128x16xbf16>
    %cst_123 = arith.constant dense<0.000000e+00> : vector<128x32xf32>
    %262 = tpu.matmul %261, %30, %cst_123 {dimension_numbers = #tpu.dot_dimension_numbers<[1], [0], [0], [1], [0, 0, 1, 1], [], []>} : vector<128x16xbf16>, vector<16x32xbf16>, vector<128x32xf32> -> vector<128x32xf32>
    %263 = arith.addf %226, %262 : vector<128x32xf32>
    %264 = arith.addf %187, %263 : vector<128x32xf32>
    %265 = vector.broadcast %32 : vector<1x32xf32> to vector<128x32xf32>
    %266 = arith.addf %264, %265 : vector<128x32xf32>
    %cst_124 = arith.constant dense<0.000000e+00> : vector<128xf32>
    %267 = vector.multi_reduction <add>, %266, %cst_124 [1] : vector<128x32xf32> to vector<128xf32>
    %268 = vector.shape_cast %267 : vector<128xf32> to vector<128x1xf32>
    %cst_125 = arith.constant 3.200000e+01 : f32
    %269 = vector.broadcast %cst_125 : f32 to vector<128x1xf32>
    %270 = arith.divf %268, %269 : vector<128x1xf32>
    %271 = vector.broadcast %270 : vector<128x1xf32> to vector<128x32xf32>
    %272 = arith.subf %266, %271 : vector<128x32xf32>
    %273 = arith.mulf %272, %272 : vector<128x32xf32>
    %cst_126 = arith.constant dense<0.000000e+00> : vector<128xf32>
    %274 = vector.multi_reduction <add>, %273, %cst_126 [1] : vector<128x32xf32> to vector<128xf32>
    %275 = vector.shape_cast %274 : vector<128xf32> to vector<128x1xf32>
    %cst_127 = arith.constant 3.200000e+01 : f32
    %276 = vector.broadcast %cst_127 : f32 to vector<128x1xf32>
    %277 = arith.divf %275, %276 : vector<128x1xf32>
    %278 = vector.broadcast %270 : vector<128x1xf32> to vector<128x32xf32>
    %279 = arith.subf %266, %278 : vector<128x32xf32>
    %cst_128 = arith.constant 9.99999996E-13 : f32
    %280 = vector.broadcast %cst_128 : f32 to vector<128x1xf32>
    %281 = arith.addf %277, %280 : vector<128x1xf32>
    %282 = math.rsqrt %281 : vector<128x1xf32>
    %283 = vector.broadcast %282 : vector<128x1xf32> to vector<128x32xf32>
    %284 = arith.mulf %279, %283 : vector<128x32xf32>
    %285 = vector.broadcast %33 : vector<1x32xf32> to vector<128x32xf32>
    %286 = arith.mulf %284, %285 : vector<128x32xf32>
    %287 = vector.broadcast %34 : vector<1x32xf32> to vector<128x32xf32>
    %288 = arith.addf %286, %287 : vector<128x32xf32>
    %289 = arith.truncf %288 : vector<128x32xf32> to vector<128x32xbf16>
    %cst_129 = arith.constant dense<0.000000e+00> : vector<128x64xf32>
    %290 = tpu.matmul %289, %39, %cst_129 {dimension_numbers = #tpu.dot_dimension_numbers<[1], [0], [0], [1], [0, 0, 1, 1], [], []>} : vector<128x32xbf16>, vector<32x64xbf16>, vector<128x64xf32> -> vector<128x64xf32>
    %291 = vector.broadcast %40 : vector<1x64xf32> to vector<128x64xf32>
    %292 = arith.addf %290, %291 : vector<128x64xf32>
    %293 = arith.mulf %292, %292 : vector<128x64xf32>
    %294 = arith.mulf %292, %293 : vector<128x64xf32>
    %cst_130 = arith.constant 4.471500e-02 : f32
    %295 = vector.broadcast %cst_130 : f32 to vector<128x64xf32>
    %296 = arith.mulf %295, %294 : vector<128x64xf32>
    %297 = arith.addf %292, %296 : vector<128x64xf32>
    %cst_131 = arith.constant 0.797884583 : f32
    %298 = vector.broadcast %cst_131 : f32 to vector<128x64xf32>
    %299 = arith.mulf %298, %297 : vector<128x64xf32>
    %300 = math.tanh %299 : vector<128x64xf32>
    %cst_132 = arith.constant 1.000000e+00 : f32
    %301 = vector.broadcast %cst_132 : f32 to vector<128x64xf32>
    %302 = arith.addf %301, %300 : vector<128x64xf32>
    %cst_133 = arith.constant 5.000000e-01 : f32
    %303 = vector.broadcast %cst_133 : f32 to vector<128x64xf32>
    %304 = arith.mulf %303, %302 : vector<128x64xf32>
    %305 = arith.mulf %292, %304 : vector<128x64xf32>
    %306 = arith.truncf %305 : vector<128x64xf32> to vector<128x64xbf16>
    %cst_134 = arith.constant dense<0.000000e+00> : vector<128x32xf32>
    %307 = tpu.matmul %306, %41, %cst_134 {dimension_numbers = #tpu.dot_dimension_numbers<[1], [0], [0], [1], [0, 0, 1, 1], [], []>} : vector<128x64xbf16>, vector<64x32xbf16>, vector<128x32xf32> -> vector<128x32xf32>
    %308 = vector.broadcast %35 : vector<1x32xf32> to vector<128x32xf32>
    %309 = arith.addf %307, %308 : vector<128x32xf32>
    %310 = arith.addf %288, %309 : vector<128x32xf32>
    %cst_135 = arith.constant dense<0.000000e+00> : vector<128xf32>
    %311 = vector.multi_reduction <add>, %310, %cst_135 [1] : vector<128x32xf32> to vector<128xf32>
    %312 = vector.shape_cast %311 : vector<128xf32> to vector<128x1xf32>
    %cst_136 = arith.constant 3.200000e+01 : f32
    %313 = vector.broadcast %cst_136 : f32 to vector<128x1xf32>
    %314 = arith.divf %312, %313 : vector<128x1xf32>
    %315 = vector.broadcast %314 : vector<128x1xf32> to vector<128x32xf32>
    %316 = arith.subf %310, %315 : vector<128x32xf32>
    %317 = arith.mulf %316, %316 : vector<128x32xf32>
    %cst_137 = arith.constant dense<0.000000e+00> : vector<128xf32>
    %318 = vector.multi_reduction <add>, %317, %cst_137 [1] : vector<128x32xf32> to vector<128xf32>
    %319 = vector.shape_cast %318 : vector<128xf32> to vector<128x1xf32>
    %cst_138 = arith.constant 3.200000e+01 : f32
    %320 = vector.broadcast %cst_138 : f32 to vector<128x1xf32>
    %321 = arith.divf %319, %320 : vector<128x1xf32>
    %322 = vector.broadcast %314 : vector<128x1xf32> to vector<128x32xf32>
    %323 = arith.subf %310, %322 : vector<128x32xf32>
    %cst_139 = arith.constant 9.99999996E-13 : f32
    %324 = vector.broadcast %cst_139 : f32 to vector<128x1xf32>
    %325 = arith.addf %321, %324 : vector<128x1xf32>
    %326 = math.rsqrt %325 : vector<128x1xf32>
    %327 = vector.broadcast %326 : vector<128x1xf32> to vector<128x32xf32>
    %328 = arith.mulf %323, %327 : vector<128x32xf32>
    %329 = vector.broadcast %36 : vector<1x32xf32> to vector<128x32xf32>
    %330 = arith.mulf %328, %329 : vector<128x32xf32>
    %331 = vector.broadcast %37 : vector<1x32xf32> to vector<128x32xf32>
    %332 = arith.addf %330, %331 : vector<128x32xf32>
    %333 = tpu.iota {dimensions = array<i32: 0>} : vector<8x128xi32>
    %334 = tpu.iota {dimensions = array<i32: 1>} : vector<8x128xi32>
    %c16_i32 = arith.constant 16 : i32
    %335 = vector.broadcast %c16_i32 : i32 to vector<8x128xi32>
    %336 = arith.muli %333, %335 : vector<8x128xi32>
    %337 = arith.cmpi eq, %334, %336 : vector<8x128xi32>
    %338 = arith.extui %337 : vector<8x128xi1> to vector<8x128xi32>
    %339 = arith.sitofp %338 : vector<8x128xi32> to vector<8x128xf32>
    %340 = arith.truncf %339 : vector<8x128xf32> to vector<8x128xbf16>
    %341 = arith.truncf %332 : vector<128x32xf32> to vector<128x32xbf16>
    %cst_140 = arith.constant dense<0.000000e+00> : vector<8x32xf32>
    %342 = tpu.matmul %340, %341, %cst_140 {dimension_numbers = #tpu.dot_dimension_numbers<[1], [0], [0], [1], [0, 0, 1, 1], [], []>} : vector<8x128xbf16>, vector<128x32xbf16>, vector<8x32xf32> -> vector<8x32xf32>
    %343 = arith.truncf %342 : vector<8x32xf32> to vector<8x32xbf16>
    %cst_141 = arith.constant dense<0.000000e+00> : vector<8x32xf32>
    %344 = tpu.matmul %343, %42, %cst_141 {dimension_numbers = #tpu.dot_dimension_numbers<[1], [0], [0], [1], [0, 0, 1, 1], [], []>} : vector<8x32xbf16>, vector<32x32xbf16>, vector<8x32xf32> -> vector<8x32xf32>
    %345 = vector.broadcast %38 : vector<1x32xf32> to vector<8x32xf32>
    %346 = arith.addf %344, %345 : vector<8x32xf32>
    %347 = math.tanh %346 : vector<8x32xf32>
    %c0_142 = arith.constant 0 : index
    %c0_143 = arith.constant 0 : index
    %348 = vector.load %arg11[%c0_142, %c0_143] : memref<8x32xf32, #tpu.memory_space<vmem>>, vector<8x32xf32>
    tpu.vector_store %arg11[%c0_142, %c0_143], %347 {strides = array<i32>} : memref<8x32xf32, #tpu.memory_space<vmem>>, vector<8x32xf32>,
    return
  }
  func.func @transform_0(%arg0: i32) -> (i32, i32, i32) {
    %c0_i32 = arith.constant 0 : i32
    %c0_i32_0 = arith.constant 0 : i32
    %c0_i32_1 = arith.constant 0 : i32
    return %arg0, %c0_i32, %c0_i32_0 : i32, i32, i32
  }
  func.func @transform_1(%arg0: i32) -> (i32, i32, i32) {
    %c0_i32 = arith.constant 0 : i32
    %c0_i32_0 = arith.constant 0 : i32
    %c0_i32_1 = arith.constant 0 : i32
    return %arg0, %c0_i32, %c0_i32_0 : i32, i32, i32
  }
  func.func @transform_2(%arg0: i32) -> (i32, i32, i32, i32) {
    %c0_i32 = arith.constant 0 : i32
    %c0_i32_0 = arith.constant 0 : i32
    %c0_i32_1 = arith.constant 0 : i32
    %c0_i32_2 = arith.constant 0 : i32
    %c0_i32_3 = arith.constant 0 : i32
    return %c0_i32, %c0_i32_0, %c0_i32_1, %c0_i32_2 : i32, i32, i32, i32
  }
  func.func @transform_3(%arg0: i32) -> (i32, i32, i32, i32) {
    %c0_i32 = arith.constant 0 : i32
    %c0_i32_0 = arith.constant 0 : i32
    %c0_i32_1 = arith.constant 0 : i32
    %c0_i32_2 = arith.constant 0 : i32
    %c0_i32_3 = arith.constant 0 : i32
    return %c0_i32, %c0_i32_0, %c0_i32_1, %c0_i32_2 : i32, i32, i32, i32
  }
  func.func @transform_4(%arg0: i32) -> (i32, i32, i32) {
    %c0_i32 = arith.constant 0 : i32
    %c0_i32_0 = arith.constant 0 : i32
    %c0_i32_1 = arith.constant 0 : i32
    %c0_i32_2 = arith.constant 0 : i32
    return %c0_i32, %c0_i32_0, %c0_i32_1 : i32, i32, i32
  }
  func.func @transform_5(%arg0: i32) -> (i32, i32) {
    %c0_i32 = arith.constant 0 : i32
    %c0_i32_0 = arith.constant 0 : i32
    %c0_i32_1 = arith.constant 0 : i32
    return %c0_i32, %c0_i32_0 : i32, i32
  }
  func.func @transform_6(%arg0: i32) -> (i32, i32) {
    %c0_i32 = arith.constant 0 : i32
    %c0_i32_0 = arith.constant 0 : i32
    %c0_i32_1 = arith.constant 0 : i32
    return %c0_i32, %c0_i32_0 : i32, i32
  }
  func.func @transform_7(%arg0: i32) -> (i32, i32) {
    %c0_i32 = arith.constant 0 : i32
    %c0_i32_0 = arith.constant 0 : i32
    %c0_i32_1 = arith.constant 0 : i32
    return %c0_i32, %c0_i32_0 : i32, i32
  }
  func.func @transform_8(%arg0: i32) -> (i32, i32) {
    %c0_i32 = arith.constant 0 : i32
    %c0_i32_0 = arith.constant 0 : i32
    %c0_i32_1 = arith.constant 0 : i32
    return %c0_i32, %c0_i32_0 : i32, i32
  }
  func.func @transform_9(%arg0: i32) -> (i32, i32) {
    %c0_i32 = arith.constant 0 : i32
    %c0_i32_0 = arith.constant 0 : i32
    %c0_i32_1 = arith.constant 0 : i32
    return %c0_i32, %c0_i32_0 : i32, i32
  }
  func.func @transform_10(%arg0: i32) -> (i32, i32) {
    %c0_i32 = arith.constant 0 : i32
    %c0_i32_0 = arith.constant 0 : i32
    return %arg0, %c0_i32 : i32, i32
  }
}

</mosaic_0001>

<bundles_post_ra>
// kernel: tpu_custom_call.1
= control target key start
LH: loop header
LB: loop body
LE: loop exit
PB: predicated region body
PF: predicated region fallthrough
CT: control target
= control target key end

     0   :  { %15 = vsyncpa [#allocation3], 0  ;;  %s12205_s0 = inlined_call_operand.vmem [shape: f32[8,16,32], index: 0, kind: input, shape index: {}]   ;;  %s12206_s1 = inlined_call_operand.hbm [shape: f32[8,1,16], index: 1, kind: input, shape index: {}]   ;;  %s12207_s2 = inlined_call_operand.vmem [shape: bf16[3,2,32,16], index: 2, kind: input, shape index: {}]   ;;  %s12208_s3 = inlined_call_operand.hbm [shape: f32[3,2,1,16], index: 3, kind: input, shape index: {}]   ;;  %s12209_s4 = inlined_call_operand.vmem [shape: bf16[2,16,32], index: 4, kind: input, shape index: {}]   ;;  %s12210_s5 = inlined_call_operand.hbm [shape: f32[7,32], index: 5, kind: input, shape index: {}]   ;;  %s12211_s6 = inlined_call_operand.hbm [shape: bf16[32,64], index: 6, kind: input, shape index: {}]   ;;  %s12212_s7 = inlined_call_operand.vmem [shape: f32[1,64], index: 7, kind: input, shape index: {}]   ;;  %s12213_s8 = inlined_call_operand.vmem [shape: bf16[64,32], index: 8, kind: input, shape index: {}]   ;;  %s12214_s9 = inlined_call_operand.hbm [shape: bf16[32,32], index: 9, kind: input, shape index: {}]   ;;  %s12215_s10 = inlined_call_operand.hbm [shape: f32[8,32], index: 10, kind: output, shape index: {}]  }
   0x1   :  { %16 = vsyncpa [#allocation6], 0 }
   0x2   :  { %17 = vsyncpa [#allocation9], 0 }
   0x3   :  { %18 = vsyncpa [#allocation4], 0  ;;  %s40_s15 = sshll.u32 %s12208_s3, 4  ;;  %s8517_s16 = smov [#allocation5]   ;;  %s41_s15 = int_to_ptr.hbm [resolvable:$true] %s40_s15 }
   0x4   :  { %s42_s17 = sshll.u32 %s8517_s16, 4  ;;  %s66_s20 = sshll.u32 %s12211_s6, 4  ;;  %s43_s17 = int_to_ptr.vmem [resolvable:$true] %s42_s17  ;;  %s67_s20 = int_to_ptr.hbm [resolvable:$true] %s66_s20 }
   0x5   :  { %s8518_s21 = smov 16   ;;  %s8519_s22 = smov 1  }
   0x6   :  { %48 = dma.hbm_to_vmem [thread:$0]  %s41_s15, 96, %s43_s17, [#allocation6], %s8518_s21, %s8518_s21, %s8519_s22  }
   0x7   :  { %s8520_s23 = smov [#allocation8]   ;;  %s8521_s25 = smov 64  }
   0x8   :  { %s68_s24 = sshll.u32 %s8520_s23, 4  ;;  %s8522_s26 = smov 4   ;;  %s69_s24 = int_to_ptr.vmem [resolvable:$true] %s68_s24 }
   0x9   :  { %74 = dma.hbm_to_vmem [thread:$0]  %s67_s20, 256, %s69_s24, [#allocation9], %s8521_s25, %s8521_s25, %s8522_s26  }
   0xa   :  { %s25_s28 = sshll.u32 %s12206_s1, 4  ;;  %s8523_s29 = smov [#allocation2]   ;;  %s26_s28 = int_to_ptr.hbm [resolvable:$true] %s25_s28 }
   0xb   :  { %s27_s30 = sshll.u32 %s8523_s29, 4  ;;  %s56_s12 = sshll.u32 %s12210_s5, 4  ;;  %s28_s30 = int_to_ptr.vmem [resolvable:$true] %s27_s30  ;;  %s57_s12 = int_to_ptr.hbm [resolvable:$true] %s56_s12 }
   0xc   :  { %33 = dma.hbm_to_vmem [thread:$0]  %s26_s28, 128, %s28_s30, [#allocation3], %s8518_s21, %s8518_s21, %s8519_s22  }
   0xd   :  { %s8524_s13 = smov [#allocation7]   ;;  %s83_s17 = sshll.u32 %s12214_s9, 4  ;;  %s84_s17 = int_to_ptr.hbm [resolvable:$true] %s83_s17 }
   0xe   :  { %s58_s14 = sshll.u32 %s8524_s13, 4  ;;  %s8525_s1 = smov [#allocation10]   ;;  %s59_s14 = int_to_ptr.vmem [resolvable:$true] %s58_s14 }
   0xf   :  { %61 = dma.hbm_to_vmem [thread:$0]  %s57_s12, 128, %s59_s14, [#allocation6]  }
  0x10   :  { %s85_s18 = sshll.u32 %s8525_s1, 4  ;;  %s86_s18 = int_to_ptr.vmem [resolvable:$true] %s85_s18 }
  0x11   :  { %91 = dma.hbm_to_vmem [thread:$0]  %s84_s17, 256, %s86_s18, [#allocation9], %s8521_s25, %s8521_s25, %s8522_s26  }
  0x12   :  { %8509 = dma.done.wait [#allocation3], 128  }
  0x13   :  { %8510 = vsyncadd [#allocation3], 4294967168 }
  0x14   :  { %8511 = dma.done.wait [#allocation6], 224  }
  0x15   :  { %8512 = vsyncadd [#allocation6], 4294967072 }
  0x16   :  { %8513 = dma.done.wait [#allocation9], 512  }
  0x17   :  { %8514 = vsyncadd [#allocation9], 4294966784  ;;  %v7797_v0 = vld [vmem:[%s12207_s2 + $0x8] sm:$0xff]  ;;  %v7796_v2 = vld [vmem:[%s12207_s2] sm:$0xff]  ;;  %vm223_vm0 = vcmask 261120   ;;  %vm483_vm1 = vcmask 130048  }
  0x18   :  { %v7801_v1 = vld [vmem:[%s12207_s2 + $0x28] sm:$0xff]  ;;  %254 = vmatpush.bf16.msra.mxu0 %v7797_v0  ;;  %v7800_v3 = vld [vmem:[%s12207_s2 + $0x20] sm:$0xff]  ;;  %v115_v7 = vld [vmem:[%s12205_s0 + $0x10] sm:$0xff]  ;;  %s7446_s29 = sshll.u32 %s12215_s10, 4  ;;  %s7447_s29 = int_to_ptr.hbm [resolvable:$true] %s7446_s29 }
  0x19   :  { %318 = vmatpush.bf16.msra.mxu1 %v7801_v1  ;;  %v113_v4 = vld [vmem:[%s12205_s0] sm:$0xff]  ;;  %v114_v5 = vld [vmem:[%s12205_s0 + $0x8] sm:$0xff]  ;;  %v116_v8 = vld [vmem:[%s12205_s0 + $0x18] sm:$0xff] }
  0x1a   :  { %v8617_v6 = vpack.c.bf16 %v114_v5, %v113_v4  ;;  %v8629_v9 = vpack.c.bf16 %v116_v8, %v115_v7  ;;  %v117_v10 = vld [vmem:[%s12205_s0 + $0x20] sm:$0xff]  ;;  %v118_v11 = vld [vmem:[%s12205_s0 + $0x28] sm:$0xff]  ;;  %v119_v13 = vld [vmem:[%s12205_s0 + $0x30] sm:$0xff] }
  0x1b   :  { %v8641_v12 = vpack.c.bf16 %v118_v11, %v117_v10  ;;  %v120_v14 = vld [vmem:[%s12205_s0 + $0x38] sm:$0xff]  ;;  %v121_v16 = vld [vmem:[%s12205_s0 + $0x40] sm:$0xff]  ;;  %v122_v17 = vld [vmem:[%s12205_s0 + $0x48] sm:$0xff] }
  0x1c   :  { %255 = vmatpush.bf16.msra.mxu0 %v7796_v2  ;;  %v8653_v15 = vpack.c.bf16 %v120_v14, %v119_v13  ;;  %v8665_v18 = vpack.c.bf16 %v122_v17, %v121_v16  ;;  %v123_v19 = vld [vmem:[%s12205_s0 + $0x50] sm:$0xff]  ;;  %v124_v20 = vld [vmem:[%s12205_s0 + $0x58] sm:$0xff]  ;;  %v8683_v24 = vld [vmem:[#allocation5 + $0x2] ss:$0 sm:$0xff] }
  0x1d   :  { %319 = vmatpush.bf16.msra.mxu1 %v7800_v3  ;;  %v8677_v21 = vpack.c.bf16 %v124_v20, %v123_v19  ;;  %v8686_v26 = vld [vmem:[#allocation5] ss:$0 sm:$0xff]  ;;  %v125_v3 = vld [vmem:[%s12205_s0 + $0x60] sm:$0xff] }
  0x1e   :  { %v126_v4 = vld [vmem:[%s12205_s0 + $0x68] sm:$0xff] }
  0x1f   :  { %7488 = vmatmul.msk.bf16.vlgmr.msra.gmra.mxu0 %vm223_vm0, %v8617_v6  ;;  %v8707_v8 = vpack.c.bf16 %v126_v4, %v125_v3 }
  0x20   :  { %7504 = vmatmul.msk.bf16.vlgmr.msra.gmra.mxu1 %vm223_vm0, %v8617_v6 }
  0x2f   :  { %7489 = vmatmul.msk.bf16.gmra.mxu0 %vm223_vm0, %v8629_v9 }
  0x30   :  { %7505 = vmatmul.msk.bf16.gmra.mxu1 %vm223_vm0, %v8629_v9 }
  0x3f   :  { %7490 = vmatmul.msk.bf16.gmra.mxu0 %vm223_vm0, %v8641_v12 }
  0x40   :  { %7506 = vmatmul.msk.bf16.gmra.mxu1 %vm223_vm0, %v8641_v12 }
  0x4f   :  { %7491 = vmatmul.msk.bf16.gmra.mxu0 %vm223_vm0, %v8653_v15 }
  0x50   :  { %7507 = vmatmul.msk.bf16.gmra.mxu1 %vm223_vm0, %v8653_v15 }
  0x5f   :  { %7492 = vmatmul.msk.bf16.gmra.mxu0 %vm223_vm0, %v8665_v18 }
  0x60   :  { %7508 = vmatmul.msk.bf16.gmra.mxu1 %vm223_vm0, %v8665_v18 }
  0x6f   :  { %7493 = vmatmul.msk.bf16.gmra.mxu0 %vm223_vm0, %v8677_v21 }
  0x70   :  { %7509 = vmatmul.msk.bf16.gmra.mxu1 %vm223_vm0, %v8677_v21 }
  0x7f   :  { %7494 = vmatmul.msk.bf16.gmra.mxu0 %vm223_vm0, %v8707_v8 }
  0x80   :  { %7510 = vmatmul.msk.bf16.gmra.mxu1 %vm223_vm0, %v8707_v8 }
  0x9c   :  { %v257_v22 = vpop.f32.mrf.mxu0 }
  0x9d   :  { %v321_v23 = vpop.f32.mrf.mxu1  ;;  %v258_v31 = vadd.f32 %v8686_v26, %v257_v22 }
  0x9e   :  { %v322_v25 = vadd.f32 %v8683_v24, %v321_v23 }
  0x9f   :  { %v425_v36 = vpack.c.bf16 %v258_v31, %v258_v31 }
  0xa0   :  { %v441_v29 = vpack.c.bf16 %v322_v25, %v322_v25 }
  0xa1   :  { %v475_v42 = vunpack.c.l.b16 %v425_v36 }
  0xa2   :  { %v480_v34 = vunpack.c.l.b16 %v441_v29 }
  0xa4   :  { %v259_v27 = vpop.f32.mrf.mxu0 }
  0xa5   :  { %v323_v28 = vpop.f32.mrf.mxu1  ;;  %v260_v32 = vadd.f32 %v8686_v26, %v259_v27 }
  0xa6   :  { %v324_v30 = vadd.f32 %v8683_v24, %v323_v28 }
  0xa7   :  { %v426_v37 = vpack.c.bf16 %v260_v32, %v260_v32 }
  0xa8   :  { %v442_v33 = vpack.c.bf16 %v324_v30, %v324_v30 }
  0xa9   :  { %v476_v43 = vunpack.c.l.b16 %v426_v37 }
  0xaa   :  { %v481_v35 = vunpack.c.l.b16 %v442_v33  ;;  %v127_v33 = vld [vmem:[%s12205_s0 + $0x70] sm:$0xff] }
  0xab   :  { %v477_v45 = vpack.c.b16 %v476_v43, %v475_v42 }
  0xac   :  { %v482_v38 = vpack.c.b16 %v481_v35, %v480_v34  ;;  %v262_v39 = vpop.f32.mrf.mxu0  ;;  %v128_v34 = vld [vmem:[%s12205_s0 + $0x78] sm:$0xff] }
  0xad   :  { %v326_v40 = vpop.f32.mrf.mxu1  ;;  %v263_v50 = vadd.f32 %v8686_v26, %v262_v39  ;;  %v8725_v37 = vpack.c.bf16 %v128_v34, %v127_v33  ;;  %v7832_v33 = vld [vmem:[#allocation2] ss:$0 sm:$0xff] }
  0xae   :  { %v488_v41 = vsel %vm483_vm1, %v482_v38, 0  ;;  %v327_v44 = vadd.f32 %v8683_v24, %v326_v40 }
  0xaf   :  { %497 = vmatpush.bf16.xpose.msra.mxu3 %v488_v41  ;;  %v427_v55 = vpack.c.bf16 %v263_v50, %v263_v50  ;;  %7511 = vmatmul.msk.bf16.gmra.mxu1 %vm223_vm0, %v8725_v37 }
  0xb0   :  { %v443_v48 = vpack.c.bf16 %v327_v44, %v327_v44  ;;  %7495 = vmatmul.msk.bf16.gmra.mxu0 %vm223_vm0, %v8725_v37 }
  0xb1   :  { %v506_v61 = vunpack.c.l.b16 %v427_v55 }
  0xb2   :  { %v511_v53 = vunpack.c.l.b16 %v443_v48 }
  0xb4   :  { %v264_v46 = vpop.f32.mrf.mxu0 }
  0xb5   :  { %v328_v47 = vpop.f32.mrf.mxu1  ;;  %v265_v51 = vadd.f32 %v8686_v26, %v264_v46 }
  0xb6   :  { %v329_v49 = vadd.f32 %v8683_v24, %v328_v47  ;;  %7528 = vmatmul.msk.bf16.vlgmr.msra.gmra.mxu3 %vm483_vm1, %v477_v45 }
  0xb7   :  { %v428_v56 = vpack.c.bf16 %v265_v51, %v265_v51 }
  0xb8   :  { %v444_v52 = vpack.c.bf16 %v329_v49, %v329_v49 }
  0xb9   :  { %v507_v62 = vunpack.c.l.b16 %v428_v56 }
  0xba   :  { %v512_v54 = vunpack.c.l.b16 %v444_v52 }
  0xbb   :  { %v508_v0 = vpack.c.b16 %v507_v62, %v506_v61 }
  0xbc   :  { %v513_v57 = vpack.c.b16 %v512_v54, %v511_v53  ;;  %v267_v58 = vpop.f32.mrf.mxu0 }
  0xbd   :  { %v331_v59 = vpop.f32.mrf.mxu1  ;;  %v268_v10 = vadd.f32 %v8686_v26, %v267_v58 }
  0xbe   :  { %v518_v60 = vsel %vm483_vm1, %v513_v57, 0  ;;  %v332_v63 = vadd.f32 %v8683_v24, %v331_v59 }
  0xbf   :  { %527 = vmatpush.bf16.xpose.msrb.mxu3 %v518_v60  ;;  %v429_v17 = vpack.c.bf16 %v268_v10, %v268_v10 }
  0xc0   :  { %v445_v5 = vpack.c.bf16 %v332_v63, %v332_v63 }
  0xc1   :  { %v536_v27 = vunpack.c.l.b16 %v429_v17 }
  0xc2   :  { %v541_v14 = vunpack.c.l.b16 %v445_v5 }
  0xc4   :  { %v269_v1 = vpop.f32.mrf.mxu0 }
  0xc5   :  { %v333_v2 = vpop.f32.mrf.mxu1  ;;  %v270_v11 = vadd.f32 %v8686_v26, %v269_v1 }
  0xc6   :  { %v334_v7 = vadd.f32 %v8683_v24, %v333_v2  ;;  %7529 = vmatmul.msk.bf16.vlgmr.msrb.gmra.mxu3 %vm483_vm1, %v508_v0 }
  0xc7   :  { %v430_v19 = vpack.c.bf16 %v270_v11, %v270_v11 }
  0xc8   :  { %v446_v13 = vpack.c.bf16 %v334_v7, %v334_v7 }
  0xc9   :  { %v537_v28 = vunpack.c.l.b16 %v430_v19 }
  0xca   :  { %v542_v16 = vunpack.c.l.b16 %v446_v13 }
  0xcb   :  { %v538_v30 = vpack.c.b16 %v537_v28, %v536_v27 }
  0xcc   :  { %v543_v20 = vpack.c.b16 %v542_v16, %v541_v14  ;;  %v272_v22 = vpop.f32.mrf.mxu0 }
  0xcd   :  { %v336_v23 = vpop.f32.mrf.mxu1  ;;  %v273_v38 = vadd.f32 %v8686_v26, %v272_v22 }
  0xce   :  { %v548_v25 = vsel %vm483_vm1, %v543_v20, 0  ;;  %v337_v29 = vadd.f32 %v8683_v24, %v336_v23 }
  0xcf   :  { %557 = vmatpush.bf16.xpose.msra.mxu3 %v548_v25  ;;  %v431_v43 = vpack.c.bf16 %v273_v38, %v273_v38 }
  0xd0   :  { %v447_v35 = vpack.c.bf16 %v337_v29, %v337_v29 }
  0xd1   :  { %v566_v49 = vunpack.c.l.b16 %v431_v43 }
  0xd2   :  { %v571_v41 = vunpack.c.l.b16 %v447_v35 }
  0xd4   :  { %v274_v31 = vpop.f32.mrf.mxu0 }
  0xd5   :  { %v338_v32 = vpop.f32.mrf.mxu1  ;;  %v275_v39 = vadd.f32 %v8686_v26, %v274_v31 }
  0xd6   :  { %v339_v36 = vadd.f32 %v8683_v24, %v338_v32  ;;  %7530 = vmatmul.msk.bf16.vlgmr.msra.gmra.mxu3 %vm483_vm1, %v538_v30 }
  0xd7   :  { %v432_v44 = vpack.c.bf16 %v275_v39, %v275_v39 }
  0xd8   :  { %v448_v40 = vpack.c.bf16 %v339_v36, %v339_v36 }
  0xd9   :  { %v567_v50 = vunpack.c.l.b16 %v432_v44  ;;  %v7833_v44 = vld [vmem:[#allocation2 + $0x1] ss:$0 sm:$0xff] }
  0xda   :  { %v572_v42 = vunpack.c.l.b16 %v448_v40 }
  0xdb   :  { %v568_v52 = vpack.c.b16 %v567_v50, %v566_v49 }
  0xdc   :  { %v573_v45 = vpack.c.b16 %v572_v42, %v571_v41  ;;  %v277_v46 = vpop.f32.mrf.mxu0 }
  0xdd   :  { %v341_v47 = vpop.f32.mrf.mxu1  ;;  %v278_v57 = vadd.f32 %v8686_v26, %v277_v46 }
  0xde   :  { %v578_v48 = vsel %vm483_vm1, %v573_v45, 0  ;;  %v342_v51 = vadd.f32 %v8683_v24, %v341_v47 }
  0xdf   :  { %587 = vmatpush.bf16.xpose.msrb.mxu3 %v578_v48  ;;  %v433_v62 = vpack.c.bf16 %v278_v57, %v278_v57 }
  0xe0   :  { %v449_v55 = vpack.c.bf16 %v342_v51, %v342_v51 }
  0xe1   :  { %v596_v4 = vunpack.c.l.b16 %v433_v62 }
  0xe2   :  { %v601_v60 = vunpack.c.l.b16 %v449_v55 }
  0xe4   :  { %v279_v53 = vpop.f32.mrf.mxu0 }
  0xe5   :  { %v343_v54 = vpop.f32.mrf.mxu1  ;;  %v280_v58 = vadd.f32 %v8686_v26, %v279_v53 }
  0xe6   :  { %v344_v56 = vadd.f32 %v8683_v24, %v343_v54  ;;  %7531 = vmatmul.msk.bf16.vlgmr.msrb.gmra.mxu3 %vm483_vm1, %v568_v52 }
  0xe7   :  { %v434_v63 = vpack.c.bf16 %v280_v58, %v280_v58 }
  0xe8   :  { %v450_v59 = vpack.c.bf16 %v344_v56, %v344_v56 }
  0xe9   :  { %v597_v5 = vunpack.c.l.b16 %v434_v63 }
  0xea   :  { %v602_v61 = vunpack.c.l.b16 %v450_v59 }
  0xeb   :  { %v598_v10 = vpack.c.b16 %v597_v5, %v596_v4 }
  0xec   :  { %v603_v0 = vpack.c.b16 %v602_v61, %v601_v60  ;;  %v282_v1 = vpop.f32.mrf.mxu0 }
  0xed   :  { %v346_v2 = vpop.f32.mrf.mxu1  ;;  %v283_v17 = vadd.f32 %v8686_v26, %v282_v1 }
  0xee   :  { %v608_v3 = vsel %vm483_vm1, %v603_v0, 0  ;;  %v347_v7 = vadd.f32 %v8683_v24, %v346_v2 }
  0xef   :  { %617 = vmatpush.bf16.xpose.msra.mxu3 %v608_v3  ;;  %v435_v25 = vpack.c.bf16 %v283_v17, %v283_v17 }
  0xf0   :  { %v451_v14 = vpack.c.bf16 %v347_v7, %v347_v7 }
  0xf1   :  { %v626_v30 = vunpack.c.l.b16 %v435_v25 }
  0xf2   :  { %v631_v22 = vunpack.c.l.b16 %v451_v14 }
  0xf4   :  { %v284_v11 = vpop.f32.mrf.mxu0 }
  0xf5   :  { %v348_v13 = vpop.f32.mrf.mxu1  ;;  %v285_v19 = vadd.f32 %v8686_v26, %v284_v11 }
  0xf6   :  { %v349_v16 = vadd.f32 %v8683_v24, %v348_v13  ;;  %7532 = vmatmul.msk.bf16.vlgmr.msra.gmra.mxu3 %vm483_vm1, %v598_v10 }
  0xf7   :  { %v436_v27 = vpack.c.bf16 %v285_v19, %v285_v19 }
  0xf8   :  { %v452_v20 = vpack.c.bf16 %v349_v16, %v349_v16 }
  0xf9   :  { %v627_v31 = vunpack.c.l.b16 %v436_v27 }
  0xfa   :  { %v632_v23 = vunpack.c.l.b16 %v452_v20 }
  0xfb   :  { %v628_v32 = vpack.c.b16 %v627_v31, %v626_v30 }
  0xfc   :  { %v633_v28 = vpack.c.b16 %v632_v23, %v631_v22  ;;  %v287_v48 = vpop.f32.mrf.mxu0 }
  0xfd   :  { %v351_v42 = vpop.f32.mrf.mxu1  ;;  %v288_v53 = vadd.f32 %v8686_v26, %v287_v48 }
  0xfe   :  { %v638_v29 = vsel %vm483_vm1, %v633_v28, 0  ;;  %v352_v45 = vadd.f32 %v8683_v24, %v351_v42  ;;  %v7834_v42 = vld [vmem:[#allocation2 + $0x4] ss:$0 sm:$0xff] }
  0xff   :  { %647 = vmatpush.bf16.xpose.msrb.mxu3 %v638_v29  ;;  %v437_v59 = vpack.c.bf16 %v288_v53, %v288_v53 }
 0x100   :  { %v453_v50 = vpack.c.bf16 %v352_v45, %v352_v45 }
 0x101   :  { %v656_v4 = vunpack.c.l.b16 %v437_v59 }
 0x102   :  { %v661_v55 = vunpack.c.l.b16 %v453_v50 }
 0x104   :  { %v289_v61 = vpop.f32.mrf.mxu0 }
 0x105   :  { %v353_v51 = vpop.f32.mrf.mxu1  ;;  %v290_v62 = vadd.f32 %v8686_v26, %v289_v61 }
 0x106   :  { %7533 = vmatmul.msk.bf16.vlgmr.msrb.gmra.mxu3 %vm483_vm1, %v628_v32  ;;  %v354_v54 = vadd.f32 %v8683_v24, %v353_v51  ;;  %v7835_v51 = vld [vmem:[#allocation2 + $0x5] ss:$0 sm:$0xff] }
 0x107   :  { %v438_v1 = vpack.c.bf16 %v290_v62, %v290_v62 }
 0x108   :  { %v454_v56 = vpack.c.bf16 %v354_v54, %v354_v54 }
 0x109   :  { %v657_v7 = vunpack.c.l.b16 %v438_v1 }
 0x10a   :  { %v662_v60 = vunpack.c.l.b16 %v454_v56 }
 0x10b   :  { %v658_v13 = vpack.c.b16 %v657_v7, %v656_v4 }
 0x10c   :  { %v663_v0 = vpack.c.b16 %v662_v60, %v661_v55 }
 0x10e   :  { %v668_v5 = vsel %vm483_vm1, %v663_v0, 0 }
 0x10f   :  { %677 = vmatpush.bf16.xpose.msra.mxu3 %v668_v5 }
 0x116   :  { %7534 = vmatmul.msk.bf16.vlgmr.msra.gmra.mxu3 %vm483_vm1, %v658_v13 }
 0x12c   :  { %v356_v2 = vpop.f32.mrf.mxu1 }
 0x12d   :  { %v357_v10 = vadd.f32 %v8683_v24, %v356_v2  ;;  %v292_v14 = vpop.f32.mrf.mxu0 }
 0x12e   :  { %v293_v19 = vadd.f32 %v8686_v26, %v292_v14 }
 0x12f   :  { %v455_v16 = vpack.c.bf16 %v357_v10, %v357_v10 }
 0x130   :  { %v439_v27 = vpack.c.bf16 %v293_v19, %v293_v19 }
 0x131   :  { %v691_v22 = vunpack.c.l.b16 %v455_v16 }
 0x134   :  { %v358_v17 = vpop.f32.mrf.mxu1 }
 0x135   :  { %v359_v20 = vadd.f32 %v8683_v24, %v358_v17  ;;  %v294_v29 = vpop.f32.mrf.mxu0 }
 0x136   :  { %v295_v30 = vadd.f32 %v8686_v26, %v294_v29 }
 0x137   :  { %v456_v23 = vpack.c.bf16 %v359_v20, %v359_v20 }
 0x138   :  { %v440_v32 = vpack.c.bf16 %v295_v30, %v295_v30 }
 0x139   :  { %v499_v34 = vpop.f32.mrf.mxu3  ;;  %v692_v28 = vunpack.c.l.b16 %v456_v23 }
 0x13a   :  { %v714_v35 = vmul.f32 0.25, %v499_v34 }
 0x13b   :  { %v693_v31 = vpack.c.b16 %v692_v28, %v691_v22 }
 0x13c   :  { %v8747_v36 = vadd.f32 %v7832_v33, %v714_v35  ;;  %v687_v35 = vunpack.c.l.b16 %v440_v32  ;;  %v7836_v32 = vld [vmem:[#allocation2 + $0x3] ss:$0 sm:$0xff] }
 0x13d   :  { %v698_v34 = vsel %vm483_vm1, %v693_v31, 0 }
 0x13e   :  { %v770_v38 = vsel %vm483_vm1, %v8747_v36, -inf  ;;  %707 = vmatpush.bf16.xpose.msrb.mxu3 %v698_v34 }
 0x13f   :  { %771 = vmax.xlane.f32.xlu1 %v770_v38 }
 0x141   :  { %v501_v39 = vpop.f32.mrf.mxu3 }
 0x142   :  { %v715_v40 = vmul.f32 0.25, %v501_v39 }
 0x144   :  { %v8751_v41 = vadd.f32 %v7832_v33, %v715_v40  ;;  %v686_v33 = vunpack.c.l.b16 %v439_v27  ;;  %v7805_v40 = vld [vmem:[%s12207_s2 + $0x48] sm:$0xff] }
 0x145   :  { %382 = vmatpush.bf16.msra.mxu2 %v7805_v40 }
 0x146   :  { %v773_v43 = vsel %vm483_vm1, %v8751_v41, -inf  ;;  %v688_v24 = vpack.c.b16 %v687_v35, %v686_v33 }
 0x147   :  { %774 = vmax.xlane.f32.xlu1 %v773_v43 }
 0x148   :  { %7535 = vmatmul.msk.bf16.vlgmr.msrb.gmra.mxu3 %vm483_vm1, %v688_v24 }
 0x149   :  { %v529_v46 = vpop.f32.mrf.mxu3 }
 0x14a   :  { %v716_v47 = vmul.f32 0.25, %v529_v46 }
 0x14c   :  { %v8756_v49 = vadd.f32 %v7833_v44, %v716_v47 }
 0x14e   :  { %v776_v52 = vsel %vm483_vm1, %v8756_v49, -inf }
 0x14f   :  { %777 = vmax.xlane.f32.xlu0 %v776_v52 }
 0x151   :  { %v531_v57 = vpop.f32.mrf.mxu3 }
 0x152   :  { %v717_v58 = vmul.f32 0.25, %v531_v57 }
 0x154   :  { %v8763_v63 = vadd.f32 %v7833_v44, %v717_v58  ;;  %v7804_v58 = vld [vmem:[%s12207_s2 + $0x40] sm:$0xff] }
 0x155   :  { %383 = vmatpush.bf16.msra.mxu2 %v7804_v58 }
 0x156   :  { %v779_v3 = vsel %vm483_vm1, %v8763_v63, -inf }
 0x157   :  { %780 = vmax.xlane.f32.xlu0 %v779_v3 }
 0x158   :  { %7520 = vmatmul.msk.bf16.vlgmr.msra.gmra.mxu2 %vm223_vm0, %v8617_v6 }
 0x159   :  { %v8769_v11 = vpop.f32.mrf.mxu3 }
 0x161   :  { %v8774_v25 = vpop.f32.mrf.mxu3 }
 0x168   :  { %7521 = vmatmul.msk.bf16.gmra.mxu2 %vm223_vm0, %v8629_v9 }
 0x169   :  { %v8778_v38 = vpop.f32.mrf.mxu3 }
 0x171   :  { %v8781_v39 = vpop.f32.mrf.mxu3 }
 0x172   :  { %v721_v30 = vmul.f32 0.25, %v8781_v39 }
 0x174   :  { %v8840_v35 = vadd.f32 %v7836_v32, %v721_v30 }
 0x178   :  { %7522 = vmatmul.msk.bf16.gmra.mxu2 %vm223_vm0, %v8641_v12 }
 0x179   :  { %v619_v26 = vpop.f32.mrf.mxu3 }
 0x17a   :  { %v722_v43 = vmul.f32 0.25, %v619_v26  ;;  %v791_v26 = vsel %vm483_vm1, %v8840_v35, -inf }
 0x17c   :  { %v762_v44 = vadd.f32 %v7834_v42, %v722_v43 }
 0x17e   :  { %v794_v45 = vsel %vm483_vm1, %v762_v44, -inf }
 0x17f   :  { %795 = vmax.xlane.f32.xlu0 %v794_v45 }
 0x181   :  { %v621_v46 = vpop.f32.mrf.mxu3 }
 0x182   :  { %v723_v47 = vmul.f32 0.25, %v621_v46 }
 0x184   :  { %v8787_v48 = vadd.f32 %v7834_v42, %v723_v47 }
 0x186   :  { %v797_v50 = vsel %vm483_vm1, %v8787_v48, -inf }
 0x187   :  { %798 = vmax.xlane.f32.xlu1 %v797_v50 }
 0x188   :  { %7523 = vmatmul.msk.bf16.gmra.mxu2 %vm223_vm0, %v8653_v15 }
 0x189   :  { %v649_v52 = vpop.f32.mrf.mxu3 }
 0x18a   :  { %v724_v53 = vmul.f32 0.25, %v649_v52 }
 0x18c   :  { %v764_v54 = vadd.f32 %v7835_v51, %v724_v53  ;;  %v7837_v53 = vld [vmem:[#allocation2 + $0x7] ss:$0 sm:$0xff] }
 0x18e   :  { %v800_v55 = vsel %vm483_vm1, %v764_v54, -inf }
 0x18f   :  { %801 = vmax.xlane.f32.xlu2 %v800_v55  ;;  %v720_v55 = vmul.f32 0.25, %v8778_v38 }
 0x191   :  { %v651_v56 = vpop.f32.mrf.mxu3 }
 0x192   :  { %v725_v57 = vmul.f32 0.25, %v651_v56 }
 0x194   :  { %v8795_v59 = vadd.f32 %v7835_v51, %v725_v57 }
 0x196   :  { %v803_v60 = vsel %vm483_vm1, %v8795_v59, -inf }
 0x197   :  { %804 = vmax.xlane.f32.xlu2 %v803_v60 }
 0x198   :  { %7524 = vmatmul.msk.bf16.gmra.mxu2 %vm223_vm0, %v8665_v18 }
 0x199   :  { %v8835_v29 = vpop.f32.mrf.mxu3 }
 0x1a1   :  { %v8845_v43 = vpop.f32.mrf.mxu3 }
 0x1a8   :  { %7525 = vmatmul.msk.bf16.gmra.mxu2 %vm223_vm0, %v8677_v21 }
 0x1b2   :  { %v772_v61 = vpop.xlane.xlu1 %771 }
 0x1b3   :  { %v818_v62 = vsub.f32 %v8747_v36, %v772_v61 }
 0x1b5   :  { %v834_v0 = vmul.f32 1.442695, %v818_v62 }
 0x1b7   :  { %7845 = vpow2.f32 %v834_v0 }
 0x1b8   :  { %7526 = vmatmul.msk.bf16.gmra.mxu2 %vm223_vm0, %v8707_v8 }
 0x1ba   :  { %v775_v3 = vpop.xlane.xlu1 %774 }
 0x1bb   :  { %v819_v7 = vsub.f32 %v8751_v41, %v775_v3 }
 0x1bd   :  { %v8806_v1 = vpop.eup %7845  ;;  %v836_v36 = vmul.f32 1.442695, %v819_v7 }
 0x1be   :  { %v866_v2 = vsel %vm483_vm1, %v8806_v1, 0.0 }
 0x1bf   :  { %867 = vadd.xlane.f32.xlu1 %v866_v2  ;;  %v8871_v2 = vld [vmem:[#allocation5 + $0x4] ss:$0 sm:$0xff] }
 0x1c2   :  { %v778_v4 = vpop.xlane.xlu0 %777 }
 0x1c3   :  { %v820_v5 = vsub.f32 %v8756_v49, %v778_v4 }
 0x1c5   :  { %v838_v10 = vmul.f32 1.442695, %v820_v5 }
 0x1c7   :  { %7847 = vpow2.f32 %v838_v10 }
 0x1c8   :  { %7849 = vpow2.f32 %v836_v36  ;;  %7527 = vmatmul.msk.bf16.gmra.mxu2 %vm223_vm0, %v8725_v37 }
 0x1ca   :  { %v781_v13 = vpop.xlane.xlu0 %780 }
 0x1cb   :  { %v821_v14 = vsub.f32 %v8763_v63, %v781_v13  ;;  %v709_v50 = vpop.f32.mrf.mxu3 }
 0x1cc   :  { %v728_v52 = vmul.f32 0.25, %v709_v50 }
 0x1cd   :  { %v8815_v16 = vpop.eup %7847  ;;  %v840_v17 = vmul.f32 1.442695, %v821_v14 }
 0x1ce   :  { %v872_v19 = vsel %vm483_vm1, %v8815_v16, 0.0  ;;  %v8819_v49 = vpop.eup %7849  ;;  %v8863_v58 = vadd.f32 %v7837_v53, %v728_v52 }
 0x1cf   :  { %7851 = vpow2.f32 %v840_v17  ;;  %873 = vadd.xlane.f32.xlu2 %v872_v19  ;;  %v869_v22 = vsel %vm483_vm1, %v8819_v49, 0.0 }
 0x1d0   :  { %v812_v62 = vsel %vm483_vm1, %v8863_v58, -inf }
 0x1d3   :  { %v711_v61 = vpop.f32.mrf.mxu3 }
 0x1d4   :  { %v729_v0 = vmul.f32 0.25, %v711_v61 }
 0x1d5   :  { %v8821_v41 = vpop.eup %7851 }
 0x1d6   :  { %v875_v20 = vsel %vm483_vm1, %v8821_v41, 0.0  ;;  %v8873_v3 = vadd.f32 %v7837_v53, %v729_v0 }
 0x1d7   :  { %876 = vadd.xlane.f32.xlu0 %v875_v20  ;;  %870 = vadd.xlane.f32.xlu2 %v869_v22 }
 0x1d8   :  { %v815_v13 = vsel %vm483_vm1, %v8873_v3, -inf }
 0x1db   :  { %v385_v60 = vpop.f32.mrf.mxu2 }
 0x1dc   :  { %v386_v4 = vadd.f32 %v8871_v2, %v385_v60 }
 0x1de   :  { %v457_v10 = vpack.c.bf16 %v386_v4, %v386_v4 }
 0x1e0   :  { %v1177_v14 = vunpack.c.l.b16 %v457_v10 }
 0x1e3   :  { %v387_v5 = vpop.f32.mrf.mxu2 }
 0x1e4   :  { %v388_v7 = vadd.f32 %v8871_v2, %v387_v5 }
 0x1e6   :  { %v458_v36 = vpack.c.bf16 %v388_v7, %v388_v7 }
 0x1e8   :  { %v1178_v17 = vunpack.c.l.b16 %v458_v36 }
 0x1ea   :  { %v1179_v20 = vpack.c.b16 %v1178_v17, %v1177_v14 }
 0x1eb   :  { %v390_v19 = vpop.f32.mrf.mxu2 }
 0x1ec   :  { %1191 = vmatpush.bf16.msrb.mxu0 %v1179_v20  ;;  %v391_v22 = vadd.f32 %v8871_v2, %v390_v19 }
 0x1f2   :  { %v796_v63 = vpop.xlane.xlu0 %795 }
 0x1f3   :  { %v826_v23 = vsub.f32 %v762_v44, %v796_v63  ;;  %v459_v63 = vpack.c.bf16 %v391_v22, %v391_v22 }
 0x1f5   :  { %v850_v27 = vmul.f32 1.442695, %v826_v23  ;;  %v392_v23 = vpop.f32.mrf.mxu2 }
 0x1f6   :  { %v393_v30 = vadd.f32 %v8871_v2, %v392_v23 }
 0x1f7   :  { %7853 = vpow2.f32 %v850_v27 }
 0x1fa   :  { %v799_v33 = vpop.xlane.xlu1 %798 }
 0x1fb   :  { %v827_v40 = vsub.f32 %v8787_v48, %v799_v33 }
 0x1fd   :  { %v8833_v28 = vpop.eup %7853  ;;  %v852_v39 = vmul.f32 1.442695, %v827_v40 }
 0x1fe   :  { %v890_v31 = vsel %vm483_vm1, %v8833_v28, 0.0 }
 0x1ff   :  { %891 = vadd.xlane.f32.xlu2 %v890_v31  ;;  %v1205_v31 = vunpack.c.l.b16 %v459_v63 }
 0x202   :  { %v802_v34 = vpop.xlane.xlu2 %801 }
 0x203   :  { %v828_v24 = vsub.f32 %v764_v54, %v802_v34 }
 0x205   :  { %v854_v42 = vmul.f32 1.442695, %v828_v24  ;;  %v395_v24 = vpop.f32.mrf.mxu2 }
 0x207   :  { %7855 = vpow2.f32 %v854_v42  ;;  %792 = vmax.xlane.f32.xlu2 %v791_v26 }
 0x208   :  { %7857 = vpow2.f32 %v852_v39  ;;  %v396_v39 = vadd.f32 %v8871_v2, %v395_v24 }
 0x20a   :  { %v805_v44 = vpop.xlane.xlu2 %804 }
 0x20b   :  { %v829_v45 = vsub.f32 %v8795_v59, %v805_v44  ;;  %v8865_v59 = vadd.f32 %v7836_v32, %v720_v55  ;;  %v460_v32 = vpack.c.bf16 %v393_v30, %v393_v30 }
 0x20d   :  { %v8850_v46 = vpop.eup %7855  ;;  %v856_v47 = vmul.f32 1.442695, %v829_v45  ;;  %v788_v38 = vsel %vm483_vm1, %v8865_v59, -inf  ;;  %v1206_v33 = vunpack.c.l.b16 %v460_v32  ;;  %v397_v44 = vpop.f32.mrf.mxu2 }
 0x20e   :  { %v896_v48 = vsel %vm483_vm1, %v8850_v46, 0.0  ;;  %v8854_v51 = vpop.eup %7857 }
 0x20f   :  { %7859 = vpow2.f32 %v856_v47  ;;  %897 = vadd.xlane.f32.xlu0 %v896_v48  ;;  %v893_v56 = vsel %vm483_vm1, %v8854_v51, 0.0  ;;  %v1207_v34 = vpack.c.b16 %v1206_v33, %v1205_v31  ;;  %v398_v47 = vadd.f32 %v8871_v2, %v397_v44 }
 0x210   :  { %v461_v48 = vpack.c.bf16 %v396_v39, %v396_v39 }
 0x211   :  { %1219 = vmatpush.bf16.msrb.mxu1 %v1207_v34  ;;  %v462_v50 = vpack.c.bf16 %v398_v47, %v398_v47 }
 0x212   :  { %v1233_v60 = vunpack.c.l.b16 %v461_v48 }
 0x213   :  { %v1234_v61 = vunpack.c.l.b16 %v462_v50 }
 0x215   :  { %v8856_v54 = vpop.eup %7859  ;;  %v400_v0 = vpop.f32.mrf.mxu2  ;;  %v1235_v7 = vpack.c.b16 %v1234_v61, %v1233_v60 }
 0x216   :  { %v899_v57 = vsel %vm483_vm1, %v8856_v54, 0.0 }
 0x217   :  { %894 = vadd.xlane.f32.xlu0 %v893_v56  ;;  %900 = vadd.xlane.f32.xlu1 %v899_v57 }
 0x218   :  { %1247 = vmatpush.bf16.msrb.mxu2 %v1235_v7 }
 0x21d   :  { %v402_v39 = vpop.f32.mrf.mxu2 }
 0x21f   :  { %789 = vmax.xlane.f32.xlu1 %v788_v38  ;;  %813 = vmax.xlane.f32.xlu0 %v812_v62 }
 0x227   :  { %816 = vmax.xlane.f32.xlu1 %v815_v13  ;;  %v401_v13 = vadd.f32 %v8871_v2, %v400_v0 }
 0x229   :  { %v463_v34 = vpack.c.bf16 %v401_v13, %v401_v13 }
 0x232   :  { %v868_v27 = vpop.xlane.xlu1 %867 }
 0x233   :  { %7861 = vrcp.f32 %v868_v27  ;;  %v925_v4 = vand.u32 2147483648, %v868_v27  ;;  %vm919_vm4 = vweird.f32 %v868_v27  ;;  %v923_v10 = vand.u32 2147483647, %v868_v27 }
 0x235   :  { %vm924_vm8 = vcmp.eq.f32.partialorder %v923_v10, 8.507059e+37 }
 0x239   :  { %v7862_v40 = vpop.eup %7861 }
 0x23a   :  { %v915_v42 = vmul.f32 %v7862_v40, %v868_v27  ;;  %vm920_vm2 = vweird.f32 %v7862_v40  ;;  %v926_v27 = vor.u32 1.1754944e-38, %v925_v4 }
 0x23b   :  { %vm8887_vm5 = vmor %vm919_vm4, %vm920_vm2 }
 0x23c   :  { %v916_v45 = vsub.f32 1.0, %v915_v42 }
 0x23e   :  { %v917_v53 = vmul.f32 %v7862_v40, %v916_v45 }
 0x240   :  { %v918_v38 = vadd.f32 %v7862_v40, %v917_v53 }
 0x242   :  { %v874_v26 = vpop.xlane.xlu2 %873  ;;  %v922_v63 = vsel %vm8887_vm5, %v7862_v40, %v918_v38  ;;  %v403_v40 = vadd.f32 %v8871_v2, %v402_v39 }
 0x243   :  { %7863 = vrcp.f32 %v874_v26  ;;  %v955_v36 = vand.u32 2147483648, %v874_v26  ;;  %vm949_vm6 = vweird.f32 %v874_v26  ;;  %v953_v19 = vand.u32 2147483647, %v874_v26 }
 0x244   :  { %v464_v60 = vpack.c.bf16 %v403_v40, %v403_v40 }
 0x245   :  { %v956_v32 = vor.u32 1.1754944e-38, %v955_v36  ;;  %vm954_vm9 = vcmp.eq.f32.partialorder %v953_v19, 8.507059e+37  ;;  %v405_v19 = vpop.f32.mrf.mxu2 }
 0x249   :  { %v7864_v52 = vpop.eup %7863 }
 0x24a   :  { %v945_v55 = vmul.f32 %v7864_v52, %v874_v26  ;;  %v877_v56 = vpop.xlane.xlu0 %876  ;;  %v8883_v57 = vpop.xlane.xlu2 %870  ;;  %vm950_vm3 = vweird.f32 %v7864_v52  ;;  %v927_v26 = vsel %vm924_vm8, %v926_v27, %v922_v63 }
 0x24b   :  { %7865 = vrcp.f32 %v877_v56  ;;  %vm8891_vm7 = vmor %vm949_vm6, %vm950_vm3  ;;  %v968_v42 = vand.u32 2147483647, %v877_v56  ;;  %v970_v44 = vand.u32 2147483648, %v877_v56  ;;  %v938_v50 = vand.u32 2147483647, %v8883_v57 }
 0x24c   :  { %v946_v62 = vsub.f32 1.0, %v945_v55  ;;  %7867 = vrcp.f32 %v8883_v57  ;;  %v1261_v55 = vunpack.c.l.b16 %v463_v34  ;;  %vm964_vm12 = vweird.f32 %v877_v56 }
 0x24d   :  { %v971_v38 = vor.u32 1.1754944e-38, %v970_v44  ;;  %vm934_vm14 = vweird.f32 %v8883_v57  ;;  %vm969_vm15 = vcmp.eq.f32.partialorder %v968_v42, 8.507059e+37  ;;  %vm939_vm3 = vcmp.eq.f32.partialorder %v938_v50, 8.507059e+37  ;;  %v407_v34 = vpop.f32.mrf.mxu2 }
 0x24e   :  { %v947_v5 = vmul.f32 %v7864_v52, %v946_v62  ;;  %v928_v62 = vmul.f32 %v8806_v1, %v927_v26 }
 0x250   :  { %v948_v17 = vadd.f32 %v7864_v52, %v947_v5  ;;  %v1262_v5 = vunpack.c.l.b16 %v464_v60  ;;  %v1154_v22 = vpack.c.bf16 %v928_v62, %v928_v62 }
 0x251   :  { %v7866_v20 = vpop.eup %7865 }
 0x252   :  { %v7868_v23 = vpop.eup %7867  ;;  %v960_v30 = vmul.f32 %v7866_v20, %v877_v56  ;;  %v952_v31 = vsel %vm8891_vm7, %v7864_v52, %v948_v17  ;;  %vm965_vm10 = vweird.f32 %v7866_v20  ;;  %v940_v52 = vand.u32 2147483648, %v8883_v57 }
 0x253   :  { %v930_v33 = vmul.f32 %v7868_v23, %v8883_v57  ;;  %v957_v47 = vsel %vm954_vm9, %v956_v32, %v952_v31  ;;  %vm935_vm11 = vweird.f32 %v7868_v23  ;;  %vm966_vm13 = vmor %vm964_vm12, %vm965_vm10  ;;  %v1263_v14 = vpack.c.b16 %v1262_v5, %v1261_v55 }
 0x254   :  { %v961_v24 = vsub.f32 1.0, %v960_v30  ;;  %v958_v0 = vmul.f32 %v8815_v16, %v957_v47  ;;  %vm936_vm2 = vmor %vm934_vm14, %vm935_vm11  ;;  %v941_v7 = vor.u32 1.1754944e-38, %v940_v52  ;;  %v1172_v31 = vunpack.c.l.b16 %v1154_v22 }
 0x255   :  { %v931_v45 = vsub.f32 1.0, %v930_v33  ;;  %1275 = vmatpush.bf16.msra.mxu3 %v1263_v14  ;;  %v410_v44 = vpop.f32.mrf.mxu2  ;;  %v8920_v14 = vld [vmem:[#allocation2 + $0x2] ss:$0 sm:$0xff] }
 0x256   :  { %v962_v48 = vmul.f32 %v7866_v20, %v961_v24  ;;  %v1156_v1 = vpack.c.bf16 %v958_v0, %v958_v0  ;;  %v411_v47 = vadd.f32 %v8871_v2, %v410_v44 }
 0x257   :  { %v932_v53 = vmul.f32 %v7868_v23, %v931_v45 }
 0x258   :  { %v963_v61 = vadd.f32 %v7866_v20, %v962_v48  ;;  %v1200_v27 = vunpack.c.l.b16 %v1156_v1  ;;  %v467_v50 = vpack.c.bf16 %v411_v47, %v411_v47 }
 0x259   :  { %v933_v4 = vadd.f32 %v7868_v23, %v932_v53 }
 0x25a   :  { %v967_v10 = vsel %vm966_vm13, %v7866_v20, %v963_v61  ;;  %v1317_v53 = vunpack.c.l.b16 %v467_v50 }
 0x25b   :  { %v937_v36 = vsel %vm936_vm2, %v7868_v23, %v933_v4  ;;  %v972_v13 = vsel %vm969_vm15, %v971_v38, %v967_v10  ;;  %v406_v23 = vadd.f32 %v8871_v2, %v405_v19  ;;  %v727_v19 = vmul.f32 0.25, %v8845_v43 }
 0x25c   :  { %v942_v17 = vsel %vm939_vm3, %v941_v7, %v937_v36  ;;  %v973_v56 = vmul.f32 %v8821_v41, %v972_v13  ;;  %v718_v36 = vmul.f32 0.25, %v8769_v11 }
 0x25d   :  { %v943_v16 = vmul.f32 %v8819_v49, %v942_v17  ;;  %v465_v41 = vpack.c.bf16 %v406_v23, %v406_v23  ;;  %v408_v49 = vadd.f32 %v8871_v2, %v407_v34  ;;  %v412_v40 = vpop.f32.mrf.mxu2 }
 0x25e   :  { %v1157_v63 = vpack.c.bf16 %v973_v56, %v973_v56  ;;  %v413_v48 = vadd.f32 %v8871_v2, %v412_v40  ;;  %v7799_v56 = vld [vmem:[%s12207_s2 + $0x18] sm:$0xff] }
 0x25f   :  { %v1155_v57 = vpack.c.bf16 %v943_v16, %v943_v16  ;;  %v1289_v24 = vunpack.c.l.b16 %v465_v41  ;;  %v466_v42 = vpack.c.bf16 %v408_v49, %v408_v49  ;;  %v7802_v49 = vld [vmem:[%s12207_s2 + $0x30] sm:$0xff] }
 0x260   :  { %v1201_v30 = vunpack.c.l.b16 %v1157_v63  ;;  %v468_v52 = vpack.c.bf16 %v413_v48, %v413_v48  ;;  %v8934_v63 = vadd.f32 %v8920_v14, %v718_v36 }
 0x261   :  { %v1173_v32 = vunpack.c.l.b16 %v1155_v57  ;;  %v1290_v26 = vunpack.c.l.b16 %v466_v42  ;;  %v8936_v57 = vld [vmem:[#allocation2 + $0x6] ss:$0 sm:$0xff] }
 0x262   :  { %v1202_v20 = vpack.c.b16 %v1201_v30, %v1200_v27  ;;  %v1318_v55 = vunpack.c.l.b16 %v468_v52  ;;  %v8947_v23 = vadd.f32 %v8936_v57, %v727_v19 }
 0x263   :  { %v1174_v33 = vpack.c.b16 %v1173_v32, %v1172_v31  ;;  %v1291_v39 = vpack.c.b16 %v1290_v26, %v1289_v24  ;;  %v7798_v24 = vld [vmem:[%s12207_s2 + $0x10] sm:$0xff] }
 0x264   :  { %7537 = vmatmul.msk.bf16.vlgmr.msrb.gmra.mxu1 %vm483_vm1, %v1202_v20  ;;  %v1319_v62 = vpack.c.b16 %v1318_v55, %v1317_v53  ;;  %v809_v53 = vsel %vm483_vm1, %v8947_v23, -inf }
 0x265   :  { %7536 = vmatmul.msk.bf16.vlgmr.msrb.gmra.mxu0 %vm483_vm1, %v1174_v33  ;;  %v782_v33 = vsel %vm483_vm1, %v8934_v63, -inf }
 0x266   :  { %1303 = vmatpush.bf16.msra.mxu0 %v1291_v39  ;;  %1331 = vmatpush.bf16.msra.mxu1 %v1319_v62 }
 0x26a   :  { %1423 = vmatpush.bf16.msrb.mxu0 %v7799_v56 }
 0x26e   :  { %1424 = vmatpush.bf16.msrb.mxu0 %v7798_v24 }
 0x272   :  { %v892_v45 = vpop.xlane.xlu2 %891 }
 0x273   :  { %7869 = vrcp.f32 %v892_v45  ;;  %v1045_v30 = vand.u32 2147483648, %v892_v45  ;;  %vm1039_vm5 = vweird.f32 %v892_v45  ;;  %v1043_v43 = vand.u32 2147483647, %v892_v45 }
 0x275   :  { %v1046_v42 = vor.u32 1.1754944e-38, %v1045_v30  ;;  %vm1044_vm8 = vcmp.eq.f32.partialorder %v1043_v43, 8.507059e+37 }
 0x279   :  { %v7870_v0 = vpop.eup %7869 }
 0x27a   :  { %v793_v60 = vpop.xlane.xlu2 %792  ;;  %v1035_v4 = vmul.f32 %v7870_v0, %v892_v45  ;;  %vm1040_vm4 = vweird.f32 %v7870_v0 }
 0x27b   :  { %v825_v61 = vsub.f32 %v8840_v35, %v793_v60  ;;  %v7803_v35 = vld [vmem:[%s12207_s2 + $0x38] sm:$0xff]  ;;  %vm8940_vm6 = vmor %vm1039_vm5, %vm1040_vm4 }
 0x27c   :  { %v1036_v7 = vsub.f32 1.0, %v1035_v4  ;;  %1487 = vmatpush.bf16.msrb.mxu1 %v7803_v35 }
 0x27d   :  { %v848_v38 = vmul.f32 1.442695, %v825_v61 }
 0x27e   :  { %v1037_v17 = vmul.f32 %v7870_v0, %v1036_v7 }
 0x27f   :  { %7871 = vpow2.f32 %v848_v38 }
 0x280   :  { %v1038_v27 = vadd.f32 %v7870_v0, %v1037_v17  ;;  %1488 = vmatpush.bf16.msrb.mxu1 %v7802_v49 }
 0x282   :  { %v898_v5 = vpop.xlane.xlu0 %897  ;;  %v1042_v34 = vsel %vm8940_vm6, %v7870_v0, %v1038_v27 }
 0x283   :  { %7873 = vrcp.f32 %v898_v5  ;;  %v1073_v41 = vand.u32 2147483647, %v898_v5  ;;  %v1075_v39 = vand.u32 2147483648, %v898_v5  ;;  %vm1069_vm9 = vweird.f32 %v898_v5 }
 0x284   :  { %v1047_v47 = vsel %vm1044_vm8, %v1046_v42, %v1042_v34 }
 0x285   :  { %v8915_v10 = vpop.eup %7871  ;;  %vm1074_vm11 = vcmp.eq.f32.partialorder %v1073_v41, 8.507059e+37  ;;  %v1076_v62 = vor.u32 1.1754944e-38, %v1075_v39 }
 0x286   :  { %v887_v13 = vsel %vm483_vm1, %v8915_v10, 0.0 }
 0x287   :  { %888 = vadd.xlane.f32.xlu0 %v887_v13 }
 0x289   :  { %v7874_v1 = vpop.eup %7873 }
 0x28a   :  { %v1065_v16 = vmul.f32 %v7874_v1, %v898_v5  ;;  %v8929_v11 = vpop.xlane.xlu0 %894  ;;  %v8931_v22 = vpop.xlane.xlu1 %900  ;;  %vm1070_vm7 = vweird.f32 %v7874_v1 }
 0x28b   :  { %7875 = vrcp.f32 %v8929_v11  ;;  %vm8958_vm10 = vmor %vm1069_vm9, %vm1070_vm7  ;;  %v1058_v38 = vand.u32 2147483647, %v8929_v11  ;;  %v1060_v5 = vand.u32 2147483648, %v8929_v11  ;;  %v1090_v36 = vand.u32 2147483648, %v8931_v22 }
 0x28c   :  { %v1066_v31 = vsub.f32 1.0, %v1065_v16  ;;  %7877 = vrcp.f32 %v8931_v22  ;;  %vm1054_vm14 = vweird.f32 %v8929_v11  ;;  %vm1084_vm2 = vweird.f32 %v8931_v22 }
 0x28d   :  { %v1061_v16 = vor.u32 1.1754944e-38, %v1060_v5  ;;  %vm1059_vm3 = vcmp.eq.f32.partialorder %v1058_v38, 8.507059e+37  ;;  %v1091_v43 = vor.u32 1.1754944e-38, %v1090_v36 }
 0x28e   :  { %v1067_v20 = vmul.f32 %v7874_v1, %v1066_v31 }
 0x28f   :  { %783 = vmax.xlane.f32.xlu0 %v782_v33 }
 0x290   :  { %v1068_v26 = vadd.f32 %v7874_v1, %v1067_v20 }
 0x291   :  { %v7876_v44 = vpop.eup %7875 }
 0x292   :  { %v7878_v45 = vpop.eup %7877  ;;  %v1050_v48 = vmul.f32 %v7876_v44, %v8929_v11  ;;  %v790_v50 = vpop.xlane.xlu1 %789  ;;  %v1072_v55 = vsel %vm8958_vm10, %v7874_v1, %v1068_v26  ;;  %vm1055_vm12 = vweird.f32 %v7876_v44 }
 0x293   :  { %v814_v52 = vpop.xlane.xlu0 %813  ;;  %v1080_v60 = vmul.f32 %v7878_v45, %v8931_v22  ;;  %v824_v61 = vsub.f32 %v8865_v59, %v790_v50  ;;  %v1077_v17 = vsel %vm1074_vm11, %v1076_v62, %v1072_v55  ;;  %vm1085_vm13 = vweird.f32 %v7878_v45  ;;  %vm1056_vm15 = vmor %vm1054_vm14, %vm1055_vm12 }
 0x294   :  { %v1051_v0 = vsub.f32 1.0, %v1050_v48  ;;  %v832_v4 = vsub.f32 %v8863_v58, %v814_v52  ;;  %v1088_v59 = vand.u32 2147483647, %v8931_v22  ;;  %v1048_v58 = vmul.f32 %v8833_v28, %v1047_v47  ;;  %vm1086_vm4 = vmor %vm1084_vm2, %vm1085_vm13 }
 0x295   :  { %v1081_v7 = vsub.f32 1.0, %v1080_v60  ;;  %v846_v13 = vmul.f32 1.442695, %v824_v61  ;;  %v1078_v30 = vmul.f32 %v8850_v46, %v1077_v17 }
 0x296   :  { %v1052_v35 = vmul.f32 %v7876_v44, %v1051_v0  ;;  %v862_v56 = vmul.f32 1.442695, %v832_v4  ;;  %vm1089_vm5 = vcmp.eq.f32.partialorder %v1088_v59, 8.507059e+37  ;;  %v1162_v41 = vpack.c.bf16 %v1048_v58, %v1048_v58 }
 0x297   :  { %v1082_v1 = vmul.f32 %v7878_v45, %v1081_v7  ;;  %7879 = vpow2.f32 %v846_v13  ;;  %810 = vmax.xlane.f32.xlu0 %v809_v53  ;;  %v1164_v24 = vpack.c.bf16 %v1078_v30, %v1078_v30 }
 0x298   :  { %v1053_v19 = vadd.f32 %v7876_v44, %v1052_v35  ;;  %7881 = vpow2.f32 %v862_v56 }
 0x299   :  { %v1083_v27 = vadd.f32 %v7878_v45, %v1082_v1  ;;  %v1312_v40 = vunpack.c.l.b16 %v1164_v24 }
 0x29a   :  { %v1057_v31 = vsel %vm1056_vm15, %v7876_v44, %v1053_v19  ;;  %v817_v32 = vpop.xlane.xlu1 %816  ;;  %v719_v44 = vmul.f32 0.25, %v8774_v25  ;;  %v726_v25 = vmul.f32 0.25, %v8835_v29  ;;  %v415_v29 = vpop.f32.mrf.mxu2 }
 0x29b   :  { %v1062_v20 = vsel %vm1059_vm3, %v1061_v16, %v1057_v31  ;;  %v1087_v33 = vsel %vm1086_vm4, %v7878_v45, %v1083_v27  ;;  %v833_v11 = vsub.f32 %v8873_v3, %v817_v32  ;;  %v1284_v45 = vunpack.c.l.b16 %v1162_v41 }
 0x29c   :  { %v1092_v34 = vsel %vm1089_vm5, %v1091_v43, %v1087_v33  ;;  %v1063_v28 = vmul.f32 %v8854_v51, %v1062_v20  ;;  %v8992_v52 = vadd.f32 %v8920_v14, %v719_v44  ;;  %v9004_v61 = vadd.f32 %v8936_v57, %v726_v25 }
 0x29d   :  { %v8981_v49 = vpop.eup %7879  ;;  %v864_v22 = vmul.f32 1.442695, %v833_v11  ;;  %v1093_v46 = vmul.f32 %v8856_v54, %v1092_v34  ;;  %v416_v57 = vadd.f32 %v8871_v2, %v415_v29 }
 0x29e   :  { %v8984_v42 = vpop.eup %7881  ;;  %v884_v26 = vsel %vm483_vm1, %v8981_v49, 0.0  ;;  %v1163_v39 = vpack.c.bf16 %v1063_v28, %v1063_v28  ;;  %v785_v60 = vsel %vm483_vm1, %v8992_v52, -inf  ;;  %v806_v62 = vsel %vm483_vm1, %v9004_v61, -inf }
 0x29f   :  { %7883 = vpow2.f32 %v864_v22  ;;  %885 = vadd.xlane.f32.xlu2 %v884_v26  ;;  %v908_v51 = vsel %vm483_vm1, %v8984_v42, 0.0  ;;  %v1165_v3 = vpack.c.bf16 %v1093_v46, %v1093_v46  ;;  %v469_v38 = vpack.c.bf16 %v416_v57, %v416_v57 }
 0x2a0   :  { %909 = vadd.xlane.f32.xlu1 %v908_v51  ;;  %v1285_v47 = vunpack.c.l.b16 %v1163_v39 }
 0x2a1   :  { %v1313_v54 = vunpack.c.l.b16 %v1165_v3  ;;  %v1345_v7 = vunpack.c.l.b16 %v469_v38 }
 0x2a2   :  { %v1286_v48 = vpack.c.b16 %v1285_v47, %v1284_v45  ;;  %v417_v4 = vpop.f32.mrf.mxu2 }
 0x2a3   :  { %v1314_v50 = vpack.c.b16 %v1313_v54, %v1312_v40  ;;  %v418_v5 = vadd.f32 %v8871_v2, %v417_v4 }
 0x2a4   :  { %7540 = vmatmul.msk.bf16.vlgmr.msra.gmra.mxu0 %vm483_vm1, %v1286_v48 }
 0x2a5   :  { %v8995_v53 = vpop.eup %7883  ;;  %7541 = vmatmul.msk.bf16.vlgmr.msra.gmra.mxu1 %vm483_vm1, %v1314_v50  ;;  %v470_v36 = vpack.c.bf16 %v418_v5, %v418_v5 }
 0x2a6   :  { %v911_v55 = vsel %vm483_vm1, %v8995_v53, 0.0 }
 0x2a7   :  { %912 = vadd.xlane.f32.xlu2 %v911_v55  ;;  %v1346_v13 = vunpack.c.l.b16 %v470_v36 }
 0x2a8   :  { %786 = vmax.xlane.f32.xlu1 %v785_v60 }
 0x2a9   :  { %v1347_v35 = vpack.c.b16 %v1346_v13, %v1345_v7 }
 0x2aa   :  { %v420_v56 = vpop.f32.mrf.mxu2 }
 0x2ab   :  { %1359 = vmatpush.bf16.msra.mxu2 %v1347_v35  ;;  %v421_v43 = vadd.f32 %v8871_v2, %v420_v56 }
 0x2ad   :  { %v471_v33 = vpack.c.bf16 %v421_v43, %v421_v43 }
 0x2af   :  { %807 = vmax.xlane.f32.xlu2 %v806_v62  ;;  %v1373_v22 = vunpack.c.l.b16 %v471_v33 }
 0x2b2   :  { %v422_v30 = vpop.f32.mrf.mxu2 }
 0x2b3   :  { %v423_v32 = vadd.f32 %v8871_v2, %v422_v30 }
 0x2b4   :  { %7552 = vmatmul.msk.bf16.vlgmr.msrb.gmra.mxu0 %vm223_vm0, %v8617_v6 }
 0x2b5   :  { %7568 = vmatmul.msk.bf16.vlgmr.msrb.gmra.mxu1 %vm223_vm0, %v8617_v6  ;;  %v472_v11 = vpack.c.bf16 %v423_v32, %v423_v32 }
 0x2b7   :  { %v1374_v46 = vunpack.c.l.b16 %v472_v11 }
 0x2b9   :  { %v1375_v24 = vpack.c.b16 %v1374_v46, %v1373_v22 }
 0x2bb   :  { %1387 = vmatpush.bf16.msrb.mxu3 %v1375_v24 }
 0x2c4   :  { %7553 = vmatmul.msk.bf16.gmra.mxu0 %vm223_vm0, %v8629_v9 }
 0x2c5   :  { %7569 = vmatmul.msk.bf16.gmra.mxu1 %vm223_vm0, %v8629_v9 }
 0x2d4   :  { %7554 = vmatmul.msk.bf16.gmra.mxu0 %vm223_vm0, %v8641_v12 }
 0x2d5   :  { %7570 = vmatmul.msk.bf16.gmra.mxu1 %vm223_vm0, %v8641_v12 }
 0x2e2   :  { %v9042_v41 = vpop.f32.mrf.mxu0 }
 0x2e4   :  { %7555 = vmatmul.msk.bf16.gmra.mxu0 %vm223_vm0, %v8653_v15 }
 0x2e5   :  { %7571 = vmatmul.msk.bf16.gmra.mxu1 %vm223_vm0, %v8653_v15 }
 0x2ea   :  { %v9057_v48 = vpop.f32.mrf.mxu0 }
 0x2f4   :  { %7556 = vmatmul.msk.bf16.gmra.mxu0 %vm223_vm0, %v8665_v18 }
 0x2f5   :  { %7572 = vmatmul.msk.bf16.gmra.mxu1 %vm223_vm0, %v8665_v18 }
 0x2fa   :  { %v889_v0 = vpop.xlane.xlu0 %888 }
 0x2fb   :  { %7885 = vrcp.f32 %v889_v0  ;;  %v1030_v39 = vand.u32 2147483648, %v889_v0  ;;  %vm1024_vm7 = vweird.f32 %v889_v0  ;;  %v1028_v51 = vand.u32 2147483647, %v889_v0 }
 0x2fd   :  { %v1031_v40 = vor.u32 1.1754944e-38, %v1030_v39  ;;  %vm1029_vm9 = vcmp.eq.f32.partialorder %v1028_v51, 8.507059e+37 }
 0x301   :  { %v7886_v1 = vpop.eup %7885 }
 0x302   :  { %v784_v17 = vpop.xlane.xlu0 %783  ;;  %v1020_v58 = vmul.f32 %v7886_v1, %v889_v0  ;;  %vm1025_vm6 = vweird.f32 %v7886_v1 }
 0x303   :  { %v822_v59 = vsub.f32 %v8934_v63, %v784_v17  ;;  %vm1026_vm8 = vmor %vm1024_vm7, %vm1025_vm6 }
 0x304   :  { %7557 = vmatmul.msk.bf16.gmra.mxu0 %vm223_vm0, %v8677_v21  ;;  %v1021_v16 = vsub.f32 1.0, %v1020_v58 }
 0x305   :  { %v842_v19 = vmul.f32 1.442695, %v822_v59  ;;  %7573 = vmatmul.msk.bf16.gmra.mxu1 %vm223_vm0, %v8677_v21 }
 0x306   :  { %v1022_v34 = vmul.f32 %v7886_v1, %v1021_v16 }
 0x307   :  { %7887 = vpow2.f32 %v842_v19 }
 0x308   :  { %v1023_v26 = vadd.f32 %v7886_v1, %v1022_v34 }
 0x30a   :  { %v811_v27 = vpop.xlane.xlu0 %810  ;;  %v1027_v45 = vsel %vm1026_vm8, %v7886_v1, %v1023_v26 }
 0x30b   :  { %v831_v31 = vsub.f32 %v8947_v23, %v811_v27  ;;  %v9044_v23 = vpop.f32.mrf.mxu1  ;;  %v1032_v50 = vsel %vm1029_vm9, %v1031_v40, %v1027_v45 }
 0x30c   :  { %v1033_v4 = vmul.f32 %v8915_v10, %v1032_v50 }
 0x30d   :  { %v9038_v63 = vpop.eup %7887  ;;  %v860_v20 = vmul.f32 1.442695, %v831_v31 }
 0x30e   :  { %v878_v28 = vsel %vm483_vm1, %v9038_v63, 0.0  ;;  %v1161_v56 = vpack.c.bf16 %v1033_v4, %v1033_v4 }
 0x30f   :  { %7889 = vpow2.f32 %v860_v20  ;;  %879 = vadd.xlane.f32.xlu1 %v878_v28 }
 0x310   :  { %v1257_v20 = vunpack.c.l.b16 %v1161_v56 }
 0x312   :  { %v886_v2 = vpop.xlane.xlu2 %885 }
 0x313   :  { %7891 = vrcp.f32 %v886_v2  ;;  %v9046_v44 = vpop.xlane.xlu1 %909  ;;  %v9061_v55 = vpop.f32.mrf.mxu1  ;;  %v1013_v5 = vand.u32 2147483647, %v886_v2  ;;  %v1015_v7 = vand.u32 2147483648, %v886_v2  ;;  %vm1009_vm11 = vweird.f32 %v886_v2 }
 0x314   :  { %7893 = vrcp.f32 %v9046_v44  ;;  %7558 = vmatmul.msk.bf16.gmra.mxu0 %vm223_vm0, %v8707_v8  ;;  %vm1129_vm2 = vweird.f32 %v9046_v44 }
 0x315   :  { %v9051_v3 = vpop.eup %7889  ;;  %7574 = vmatmul.msk.bf16.gmra.mxu1 %vm223_vm0, %v8707_v8  ;;  %v1016_v59 = vor.u32 1.1754944e-38, %v1015_v7  ;;  %vm1014_vm13 = vcmp.eq.f32.partialorder %v1013_v5, 8.507059e+37 }
 0x316   :  { %v905_v47 = vsel %vm483_vm1, %v9051_v3, 0.0 }
 0x317   :  { %906 = vadd.xlane.f32.xlu1 %v905_v47 }
 0x319   :  { %v7892_v54 = vpop.eup %7891 }
 0x31a   :  { %v9059_v25 = vpop.eup %7893  ;;  %v1005_v60 = vmul.f32 %v7892_v54, %v886_v2  ;;  %v913_v62 = vpop.xlane.xlu2 %912  ;;  %vm1010_vm10 = vweird.f32 %v7892_v54  ;;  %v1133_v2 = vand.u32 2147483647, %v9046_v44 }
 0x31b   :  { %v1125_v29 = vmul.f32 %v9059_v25, %v9046_v44  ;;  %7895 = vrcp.f32 %v913_v62  ;;  %v787_v57 = vpop.xlane.xlu1 %786  ;;  %vm1011_vm12 = vmor %vm1009_vm11, %vm1010_vm10  ;;  %vm1130_vm14 = vweird.f32 %v9059_v25  ;;  %v1148_v33 = vand.u32 2147483647, %v913_v62 }
 0x31c   :  { %v1006_v0 = vsub.f32 1.0, %v1005_v60  ;;  %v823_v38 = vsub.f32 %v8992_v52, %v787_v57  ;;  %v1150_v11 = vand.u32 2147483648, %v913_v62  ;;  %vm9086_vm3 = vmor %vm1129_vm2, %vm1130_vm14  ;;  %vm1144_vm4 = vweird.f32 %v913_v62 }
 0x31d   :  { %v1126_v13 = vsub.f32 1.0, %v1125_v29  ;;  %vm1149_vm6 = vcmp.eq.f32.partialorder %v1148_v33, 8.507059e+37  ;;  %vm1134_vm7 = vcmp.eq.f32.partialorder %v1133_v2, 8.507059e+37 }
 0x31e   :  { %v1007_v36 = vmul.f32 %v7892_v54, %v1006_v0  ;;  %v844_v17 = vmul.f32 1.442695, %v823_v38  ;;  %v1151_v45 = vor.u32 1.1754944e-38, %v1150_v11 }
 0x31f   :  { %v1127_v52 = vmul.f32 %v9059_v25, %v1126_v13 }
 0x320   :  { %v1008_v35 = vadd.f32 %v7892_v54, %v1007_v36  ;;  %7897 = vpow2.f32 %v844_v17  ;;  %v9105_v36 = vld [vmem:[#allocation5 + $0x3] ss:$0 sm:$0xff] }
 0x321   :  { %v7896_v1 = vpop.eup %7895  ;;  %v9067_v19 = vpop.f32.mrf.mxu0  ;;  %v1128_v22 = vadd.f32 %v9059_v25, %v1127_v52 }
 0x322   :  { %v1012_v58 = vsel %vm1011_vm12, %v7892_v54, %v1008_v35  ;;  %v1140_v10 = vmul.f32 %v7896_v1, %v913_v62  ;;  %v9070_v16 = vpop.f32.mrf.mxu1  ;;  %v808_v27 = vpop.xlane.xlu2 %807  ;;  %vm1145_vm15 = vweird.f32 %v7896_v1 }
 0x323   :  { %v1017_v30 = vsel %vm1014_vm13, %v1016_v59, %v1012_v58  ;;  %v830_v31 = vsub.f32 %v9004_v61, %v808_v27  ;;  %vm1146_vm5 = vmor %vm1144_vm4, %vm1145_vm15  ;;  %v1132_v40 = vsel %vm9086_vm3, %v9059_v25, %v1128_v22  ;;  %v9108_v59 = vld [vmem:[#allocation5 + $0x1] ss:$0 sm:$0xff] }
 0x324   :  { %v1141_v43 = vsub.f32 1.0, %v1140_v10  ;;  %v1018_v32 = vmul.f32 %v8981_v49, %v1017_v30  ;;  %7559 = vmatmul.msk.bf16.gmra.mxu0 %vm223_vm0, %v8725_v37  ;;  %v1135_v49 = vand.u32 2147483648, %v9046_v44 }
 0x325   :  { %v858_v34 = vmul.f32 1.442695, %v830_v31  ;;  %7575 = vmatmul.msk.bf16.gmra.mxu1 %vm223_vm0, %v8725_v37 }
 0x326   :  { %v9079_v28 = vpop.eup %7897  ;;  %v1142_v61 = vmul.f32 %v7896_v1, %v1141_v43  ;;  %v1160_v46 = vpack.c.bf16 %v1018_v32, %v1018_v32  ;;  %v1136_v29 = vor.u32 1.1754944e-38, %v1135_v49 }
 0x327   :  { %7899 = vpow2.f32 %v858_v34  ;;  %v881_v24 = vsel %vm483_vm1, %v9079_v28, 0.0 }
 0x328   :  { %v1143_v39 = vadd.f32 %v7896_v1, %v1142_v61  ;;  %882 = vadd.xlane.f32.xlu2 %v881_v24  ;;  %v1256_v51 = vunpack.c.l.b16 %v1160_v46  ;;  %v1137_v62 = vsel %vm1134_vm7, %v1136_v29, %v1132_v40 }
 0x329   :  { %v9091_v47 = vpop.f32.mrf.mxu0  ;;  %v1138_v25 = vmul.f32 %v8984_v42, %v1137_v62 }
 0x32a   :  { %v1147_v54 = vsel %vm1146_vm5, %v7896_v1, %v1143_v39  ;;  %v9096_v50 = vpop.f32.mrf.mxu1  ;;  %v1258_v60 = vpack.c.b16 %v1257_v20, %v1256_v51 }
 0x32b   :  { %v1152_v57 = vsel %vm1149_vm6, %v1151_v45, %v1147_v54  ;;  %v1168_v13 = vpack.c.bf16 %v1138_v25, %v1138_v25 }
 0x32c   :  { %7539 = vmatmul.msk.bf16.vlgmr.msra.gmra.mxu3 %vm483_vm1, %v1258_v60  ;;  %v1153_v38 = vmul.f32 %v8995_v53, %v1152_v57 }
 0x32d   :  { %v9099_v44 = vpop.eup %7899  ;;  %v1368_v56 = vunpack.c.l.b16 %v1168_v13 }
 0x32e   :  { %v902_v0 = vsel %vm483_vm1, %v9099_v44, 0.0  ;;  %v1169_v7 = vpack.c.bf16 %v1153_v38, %v1153_v38 }
 0x32f   :  { %903 = vadd.xlane.f32.xlu0 %v902_v0 }
 0x330   :  { %v1369_v17 = vunpack.c.l.b16 %v1169_v7 }
 0x331   :  { %v1426_v4 = vpop.f32.mrf.mxu0 }
 0x332   :  { %v1490_v5 = vpop.f32.mrf.mxu1  ;;  %v1370_v52 = vpack.c.b16 %v1369_v17, %v1368_v56  ;;  %v1427_v27 = vadd.f32 %v9108_v59, %v1426_v4 }
 0x333   :  { %v1491_v35 = vadd.f32 %v9105_v36, %v1490_v5 }
 0x334   :  { %v1594_v33 = vpack.c.bf16 %v1427_v27, %v1427_v27 }
 0x335   :  { %v1610_v10 = vpack.c.bf16 %v1491_v35, %v1491_v35 }
 0x336   :  { %v1644_v61 = vunpack.c.l.b16 %v1594_v33 }
 0x337   :  { %v1649_v31 = vunpack.c.l.b16 %v1610_v10 }
 0x339   :  { %v1428_v1 = vpop.f32.mrf.mxu0 }
 0x33a   :  { %v1492_v58 = vpop.f32.mrf.mxu1  ;;  %v1429_v30 = vadd.f32 %v9108_v59, %v1428_v1 }
 0x33b   :  { %v1493_v53 = vadd.f32 %v9105_v36, %v1492_v58 }
 0x33c   :  { %7543 = vmatmul.msk.bf16.vlgmr.msrb.gmra.mxu3 %vm483_vm1, %v1370_v52  ;;  %v1595_v11 = vpack.c.bf16 %v1429_v30, %v1429_v30 }
 0x33d   :  { %v1611_v42 = vpack.c.bf16 %v1493_v53, %v1493_v53 }
 0x33e   :  { %v1645_v46 = vunpack.c.l.b16 %v1595_v11 }
 0x33f   :  { %v1650_v43 = vunpack.c.l.b16 %v1611_v42 }
 0x340   :  { %v1646_v26 = vpack.c.b16 %v1645_v46, %v1644_v61 }
 0x341   :  { %v1651_v32 = vpack.c.b16 %v1650_v43, %v1649_v31  ;;  %v1431_v20 = vpop.f32.mrf.mxu0 }
 0x342   :  { %v1495_v34 = vpop.f32.mrf.mxu1  ;;  %v1432_v40 = vadd.f32 %v9108_v59, %v1431_v20 }
 0x343   :  { %v1656_v22 = vsel %vm483_vm1, %v1651_v32, 0  ;;  %v1496_v49 = vadd.f32 %v9105_v36, %v1495_v34 }
 0x344   :  { %1665 = vmatpush.bf16.xpose.msra.mxu3 %v1656_v22  ;;  %v1596_v0 = vpack.c.bf16 %v1432_v40, %v1432_v40 }
 0x345   :  { %v1612_v39 = vpack.c.bf16 %v1496_v49, %v1496_v49 }
 0x346   :  { %v1674_v5 = vunpack.c.l.b16 %v1596_v0 }
 0x347   :  { %v1679_v60 = vunpack.c.l.b16 %v1612_v39 }
 0x349   :  { %v1433_v24 = vpop.f32.mrf.mxu0 }
 0x34a   :  { %v1497_v2 = vpop.f32.mrf.mxu1  ;;  %v1434_v54 = vadd.f32 %v9108_v59, %v1433_v24 }
 0x34b   :  { %v1498_v51 = vadd.f32 %v9105_v36, %v1497_v2 }
 0x34c   :  { %7592 = vmatmul.msk.bf16.vlgmr.msra.gmra.mxu3 %vm483_vm1, %v1646_v26  ;;  %v1597_v38 = vpack.c.bf16 %v1434_v54, %v1434_v54 }
 0x34d   :  { %v1613_v45 = vpack.c.bf16 %v1498_v51, %v1498_v51 }
 0x34e   :  { %v1675_v7 = vunpack.c.l.b16 %v1597_v38 }
 0x34f   :  { %v1680_v29 = vunpack.c.l.b16 %v1613_v45 }
 0x350   :  { %v1676_v35 = vpack.c.b16 %v1675_v7, %v1674_v5 }
 0x351   :  { %v1681_v57 = vpack.c.b16 %v1680_v29, %v1679_v60  ;;  %v1436_v62 = vpop.f32.mrf.mxu0 }
 0x352   :  { %v1500_v25 = vpop.f32.mrf.mxu1  ;;  %v1437_v10 = vadd.f32 %v9108_v59, %v1436_v62 }
 0x353   :  { %v1686_v4 = vsel %vm483_vm1, %v1681_v57, 0  ;;  %v1501_v13 = vadd.f32 %v9105_v36, %v1500_v25 }
 0x354   :  { %1695 = vmatpush.bf16.xpose.msrb.mxu3 %v1686_v4  ;;  %v1598_v43 = vpack.c.bf16 %v1437_v10, %v1437_v10 }
 0x355   :  { %v1614_v1 = vpack.c.bf16 %v1501_v13, %v1501_v13 }
 0x356   :  { %v1704_v34 = vunpack.c.l.b16 %v1598_v43 }
 0x357   :  { %v1709_v42 = vunpack.c.l.b16 %v1614_v1 }
 0x359   :  { %v1438_v17 = vpop.f32.mrf.mxu0 }
 0x35a   :  { %v1502_v56 = vpop.f32.mrf.mxu1  ;;  %v1439_v53 = vadd.f32 %v9108_v59, %v1438_v17 }
 0x35b   :  { %v1503_v58 = vadd.f32 %v9105_v36, %v1502_v56 }
 0x35c   :  { %7593 = vmatmul.msk.bf16.vlgmr.msrb.gmra.mxu3 %vm483_vm1, %v1676_v35  ;;  %v1599_v32 = vpack.c.bf16 %v1439_v53, %v1439_v53 }
 0x35d   :  { %v1615_v52 = vpack.c.bf16 %v1503_v58, %v1503_v58 }
 0x35e   :  { %v1705_v22 = vunpack.c.l.b16 %v1599_v32 }
 0x35f   :  { %v1710_v27 = vunpack.c.l.b16 %v1615_v52 }
 0x360   :  { %v1706_v49 = vpack.c.b16 %v1705_v22, %v1704_v34 }
 0x361   :  { %v1711_v30 = vpack.c.b16 %v1710_v27, %v1709_v42  ;;  %v1441_v31 = vpop.f32.mrf.mxu0 }
 0x362   :  { %v1505_v20 = vpop.f32.mrf.mxu1  ;;  %v1442_v2 = vadd.f32 %v9108_v59, %v1441_v31 }
 0x363   :  { %v1716_v33 = vsel %vm483_vm1, %v1711_v30, 0  ;;  %v1506_v11 = vadd.f32 %v9105_v36, %v1505_v20 }
 0x364   :  { %1725 = vmatpush.bf16.xpose.msra.mxu3 %v1716_v33  ;;  %v1600_v54 = vpack.c.bf16 %v1442_v2, %v1442_v2 }
 0x365   :  { %v1616_v61 = vpack.c.bf16 %v1506_v11, %v1506_v11 }
 0x366   :  { %v1734_v38 = vunpack.c.l.b16 %v1600_v54 }
 0x367   :  { %v1739_v51 = vunpack.c.l.b16 %v1616_v61 }
 0x369   :  { %v1443_v46 = vpop.f32.mrf.mxu0 }
 0x36a   :  { %v1507_v24 = vpop.f32.mrf.mxu1  ;;  %v1444_v39 = vadd.f32 %v9108_v59, %v1443_v46 }
 0x36b   :  { %v1508_v26 = vadd.f32 %v9105_v36, %v1507_v24 }
 0x36c   :  { %7594 = vmatmul.msk.bf16.vlgmr.msra.gmra.mxu3 %vm483_vm1, %v1706_v49  ;;  %v1601_v60 = vpack.c.bf16 %v1444_v39, %v1444_v39 }
 0x36d   :  { %v1617_v45 = vpack.c.bf16 %v1508_v26, %v1508_v26 }
 0x36e   :  { %v1735_v25 = vunpack.c.l.b16 %v1601_v60 }
 0x36f   :  { %v1740_v40 = vunpack.c.l.b16 %v1617_v45 }
 0x370   :  { %v1736_v5 = vpack.c.b16 %v1735_v25, %v1734_v38 }
 0x371   :  { %v1741_v29 = vpack.c.b16 %v1740_v40, %v1739_v51  ;;  %v1446_v57 = vpop.f32.mrf.mxu0 }
 0x372   :  { %v1510_v62 = vpop.f32.mrf.mxu1  ;;  %v1447_v56 = vadd.f32 %v9108_v59, %v1446_v57 }
 0x373   :  { %v1746_v0 = vsel %vm483_vm1, %v1741_v29, 0  ;;  %v1511_v4 = vadd.f32 %v9105_v36, %v1510_v62 }
 0x374   :  { %1755 = vmatpush.bf16.xpose.msrb.mxu3 %v1746_v0  ;;  %v1602_v53 = vpack.c.bf16 %v1447_v56, %v1447_v56 }
 0x375   :  { %v1618_v7 = vpack.c.bf16 %v1511_v4, %v1511_v4 }
 0x376   :  { %v1764_v30 = vunpack.c.l.b16 %v1602_v53 }
 0x377   :  { %v1769_v58 = vunpack.c.l.b16 %v1618_v7 }
 0x379   :  { %v1448_v13 = vpop.f32.mrf.mxu0 }
 0x37a   :  { %v1512_v17 = vpop.f32.mrf.mxu1  ;;  %v1449_v1 = vadd.f32 %v9108_v59, %v1448_v13 }
 0x37b   :  { %v1513_v35 = vadd.f32 %v9105_v36, %v1512_v17 }
 0x37c   :  { %7595 = vmatmul.msk.bf16.vlgmr.msrb.gmra.mxu3 %vm483_vm1, %v1736_v5  ;;  %v1603_v42 = vpack.c.bf16 %v1449_v1, %v1449_v1 }
 0x37d   :  { %v1619_v52 = vpack.c.bf16 %v1513_v35, %v1513_v35 }
 0x37e   :  { %v1765_v31 = vunpack.c.l.b16 %v1603_v42 }
 0x37f   :  { %v1770_v10 = vunpack.c.l.b16 %v1619_v52 }
 0x380   :  { %v1766_v20 = vpack.c.b16 %v1765_v31, %v1764_v30 }
 0x381   :  { %v1771_v27 = vpack.c.b16 %v1770_v10, %v1769_v58  ;;  %v1451_v13 = vpop.f32.mrf.mxu0 }
 0x382   :  { %v880_v32 = vpop.xlane.xlu1 %879  ;;  %v1515_v26 = vpop.f32.mrf.mxu1  ;;  %v1452_v30 = vadd.f32 %v9108_v59, %v1451_v13 }
 0x383   :  { %v1776_v43 = vsel %vm483_vm1, %v1771_v27, 0  ;;  %7901 = vrcp.f32 %v880_v32  ;;  %v985_v2 = vand.u32 2147483648, %v880_v32  ;;  %vm979_vm9 = vweird.f32 %v880_v32 }
 0x384   :  { %1785 = vmatpush.bf16.xpose.msra.mxu3 %v1776_v43  ;;  %v983_v39 = vand.u32 2147483647, %v880_v32  ;;  %v1516_v29 = vadd.f32 %v9105_v36, %v1515_v26 }
 0x385   :  { %v986_v57 = vor.u32 1.1754944e-38, %v985_v2  ;;  %v1604_v2 = vpack.c.bf16 %v1452_v30, %v1452_v30 }
 0x386   :  { %vm984_vm11 = vcmp.eq.f32.partialorder %v983_v39, 8.507059e+37  ;;  %v1620_v7 = vpack.c.bf16 %v1516_v29, %v1516_v29 }
 0x388   :  { %v1799_v27 = vunpack.c.l.b16 %v1620_v7 }
 0x389   :  { %v7902_v33 = vpop.eup %7901 }
 0x38a   :  { %v975_v11 = vmul.f32 %v7902_v33, %v880_v32  ;;  %v9140_v34 = vpop.xlane.xlu1 %906  ;;  %vm980_vm8 = vweird.f32 %v7902_v33  ;;  %v1517_v17 = vpop.f32.mrf.mxu1 }
 0x38b   :  { %7903 = vrcp.f32 %v9140_v34  ;;  %vm981_vm10 = vmor %vm979_vm9, %vm980_vm8  ;;  %v1518_v58 = vadd.f32 %v9105_v36, %v1517_v17  ;;  %vm1114_vm2 = vweird.f32 %v9140_v34 }
 0x38c   :  { %7596 = vmatmul.msk.bf16.vlgmr.msra.gmra.mxu3 %vm483_vm1, %v1766_v20  ;;  %v976_v22 = vsub.f32 1.0, %v975_v11 }
 0x38d   :  { %v1621_v31 = vpack.c.bf16 %v1518_v58, %v1518_v58 }
 0x38e   :  { %v977_v61 = vmul.f32 %v7902_v33, %v976_v22 }
 0x390   :  { %v978_v24 = vadd.f32 %v7902_v33, %v977_v61 }
 0x391   :  { %v9143_v49 = vpop.eup %7903 }
 0x392   :  { %v1110_v45 = vmul.f32 %v9143_v49, %v9140_v34  ;;  %v982_v60 = vsel %vm981_vm10, %v7902_v33, %v978_v24  ;;  %vm1115_vm3 = vweird.f32 %v9143_v49  ;;  %v1800_v33 = vunpack.c.l.b16 %v1621_v31 }
 0x393   :  { %v987_v4 = vsel %vm984_vm11, %v986_v57, %v982_v60  ;;  %vm9160_vm5 = vmor %vm1114_vm2, %vm1115_vm3  ;;  %v1453_v60 = vpop.f32.mrf.mxu0 }
 0x394   :  { %v1111_v0 = vsub.f32 1.0, %v1110_v45  ;;  %v988_v1 = vmul.f32 %v9038_v63, %v987_v4  ;;  %v1801_v39 = vpack.c.b16 %v1800_v33, %v1799_v27  ;;  %v1120_v45 = vand.u32 2147483648, %v9140_v34 }
 0x396   :  { %v1112_v52 = vmul.f32 %v9143_v49, %v1111_v0  ;;  %v1158_v20 = vpack.c.bf16 %v988_v1, %v988_v1  ;;  %v1806_v0 = vsel %vm483_vm1, %v1801_v39, 0 }
 0x397   :  { %1815 = vmatpush.bf16.xpose.msrb.mxu3 %v1806_v0 }
 0x398   :  { %v1113_v11 = vadd.f32 %v9143_v49, %v1112_v52  ;;  %v1228_v29 = vunpack.c.l.b16 %v1158_v20 }
 0x39b   :  { %v883_v46 = vpop.xlane.xlu2 %882 }
 0x39c   :  { %7905 = vrcp.f32 %v883_v46  ;;  %v998_v38 = vand.u32 2147483647, %v883_v46  ;;  %v1000_v25 = vand.u32 2147483648, %v883_v46  ;;  %vm994_vm13 = vweird.f32 %v883_v46 }
 0x39e   :  { %vm999_vm15 = vcmp.eq.f32.partialorder %v998_v38, 8.507059e+37  ;;  %v1001_v10 = vor.u32 1.1754944e-38, %v1000_v25  ;;  %v1117_v38 = vsel %vm9160_vm5, %v9143_v49, %v1113_v11 }
 0x3a2   :  { %v7906_v51 = vpop.eup %7905  ;;  %v904_v40 = vpop.xlane.xlu0 %903 }
 0x3a3   :  { %v990_v54 = vmul.f32 %v7906_v51, %v883_v46  ;;  %7907 = vrcp.f32 %v904_v40  ;;  %vm995_vm12 = vweird.f32 %v7906_v51  ;;  %v1105_v61 = vand.u32 2147483648, %v904_v40 }
 0x3a4   :  { %vm996_vm14 = vmor %vm994_vm13, %vm995_vm12  ;;  %v1103_v46 = vand.u32 2147483647, %v904_v40  ;;  %vm1099_vm6 = vweird.f32 %v904_v40 }
 0x3a5   :  { %v991_v62 = vsub.f32 1.0, %v990_v54  ;;  %v1106_v4 = vor.u32 1.1754944e-38, %v1105_v61 }
 0x3a6   :  { %vm1104_vm8 = vcmp.eq.f32.partialorder %v1103_v46, 8.507059e+37 }
 0x3a7   :  { %v992_v5 = vmul.f32 %v7906_v51, %v991_v62  ;;  %v1454_v62 = vadd.f32 %v9108_v59, %v1453_v60 }
 0x3a9   :  { %v7908_v35 = vpop.eup %7907  ;;  %v993_v56 = vadd.f32 %v7906_v51, %v992_v5  ;;  %v1605_v7 = vpack.c.bf16 %v1454_v62, %v1454_v62 }
 0x3aa   :  { %v1095_v53 = vmul.f32 %v7908_v35, %v904_v40  ;;  %vm1100_vm4 = vweird.f32 %v7908_v35  ;;  %v1121_v40 = vor.u32 1.1754944e-38, %v1120_v45 }
 0x3ab   :  { %v997_v42 = vsel %vm996_vm14, %v7906_v51, %v993_v56  ;;  %vm1101_vm7 = vmor %vm1099_vm6, %vm1100_vm4  ;;  %v1795_v17 = vunpack.c.l.b16 %v1605_v7  ;;  %v8299_v7 = vld [vmem:[#allocation2 + $0x3] ss:$0 sm:$0xff] }
 0x3ac   :  { %v1096_v43 = vsub.f32 1.0, %v1095_v53  ;;  %v1002_v32 = vsel %vm999_vm15, %v1001_v10, %v997_v42 }
 0x3ad   :  { %v1003_v63 = vmul.f32 %v9079_v28, %v1002_v32  ;;  %v1118_v28 = vand.u32 2147483647, %v9140_v34  ;;  %v1794_v34 = vunpack.c.l.b16 %v1604_v2 }
 0x3ae   :  { %v1097_v22 = vmul.f32 %v7908_v35, %v1096_v43 }
 0x3af   :  { %v9156_v24 = vpop.f32.mrf.mxu3  ;;  %v1159_v26 = vpack.c.bf16 %v1003_v63, %v1003_v63  ;;  %vm1119_vm9 = vcmp.eq.f32.partialorder %v1118_v28, 8.507059e+37  ;;  %v1796_v52 = vpack.c.b16 %v1795_v17, %v1794_v34  ;;  %v8297_v63 = vld [vmem:[#allocation2] ss:$0 sm:$0xff] }
 0x3b0   :  { %v1098_v54 = vadd.f32 %v7908_v35, %v1097_v22  ;;  %v1122_v56 = vsel %vm1119_vm9, %v1121_v40, %v1117_v38 }
 0x3b1   :  { %v1229_v57 = vunpack.c.l.b16 %v1159_v26  ;;  %v1123_v49 = vmul.f32 %v9051_v3, %v1122_v56  ;;  %7597 = vmatmul.msk.bf16.vlgmr.msrb.gmra.mxu3 %vm483_vm1, %v1796_v52  ;;  %v8298_v26 = vld [vmem:[#allocation2 + $0x1] ss:$0 sm:$0xff]  ;;  %v1520_v52 = vpop.f32.mrf.mxu1 }
 0x3b2   :  { %v1102_v25 = vsel %vm1101_vm7, %v7908_v35, %v1098_v54 }
 0x3b3   :  { %v1230_v5 = vpack.c.b16 %v1229_v57, %v1228_v29  ;;  %v1107_v13 = vsel %vm1104_vm8, %v1106_v4, %v1102_v25  ;;  %v1167_v10 = vpack.c.bf16 %v1123_v49, %v1123_v49 }
 0x3b4   :  { %v1108_v58 = vmul.f32 %v9099_v44, %v1107_v13 }
 0x3b5   :  { %7538 = vmatmul.msk.bf16.vlgmr.msrb.gmra.mxu2 %vm483_vm1, %v1230_v5  ;;  %v1341_v27 = vunpack.c.l.b16 %v1167_v10  ;;  %v9216_v10 = vld [vmem:[#allocation2 + $0x4] ss:$0 sm:$0xff] }
 0x3b6   :  { %v1166_v35 = vpack.c.bf16 %v1108_v58, %v1108_v58 }
 0x3b7   :  { %v9172_v1 = vpop.f32.mrf.mxu3 }
 0x3b8   :  { %v1340_v42 = vunpack.c.l.b16 %v1166_v35 }
 0x3ba   :  { %v1342_v30 = vpack.c.b16 %v1341_v27, %v1340_v42  ;;  %v1521_v27 = vadd.f32 %v9105_v36, %v1520_v52 }
 0x3bf   :  { %v9177_v53 = vpop.f32.mrf.mxu3 }
 0x3c5   :  { %7542 = vmatmul.msk.bf16.vlgmr.msra.gmra.mxu2 %vm483_vm1, %v1342_v30 }
 0x3c7   :  { %v9180_v31 = vpop.f32.mrf.mxu3 }
 0x3cf   :  { %v1667_v43 = vpop.f32.mrf.mxu3 }
 0x3d0   :  { %v1882_v32 = vmul.f32 0.25, %v1667_v43  ;;  %v1622_v43 = vpack.c.bf16 %v1521_v27, %v1521_v27 }
 0x3d2   :  { %v9182_v44 = vadd.f32 %v8297_v63, %v1882_v32  ;;  %v1456_v32 = vpop.f32.mrf.mxu0 }
 0x3d4   :  { %v1914_v3 = vsel %vm483_vm1, %v9182_v44, -inf }
 0x3d5   :  { %1915 = vmax.xlane.f32.xlu2 %v1914_v3 }
 0x3d7   :  { %v1669_v20 = vpop.f32.mrf.mxu3 }
 0x3d8   :  { %v1883_v33 = vmul.f32 0.25, %v1669_v20  ;;  %v1829_v20 = vunpack.c.l.b16 %v1622_v43 }
 0x3da   :  { %v9186_v11 = vadd.f32 %v8297_v63, %v1883_v33  ;;  %v1522_v63 = vpop.f32.mrf.mxu1 }
 0x3db   :  { %v1523_v3 = vadd.f32 %v9105_v36, %v1522_v63 }
 0x3dc   :  { %v1917_v22 = vsel %vm483_vm1, %v9186_v11, -inf }
 0x3dd   :  { %1918 = vmax.xlane.f32.xlu0 %v1917_v22  ;;  %v1623_v33 = vpack.c.bf16 %v1523_v3, %v1523_v3  ;;  %v1457_v22 = vadd.f32 %v9108_v59, %v1456_v32 }
 0x3df   :  { %v1697_v61 = vpop.f32.mrf.mxu3 }
 0x3e0   :  { %v1884_v46 = vmul.f32 0.25, %v1697_v61  ;;  %v1830_v61 = vunpack.c.l.b16 %v1623_v33 }
 0x3e2   :  { %v9190_v2 = vadd.f32 %v8298_v26, %v1884_v46  ;;  %v1831_v46 = vpack.c.b16 %v1830_v61, %v1829_v20 }
 0x3e4   :  { %v1920_v39 = vsel %vm483_vm1, %v9190_v2, -inf }
 0x3e5   :  { %1921 = vmax.xlane.f32.xlu1 %v1920_v39  ;;  %v1458_v39 = vpop.f32.mrf.mxu0 }
 0x3e7   :  { %v1699_v51 = vpop.f32.mrf.mxu3 }
 0x3e8   :  { %v1885_v28 = vmul.f32 0.25, %v1699_v51  ;;  %v1836_v51 = vsel %vm483_vm1, %v1831_v46, 0 }
 0x3e9   :  { %1845 = vmatpush.bf16.xpose.msra.mxu3 %v1836_v51 }
 0x3ea   :  { %v9194_v45 = vadd.f32 %v8298_v26, %v1885_v28  ;;  %v1606_v26 = vpack.c.bf16 %v1457_v22, %v1457_v22  ;;  %v1459_v28 = vadd.f32 %v9108_v59, %v1458_v39 }
 0x3ec   :  { %v1923_v54 = vsel %vm483_vm1, %v9194_v45, -inf }
 0x3ed   :  { %1924 = vmax.xlane.f32.xlu2 %v1923_v54  ;;  %v1525_v54 = vpop.f32.mrf.mxu1 }
 0x3ef   :  { %v1727_v60 = vpop.f32.mrf.mxu3 }
 0x3f0   :  { %v1886_v29 = vmul.f32 0.25, %v1727_v60  ;;  %v1824_v60 = vunpack.c.l.b16 %v1606_v26 }
 0x3f2   :  { %v9199_v57 = vadd.f32 %v8920_v14, %v1886_v29  ;;  %v1607_v29 = vpack.c.bf16 %v1459_v28, %v1459_v28 }
 0x3f4   :  { %v1926_v62 = vsel %vm483_vm1, %v9199_v57, -inf }
 0x3f5   :  { %1927 = vmax.xlane.f32.xlu0 %v1926_v62  ;;  %v1825_v62 = vunpack.c.l.b16 %v1607_v29 }
 0x3f7   :  { %v1729_v0 = vpop.f32.mrf.mxu3 }
 0x3f8   :  { %v1887_v38 = vmul.f32 0.25, %v1729_v0  ;;  %v1826_v0 = vpack.c.b16 %v1825_v62, %v1824_v60 }
 0x3fa   :  { %v9204_v25 = vadd.f32 %v8920_v14, %v1887_v38  ;;  %v1526_v38 = vadd.f32 %v9105_v36, %v1525_v54  ;;  %7598 = vmatmul.msk.bf16.vlgmr.msra.gmra.mxu3 %vm483_vm1, %v1826_v0 }
 0x3fc   :  { %v1929_v4 = vsel %vm483_vm1, %v9204_v25, -inf }
 0x3fd   :  { %1930 = vmax.xlane.f32.xlu1 %v1929_v4  ;;  %v1624_v4 = vpack.c.bf16 %v1526_v38, %v1526_v38 }
 0x3ff   :  { %v1757_v5 = vpop.f32.mrf.mxu3 }
 0x400   :  { %v1888_v34 = vmul.f32 0.25, %v1757_v5  ;;  %v7807_v5 = vld [vmem:[%s12207_s2 + $0x58] sm:$0xff] }
 0x401   :  { %1551 = vmatpush.bf16.msrb.mxu2 %v7807_v5 }
 0x402   :  { %v9208_v40 = vadd.f32 %v8299_v7, %v1888_v34  ;;  %v1461_v34 = vpop.f32.mrf.mxu0 }
 0x404   :  { %v1932_v13 = vsel %vm483_vm1, %v9208_v40, -inf }
 0x405   :  { %1933 = vmax.xlane.f32.xlu2 %v1932_v13 }
 0x407   :  { %v1759_v17 = vpop.f32.mrf.mxu3 }
 0x408   :  { %v1889_v56 = vmul.f32 0.25, %v1759_v17  ;;  %v7806_v17 = vld [vmem:[%s12207_s2 + $0x50] sm:$0xff] }
 0x409   :  { %1552 = vmatpush.bf16.msrb.mxu2 %v7806_v17 }
 0x40a   :  { %v9212_v58 = vadd.f32 %v8299_v7, %v1889_v56  ;;  %v1527_v7 = vpop.f32.mrf.mxu1  ;;  %v1859_v56 = vunpack.c.l.b16 %v1624_v4 }
 0x40b   :  { %v1528_v13 = vadd.f32 %v9105_v36, %v1527_v7 }
 0x40c   :  { %v1935_v14 = vsel %vm483_vm1, %v9212_v58, -inf  ;;  %7584 = vmatmul.msk.bf16.vlgmr.msrb.gmra.mxu2 %vm223_vm0, %v8617_v6 }
 0x40d   :  { %1936 = vmax.xlane.f32.xlu0 %v1935_v14  ;;  %v1462_v14 = vadd.f32 %v9108_v59, %v1461_v34  ;;  %v1625_v52 = vpack.c.bf16 %v1528_v13, %v1528_v13 }
 0x40f   :  { %v1787_v49 = vpop.f32.mrf.mxu3 }
 0x410   :  { %v1890_v35 = vmul.f32 0.25, %v1787_v49  ;;  %v1860_v49 = vunpack.c.l.b16 %v1625_v52 }
 0x412   :  { %v9219_v42 = vadd.f32 %v9216_v10, %v1890_v35  ;;  %v1608_v35 = vpack.c.bf16 %v1462_v14, %v1462_v14  ;;  %v1861_v27 = vpack.c.b16 %v1860_v49, %v1859_v56  ;;  %v8301_v14 = vld [vmem:[#allocation2 + $0x5] ss:$0 sm:$0xff] }
 0x414   :  { %v1938_v30 = vsel %vm483_vm1, %v9219_v42, -inf  ;;  %v1866_v36 = vsel %vm483_vm1, %v1861_v27, 0  ;;  %v1854_v32 = vunpack.c.l.b16 %v1608_v35 }
 0x415   :  { %1939 = vmax.xlane.f32.xlu0 %v1938_v30  ;;  %v1463_v30 = vpop.f32.mrf.mxu0  ;;  %1875 = vmatpush.bf16.xpose.msrb.mxu3 %v1866_v36 }
 0x416   :  { %v1464_v43 = vadd.f32 %v9108_v59, %v1463_v30 }
 0x417   :  { %v1789_v6 = vpop.f32.mrf.mxu3 }
 0x418   :  { %v1609_v63 = vpack.c.bf16 %v1464_v43, %v1464_v43  ;;  %v1891_v26 = vmul.f32 0.25, %v1789_v6 }
 0x41a   :  { %v1855_v3 = vunpack.c.l.b16 %v1609_v63 }
 0x41c   :  { %v1856_v20 = vpack.c.b16 %v1855_v3, %v1854_v32  ;;  %7585 = vmatmul.msk.bf16.gmra.mxu2 %vm223_vm0, %v8629_v9  ;;  %v9254_v9 = vadd.f32 %v9216_v10, %v1891_v26 }
 0x41e   :  { %7599 = vmatmul.msk.bf16.vlgmr.msrb.gmra.mxu3 %vm483_vm1, %v1856_v20 }
 0x42c   :  { %7586 = vmatmul.msk.bf16.gmra.mxu2 %vm223_vm0, %v8641_v12 }
 0x434   :  { %v1817_v4 = vpop.f32.mrf.mxu3 }
 0x435   :  { %v1892_v17 = vmul.f32 0.25, %v1817_v4 }
 0x437   :  { %v9275_v52 = vadd.f32 %v8301_v14, %v1892_v17 }
 0x439   :  { %v1944_v43 = vsel %vm483_vm1, %v9275_v52, -inf }
 0x43c   :  { %7587 = vmatmul.msk.bf16.gmra.mxu2 %vm223_vm0, %v8653_v15  ;;  %v1819_v49 = vpop.f32.mrf.mxu3 }
 0x448   :  { %v1916_v33 = vpop.xlane.xlu2 %1915 }
 0x449   :  { %v1962_v22 = vsub.f32 %v9182_v44, %v1916_v33 }
 0x44b   :  { %v1978_v61 = vmul.f32 1.442695, %v1962_v22 }
 0x44c   :  { %7588 = vmatmul.msk.bf16.gmra.mxu2 %vm223_vm0, %v8665_v18 }
 0x44d   :  { %7909 = vpow2.f32 %v1978_v61 }
 0x450   :  { %v1919_v46 = vpop.xlane.xlu0 %1918 }
 0x451   :  { %v1963_v59 = vsub.f32 %v9186_v11, %v1919_v46  ;;  %v1941_v11 = vsel %vm483_vm1, %v9254_v9, -inf }
 0x453   :  { %v9247_v39 = vpop.eup %7909  ;;  %v1980_v51 = vmul.f32 1.442695, %v1963_v59 }
 0x454   :  { %v2010_v28 = vsel %vm483_vm1, %v9247_v39, 0.0 }
 0x455   :  { %7911 = vpow2.f32 %v1980_v51  ;;  %2011 = vadd.xlane.f32.xlu1 %v2010_v28  ;;  %v9307_v28 = vpop.f32.mrf.mxu2 }
 0x458   :  { %v1922_v44 = vpop.xlane.xlu1 %1921 }
 0x459   :  { %v1964_v54 = vsub.f32 %v9190_v2, %v1922_v44 }
 0x45b   :  { %v9259_v60 = vpop.eup %7911  ;;  %v1982_v29 = vmul.f32 1.442695, %v1964_v54 }
 0x45c   :  { %v2013_v62 = vsel %vm483_vm1, %v9259_v60, 0.0  ;;  %7589 = vmatmul.msk.bf16.gmra.mxu2 %vm223_vm0, %v8677_v21 }
 0x45d   :  { %7913 = vpow2.f32 %v1982_v29  ;;  %2014 = vadd.xlane.f32.xlu2 %v2013_v62  ;;  %1942 = vmax.xlane.f32.xlu1 %v1941_v11  ;;  %v9315_v21 = vpop.f32.mrf.mxu2  ;;  %v9323_v62 = vld [vmem:[#allocation5 + $0x5] ss:$0 sm:$0xff] }
 0x460   :  { %v1925_v0 = vpop.xlane.xlu2 %1924 }
 0x461   :  { %v1965_v12 = vsub.f32 %v9194_v45, %v1925_v0 }
 0x463   :  { %v9264_v10 = vpop.eup %7913  ;;  %v1984_v38 = vmul.f32 1.442695, %v1965_v12 }
 0x464   :  { %v2016_v2 = vsel %vm483_vm1, %v9264_v10, 0.0 }
 0x465   :  { %7915 = vpow2.f32 %v1984_v38  ;;  %2017 = vadd.xlane.f32.xlu2 %v2016_v2 }
 0x468   :  { %v1928_v5 = vpop.xlane.xlu0 %1927 }
 0x469   :  { %v1966_v34 = vsub.f32 %v9199_v57, %v1928_v5  ;;  %v1893_v57 = vmul.f32 0.25, %v1819_v49 }
 0x46b   :  { %v9271_v7 = vpop.eup %7915  ;;  %v1986_v13 = vmul.f32 1.442695, %v1966_v34  ;;  %v9286_v32 = vadd.f32 %v8301_v14, %v1893_v57 }
 0x46c   :  { %v2019_v45 = vsel %vm483_vm1, %v9271_v7, 0.0  ;;  %7590 = vmatmul.msk.bf16.gmra.mxu2 %vm223_vm0, %v8707_v8 }
 0x46d   :  { %7917 = vpow2.f32 %v1986_v13  ;;  %2020 = vadd.xlane.f32.xlu0 %v2019_v45  ;;  %v1947_v20 = vsel %vm483_vm1, %v9286_v32, -inf }
 0x470   :  { %v1931_v56 = vpop.xlane.xlu1 %1930 }
 0x471   :  { %v1967_v15 = vsub.f32 %v9204_v25, %v1931_v56 }
 0x473   :  { %v9278_v35 = vpop.eup %7917  ;;  %v1988_v27 = vmul.f32 1.442695, %v1967_v15 }
 0x474   :  { %v2022_v30 = vsel %vm483_vm1, %v9278_v35, 0.0 }
 0x475   :  { %7919 = vpow2.f32 %v1988_v27  ;;  %2023 = vadd.xlane.f32.xlu1 %v2022_v30  ;;  %1945 = vmax.xlane.f32.xlu0 %v1944_v43 }
 0x478   :  { %v1934_v36 = vpop.xlane.xlu2 %1933 }
 0x479   :  { %v1968_v25 = vsub.f32 %v9208_v40, %v1934_v36 }
 0x47b   :  { %v9289_v63 = vpop.eup %7919  ;;  %v1990_v3 = vmul.f32 1.442695, %v1968_v25 }
 0x47c   :  { %v2025_v33 = vsel %vm483_vm1, %v9289_v63, 0.0  ;;  %7591 = vmatmul.msk.bf16.gmra.mxu2 %vm223_vm0, %v8725_v37 }
 0x47d   :  { %7921 = vpow2.f32 %v1990_v3  ;;  %1948 = vmax.xlane.f32.xlu1 %v1947_v20  ;;  %2026 = vadd.xlane.f32.xlu2 %v2025_v33  ;;  %v1847_v0 = vpop.f32.mrf.mxu3 }
 0x480   :  { %v1937_v22 = vpop.xlane.xlu0 %1936 }
 0x481   :  { %v1969_v18 = vsub.f32 %v9212_v58, %v1937_v22 }
 0x483   :  { %v9296_v61 = vpop.eup %7921  ;;  %v1992_v6 = vmul.f32 1.442695, %v1969_v18 }
 0x484   :  { %v2028_v40 = vsel %vm483_vm1, %v9296_v61, 0.0 }
 0x485   :  { %7923 = vpow2.f32 %v1992_v6  ;;  %2029 = vadd.xlane.f32.xlu2 %v2028_v40  ;;  %v9327_v37 = vpop.f32.mrf.mxu3 }
 0x488   :  { %v1940_v46 = vpop.xlane.xlu0 %1939 }
 0x489   :  { %v1970_v59 = vsub.f32 %v9219_v42, %v1940_v46  ;;  %v9317_v42 = vpop.f32.mrf.mxu2 }
 0x48b   :  { %v9303_v26 = vpop.eup %7923  ;;  %v1994_v51 = vmul.f32 1.442695, %v1970_v59 }
 0x48c   :  { %v2031_v58 = vsel %vm483_vm1, %v9303_v26, 0.0 }
 0x48d   :  { %7925 = vpow2.f32 %v1994_v51  ;;  %2032 = vadd.xlane.f32.xlu0 %v2031_v58 }
 0x491   :  { %v9321_v11 = vpop.f32.mrf.mxu2 }
 0x493   :  { %v9309_v44 = vpop.eup %7925 }
 0x494   :  { %v2034_v54 = vsel %vm483_vm1, %v9309_v44, 0.0 }
 0x495   :  { %2035 = vadd.xlane.f32.xlu1 %v2034_v54 }
 0x499   :  { %v1554_v29 = vpop.f32.mrf.mxu2 }
 0x49a   :  { %v1555_v38 = vadd.f32 %v9323_v62, %v1554_v29 }
 0x49c   :  { %v1626_v4 = vpack.c.bf16 %v1555_v38, %v1555_v38 }
 0x49e   :  { %v2321_v5 = vunpack.c.l.b16 %v1626_v4 }
 0x4a1   :  { %v1556_v12 = vpop.f32.mrf.mxu2  ;;  %v9332_v20 = vpop.f32.mrf.mxu3 }
 0x4a2   :  { %v1557_v2 = vadd.f32 %v9323_v62, %v1556_v12 }
 0x4a4   :  { %v1627_v8 = vpack.c.bf16 %v1557_v2, %v1557_v2 }
 0x4a6   :  { %v2322_v34 = vunpack.c.l.b16 %v1627_v8  ;;  %v1894_v8 = vmul.f32 0.25, %v1847_v0 }
 0x4a8   :  { %v2323_v13 = vpack.c.b16 %v2322_v34, %v2321_v5 }
 0x4a9   :  { %v1559_v45 = vpop.f32.mrf.mxu2 }
 0x4aa   :  { %2335 = vmatpush.bf16.msra.mxu0 %v2323_v13  ;;  %v1560_v43 = vadd.f32 %v9323_v62, %v1559_v45 }
 0x4ac   :  { %v1628_v33 = vpack.c.bf16 %v1560_v43, %v1560_v43 }
 0x4ae   :  { %v2349_v46 = vunpack.c.l.b16 %v1628_v33 }
 0x4b1   :  { %v1561_v27 = vpop.f32.mrf.mxu2 }
 0x4b2   :  { %v1562_v36 = vadd.f32 %v9323_v62, %v1561_v27 }
 0x4b4   :  { %v1629_v22 = vpack.c.bf16 %v1562_v36, %v1562_v36 }
 0x4b6   :  { %v2350_v59 = vunpack.c.l.b16 %v1629_v22 }
 0x4b8   :  { %v2351_v29 = vpack.c.b16 %v2350_v59, %v2349_v46 }
 0x4b9   :  { %v1564_v38 = vpop.f32.mrf.mxu2 }
 0x4ba   :  { %2363 = vmatpush.bf16.msra.mxu1 %v2351_v29  ;;  %v9355_v29 = vld [vmem:[#allocation2 + $0x7] ss:$0 sm:$0xff] }
 0x4c1   :  { %v1566_v33 = vpop.f32.mrf.mxu2 }
 0x4c2   :  { %v1567_v46 = vadd.f32 %v9323_v62, %v1566_v33 }
 0x4c8   :  { %v2012_v17 = vpop.xlane.xlu1 %2011 }
 0x4c9   :  { %7927 = vrcp.f32 %v2012_v17  ;;  %vm2063_vm11 = vweird.f32 %v2012_v17  ;;  %v2067_v18 = vand.u32 2147483647, %v2012_v17  ;;  %v2069_v6 = vand.u32 2147483648, %v2012_v17 }
 0x4cb   :  { %v2070_v12 = vor.u32 1.1754944e-38, %v2069_v6  ;;  %vm2068_vm13 = vcmp.eq.f32.partialorder %v2067_v18, 8.507059e+37  ;;  %v1565_v6 = vadd.f32 %v9323_v62, %v1564_v38 }
 0x4cf   :  { %v7928_v56 = vpop.eup %7927 }
 0x4d0   :  { %v2059_v14 = vmul.f32 %v7928_v56, %v2012_v17  ;;  %v2015_v49 = vpop.xlane.xlu2 %2014  ;;  %v1943_v15 = vpop.xlane.xlu1 %1942  ;;  %vm2064_vm10 = vweird.f32 %v7928_v56 }
 0x4d1   :  { %7929 = vrcp.f32 %v2015_v49  ;;  %v1971_v30 = vsub.f32 %v9254_v9, %v1943_v15  ;;  %vm2065_vm12 = vmor %vm2063_vm11, %vm2064_vm10  ;;  %v2084_v5 = vand.u32 2147483648, %v2015_v49  ;;  %v2082_v17 = vand.u32 2147483647, %v2015_v49  ;;  %v1879_v15 = vpop.f32.mrf.mxu3 }
 0x4d2   :  { %v2060_v57 = vsub.f32 1.0, %v2059_v14  ;;  %vm2078_vm15 = vweird.f32 %v2015_v49 }
 0x4d3   :  { %v1996_v3 = vmul.f32 1.442695, %v1971_v30  ;;  %v9342_v30 = vld [vmem:[#allocation2 + $0x6] ss:$0 sm:$0xff]  ;;  %vm2083_vm3 = vcmp.eq.f32.partialorder %v2082_v17, 8.507059e+37 }
 0x4d4   :  { %v2061_v25 = vmul.f32 %v7928_v56, %v2060_v57  ;;  %v2085_v57 = vor.u32 1.1754944e-38, %v2084_v5  ;;  %v9345_v0 = vadd.f32 %v9342_v30, %v1894_v8 }
 0x4d5   :  { %7931 = vpow2.f32 %v1996_v3 }
 0x4d6   :  { %v2062_v40 = vadd.f32 %v7928_v56, %v2061_v25 }
 0x4d7   :  { %v7930_v51 = vpop.eup %7929 }
 0x4d8   :  { %v2066_v9 = vsel %vm2065_vm12, %v7928_v56, %v2062_v40  ;;  %v2074_v58 = vmul.f32 %v7930_v51, %v2015_v49  ;;  %v9334_v54 = vpop.xlane.xlu2 %2017  ;;  %vm2079_vm14 = vweird.f32 %v7930_v51  ;;  %v1950_v40 = vsel %vm483_vm1, %v9345_v0, -inf }
 0x4d9   :  { %7933 = vrcp.f32 %v9334_v54  ;;  %v2071_v4 = vsel %vm2068_vm13, %v2070_v12, %v2066_v9  ;;  %vm2080_vm2 = vmor %vm2078_vm15, %vm2079_vm14  ;;  %v1630_v9 = vpack.c.bf16 %v1565_v6, %v1565_v6  ;;  %vm2093_vm5 = vweird.f32 %v9334_v54 }
 0x4da   :  { %v2075_v2 = vsub.f32 1.0, %v2074_v58  ;;  %v2072_v56 = vmul.f32 %v9247_v39, %v2071_v4  ;;  %v1897_v39 = vmul.f32 0.25, %v1879_v15  ;;  %v2099_v58 = vand.u32 2147483648, %v9334_v54 }
 0x4db   :  { %v9337_v34 = vpop.eup %7931  ;;  %v1631_v12 = vpack.c.bf16 %v1567_v46, %v1567_v46  ;;  %v2097_v8 = vand.u32 2147483647, %v9334_v54  ;;  %v2377_v17 = vunpack.c.l.b16 %v1630_v9 }
 0x4dc   :  { %v2076_v13 = vmul.f32 %v7930_v51, %v2075_v2  ;;  %v2037_v45 = vsel %vm483_vm1, %v9337_v34, 0.0  ;;  %v2298_v49 = vpack.c.bf16 %v2072_v56, %v2072_v56 }
 0x4dd   :  { %2038 = vadd.xlane.f32.xlu2 %v2037_v45  ;;  %v2378_v45 = vunpack.c.l.b16 %v1631_v12  ;;  %vm2098_vm7 = vcmp.eq.f32.partialorder %v2097_v8, 8.507059e+37 }
 0x4de   :  { %v2077_v14 = vadd.f32 %v7930_v51, %v2076_v13  ;;  %v2316_v38 = vunpack.c.l.b16 %v2298_v49 }
 0x4df   :  { %v7934_v27 = vpop.eup %7933 }
 0x4e0   :  { %v2081_v43 = vsel %vm2080_vm2, %v7930_v51, %v2077_v14  ;;  %v2089_v36 = vmul.f32 %v7934_v27, %v9334_v54  ;;  %v2021_v25 = vpop.xlane.xlu0 %2020  ;;  %vm2094_vm4 = vweird.f32 %v7934_v27  ;;  %v1569_v54 = vpop.f32.mrf.mxu2 }
 0x4e1   :  { %v2086_v3 = vsel %vm2083_vm3, %v2085_v57, %v2081_v43  ;;  %7935 = vrcp.f32 %v2021_v25  ;;  %vm9361_vm6 = vmor %vm2093_vm5, %vm2094_vm4  ;;  %vm2108_vm9 = vweird.f32 %v2021_v25 }
 0x4e2   :  { %v2087_v22 = vmul.f32 %v9259_v60, %v2086_v3  ;;  %v2090_v18 = vsub.f32 1.0, %v2089_v36  ;;  %v9358_v60 = vadd.f32 %v9355_v29, %v1897_v39  ;;  %v2100_v36 = vor.u32 1.1754944e-38, %v2099_v58 }
 0x4e4   :  { %v2299_v59 = vpack.c.bf16 %v2087_v22, %v2087_v22  ;;  %v2091_v51 = vmul.f32 %v7934_v27, %v2090_v18  ;;  %v1959_v33 = vsel %vm483_vm1, %v9358_v60, -inf  ;;  %v2379_v18 = vpack.c.b16 %v2378_v45, %v2377_v17 }
 0x4e5   :  { %1951 = vmax.xlane.f32.xlu2 %v1950_v40  ;;  %v2112_v40 = vand.u32 2147483647, %v2021_v25 }
 0x4e6   :  { %v2317_v2 = vunpack.c.l.b16 %v2299_v59  ;;  %v2092_v4 = vadd.f32 %v7934_v27, %v2091_v51  ;;  %2391 = vmatpush.bf16.msra.mxu2 %v2379_v18 }
 0x4e7   :  { %v7936_v5 = vpop.eup %7935  ;;  %vm2113_vm11 = vcmp.eq.f32.partialorder %v2112_v40, 8.507059e+37 }
 0x4e8   :  { %v2096_v56 = vsel %vm9361_vm6, %v7934_v27, %v2092_v4  ;;  %v2104_v14 = vmul.f32 %v7936_v5, %v2021_v25  ;;  %v1946_v15 = vpop.xlane.xlu0 %1945  ;;  %v9367_v57 = vpop.xlane.xlu1 %2023  ;;  %v2318_v43 = vpack.c.b16 %v2317_v2, %v2316_v38  ;;  %v2114_v27 = vand.u32 2147483648, %v2021_v25 }
 0x4e9   :  { %v1972_v3 = vsub.f32 %v9275_v52, %v1946_v15  ;;  %7937 = vrcp.f32 %v9367_v57  ;;  %v2101_v49 = vsel %vm2098_vm7, %v2100_v36, %v2096_v56  ;;  %vm2109_vm8 = vweird.f32 %v7936_v5  ;;  %v1571_v8 = vpop.f32.mrf.mxu2 }
 0x4ea   :  { %v2105_v39 = vsub.f32 1.0, %v2104_v14  ;;  %7600 = vmatmul.msk.bf16.vlgmr.msra.gmra.mxu0 %vm483_vm1, %v2318_v43  ;;  %v2102_v52 = vmul.f32 %v9264_v10, %v2101_v49  ;;  %vm2110_vm10 = vmor %vm2108_vm9, %vm2109_vm8  ;;  %v2115_v51 = vor.u32 1.1754944e-38, %v2114_v27  ;;  %v1895_v2 = vmul.f32 0.25, %v9327_v37 }
 0x4eb   :  { %v1998_v22 = vmul.f32 1.442695, %v1972_v3  ;;  %vm2123_vm12 = vweird.f32 %v9367_v57  ;;  %v1570_v56 = vadd.f32 %v9323_v62, %v1569_v54  ;;  %v1572_v37 = vadd.f32 %v9323_v62, %v1571_v8 }
 0x4ec   :  { %v2106_v6 = vmul.f32 %v7936_v5, %v2105_v39  ;;  %v2300_v10 = vpack.c.bf16 %v2102_v52, %v2102_v52  ;;  %v2129_v36 = vand.u32 2147483648, %v9367_v57 }
 0x4ed   :  { %7939 = vpow2.f32 %v1998_v22  ;;  %1960 = vmax.xlane.f32.xlu2 %v1959_v33  ;;  %v1633_v3 = vpack.c.bf16 %v1572_v37, %v1572_v37  ;;  %v9398_v22 = vadd.f32 %v9342_v30, %v1895_v2 }
 0x4ee   :  { %v2107_v46 = vadd.f32 %v7936_v5, %v2106_v6  ;;  %v2344_v39 = vunpack.c.l.b16 %v2300_v10 }
 0x4ef   :  { %v7938_v59 = vpop.eup %7937  ;;  %v2406_v6 = vunpack.c.l.b16 %v1633_v3 }
 0x4f0   :  { %v2111_v9 = vsel %vm2110_vm10, %v7936_v5, %v2107_v46  ;;  %v2119_v58 = vmul.f32 %v7938_v59, %v9367_v57  ;;  %v9376_v12 = vpop.xlane.xlu2 %2026  ;;  %v1949_v38 = vpop.xlane.xlu1 %1948  ;;  %v2127_v5 = vand.u32 2147483647, %v9367_v57  ;;  %vm2124_vm13 = vweird.f32 %v7938_v59 }
 0x4f1   :  { %v2116_v4 = vsel %vm2113_vm11, %v2115_v51, %v2111_v9  ;;  %7941 = vrcp.f32 %v9376_v12  ;;  %v1973_v17 = vsub.f32 %v9286_v32, %v1949_v38  ;;  %v1632_v32 = vpack.c.bf16 %v1570_v56, %v1570_v56  ;;  %vm9393_vm14 = vmor %vm2123_vm12, %vm2124_vm13 }
 0x4f2   :  { %v2117_v25 = vmul.f32 %v9271_v7, %v2116_v4  ;;  %v2120_v13 = vsub.f32 1.0, %v2119_v58  ;;  %v2130_v9 = vor.u32 1.1754944e-38, %v2129_v36  ;;  %vm2128_vm15 = vcmp.eq.f32.partialorder %v2127_v5, 8.507059e+37 }
 0x4f3   :  { %v9382_v45 = vpop.eup %7939  ;;  %v2000_v43 = vmul.f32 1.442695, %v1973_v17  ;;  %v2405_v18 = vunpack.c.l.b16 %v1632_v32  ;;  %v1896_v38 = vmul.f32 0.25, %v9332_v20  ;;  %v2144_v2 = vand.u32 2147483648, %v9376_v12 }
 0x4f4   :  { %v2301_v14 = vpack.c.bf16 %v2117_v25, %v2117_v25  ;;  %v2121_v15 = vmul.f32 %v7938_v59, %v2120_v13  ;;  %v2040_v7 = vsel %vm483_vm1, %v9382_v45, 0.0  ;;  %v1953_v4 = vsel %vm483_vm1, %v9398_v22, -inf }
 0x4f5   :  { %7943 = vpow2.f32 %v2000_v43  ;;  %2041 = vadd.xlane.f32.xlu0 %v2040_v7  ;;  %v2407_v58 = vpack.c.b16 %v2406_v6, %v2405_v18  ;;  %v2142_v10 = vand.u32 2147483647, %v9376_v12  ;;  %vm2138_vm3 = vweird.f32 %v9376_v12 }
 0x4f6   :  { %v2345_v33 = vunpack.c.l.b16 %v2301_v14  ;;  %v2122_v49 = vadd.f32 %v7938_v59, %v2121_v15  ;;  %v2145_v5 = vor.u32 1.1754944e-38, %v2144_v2  ;;  %v9416_v56 = vadd.f32 %v9355_v29, %v1896_v38 }
 0x4f7   :  { %v7942_v27 = vpop.eup %7941  ;;  %2419 = vmatpush.bf16.msra.mxu3 %v2407_v58  ;;  %vm2143_vm5 = vcmp.eq.f32.partialorder %v2142_v10, 8.507059e+37 }
 0x4f8   :  { %v2126_v40 = vsel %vm9393_vm14, %v7938_v59, %v2122_v49  ;;  %v2134_v52 = vmul.f32 %v7942_v27, %v9376_v12  ;;  %v2030_v46 = vpop.xlane.xlu2 %2029  ;;  %v2346_v51 = vpack.c.b16 %v2345_v33, %v2344_v39  ;;  %vm2139_vm2 = vweird.f32 %v7942_v27 }
 0x4f9   :  { %7945 = vrcp.f32 %v2030_v46  ;;  %v2131_v30 = vsel %vm2128_vm15, %v2130_v9, %v2126_v40  ;;  %vm2140_vm4 = vmor %vm2138_vm3, %vm2139_vm2  ;;  %v1956_v12 = vsel %vm483_vm1, %v9416_v56, -inf  ;;  %vm2153_vm7 = vweird.f32 %v2030_v46 }
 0x4fa   :  { %v2135_v57 = vsub.f32 1.0, %v2134_v52  ;;  %7601 = vmatmul.msk.bf16.vlgmr.msra.gmra.mxu1 %vm483_vm1, %v2346_v51  ;;  %v2132_v13 = vmul.f32 %v9278_v35, %v2131_v30  ;;  %v2159_v39 = vand.u32 2147483648, %v2030_v46 }
 0x4fb   :  { %v9408_v59 = vpop.eup %7943 }
 0x4fc   :  { %v2136_v8 = vmul.f32 %v7942_v27, %v2135_v57  ;;  %v2043_v25 = vsel %vm483_vm1, %v9408_v59, 0.0  ;;  %v2302_v36 = vpack.c.bf16 %v2132_v13, %v2132_v13 }
 0x4fd   :  { %1954 = vmax.xlane.f32.xlu0 %v1953_v4  ;;  %2044 = vadd.xlane.f32.xlu1 %v2043_v25 }
 0x4fe   :  { %v2137_v17 = vadd.f32 %v7942_v27, %v2136_v8  ;;  %v2372_v29 = vunpack.c.l.b16 %v2302_v36 }
 0x4ff   :  { %v7946_v20 = vpop.eup %7945 }
 0x500   :  { %v2141_v37 = vsel %vm2140_vm4, %v7942_v27, %v2137_v17  ;;  %v2149_v14 = vmul.f32 %v7946_v20, %v2030_v46  ;;  %v2033_v15 = vpop.xlane.xlu0 %2032  ;;  %vm2154_vm6 = vweird.f32 %v7946_v20  ;;  %v2157_v27 = vand.u32 2147483647, %v2030_v46 }
 0x501   :  { %v2146_v43 = vsel %vm2143_vm5, %v2145_v5, %v2141_v37  ;;  %7947 = vrcp.f32 %v2033_v15  ;;  %vm2155_vm8 = vmor %vm2153_vm7, %vm2154_vm6  ;;  %v2174_v9 = vand.u32 2147483648, %v2033_v15  ;;  %v2172_v58 = vand.u32 2147483647, %v2033_v15  ;;  %v1574_v5 = vpop.f32.mrf.mxu2 }
 0x502   :  { %v2147_v35 = vmul.f32 %v9289_v63, %v2146_v43  ;;  %v2150_v7 = vsub.f32 1.0, %v2149_v14  ;;  %v2160_v63 = vor.u32 1.1754944e-38, %v2159_v39  ;;  %vm2158_vm9 = vcmp.eq.f32.partialorder %v2157_v27, 8.507059e+37 }
 0x503   :  { %vm2168_vm11 = vweird.f32 %v2033_v15  ;;  %v2175_v46 = vor.u32 1.1754944e-38, %v2174_v9  ;;  %vm2173_vm13 = vcmp.eq.f32.partialorder %v2172_v58, 8.507059e+37 }
 0x504   :  { %v2303_v32 = vpack.c.bf16 %v2147_v35, %v2147_v35  ;;  %v2151_v3 = vmul.f32 %v7946_v20, %v2150_v7 }
 0x505   :  { %1957 = vmax.xlane.f32.xlu1 %v1956_v12 }
 0x506   :  { %v2373_v33 = vunpack.c.l.b16 %v2303_v32  ;;  %v2152_v49 = vadd.f32 %v7946_v20, %v2151_v3 }
 0x507   :  { %v7948_v54 = vpop.eup %7947 }
 0x508   :  { %v2156_v18 = vsel %vm2155_vm8, %v7946_v20, %v2152_v49  ;;  %v2164_v6 = vmul.f32 %v7948_v54, %v2033_v15  ;;  %v2374_v40 = vpack.c.b16 %v2373_v33, %v2372_v29  ;;  %vm2169_vm10 = vweird.f32 %v7948_v54  ;;  %v2036_v14 = vpop.xlane.xlu1 %2035 }
 0x509   :  { %v2161_v51 = vsel %vm2158_vm9, %v2160_v63, %v2156_v18  ;;  %vm2170_vm12 = vmor %vm2168_vm11, %vm2169_vm10  ;;  %v1576_v37 = vpop.f32.mrf.mxu2  ;;  %7949 = vrcp.f32 %v2036_v14  ;;  %vm2183_vm15 = vweird.f32 %v2036_v14  ;;  %v2187_v58 = vand.u32 2147483647, %v2036_v14 }
 0x50a   :  { %v2165_v52 = vsub.f32 1.0, %v2164_v6  ;;  %7602 = vmatmul.msk.bf16.vlgmr.msra.gmra.mxu2 %vm483_vm1, %v2374_v40  ;;  %v2162_v38 = vmul.f32 %v9296_v61, %v2161_v51  ;;  %v1575_v61 = vadd.f32 %v9323_v62, %v1574_v5  ;;  %v1577_v36 = vadd.f32 %v9323_v62, %v1576_v37 }
 0x50b   :  { %vm2188_vm3 = vcmp.eq.f32.partialorder %v2187_v58, 8.507059e+37 }
 0x50c   :  { %v2166_v57 = vmul.f32 %v7948_v54, %v2165_v52  ;;  %v2304_v8 = vpack.c.bf16 %v2162_v38, %v2162_v38  ;;  %v1634_v15 = vpack.c.bf16 %v1575_v61, %v1575_v61  ;;  %v1635_v7 = vpack.c.bf16 %v1577_v36, %v1577_v36 }
 0x50e   :  { %v2167_v30 = vadd.f32 %v7948_v54, %v2166_v57  ;;  %v2400_v13 = vunpack.c.l.b16 %v2304_v8  ;;  %v2433_v35 = vunpack.c.l.b16 %v1634_v15  ;;  %v2434_v12 = vunpack.c.l.b16 %v1635_v7 }
 0x50f   :  { %v2189_v57 = vand.u32 2147483648, %v2036_v14 }
 0x510   :  { %v2171_v2 = vsel %vm2170_vm12, %v7948_v54, %v2167_v30  ;;  %v2435_v32 = vpack.c.b16 %v2434_v12, %v2433_v35  ;;  %v7809_v30 = vld [vmem:[%s12209_s4 + $0x8] sm:$0xff] }
 0x511   :  { %v2176_v4 = vsel %vm2173_vm13, %v2175_v46, %v2171_v2  ;;  %v1579_v43 = vpop.f32.mrf.mxu2 }
 0x512   :  { %v2177_v10 = vmul.f32 %v9303_v26, %v2176_v4  ;;  %v7950_v26 = vpop.eup %7949  ;;  %v1580_v3 = vadd.f32 %v9323_v62, %v1579_v43  ;;  %2447 = vmatpush.bf16.msrb.mxu0 %v2435_v32 }
 0x513   :  { %v2179_v33 = vmul.f32 %v7950_v26, %v2036_v14  ;;  %vm2184_vm14 = vweird.f32 %v7950_v26 }
 0x514   :  { %v2305_v25 = vpack.c.bf16 %v2177_v10, %v2177_v10  ;;  %v1636_v49 = vpack.c.bf16 %v1580_v3, %v1580_v3  ;;  %vm2185_vm2 = vmor %vm2183_vm15, %vm2184_vm14  ;;  %v2190_v10 = vor.u32 1.1754944e-38, %v2189_v57 }
 0x515   :  { %v2180_v6 = vsub.f32 1.0, %v2179_v33 }
 0x516   :  { %v2401_v17 = vunpack.c.l.b16 %v2305_v25  ;;  %v2461_v54 = vunpack.c.l.b16 %v1636_v49  ;;  %2583 = vmatpush.bf16.msra.mxu0 %v7809_v30 }
 0x517   :  { %v2181_v52 = vmul.f32 %v7950_v26, %v2180_v6 }
 0x518   :  { %v2402_v20 = vpack.c.b16 %v2401_v17, %v2400_v13 }
 0x519   :  { %v1581_v39 = vpop.f32.mrf.mxu2  ;;  %v2182_v9 = vadd.f32 %v7950_v26, %v2181_v52 }
 0x51a   :  { %7603 = vmatmul.msk.bf16.vlgmr.msra.gmra.mxu3 %vm483_vm1, %v2402_v20  ;;  %v1582_v29 = vadd.f32 %v9323_v62, %v1581_v39 }
 0x51b   :  { %v2186_v2 = vsel %vm2185_vm2, %v7950_v26, %v2182_v9 }
 0x51c   :  { %v1637_v27 = vpack.c.bf16 %v1582_v29, %v1582_v29  ;;  %v2191_v17 = vsel %vm2188_vm3, %v2190_v10, %v2186_v2 }
 0x51d   :  { %v2192_v14 = vmul.f32 %v9309_v44, %v2191_v17 }
 0x51e   :  { %v2462_v18 = vunpack.c.l.b16 %v1637_v27 }
 0x51f   :  { %v2306_v32 = vpack.c.bf16 %v2192_v14, %v2192_v14 }
 0x520   :  { %v2463_v40 = vpack.c.b16 %v2462_v18, %v2461_v54 }
 0x521   :  { %v1584_v63 = vpop.f32.mrf.mxu2  ;;  %v2428_v27 = vunpack.c.l.b16 %v2306_v32 }
 0x522   :  { %2475 = vmatpush.bf16.msrb.mxu1 %v2463_v40 }
 0x529   :  { %v1586_v38 = vpop.f32.mrf.mxu2 }
 0x52a   :  { %v1587_v18 = vadd.f32 %v9323_v62, %v1586_v38  ;;  %v8304_v38 = vld [vmem:[%s12207_s2 + $0x8] sm:$0xff] }
 0x531   :  { %v1589_v43 = vpop.f32.mrf.mxu2 }
 0x532   :  { %v1590_v6 = vadd.f32 %v9323_v62, %v1589_v43 }
 0x534   :  { %v1640_v9 = vpack.c.bf16 %v1590_v6, %v1590_v6 }
 0x536   :  { %v2517_v58 = vunpack.c.l.b16 %v1640_v9 }
 0x550   :  { %v2039_v51 = vpop.xlane.xlu2 %2038 }
 0x551   :  { %7951 = vrcp.f32 %v2039_v51  ;;  %v2204_v20 = vand.u32 2147483648, %v2039_v51  ;;  %v2202_v61 = vand.u32 2147483647, %v2039_v51  ;;  %vm2198_vm5 = vweird.f32 %v2039_v51 }
 0x553   :  { %v2205_v36 = vor.u32 1.1754944e-38, %v2204_v20  ;;  %vm2203_vm7 = vcmp.eq.f32.partialorder %v2202_v61, 8.507059e+37 }
 0x557   :  { %v7952_v46 = vpop.eup %7951 }
 0x558   :  { %v2194_v4 = vmul.f32 %v7952_v46, %v2039_v51  ;;  %v1952_v8 = vpop.xlane.xlu2 %1951  ;;  %vm2199_vm4 = vweird.f32 %v7952_v46  ;;  %v1639_v51 = vpack.c.bf16 %v1587_v18, %v1587_v18 }
 0x559   :  { %v1974_v25 = vsub.f32 %v9345_v0, %v1952_v8  ;;  %vm2200_vm6 = vmor %vm2198_vm5, %vm2199_vm4  ;;  %v1585_v0 = vadd.f32 %v9323_v62, %v1584_v63 }
 0x55a   :  { %v2195_v13 = vsub.f32 1.0, %v2194_v4  ;;  %v2490_v57 = vunpack.c.l.b16 %v1639_v51 }
 0x55b   :  { %v2002_v5 = vmul.f32 1.442695, %v1974_v25  ;;  %v1638_v49 = vpack.c.bf16 %v1585_v0, %v1585_v0 }
 0x55c   :  { %v2196_v37 = vmul.f32 %v7952_v46, %v2195_v13  ;;  %v8305_v13 = vld [vmem:[%s12207_s2] sm:$0xff] }
 0x55d   :  { %7953 = vpow2.f32 %v2002_v5  ;;  %v2489_v52 = vunpack.c.l.b16 %v1638_v49 }
 0x55e   :  { %v2197_v15 = vadd.f32 %v7952_v46, %v2196_v37 }
 0x55f   :  { %v2491_v4 = vpack.c.b16 %v2490_v57, %v2489_v52 }
 0x560   :  { %v2201_v35 = vsel %vm2200_vm6, %v7952_v46, %v2197_v15  ;;  %v1961_v7 = vpop.xlane.xlu2 %1960 }
 0x561   :  { %v2206_v12 = vsel %vm2203_vm7, %v2205_v36, %v2201_v35  ;;  %v1977_v26 = vsub.f32 %v9358_v60, %v1961_v7  ;;  %v1591_v60 = vpop.f32.mrf.mxu2  ;;  %2503 = vmatpush.bf16.msrb.mxu2 %v2491_v4  ;;  %v7808_v35 = vld [vmem:[%s12209_s4] sm:$0xff] }
 0x562   :  { %v2207_v3 = vmul.f32 %v9337_v34, %v2206_v12  ;;  %v1592_v40 = vadd.f32 %v9323_v62, %v1591_v60  ;;  %2662 = vmatpush.bf16.msra.mxu1 %v7808_v35 }
 0x563   :  { %v9437_v39 = vpop.eup %7953  ;;  %v2008_v29 = vmul.f32 1.442695, %v1977_v26 }
 0x564   :  { %v2307_v44 = vpack.c.bf16 %v2207_v3, %v2207_v3  ;;  %v2046_v33 = vsel %vm483_vm1, %v9437_v39, 0.0  ;;  %v1641_v30 = vpack.c.bf16 %v1592_v40, %v1592_v40 }
 0x565   :  { %7955 = vpow2.f32 %v2008_v29  ;;  %2047 = vadd.xlane.f32.xlu0 %v2046_v33 }
 0x566   :  { %v2429_v54 = vunpack.c.l.b16 %v2307_v44  ;;  %v2518_v8 = vunpack.c.l.b16 %v1641_v30 }
 0x567   :  { %v2337_v2 = vpop.f32.mrf.mxu0 }
 0x568   :  { %v2042_v34 = vpop.xlane.xlu0 %2041  ;;  %v2430_v63 = vpack.c.b16 %v2429_v54, %v2428_v27  ;;  %v2519_v10 = vpack.c.b16 %v2518_v8, %v2517_v58 }
 0x569   :  { %7957 = vrcp.f32 %v2042_v34  ;;  %v2219_v43 = vand.u32 2147483648, %v2042_v34  ;;  %vm2213_vm9 = vweird.f32 %v2042_v34  ;;  %v2217_v0 = vand.u32 2147483647, %v2042_v34 }
 0x56a   :  { %7604 = vmatmul.msk.bf16.vlgmr.msrb.gmra.mxu0 %vm483_vm1, %v2430_v63  ;;  %2531 = vmatpush.bf16.msrb.mxu3 %v2519_v10 }
 0x56b   :  { %v9445_v46 = vpop.eup %7955  ;;  %3917 = vmatpush.bf16.msrb.mxu0 %v8304_v38  ;;  %v2220_v29 = vor.u32 1.1754944e-38, %v2219_v43  ;;  %vm2218_vm11 = vcmp.eq.f32.partialorder %v2217_v0, 8.507059e+37  ;;  %v1396_v43 = vpack.c.bf16 %v9315_v21, %v9307_v28  ;;  %v1399_v28 = vpack.c.bf16 %v9096_v50, %v9070_v16 }
 0x56c   :  { %v2055_v62 = vsel %vm483_vm1, %v9445_v46, 0.0 }
 0x56d   :  { %2056 = vadd.xlane.f32.xlu0 %v2055_v62 }
 0x56f   :  { %v7958_v25 = vpop.eup %7957  ;;  %3918 = vmatpush.bf16.msrb.mxu0 %v8305_v13  ;;  %v2339_v36 = vpop.f32.mrf.mxu0  ;;  %v8307_v13 = vld [vmem:[%s12207_s2 + $0x20] sm:$0xff] }
 0x570   :  { %v2209_v17 = vmul.f32 %v7958_v25, %v2042_v34  ;;  %v1955_v20 = vpop.xlane.xlu0 %1954  ;;  %v2045_v5 = vpop.xlane.xlu1 %2044  ;;  %vm2214_vm8 = vweird.f32 %v7958_v25 }
 0x571   :  { %v1975_v37 = vsub.f32 %v9398_v22, %v1955_v20  ;;  %7959 = vrcp.f32 %v2045_v5  ;;  %vm2215_vm10 = vmor %vm2213_vm9, %vm2214_vm8  ;;  %v2538_v22 = vpack.c.bf16 %v2339_v36, %v2337_v2  ;;  %v2234_v54 = vand.u32 2147483648, %v2045_v5 }
 0x572   :  { %v2210_v61 = vsub.f32 1.0, %v2209_v17  ;;  %v2232_v40 = vand.u32 2147483647, %v2045_v5  ;;  %vm2228_vm13 = vweird.f32 %v2045_v5  ;;  %v1394_v20 = vpack.c.bf16 %v9057_v48, %v9042_v41 }
 0x573   :  { %v2004_v14 = vmul.f32 1.442695, %v1975_v37  ;;  %v2235_v52 = vor.u32 1.1754944e-38, %v2234_v54  ;;  %v1397_v41 = vpack.c.bf16 %v9172_v1, %v9156_v24  ;;  %v1398_v48 = vpack.c.bf16 %v9091_v47, %v9067_v19 }
 0x574   :  { %v2211_v15 = vmul.f32 %v7958_v25, %v2210_v61  ;;  %vm2233_vm15 = vcmp.eq.f32.partialorder %v2232_v40, 8.507059e+37 }
 0x575   :  { %7961 = vpow2.f32 %v2004_v14  ;;  %v1395_v14 = vpack.c.bf16 %v9061_v55, %v9044_v23 }
 0x576   :  { %v2212_v7 = vadd.f32 %v7958_v25, %v2211_v15 }
 0x577   :  { %v7960_v12 = vpop.eup %7959  ;;  %v2365_v18 = vpop.f32.mrf.mxu1 }
 0x578   :  { %v2216_v26 = vsel %vm2215_vm10, %v7958_v25, %v2212_v7  ;;  %v2224_v32 = vmul.f32 %v7960_v12, %v2045_v5  ;;  %v1958_v3 = vpop.xlane.xlu1 %1957  ;;  %vm2229_vm12 = vweird.f32 %v7960_v12 }
 0x579   :  { %v1976_v44 = vsub.f32 %v9416_v56, %v1958_v3  ;;  %v2221_v27 = vsel %vm2218_vm11, %v2220_v29, %v2216_v26  ;;  %vm2230_vm14 = vmor %vm2228_vm13, %vm2229_vm12  ;;  %v1400_v29 = vpack.c.bf16 %v9321_v11, %v9317_v42 }
 0x57a   :  { %v2225_v33 = vsub.f32 1.0, %v2224_v32  ;;  %7612 = vmatmul.msk.bf16.vlgmr.msra.gmra.mxu0 %vm483_vm1, %v2538_v22  ;;  %v2222_v56 = vmul.f32 %v9382_v45, %v2221_v27 }
 0x57b   :  { %v9461_v49 = vpop.eup %7961  ;;  %v2006_v6 = vmul.f32 1.442695, %v1976_v44 }
 0x57c   :  { %v2226_v60 = vmul.f32 %v7960_v12, %v2225_v33  ;;  %v2049_v34 = vsel %vm483_vm1, %v9461_v49, 0.0  ;;  %v2308_v57 = vpack.c.bf16 %v2222_v56, %v2222_v56 }
 0x57d   :  { %7963 = vpow2.f32 %v2006_v6  ;;  %2050 = vadd.xlane.f32.xlu1 %v2049_v34 }
 0x57e   :  { %v2227_v63 = vadd.f32 %v7960_v12, %v2226_v60  ;;  %v2456_v4 = vunpack.c.l.b16 %v2308_v57 }
 0x57f   :  { %v2367_v62 = vpop.f32.mrf.mxu1 }
 0x580   :  { %v2231_v51 = vsel %vm2230_vm14, %v7960_v12, %v2227_v63  ;;  %v2539_v8 = vpack.c.bf16 %v2367_v62, %v2365_v18 }
 0x581   :  { %v2236_v9 = vsel %vm2233_vm15, %v2235_v52, %v2231_v51 }
 0x582   :  { %v2237_v58 = vmul.f32 %v9408_v59, %v2236_v9  ;;  %v8306_v59 = vld [vmem:[%s12207_s2 + $0x28] sm:$0xff] }
 0x583   :  { %v9467_v30 = vpop.eup %7963 }
 0x584   :  { %v2309_v2 = vpack.c.bf16 %v2237_v58, %v2237_v58  ;;  %v2052_v38 = vsel %vm483_vm1, %v9467_v30, 0.0 }
 0x585   :  { %2053 = vadd.xlane.f32.xlu2 %v2052_v38 }
 0x586   :  { %v2457_v45 = vunpack.c.l.b16 %v2309_v2 }
 0x588   :  { %v2458_v10 = vpack.c.b16 %v2457_v45, %v2456_v4 }
 0x58a   :  { %7605 = vmatmul.msk.bf16.vlgmr.msrb.gmra.mxu1 %vm483_vm1, %v2458_v10  ;;  %7613 = vmatmul.msk.bf16.gmra.mxu0 %vm483_vm1, %v2539_v8 }
 0x58b   :  { %3966 = vmatpush.bf16.msrb.mxu1 %v8306_v59 }
 0x58d   :  { %v2393_v25 = vpop.f32.mrf.mxu2 }
 0x58f   :  { %3967 = vmatpush.bf16.msrb.mxu1 %v8307_v13 }
 0x595   :  { %v2395_v17 = vpop.f32.mrf.mxu2 }
 0x596   :  { %v2540_v5 = vpack.c.bf16 %v2395_v17, %v2393_v25 }
 0x59a   :  { %7614 = vmatmul.msk.bf16.gmra.mxu0 %vm483_vm1, %v2540_v5  ;;  %7624 = vmatmul.msk.bf16.vlgmr.msra.gmra.mxu1 %vm483_vm1, %v1394_v20 }
 0x59d   :  { %v2421_v37 = vpop.f32.mrf.mxu3 }
 0x5a5   :  { %v2423_v61 = vpop.f32.mrf.mxu3 }
 0x5a6   :  { %v2541_v15 = vpack.c.bf16 %v2423_v61, %v2421_v37 }
 0x5aa   :  { %7615 = vmatmul.msk.bf16.gmra.mxu0 %vm483_vm1, %v2541_v15  ;;  %7625 = vmatmul.msk.bf16.gmra.mxu1 %vm483_vm1, %v1395_v14 }
 0x5ba   :  { %7626 = vmatmul.msk.bf16.gmra.mxu1 %vm483_vm1, %v1396_v43  ;;  %v1401_v43 = vpack.c.bf16 %v9180_v31, %v9177_v53  ;;  %v9519_v31 = vld [vmem:[#allocation7] sm:$0x7f] }
 0x5ca   :  { %7627 = vmatmul.msk.bf16.gmra.mxu1 %vm483_vm1, %v1397_v41 }
 0x5d8   :  { %v2048_v36 = vpop.xlane.xlu0 %2047 }
 0x5d9   :  { %7965 = vrcp.f32 %v2048_v36  ;;  %v2249_v22 = vand.u32 2147483648, %v2048_v36  ;;  %vm2243_vm3 = vweird.f32 %v2048_v36  ;;  %v2247_v3 = vand.u32 2147483647, %v2048_v36 }
 0x5da   :  { %7628 = vmatmul.msk.bf16.gmra.mxu1 %vm483_vm1, %v1398_v48 }
 0x5db   :  { %v2250_v44 = vor.u32 1.1754944e-38, %v2249_v22  ;;  %vm2248_vm5 = vcmp.eq.f32.partialorder %v2247_v3, 8.507059e+37 }
 0x5df   :  { %v7966_v23 = vpop.eup %7965 }
 0x5e0   :  { %v2057_v55 = vpop.xlane.xlu0 %2056  ;;  %v2239_v35 = vmul.f32 %v7966_v23, %v2048_v36  ;;  %vm2244_vm2 = vweird.f32 %v7966_v23 }
 0x5e1   :  { %7967 = vrcp.f32 %v2057_v55  ;;  %vm2245_vm4 = vmor %vm2243_vm3, %vm2244_vm2  ;;  %vm2288_vm8 = vweird.f32 %v2057_v55  ;;  %v2294_v42 = vand.u32 2147483648, %v2057_v55  ;;  %v2292_v52 = vand.u32 2147483647, %v2057_v55 }
 0x5e2   :  { %v2240_v24 = vsub.f32 1.0, %v2239_v35 }
 0x5e3   :  { %vm2293_vm13 = vcmp.eq.f32.partialorder %v2292_v52, 8.507059e+37 }
 0x5e4   :  { %v2241_v21 = vmul.f32 %v7966_v23, %v2240_v24 }
 0x5e6   :  { %v2242_v26 = vadd.f32 %v7966_v23, %v2241_v21 }
 0x5e7   :  { %v2449_v7 = vpop.f32.mrf.mxu0  ;;  %v7968_v1 = vpop.eup %7967 }
 0x5e8   :  { %v2284_v12 = vmul.f32 %v7968_v1, %v2057_v55  ;;  %v2246_v50 = vsel %vm2245_vm4, %v7966_v23, %v2242_v26  ;;  %vm2289_vm6 = vweird.f32 %v7968_v1 }
 0x5e9   :  { %v2251_v18 = vsel %vm2248_vm5, %v2250_v44, %v2246_v50  ;;  %vm9504_vm9 = vmor %vm2288_vm8, %vm2289_vm6 }
 0x5ea   :  { %7629 = vmatmul.msk.bf16.gmra.mxu1 %vm483_vm1, %v1399_v28  ;;  %v2285_v32 = vsub.f32 1.0, %v2284_v12  ;;  %v2252_v63 = vmul.f32 %v9437_v39, %v2251_v18  ;;  %v2295_v39 = vor.u32 1.1754944e-38, %v2294_v42  ;;  %v8308_v12 = vld [vmem:[%s12205_s0] sm:$0xff]  ;;  %v8310_v18 = vld [vmem:[%s12205_s0 + $0x10] sm:$0xff] }
 0x5ec   :  { %v2286_v33 = vmul.f32 %v7968_v1, %v2285_v32  ;;  %v2310_v62 = vpack.c.bf16 %v2252_v63, %v2252_v63  ;;  %v8311_v63 = vld [vmem:[%s12205_s0 + $0x18] sm:$0xff] }
 0x5ee   :  { %v2287_v40 = vadd.f32 %v7968_v1, %v2286_v33  ;;  %v2484_v20 = vunpack.c.l.b16 %v2310_v62 }
 0x5ef   :  { %v2451_v0 = vpop.f32.mrf.mxu0 }
 0x5f0   :  { %v2542_v19 = vpack.c.bf16 %v2451_v0, %v2449_v7  ;;  %v2051_v47 = vpop.xlane.xlu1 %2050  ;;  %v2291_v58 = vsel %vm9504_vm9, %v7968_v1, %v2287_v40  ;;  %v9522_v0 = vperm.slane %v9519_v31, 0 }
 0x5f1   :  { %7969 = vrcp.f32 %v2051_v47  ;;  %v2264_v60 = vand.u32 2147483648, %v2051_v47  ;;  %v2262_v56 = vand.u32 2147483647, %v2051_v47  ;;  %vm2258_vm10 = vweird.f32 %v2051_v47 }
 0x5f2   :  { %7616 = vmatmul.msk.bf16.gmra.mxu0 %vm483_vm1, %v2542_v19  ;;  %v2296_v10 = vsel %vm2293_vm13, %v2295_v39, %v2291_v58  ;;  %v8312_v58 = vld [vmem:[%s12205_s0 + $0x20] sm:$0xff] }
 0x5f3   :  { %v2265_v57 = vor.u32 1.1754944e-38, %v2264_v60  ;;  %vm2263_vm12 = vcmp.eq.f32.partialorder %v2262_v56, 8.507059e+37  ;;  %v2297_v5 = vmul.f32 %v9445_v46, %v2296_v10 }
 0x5f5   :  { %v2313_v36 = vpack.c.bf16 %v2297_v5, %v2297_v5  ;;  %v8314_v5 = vld [vmem:[%s12205_s0 + $0x30] sm:$0xff] }
 0x5f7   :  { %v7970_v16 = vpop.eup %7969  ;;  %v2585_v46 = vpop.f32.mrf.mxu0  ;;  %v2513_v35 = vunpack.c.l.b16 %v2313_v36 }
 0x5f8   :  { %v2254_v27 = vmul.f32 %v7970_v16, %v2051_v47  ;;  %v2054_v54 = vpop.xlane.xlu2 %2053  ;;  %vm2259_vm7 = vweird.f32 %v7970_v16 }
 0x5f9   :  { %7971 = vrcp.f32 %v2054_v54  ;;  %vm2260_vm11 = vmor %vm2258_vm10, %vm2259_vm7  ;;  %v2279_v59 = vand.u32 2147483648, %v2054_v54  ;;  %v2277_v17 = vand.u32 2147483647, %v2054_v54  ;;  %vm2273_vm15 = vweird.f32 %v2054_v54 }
 0x5fa   :  { %v2255_v6 = vsub.f32 1.0, %v2254_v27  ;;  %7630 = vmatmul.msk.bf16.gmra.mxu1 %vm483_vm1, %v1400_v29 }
 0x5fb   :  { %v2280_v14 = vor.u32 1.1754944e-38, %v2279_v59  ;;  %vm2278_vm3 = vcmp.eq.f32.partialorder %v2277_v17, 8.507059e+37 }
 0x5fc   :  { %v2256_v34 = vmul.f32 %v7970_v16, %v2255_v6 }
 0x5fe   :  { %v2257_v51 = vadd.f32 %v7970_v16, %v2256_v34 }
 0x5ff   :  { %v7972_v9 = vpop.eup %7971  ;;  %v2587_v53 = vpop.f32.mrf.mxu0 }
 0x600   :  { %v2261_v2 = vsel %vm2260_vm11, %v7970_v16, %v2257_v51  ;;  %v2269_v38 = vmul.f32 %v7972_v9, %v2054_v54  ;;  %vm2274_vm14 = vweird.f32 %v7972_v9  ;;  %v8309_v16 = vld [vmem:[%s12205_s0 + $0x8] sm:$0xff] }
 0x601   :  { %v2266_v4 = vsel %vm2263_vm12, %v2265_v57, %v2261_v2  ;;  %vm2275_vm2 = vmor %vm2273_vm15, %vm2274_vm14 }
 0x602   :  { %v2267_v45 = vmul.f32 %v9461_v49, %v2266_v4  ;;  %v2270_v8 = vsub.f32 1.0, %v2269_v38 }
 0x604   :  { %v2311_v25 = vpack.c.bf16 %v2267_v45, %v2267_v45  ;;  %v2271_v13 = vmul.f32 %v7972_v9, %v2270_v8  ;;  %v8313_v8 = vld [vmem:[%s12205_s0 + $0x28] sm:$0xff] }
 0x606   :  { %v2485_v37 = vunpack.c.l.b16 %v2311_v25  ;;  %v2272_v61 = vadd.f32 %v7972_v9, %v2271_v13 }
 0x607   :  { %v2477_v15 = vpop.f32.mrf.mxu1  ;;  %v2590_v22 = vpop.f32.mrf.mxu0 }
 0x608   :  { %v2276_v49 = vsel %vm2275_vm2, %v7972_v9, %v2272_v61  ;;  %v2486_v41 = vpack.c.b16 %v2485_v37, %v2484_v20 }
 0x609   :  { %v2281_v48 = vsel %vm2278_vm3, %v2280_v14, %v2276_v49 }
 0x60a   :  { %v2282_v23 = vmul.f32 %v9467_v30, %v2281_v48  ;;  %7606 = vmatmul.msk.bf16.vlgmr.msrb.gmra.mxu2 %vm483_vm1, %v2486_v41  ;;  %7631 = vmatmul.msk.bf16.gmra.mxu1 %vm483_vm1, %v1401_v43 }
 0x60c   :  { %v2312_v55 = vpack.c.bf16 %v2282_v23, %v2282_v23 }
 0x60e   :  { %v2512_v7 = vunpack.c.l.b16 %v2312_v55 }
 0x60f   :  { %v2479_v28 = vpop.f32.mrf.mxu1  ;;  %v2592_v54 = vpop.f32.mrf.mxu0 }
 0x610   :  { %v2543_v24 = vpack.c.bf16 %v2479_v28, %v2477_v15  ;;  %v2514_v1 = vpack.c.b16 %v2513_v35, %v2512_v7  ;;  %v8526_v15 = vmov 32.0  }
 0x611   :  { %7973 = vrcp.f32 %v8526_v15 }
 0x612   :  { %7607 = vmatmul.msk.bf16.vlgmr.msrb.gmra.mxu3 %vm483_vm1, %v2514_v1  ;;  %7617 = vmatmul.msk.bf16.gmra.mxu0 %vm483_vm1, %v2543_v24 }
 0x617   :  { %v2664_v21 = vpop.f32.mrf.mxu1  ;;  %v2595_v11 = vpop.f32.mrf.mxu0 }
 0x618   :  { %v2665_v30 = vadd.f32 %v2664_v21, %v2585_v46  ;;  %v7974_v43 = vpop.eup %7973 }
 0x619   :  { %v2786_v49 = vmul.f32 32.0, %v7974_v43  ;;  %vm2790_vm4 = vweird.f32 %v7974_v43 }
 0x61a   :  { %v2704_v19 = vadd.f32 %v8308_v12, %v2665_v30 }
 0x61b   :  { %v2787_v41 = vsub.f32 1.0, %v2786_v49 }
 0x61c   :  { %v9528_v47 = vadd.f32 %v9522_v0, %v2704_v19 }
 0x61d   :  { %v2788_v48 = vmul.f32 %v7974_v43, %v2787_v41 }
 0x61e   :  { %v2737_v26 = vsel %vm223_vm0, %v9528_v47, 0.0 }
 0x61f   :  { %v2666_v32 = vpop.f32.mrf.mxu1  ;;  %2738 = vadd.xlane.f32.xlu1 %v2737_v26  ;;  %v2597_v62 = vpop.f32.mrf.mxu0  ;;  %v2789_v23 = vadd.f32 %v7974_v43, %v2788_v48  ;;  %v8315_v26 = vld [vmem:[%s12205_s0 + $0x38] sm:$0xff] }
 0x620   :  { %v2667_v3 = vadd.f32 %v2666_v32, %v2587_v53 }
 0x621   :  { %v9580_v35 = vsel %vm2790_vm4, %v7974_v43, %v2789_v23 }
 0x622   :  { %v2705_v50 = vadd.f32 %v8309_v16, %v2667_v3 }
 0x624   :  { %v9536_v29 = vadd.f32 %v9522_v0, %v2705_v50 }
 0x626   :  { %v2740_v44 = vsel %vm223_vm0, %v9536_v29, 0.0 }
 0x627   :  { %v2669_v33 = vpop.f32.mrf.mxu1  ;;  %2741 = vadd.xlane.f32.xlu2 %v2740_v44  ;;  %v2600_v13 = vpop.f32.mrf.mxu0 }
 0x628   :  { %v2670_v27 = vadd.f32 %v2669_v33, %v2590_v22 }
 0x62a   :  { %v2706_v6 = vadd.f32 %v8310_v18, %v2670_v27 }
 0x62c   :  { %v9544_v60 = vadd.f32 %v9522_v0, %v2706_v6  ;;  %v8316_v6 = vld [vmem:[%s12205_s0 + $0x40] sm:$0xff] }
 0x62e   :  { %v2743_v40 = vsel %vm223_vm0, %v9544_v60, 0.0 }
 0x62f   :  { %v2671_v34 = vpop.f32.mrf.mxu1  ;;  %2744 = vadd.xlane.f32.xlu0 %v2743_v40  ;;  %v2602_v55 = vpop.f32.mrf.mxu0 }
 0x630   :  { %v2672_v56 = vadd.f32 %v2671_v34, %v2592_v54 }
 0x632   :  { %v2707_v42 = vadd.f32 %v8311_v63, %v2672_v56 }
 0x634   :  { %v9552_v52 = vadd.f32 %v9522_v0, %v2707_v42 }
 0x636   :  { %v2746_v51 = vsel %vm223_vm0, %v9552_v52, 0.0 }
 0x637   :  { %v2674_v9 = vpop.f32.mrf.mxu1  ;;  %2747 = vadd.xlane.f32.xlu1 %v2746_v51 }
 0x638   :  { %v2675_v57 = vadd.f32 %v2674_v9, %v2595_v11 }
 0x63a   :  { %v2708_v2 = vadd.f32 %v8312_v58, %v2675_v57 }
 0x63c   :  { %v9560_v38 = vadd.f32 %v9522_v0, %v2708_v2 }
 0x63e   :  { %v2749_v39 = vsel %vm223_vm0, %v9560_v38, 0.0 }
 0x63f   :  { %v2676_v4 = vpop.f32.mrf.mxu1  ;;  %2750 = vadd.xlane.f32.xlu2 %v2749_v39 }
 0x640   :  { %v2677_v45 = vadd.f32 %v2676_v4, %v2597_v62  ;;  %v8317_v62 = vld [vmem:[%s12205_s0 + $0x48] sm:$0xff] }
 0x642   :  { %v2709_v10 = vadd.f32 %v8313_v8, %v2677_v45 }
 0x644   :  { %v9568_v59 = vadd.f32 %v9522_v0, %v2709_v10 }
 0x646   :  { %v2752_v25 = vsel %vm223_vm0, %v9568_v59, 0.0 }
 0x647   :  { %v2679_v17 = vpop.f32.mrf.mxu1  ;;  %2753 = vadd.xlane.f32.xlu0 %v2752_v25 }
 0x648   :  { %v2680_v20 = vadd.f32 %v2679_v17, %v2600_v13 }
 0x64a   :  { %v2710_v37 = vadd.f32 %v8314_v5, %v2680_v20  ;;  %v8318_v5 = vld [vmem:[%s12205_s0 + $0x50] sm:$0xff] }
 0x64c   :  { %v9576_v61 = vadd.f32 %v9522_v0, %v2710_v37 }
 0x64e   :  { %v2755_v14 = vsel %vm223_vm0, %v9576_v61, 0.0 }
 0x64f   :  { %2756 = vadd.xlane.f32.xlu0 %v2755_v14  ;;  %v2681_v36 = vpop.f32.mrf.mxu1 }
 0x650   :  { %v2682_v24 = vadd.f32 %v2681_v36, %v2602_v55  ;;  %v8319_v55 = vld [vmem:[%s12205_s0 + $0x58] sm:$0xff] }
 0x652   :  { %v2711_v22 = vadd.f32 %v8315_v26, %v2682_v24 }
 0x654   :  { %v9598_v33 = vadd.f32 %v9522_v0, %v2711_v22 }
 0x656   :  { %v2758_v56 = vsel %vm223_vm0, %v9598_v33, 0.0 }
 0x657   :  { %v2684_v21 = vpop.f32.mrf.mxu1 }
 0x65f   :  { %v2686_v54 = vpop.f32.mrf.mxu1 }
 0x667   :  { %v2689_v45 = vpop.f32.mrf.mxu1 }
 0x66f   :  { %v2605_v30 = vpop.f32.mrf.mxu0  ;;  %v2691_v41 = vpop.f32.mrf.mxu1 }
 0x670   :  { %v2685_v50 = vadd.f32 %v2684_v21, %v2605_v30 }
 0x672   :  { %v2712_v40 = vadd.f32 %v8316_v6, %v2685_v50  ;;  %v7810_v6 = vld [vmem:[#allocation8] sm:$0xff] }
 0x674   :  { %v9613_v9 = vadd.f32 %v9522_v0, %v2712_v40 }
 0x677   :  { %v2607_v18 = vpop.f32.mrf.mxu0 }
 0x678   :  { %v2687_v11 = vadd.f32 %v2686_v54, %v2607_v18  ;;  %v2694_v54 = vpop.f32.mrf.mxu1 }
 0x67a   :  { %v2713_v39 = vadd.f32 %v8317_v62, %v2687_v11 }
 0x67c   :  { %v9629_v17 = vadd.f32 %v9522_v0, %v2713_v39 }
 0x67e   :  { %v2764_v14 = vsel %vm223_vm0, %v9629_v17, 0.0 }
 0x680   :  { %v9685_v62 = vpop.f32.mrf.mxu1 }
 0x68d   :  { %v2505_v46 = vpop.f32.mrf.mxu2 }
 0x68f   :  { %v2610_v2 = vpop.f32.mrf.mxu0 }
 0x690   :  { %v2690_v25 = vadd.f32 %v2689_v45, %v2610_v2 }
 0x692   :  { %v2739_v7 = vpop.xlane.xlu1 %2738  ;;  %v2714_v37 = vadd.f32 %v8318_v5, %v2690_v25 }
 0x693   :  { %v2792_v28 = vmul.f32 %v9580_v35, %v2739_v7 }
 0x694   :  { %v9644_v23 = vadd.f32 %v9522_v0, %v2714_v37 }
 0x695   :  { %v9584_v1 = vsub.f32 %v9528_v47, %v2792_v28  ;;  %v2507_v53 = vpop.f32.mrf.mxu2  ;;  %v2533_v32 = vpop.f32.mrf.mxu3 }
 0x696   :  { %v2544_v12 = vpack.c.bf16 %v2507_v53, %v2505_v46  ;;  %v2767_v28 = vsel %vm223_vm0, %v9644_v23, 0.0 }
 0x697   :  { %v2824_v19 = vmul.f32 %v9584_v1, %v9584_v1  ;;  %v2612_v43 = vpop.f32.mrf.mxu0 }
 0x698   :  { %7618 = vmatmul.msk.bf16.gmra.mxu0 %vm483_vm1, %v2544_v12  ;;  %v2692_v48 = vadd.f32 %v2691_v41, %v2612_v43 }
 0x699   :  { %v2840_v3 = vsel %vm223_vm0, %v2824_v19, 0.0 }
 0x69a   :  { %v2742_v16 = vpop.xlane.xlu2 %2741  ;;  %2841 = vadd.xlane.f32.xlu1 %v2840_v3  ;;  %v2715_v7 = vadd.f32 %v8319_v55, %v2692_v48  ;;  %v9700_v48 = vpop.f32.mrf.mxu1 }
 0x69b   :  { %v2793_v47 = vmul.f32 %v9580_v35, %v2742_v16 }
 0x69c   :  { %v9659_v30 = vadd.f32 %v9522_v0, %v2715_v7 }
 0x69d   :  { %v9595_v44 = vsub.f32 %v9536_v29, %v2793_v47  ;;  %v2535_v63 = vpop.f32.mrf.mxu3  ;;  %v7811_v47 = vld [vmem:[#allocation8 + $0x8] sm:$0xff] }
 0x69e   :  { %v2545_v57 = vpack.c.bf16 %v2535_v63, %v2533_v32  ;;  %v2770_v26 = vsel %vm223_vm0, %v9659_v30, 0.0  ;;  %3183 = vmatpush.bf16.msra.mxu2 %v7811_v47 }
 0x69f   :  { %v2825_v27 = vmul.f32 %v9595_v44, %v9595_v44 }
 0x6a1   :  { %v2843_v34 = vsel %vm223_vm0, %v2825_v27, 0.0 }
 0x6a2   :  { %v2745_v29 = vpop.xlane.xlu0 %2744  ;;  %2844 = vadd.xlane.f32.xlu2 %v2843_v34  ;;  %2759 = vadd.xlane.f32.xlu1 %v2758_v56 }
 0x6a3   :  { %v2794_v42 = vmul.f32 %v9580_v35, %v2745_v29  ;;  %3184 = vmatpush.bf16.msra.mxu2 %v7810_v6  ;;  %v9728_v6 = vperm.slane %v9519_v31, 2 }
 0x6a5   :  { %v9610_v51 = vsub.f32 %v9544_v60, %v2794_v42  ;;  %v2761_v60 = vsel %vm223_vm0, %v9613_v9, 0.0  ;;  %v8321_v42 = vld [vmem:[%s12207_s2 + $0x40] sm:$0xff]  ;;  %12252 = vst [vmem:[#allocation17_spill] sm:$0xff] %v9728_v6 }
 0x6a7   :  { %v2826_v58 = vmul.f32 %v9610_v51, %v9610_v51 }
 0x6a8   :  { %7619 = vmatmul.msk.bf16.gmra.mxu0 %vm483_vm1, %v2545_v57 }
 0x6a9   :  { %v2846_v4 = vsel %vm223_vm0, %v2826_v58, 0.0 }
 0x6aa   :  { %2847 = vadd.xlane.f32.xlu2 %v2846_v4  ;;  %2762 = vadd.xlane.f32.xlu1 %v2761_v60  ;;  %v2748_v8 = vpop.xlane.xlu1 %2747 }
 0x6ab   :  { %v2795_v10 = vmul.f32 %v9580_v35, %v2748_v8 }
 0x6ad   :  { %v9626_v13 = vsub.f32 %v9552_v52, %v2795_v10 }
 0x6af   :  { %v2827_v20 = vmul.f32 %v9626_v13, %v9626_v13 }
 0x6b1   :  { %v2849_v15 = vsel %vm223_vm0, %v2827_v20, 0.0 }
 0x6b2   :  { %2765 = vadd.xlane.f32.xlu2 %v2764_v14  ;;  %v2751_v52 = vpop.xlane.xlu2 %2750  ;;  %2850 = vadd.xlane.f32.xlu0 %v2849_v15 }
 0x6b3   :  { %v2796_v49 = vmul.f32 %v9580_v35, %v2751_v52 }
 0x6b5   :  { %v9641_v36 = vsub.f32 %v9560_v38, %v2796_v49 }
 0x6b7   :  { %v2828_v46 = vmul.f32 %v9641_v36, %v9641_v36 }
 0x6b9   :  { %v2852_v24 = vsel %vm223_vm0, %v2828_v46, 0.0 }
 0x6ba   :  { %v2754_v53 = vpop.xlane.xlu0 %2753  ;;  %2768 = vadd.xlane.f32.xlu2 %v2767_v28  ;;  %2853 = vadd.xlane.f32.xlu0 %v2852_v24 }
 0x6bb   :  { %v2797_v38 = vmul.f32 %v9580_v35, %v2754_v53 }
 0x6bd   :  { %v9656_v21 = vsub.f32 %v9568_v59, %v2797_v38 }
 0x6bf   :  { %v2829_v12 = vmul.f32 %v9656_v21, %v9656_v21 }
 0x6c1   :  { %v2855_v19 = vsel %vm223_vm0, %v2829_v12, 0.0 }
 0x6c2   :  { %v2757_v22 = vpop.xlane.xlu0 %2756  ;;  %2856 = vadd.xlane.f32.xlu1 %v2855_v19  ;;  %2771 = vadd.xlane.f32.xlu0 %v2770_v26 }
 0x6c3   :  { %v2798_v32 = vmul.f32 %v9580_v35, %v2757_v22  ;;  %v9710_v22 = vperm.slane %v9519_v31, 1 }
 0x6c5   :  { %v9668_v3 = vsub.f32 %v9576_v61, %v2798_v32  ;;  %v8320_v61 = vld [vmem:[%s12207_s2 + $0x48] sm:$0xff]  ;;  %12251 = vst [vmem:[#allocation16_spill] sm:$0xff] %v9710_v22 }
 0x6c6   :  { %4015 = vmatpush.bf16.msrb.mxu2 %v8320_v61 }
 0x6c7   :  { %v2830_v59 = vmul.f32 %v9668_v3, %v9668_v3 }
 0x6c9   :  { %v2858_v16 = vsel %vm223_vm0, %v2830_v59, 0.0 }
 0x6ca   :  { %2859 = vadd.xlane.f32.xlu1 %v2858_v16  ;;  %4016 = vmatpush.bf16.msrb.mxu2 %v8321_v42 }
 0x70d   :  { %v2842_v50 = vpop.xlane.xlu1 %2841 }
 0x70e   :  { %v2888_v27 = vmul.f32 %v2842_v50, %v9580_v35 }
 0x710   :  { %v2904_v18 = vadd.f32 1e-12, %v2888_v27 }
 0x712   :  { %7975 = vrsqrt.f32 %v2904_v18  ;;  %vm2926_vm6 = vweird.f32 %v2904_v18 }
 0x715   :  { %v2845_v40 = vpop.xlane.xlu2 %2844  ;;  %v2615_v34 = vpop.f32.mrf.mxu0 }
 0x716   :  { %v2889_v56 = vmul.f32 %v2845_v40, %v9580_v35  ;;  %v2760_v29 = vpop.xlane.xlu1 %2759  ;;  %v2695_v12 = vadd.f32 %v2694_v54, %v2615_v34 }
 0x717   :  { %v2799_v63 = vmul.f32 %v9580_v35, %v2760_v29 }
 0x718   :  { %v7976_v11 = vpop.eup %7975  ;;  %v2905_v57 = vadd.f32 1e-12, %v2889_v56 }
 0x719   :  { %v2921_v58 = vmul.f32 %v7976_v11, %v2904_v18  ;;  %v9683_v2 = vsub.f32 %v9598_v33, %v2799_v63  ;;  %vm2927_vm5 = vweird.f32 %v7976_v11  ;;  %v8322_v18 = vld [vmem:[%s12205_s0 + $0x60] sm:$0xff] }
 0x71a   :  { %7977 = vrsqrt.f32 %v2905_v57  ;;  %vm2928_vm7 = vmor %vm2926_vm6, %vm2927_vm5  ;;  %vm2936_vm9 = vweird.f32 %v2905_v57 }
 0x71b   :  { %v2922_v39 = vmul.f32 %v7976_v11, %v2921_v58  ;;  %v2831_v4 = vmul.f32 %v9683_v2, %v9683_v2  ;;  %v2701_v58 = vpop.f32.mrf.mxu1 }
 0x71d   :  { %v2923_v60 = vmul.f32 0.5, %v2922_v39  ;;  %v2848_v45 = vpop.xlane.xlu2 %2847  ;;  %v2617_v8 = vpop.f32.mrf.mxu0  ;;  %v2861_v10 = vsel %vm223_vm0, %v2831_v4, 0.0 }
 0x71e   :  { %v2890_v25 = vmul.f32 %v2848_v45, %v9580_v35  ;;  %2862 = vadd.xlane.f32.xlu2 %v2861_v10  ;;  %v2763_v20 = vpop.xlane.xlu1 %2762  ;;  %v2697_v31 = vadd.f32 %v9685_v62, %v2617_v8 }
 0x71f   :  { %v2924_v5 = vsub.f32 1.5, %v2923_v60  ;;  %v2800_v33 = vmul.f32 %v9580_v35, %v2763_v20 }
 0x720   :  { %v7978_v37 = vpop.eup %7977  ;;  %v9692_v14 = vadd.f32 1e-12, %v2890_v25 }
 0x721   :  { %v2925_v15 = vmul.f32 %v7976_v11, %v2924_v5  ;;  %v2931_v43 = vmul.f32 %v7978_v37, %v2905_v57  ;;  %v9695_v52 = vsub.f32 %v9613_v9, %v2800_v33  ;;  %vm2937_vm8 = vweird.f32 %v7978_v37 }
 0x722   :  { %7979 = vrsqrt.f32 %v9692_v14  ;;  %vm2938_vm10 = vmor %vm2936_vm9, %vm2937_vm8  ;;  %vm2946_vm12 = vweird.f32 %v9692_v14 }
 0x723   :  { %v2932_v49 = vmul.f32 %v7978_v37, %v2931_v43  ;;  %v2832_v41 = vmul.f32 %v9695_v52, %v9695_v52  ;;  %v2929_v46 = vsel %vm2928_vm7, %v7976_v11, %v2925_v15 }
 0x724   :  { %v3080_v32 = vmul.f32 %v2929_v46, %v9584_v1  ;;  %v2716_v1 = vadd.f32 %v8322_v18, %v2695_v12 }
 0x725   :  { %v2933_v55 = vmul.f32 0.5, %v2932_v49  ;;  %v2766_v7 = vpop.xlane.xlu2 %2765  ;;  %v9702_v28 = vpop.f32.mrf.mxu0  ;;  %v2864_v24 = vsel %vm223_vm0, %v2832_v41, 0.0  ;;  %v8324_v41 = vld [vmem:[%s12205_s0 + $0x78] sm:$0xff] }
 0x726   :  { %v2801_v9 = vmul.f32 %v9580_v35, %v2766_v7  ;;  %v2851_v53 = vpop.xlane.xlu0 %2850  ;;  %2865 = vadd.xlane.f32.xlu0 %v2864_v24  ;;  %v3097_v61 = vmul.f32 %v9710_v22, %v3080_v32  ;;  %v9738_v60 = vadd.f32 %v9522_v0, %v2716_v1  ;;  %v2700_v12 = vadd.f32 %v9700_v48, %v9702_v28 }
 0x727   :  { %v2934_v38 = vsub.f32 1.5, %v2933_v55  ;;  %v2891_v19 = vmul.f32 %v2851_v53, %v9580_v35 }
 0x728   :  { %v9707_v26 = vpop.eup %7979  ;;  %v9714_v59 = vsub.f32 %v9629_v17, %v2801_v9  ;;  %v2773_v43 = vsel %vm223_vm0, %v9738_v60, 0.0 }
 0x729   :  { %v2935_v16 = vmul.f32 %v7978_v37, %v2934_v38  ;;  %v2941_v47 = vmul.f32 %v9707_v26, %v9692_v14  ;;  %v9718_v50 = vadd.f32 1e-12, %v2891_v19  ;;  %vm2947_vm11 = vweird.f32 %v9707_v26 }
 0x72a   :  { %v2833_v27 = vmul.f32 %v9714_v59, %v9714_v59  ;;  %vm9772_vm13 = vmor %vm2946_vm12, %vm2947_vm11 }
 0x72b   :  { %v2939_v54 = vsel %vm2938_vm10, %v7978_v37, %v2935_v16  ;;  %v2942_v17 = vmul.f32 %v9707_v26, %v2941_v47  ;;  %7981 = vrsqrt.f32 %v9718_v50  ;;  %vm2956_vm15 = vweird.f32 %v9718_v50 }
 0x72c   :  { %v3081_v40 = vmul.f32 %v2939_v54, %v9595_v44  ;;  %v2867_v34 = vsel %vm223_vm0, %v2833_v27, 0.0  ;;  %v9741_v44 = vadd.f32 %v9728_v6, %v3097_v61 }
 0x72d   :  { %v2943_v56 = vmul.f32 0.5, %v2942_v17  ;;  %v2769_v29 = vpop.xlane.xlu2 %2768  ;;  %v2622_v63 = vpop.f32.mrf.mxu0  ;;  %2868 = vadd.xlane.f32.xlu1 %v2867_v34 }
 0x72e   :  { %v3098_v42 = vmul.f32 %v9710_v22, %v3081_v40  ;;  %v2802_v11 = vmul.f32 %v9580_v35, %v2769_v29  ;;  %v2854_v57 = vpop.xlane.xlu0 %2853  ;;  %v2702_v25 = vadd.f32 %v2701_v58, %v2622_v63 }
 0x72f   :  { %v2944_v39 = vsub.f32 1.5, %v2943_v56  ;;  %v2892_v4 = vmul.f32 %v2854_v57, %v9580_v35 }
 0x730   :  { %v9744_v45 = vadd.f32 %v9728_v6, %v3098_v42  ;;  %v9747_v10 = vsub.f32 %v9644_v23, %v2802_v11  ;;  %v8323_v23 = vld [vmem:[%s12205_s0 + $0x68] sm:$0xff]  ;;  %v2719_v46 = vadd.f32 %v8324_v41, %v2702_v25 }
 0x731   :  { %v7982_v20 = vpop.eup %7981  ;;  %v9750_v5 = vadd.f32 1e-12, %v2892_v4  ;;  %v2945_v8 = vmul.f32 %v9707_v26, %v2944_v39  ;;  %v2717_v15 = vadd.f32 %v8323_v23, %v2697_v31 }
 0x732   :  { %v3130_v62 = vpack.c.bf16 %v9744_v45, %v9741_v44  ;;  %v2951_v33 = vmul.f32 %v7982_v20, %v9718_v50  ;;  %v2834_v37 = vmul.f32 %v9747_v10, %v9747_v10  ;;  %vm2957_vm14 = vweird.f32 %v7982_v20 }
 0x733   :  { %7983 = vrsqrt.f32 %v9750_v5  ;;  %v2949_v14 = vsel %vm9772_vm13, %v9707_v26, %v2945_v8  ;;  %v9784_v32 = vadd.f32 %v9522_v0, %v2717_v15  ;;  %v9787_v27 = vadd.f32 %v9522_v0, %v2719_v46  ;;  %vm2958_vm2 = vmor %vm2956_vm15, %vm2957_vm14 }
 0x734   :  { %v2952_v49 = vmul.f32 %v7982_v20, %v2951_v33  ;;  %7640 = vmatmul.msk.bf16.vlgmr.msra.gmra.mxu2 %vm223_vm0, %v3130_v62  ;;  %v2870_v55 = vsel %vm223_vm0, %v2834_v37, 0.0  ;;  %v3082_v26 = vmul.f32 %v2949_v14, %v9610_v51  ;;  %v8325_v51 = vld [vmem:[%s12205_s0 + $0x70] sm:$0xff]  ;;  %vm2966_vm4 = vweird.f32 %v9750_v5 }
 0x735   :  { %2774 = vadd.xlane.f32.xlu1 %v2773_v43  ;;  %2871 = vadd.xlane.f32.xlu2 %v2870_v55  ;;  %v2857_v24 = vpop.xlane.xlu1 %2856  ;;  %v2776_v28 = vsel %vm223_vm0, %v9784_v32, 0.0  ;;  %v2718_v61 = vadd.f32 %v8325_v51, %v2700_v12  ;;  %v2782_v50 = vsel %vm223_vm0, %v9787_v27, 0.0 }
 0x736   :  { %v2953_v9 = vmul.f32 0.5, %v2952_v49  ;;  %v2772_v53 = vpop.xlane.xlu0 %2771  ;;  %v2893_v38 = vmul.f32 %v2857_v24, %v9580_v35  ;;  %v3099_v29 = vmul.f32 %v9710_v22, %v3082_v26 }
 0x737   :  { %v2803_v19 = vmul.f32 %v9580_v35, %v2772_v53  ;;  %v9809_v58 = vadd.f32 %v9522_v0, %v2718_v61 }
 0x738   :  { %v2954_v16 = vsub.f32 1.5, %v2953_v9  ;;  %v2909_v47 = vadd.f32 1e-12, %v2893_v38  ;;  %v9812_v31 = vadd.f32 %v9728_v6, %v3099_v29 }
 0x739   :  { %v7984_v54 = vpop.eup %7983  ;;  %v9791_v18 = vsub.f32 %v9659_v30, %v2803_v19  ;;  %v2779_v33 = vsel %vm223_vm0, %v9809_v58, 0.0 }
 0x73a   :  { %v2955_v1 = vmul.f32 %v7982_v20, %v2954_v16  ;;  %v2961_v48 = vmul.f32 %v7984_v54, %v9750_v5  ;;  %7985 = vrsqrt.f32 %v2909_v47  ;;  %vm2967_vm3 = vweird.f32 %v7984_v54 }
 0x73b   :  { %v2835_v17 = vmul.f32 %v9791_v18, %v9791_v18  ;;  %vm2968_vm5 = vmor %vm2966_vm4, %vm2967_vm3  ;;  %vm2976_vm7 = vweird.f32 %v2909_v47 }
 0x73c   :  { %v2959_v30 = vsel %vm2958_vm2, %v7982_v20, %v2955_v1  ;;  %v2962_v40 = vmul.f32 %v7984_v54, %v2961_v48 }
 0x73d   :  { %v3083_v34 = vmul.f32 %v2959_v30, %v9626_v13  ;;  %2783 = vadd.xlane.f32.xlu1 %v2782_v50  ;;  %2777 = vadd.xlane.f32.xlu2 %v2776_v28  ;;  %v2873_v56 = vsel %vm223_vm0, %v2835_v17, 0.0 }
 0x73e   :  { %v2963_v63 = vmul.f32 0.5, %v2962_v40  ;;  %2874 = vadd.xlane.f32.xlu0 %v2873_v56 }
 0x73f   :  { %v3100_v42 = vmul.f32 %v9710_v22, %v3083_v34 }
 0x740   :  { %v7986_v11 = vpop.eup %7985  ;;  %v2964_v57 = vsub.f32 1.5, %v2963_v63 }
 0x741   :  { %v2971_v39 = vmul.f32 %v7986_v11, %v2909_v47  ;;  %v9815_v13 = vadd.f32 %v9728_v6, %v3100_v42  ;;  %vm2977_vm6 = vweird.f32 %v7986_v11 }
 0x742   :  { %v2965_v4 = vmul.f32 %v7984_v54, %v2964_v57  ;;  %vm2978_vm8 = vmor %vm2976_vm7, %vm2977_vm6 }
 0x743   :  { %v2972_v25 = vmul.f32 %v7986_v11, %v2971_v39  ;;  %v3131_v20 = vpack.c.bf16 %v9815_v13, %v9812_v31 }
 0x744   :  { %v2969_v62 = vsel %vm2968_vm5, %v7984_v54, %v2965_v4 }
 0x745   :  { %v2973_v8 = vmul.f32 0.5, %v2972_v25  ;;  %7641 = vmatmul.msk.bf16.gmra.mxu2 %vm223_vm0, %v3131_v20  ;;  %v3084_v23 = vmul.f32 %v2969_v62, %v9641_v36  ;;  %v2860_v36 = vpop.xlane.xlu1 %2859 }
 0x746   :  { %2780 = vadd.xlane.f32.xlu0 %v2779_v33  ;;  %v2894_v24 = vmul.f32 %v2860_v36, %v9580_v35 }
 0x747   :  { %v2974_v37 = vsub.f32 1.5, %v2973_v8  ;;  %v3101_v49 = vmul.f32 %v9710_v22, %v3084_v23 }
 0x748   :  { %v2910_v14 = vadd.f32 1e-12, %v2894_v24 }
 0x749   :  { %v2975_v15 = vmul.f32 %v7986_v11, %v2974_v37  ;;  %v9828_v46 = vadd.f32 %v9728_v6, %v3101_v49 }
 0x74a   :  { %7987 = vrsqrt.f32 %v2910_v14  ;;  %vm2986_vm10 = vweird.f32 %v2910_v14 }
 0x74b   :  { %v2979_v5 = vsel %vm2978_vm8, %v7986_v11, %v2975_v15 }
 0x74c   :  { %v3085_v43 = vmul.f32 %v2979_v5, %v9656_v21 }
 0x74e   :  { %v3102_v41 = vmul.f32 %v9710_v22, %v3085_v43 }
 0x750   :  { %v9831_v55 = vadd.f32 %v9728_v6, %v3102_v41  ;;  %v7988_v21 = vpop.eup %7987 }
 0x751   :  { %v2981_v9 = vmul.f32 %v7988_v21, %v2910_v14  ;;  %vm2987_vm9 = vweird.f32 %v7988_v21 }
 0x752   :  { %v3132_v7 = vpack.c.bf16 %v9831_v55, %v9828_v46  ;;  %vm2988_vm11 = vmor %vm2986_vm10, %vm2987_vm9 }
 0x753   :  { %v2982_v53 = vmul.f32 %v7988_v21, %v2981_v9 }
 0x755   :  { %7642 = vmatmul.msk.bf16.gmra.mxu2 %vm223_vm0, %v3132_v7  ;;  %v2983_v16 = vmul.f32 0.5, %v2982_v53  ;;  %v7815_v7 = vld [vmem:[%s12213_s8 + $0x18] sm:$0xff] }
 0x756   :  { %3432 = vmatpush.bf16.msra.mxu3 %v7815_v7 }
 0x757   :  { %v2984_v47 = vsub.f32 1.5, %v2983_v16  ;;  %v7814_v16 = vld [vmem:[%s12213_s8 + $0x10] sm:$0xff] }
 0x759   :  { %v2985_v28 = vmul.f32 %v7988_v21, %v2984_v47 }
 0x75a   :  { %3433 = vmatpush.bf16.msra.mxu3 %v7814_v16 }
 0x75b   :  { %v2989_v30 = vsel %vm2988_vm11, %v7988_v21, %v2985_v28 }
 0x75c   :  { %v3086_v63 = vmul.f32 %v2989_v30, %v9668_v3 }
 0x75e   :  { %v3103_v62 = vmul.f32 %v9710_v22, %v3086_v63 }
 0x760   :  { %v9852_v49 = vadd.f32 %v9728_v6, %v3103_v62 }
 0x791   :  { %v2863_v38 = vpop.xlane.xlu2 %2862 }
 0x792   :  { %v2895_v12 = vmul.f32 %v2863_v38, %v9580_v35 }
 0x794   :  { %v2911_v19 = vadd.f32 1e-12, %v2895_v12 }
 0x796   :  { %7989 = vrsqrt.f32 %v2911_v19  ;;  %vm2996_vm13 = vweird.f32 %v2911_v19 }
 0x799   :  { %v2866_v54 = vpop.xlane.xlu0 %2865 }
 0x79a   :  { %v2896_v26 = vmul.f32 %v2866_v54, %v9580_v35 }
 0x79c   :  { %v7990_v1 = vpop.eup %7989  ;;  %v2912_v48 = vadd.f32 1e-12, %v2896_v26 }
 0x79d   :  { %v2991_v17 = vmul.f32 %v7990_v1, %v2911_v19  ;;  %vm2997_vm12 = vweird.f32 %v7990_v1 }
 0x79e   :  { %7991 = vrsqrt.f32 %v2912_v48  ;;  %vm2998_vm14 = vmor %vm2996_vm13, %vm2997_vm12  ;;  %vm3006_vm2 = vweird.f32 %v2912_v48  ;;  %vm3403_vm13 = vcmask 523264  }
 0x79f   :  { %v2992_v51 = vmul.f32 %v7990_v1, %v2991_v17 }
 0x7a0   :  { %v2869_v61 = vpop.xlane.xlu1 %2868 }
 0x7a1   :  { %v2993_v40 = vmul.f32 0.5, %v2992_v51  ;;  %v2897_v50 = vmul.f32 %v2869_v61, %v9580_v35 }
 0x7a3   :  { %v2994_v34 = vsub.f32 1.5, %v2993_v40  ;;  %v2913_v56 = vadd.f32 1e-12, %v2897_v50 }
 0x7a4   :  { %v7992_v29 = vpop.eup %7991 }
 0x7a5   :  { %v2995_v42 = vmul.f32 %v7990_v1, %v2994_v34  ;;  %v3001_v11 = vmul.f32 %v7992_v29, %v2912_v48  ;;  %7993 = vrsqrt.f32 %v2913_v56  ;;  %vm3007_vm15 = vweird.f32 %v7992_v29  ;;  %v9890_v34 = vld [vmem:[%s12212_s7] ss:$0 sm:$0xff] }
 0x7a6   :  { %vm9865_vm3 = vmor %vm3006_vm2, %vm3007_vm15  ;;  %vm3016_vm5 = vweird.f32 %v2913_v56 }
 0x7a7   :  { %v2999_v57 = vsel %vm2998_vm14, %v7990_v1, %v2995_v42  ;;  %v3002_v39 = vmul.f32 %v7992_v29, %v3001_v11 }
 0x7a8   :  { %v3087_v4 = vmul.f32 %v2999_v57, %v9683_v2  ;;  %v2872_v25 = vpop.xlane.xlu2 %2871  ;;  %v2775_v20 = vpop.xlane.xlu1 %2774 }
 0x7a9   :  { %v3003_v8 = vmul.f32 0.5, %v3002_v39  ;;  %v2898_v33 = vmul.f32 %v2872_v25, %v9580_v35  ;;  %v2804_v37 = vmul.f32 %v9580_v35, %v2775_v20  ;;  %v7812_v20 = vld [vmem:[%s12213_s8] sm:$0xff] }
 0x7aa   :  { %v3104_v3 = vmul.f32 %v9710_v22, %v3087_v4 }
 0x7ab   :  { %v7994_v23 = vpop.eup %7993  ;;  %v3004_v15 = vsub.f32 1.5, %v3003_v8  ;;  %v9846_v5 = vadd.f32 1e-12, %v2898_v33  ;;  %v9849_v43 = vsub.f32 %v9738_v60, %v2804_v37 }
 0x7ac   :  { %v3011_v2 = vmul.f32 %v7994_v23, %v2913_v56  ;;  %v9855_v41 = vadd.f32 %v9728_v6, %v3104_v3  ;;  %vm3017_vm4 = vweird.f32 %v7994_v23 }
 0x7ad   :  { %v3005_v36 = vmul.f32 %v7992_v29, %v3004_v15  ;;  %7995 = vrsqrt.f32 %v9846_v5  ;;  %v2836_v24 = vmul.f32 %v9849_v43, %v9849_v43  ;;  %vm3018_vm6 = vmor %vm3016_vm5, %vm3017_vm4  ;;  %vm3026_vm8 = vweird.f32 %v9846_v5 }
 0x7ae   :  { %v3012_v60 = vmul.f32 %v7994_v23, %v3011_v2  ;;  %v3133_v14 = vpack.c.bf16 %v9855_v41, %v9852_v49 }
 0x7af   :  { %v2876_v9 = vsel %vm223_vm0, %v2836_v24, 0.0  ;;  %v3009_v53 = vsel %vm9865_vm3, %v7992_v29, %v3005_v36 }
 0x7b0   :  { %v3013_v38 = vmul.f32 0.5, %v3012_v60  ;;  %7643 = vmatmul.msk.bf16.gmra.mxu2 %vm223_vm0, %v3133_v14  ;;  %v2778_v12 = vpop.xlane.xlu2 %2777  ;;  %2877 = vadd.xlane.f32.xlu2 %v2876_v9  ;;  %v2784_v19 = vpop.xlane.xlu1 %2783  ;;  %v3088_v17 = vmul.f32 %v3009_v53, %v9695_v52  ;;  %v7813_v52 = vld [vmem:[%s12213_s8 + $0x8] sm:$0xff] }
 0x7b1   :  { %v2805_v47 = vmul.f32 %v9580_v35, %v2778_v12  ;;  %v2875_v54 = vpop.xlane.xlu0 %2874  ;;  %v2807_v26 = vmul.f32 %v9580_v35, %v2784_v19  ;;  %3434 = vmatpush.bf16.msra.mxu3 %v7813_v52 }
 0x7b2   :  { %v3014_v1 = vsub.f32 1.5, %v3013_v38  ;;  %v2899_v48 = vmul.f32 %v2875_v54, %v9580_v35  ;;  %v3105_v39 = vmul.f32 %v9710_v22, %v3088_v17 }
 0x7b3   :  { %v7996_v28 = vpop.eup %7995  ;;  %v9881_v51 = vsub.f32 %v9784_v32, %v2805_v47  ;;  %v9884_v61 = vsub.f32 %v9787_v27, %v2807_v26 }
 0x7b4   :  { %v3015_v30 = vmul.f32 %v7994_v23, %v3014_v1  ;;  %v3021_v40 = vmul.f32 %v7996_v28, %v9846_v5  ;;  %v2915_v50 = vadd.f32 1e-12, %v2899_v48  ;;  %v9914_v3 = vadd.f32 %v9728_v6, %v3105_v39 }
 0x7b5   :  { %v2837_v32 = vmul.f32 %v9881_v51, %v9881_v51  ;;  %v2839_v27 = vmul.f32 %v9884_v61, %v9884_v61  ;;  %3435 = vmatpush.bf16.msra.mxu3 %v7812_v20  ;;  %vm3027_vm7 = vweird.f32 %v7996_v28 }
 0x7b6   :  { %v3019_v56 = vsel %vm3018_vm6, %v7994_v23, %v3015_v30  ;;  %v3022_v29 = vmul.f32 %v7996_v28, %v3021_v40  ;;  %7997 = vrsqrt.f32 %v2915_v50  ;;  %vm3028_vm9 = vmor %vm3026_vm8, %vm3027_vm7  ;;  %vm3036_vm11 = vweird.f32 %v2915_v50 }
 0x7b7   :  { %v3089_v63 = vmul.f32 %v3019_v56, %v9714_v59  ;;  %v3186_v42 = vpop.f32.mrf.mxu2  ;;  %v2879_v11 = vsel %vm223_vm0, %v2837_v32, 0.0  ;;  %v2885_v57 = vsel %vm223_vm0, %v2839_v27, 0.0 }
 0x7b8   :  { %v3023_v4 = vmul.f32 0.5, %v3022_v29  ;;  %v9904_v25 = vadd.f32 %v9890_v34, %v3186_v42  ;;  %2880 = vadd.xlane.f32.xlu0 %v2879_v11  ;;  %2886 = vadd.xlane.f32.xlu2 %v2885_v57 }
 0x7b9   :  { %v2781_v62 = vpop.xlane.xlu0 %2780  ;;  %v3106_v59 = vmul.f32 %v9710_v22, %v3089_v63 }
 0x7ba   :  { %v3024_v8 = vsub.f32 1.5, %v3023_v4  ;;  %v3226_v33 = vmul.f32 %v9904_v25, %v9904_v25  ;;  %v2806_v37 = vmul.f32 %v9580_v35, %v2781_v62 }
 0x7bb   :  { %v9917_v23 = vadd.f32 %v9728_v6, %v3106_v59 }
 0x7bc   :  { %v7998_v15 = vpop.eup %7997  ;;  %v3242_v2 = vmul.f32 %v3226_v33, %v9904_v25  ;;  %v9921_v7 = vsub.f32 %v9809_v58, %v2806_v37  ;;  %v3025_v36 = vmul.f32 %v7996_v28, %v3024_v8 }
 0x7bd   :  { %v3031_v24 = vmul.f32 %v7998_v15, %v2915_v50  ;;  %v3134_v60 = vpack.c.bf16 %v9917_v23, %v9914_v3  ;;  %vm3037_vm10 = vweird.f32 %v7998_v15 }
 0x7be   :  { %v3258_v14 = vmul.f32 0.044715, %v3242_v2  ;;  %v2838_v21 = vmul.f32 %v9921_v7, %v9921_v7  ;;  %v3029_v19 = vsel %vm3028_vm9, %v7996_v28, %v3025_v36  ;;  %vm3038_vm12 = vmor %vm3036_vm11, %vm3037_vm10 }
 0x7bf   :  { %v3032_v9 = vmul.f32 %v7998_v15, %v3031_v24  ;;  %v3188_v53 = vpop.f32.mrf.mxu2  ;;  %v3090_v5 = vmul.f32 %v3029_v19, %v9747_v10 }
 0x7c0   :  { %v3274_v38 = vadd.f32 %v3258_v14, %v9904_v25  ;;  %v3189_v58 = vadd.f32 %v9890_v34, %v3188_v53  ;;  %7644 = vmatmul.msk.bf16.gmra.mxu2 %vm223_vm0, %v3134_v60  ;;  %v2882_v12 = vsel %vm223_vm0, %v2838_v21, 0.0 }
 0x7c1   :  { %v3033_v16 = vmul.f32 0.5, %v3032_v9  ;;  %2883 = vadd.xlane.f32.xlu1 %v2882_v12  ;;  %v3107_v28 = vmul.f32 %v9710_v22, %v3090_v5 }
 0x7c2   :  { %v3290_v47 = vmul.f32 0.7978846, %v3274_v38  ;;  %v3227_v54 = vmul.f32 %v3189_v58, %v3189_v58 }
 0x7c3   :  { %v3034_v26 = vsub.f32 1.5, %v3033_v16  ;;  %v9938_v50 = vadd.f32 %v9728_v6, %v3107_v28 }
 0x7c4   :  { %v3243_v1 = vmul.f32 %v3227_v54, %v3189_v58  ;;  %7999 = vtanh.f32 %v3290_v47 }
 0x7c5   :  { %v3035_v48 = vmul.f32 %v7998_v15, %v3034_v26 }
 0x7c6   :  { %v3259_v17 = vmul.f32 0.044715, %v3243_v1 }
 0x7c7   :  { %v3039_v30 = vsel %vm3038_vm12, %v7998_v15, %v3035_v48 }
 0x7c8   :  { %v3091_v40 = vmul.f32 %v3039_v30, %v9791_v18  ;;  %v3275_v52 = vadd.f32 %v3259_v17, %v3189_v58  ;;  %v3191_v32 = vpop.f32.mrf.mxu2 }
 0x7c9   :  { %v3192_v27 = vadd.f32 %v9890_v34, %v3191_v32 }
 0x7ca   :  { %v3291_v56 = vmul.f32 0.7978846, %v3275_v52  ;;  %v3108_v29 = vmul.f32 %v9710_v22, %v3091_v40  ;;  %v8000_v10 = vpop.eup %7999 }
 0x7cb   :  { %v3228_v63 = vmul.f32 %v3192_v27, %v3192_v27  ;;  %v3322_v57 = vadd.f32 1.0, %v8000_v10 }
 0x7cc   :  { %8001 = vtanh.f32 %v3291_v56  ;;  %v9941_v42 = vadd.f32 %v9728_v6, %v3108_v29 }
 0x7cd   :  { %v3244_v11 = vmul.f32 %v3228_v63, %v3192_v27  ;;  %v3338_v8 = vmul.f32 0.5, %v3322_v57 }
 0x7ce   :  { %v3135_v18 = vpack.c.bf16 %v9941_v42, %v9938_v50 }
 0x7cf   :  { %v3260_v39 = vmul.f32 0.044715, %v3244_v11  ;;  %v3354_v24 = vmul.f32 %v3338_v8, %v9904_v25 }
 0x7d0   :  { %v3193_v4 = vpop.f32.mrf.mxu2  ;;  %7645 = vmatmul.msk.bf16.gmra.mxu2 %vm223_vm0, %v3135_v18 }
 0x7d1   :  { %v3276_v20 = vadd.f32 %v3260_v39, %v3192_v27  ;;  %v3194_v62 = vadd.f32 %v9890_v34, %v3193_v4 }
 0x7d2   :  { %v8002_v59 = vpop.eup %8001 }
 0x7d3   :  { %v3323_v33 = vadd.f32 1.0, %v8002_v59  ;;  %v3292_v37 = vmul.f32 0.7978846, %v3276_v20  ;;  %v3229_v15 = vmul.f32 %v3194_v62, %v3194_v62 }
 0x7d5   :  { %v3339_v2 = vmul.f32 0.5, %v3323_v33  ;;  %v3245_v36 = vmul.f32 %v3229_v15, %v3194_v62  ;;  %8003 = vtanh.f32 %v3292_v37 }
 0x7d7   :  { %v3355_v60 = vmul.f32 %v3339_v2, %v3189_v58  ;;  %v3261_v14 = vmul.f32 0.044715, %v3245_v36 }
 0x7d8   :  { %v3196_v21 = vpop.f32.mrf.mxu2 }
 0x7d9   :  { %v3370_v9 = vpack.c.bf16 %v3355_v60, %v3354_v24  ;;  %v3277_v53 = vadd.f32 %v3261_v14, %v3194_v62  ;;  %v3197_v38 = vadd.f32 %v9890_v34, %v3196_v21 }
 0x7db   :  { %v3293_v12 = vmul.f32 0.7978846, %v3277_v53  ;;  %v3230_v19 = vmul.f32 %v3197_v38, %v3197_v38  ;;  %7664 = vmatmul.msk.bf16.vlgmr.msra.gmra.mxu3 %vm3403_vm13, %v3370_v9  ;;  %v8004_v16 = vpop.eup %8003 }
 0x7dc   :  { %v3324_v26 = vadd.f32 1.0, %v8004_v16 }
 0x7dd   :  { %8005 = vtanh.f32 %v3293_v12  ;;  %v3246_v47 = vmul.f32 %v3230_v19, %v3197_v38 }
 0x7de   :  { %v3340_v30 = vmul.f32 0.5, %v3324_v26 }
 0x7df   :  { %v3262_v54 = vmul.f32 0.044715, %v3246_v47 }
 0x7e0   :  { %v3198_v5 = vpop.f32.mrf.mxu2  ;;  %v3356_v56 = vmul.f32 %v3340_v30, %v3192_v27 }
 0x7e1   :  { %v3278_v25 = vadd.f32 %v3262_v54, %v3197_v38  ;;  %v3199_v58 = vadd.f32 %v9890_v34, %v3198_v5 }
 0x7e3   :  { %v8006_v1 = vpop.eup %8005  ;;  %v3294_v48 = vmul.f32 0.7978846, %v3278_v25  ;;  %v3231_v17 = vmul.f32 %v3199_v58, %v3199_v58 }
 0x7e4   :  { %v3325_v40 = vadd.f32 1.0, %v8006_v1 }
 0x7e5   :  { %v3247_v52 = vmul.f32 %v3231_v17, %v3199_v58  ;;  %8007 = vtanh.f32 %v3294_v48 }
 0x7e6   :  { %v3341_v32 = vmul.f32 0.5, %v3325_v40 }
 0x7e7   :  { %v3263_v28 = vmul.f32 0.044715, %v3247_v52 }
 0x7e8   :  { %v3357_v29 = vmul.f32 %v3341_v32, %v3194_v62 }
 0x7e9   :  { %v3279_v63 = vadd.f32 %v3263_v28, %v3199_v58 }
 0x7ea   :  { %v3371_v10 = vpack.c.bf16 %v3357_v29, %v3356_v56 }
 0x7eb   :  { %v3295_v11 = vmul.f32 0.7978846, %v3279_v63  ;;  %v8008_v18 = vpop.eup %8007 }
 0x7ec   :  { %7665 = vmatmul.msk.bf16.gmra.mxu3 %vm3403_vm13, %v3371_v10  ;;  %v3326_v57 = vadd.f32 1.0, %v8008_v18 }
 0x7ed   :  { %8009 = vtanh.f32 %v3295_v11 }
 0x7ee   :  { %v3342_v4 = vmul.f32 0.5, %v3326_v57 }
 0x7f0   :  { %v3358_v8 = vmul.f32 %v3342_v4, %v3197_v38 }
 0x7f3   :  { %v8010_v39 = vpop.eup %8009 }
 0x7f4   :  { %v3327_v20 = vadd.f32 1.0, %v8010_v39 }
 0x7f6   :  { %v3343_v59 = vmul.f32 0.5, %v3327_v20 }
 0x7f8   :  { %v3359_v33 = vmul.f32 %v3343_v59, %v3199_v58 }
 0x7fa   :  { %v3372_v37 = vpack.c.bf16 %v3359_v33, %v3358_v8 }
 0x7fc   :  { %7666 = vmatmul.msk.bf16.gmra.mxu3 %vm3403_vm13, %v3372_v37 }
 0x823   :  { %v2878_v15 = vpop.xlane.xlu2 %2877 }
 0x824   :  { %v2900_v27 = vmul.f32 %v2878_v15, %v9580_v35 }
 0x826   :  { %v2916_v62 = vadd.f32 1e-12, %v2900_v27 }
 0x828   :  { %8011 = vrsqrt.f32 %v2916_v62  ;;  %vm3046_vm15 = vweird.f32 %v2916_v62 }
 0x82b   :  { %v2881_v2 = vpop.xlane.xlu0 %2880  ;;  %v2887_v36 = vpop.xlane.xlu2 %2886 }
 0x82c   :  { %v2901_v24 = vmul.f32 %v2881_v2, %v9580_v35  ;;  %v2903_v60 = vmul.f32 %v2887_v36, %v9580_v35 }
 0x82e   :  { %v8012_v14 = vpop.eup %8011  ;;  %v2917_v21 = vadd.f32 1e-12, %v2901_v24  ;;  %v9956_v9 = vadd.f32 1e-12, %v2903_v60 }
 0x82f   :  { %v3041_v53 = vmul.f32 %v8012_v14, %v2916_v62  ;;  %vm3047_vm14 = vweird.f32 %v8012_v14 }
 0x830   :  { %8013 = vrsqrt.f32 %v2917_v21  ;;  %vm3048_vm2 = vmor %vm3046_vm15, %vm3047_vm14  ;;  %vm3056_vm4 = vweird.f32 %v2917_v21  ;;  %vm3076_vm9 = vweird.f32 %v9956_v9 }
 0x831   :  { %v3042_v38 = vmul.f32 %v8012_v14, %v3041_v53  ;;  %8015 = vrsqrt.f32 %v9956_v9 }
 0x833   :  { %v3043_v12 = vmul.f32 0.5, %v3042_v38  ;;  %v3201_v19 = vpop.f32.mrf.mxu2 }
 0x834   :  { %v9960_v16 = vadd.f32 %v9890_v34, %v3201_v19  ;;  %v2884_v47 = vpop.xlane.xlu1 %2883 }
 0x835   :  { %v3044_v54 = vsub.f32 1.5, %v3043_v12  ;;  %v2902_v26 = vmul.f32 %v2884_v47, %v9580_v35 }
 0x836   :  { %v8014_v5 = vpop.eup %8013  ;;  %v3232_v25 = vmul.f32 %v9960_v16, %v9960_v16 }
 0x837   :  { %v9965_v58 = vpop.eup %8015  ;;  %v3045_v1 = vmul.f32 %v8012_v14, %v3044_v54  ;;  %v3051_v48 = vmul.f32 %v8014_v5, %v2917_v21  ;;  %v2918_v17 = vadd.f32 1e-12, %v2902_v26  ;;  %vm3057_vm3 = vweird.f32 %v8014_v5 }
 0x838   :  { %v3071_v30 = vmul.f32 %v9965_v58, %v9956_v9  ;;  %v3248_v40 = vmul.f32 %v3232_v25, %v9960_v16  ;;  %vm3058_vm5 = vmor %vm3056_vm4, %vm3057_vm3  ;;  %vm3077_vm7 = vweird.f32 %v9965_v58 }
 0x839   :  { %v3052_v52 = vmul.f32 %v8014_v5, %v3051_v48  ;;  %8017 = vrsqrt.f32 %v2918_v17  ;;  %v3049_v32 = vsel %vm3048_vm2, %v8012_v14, %v3045_v1  ;;  %vm3066_vm8 = vweird.f32 %v2918_v17  ;;  %vm3078_vm11 = vmor %vm3076_vm9, %vm3077_vm7 }
 0x83a   :  { %v3264_v28 = vmul.f32 0.044715, %v3248_v40  ;;  %v3072_v29 = vmul.f32 %v9965_v58, %v3071_v30  ;;  %v3092_v18 = vmul.f32 %v3049_v32, %v9849_v43 }
 0x83b   :  { %v3053_v56 = vmul.f32 0.5, %v3052_v52  ;;  %v3203_v63 = vpop.f32.mrf.mxu2 }
 0x83c   :  { %v3280_v10 = vadd.f32 %v3264_v28, %v9960_v16  ;;  %v9973_v11 = vadd.f32 %v9890_v34, %v3203_v63  ;;  %v3073_v8 = vmul.f32 0.5, %v3072_v29  ;;  %v3109_v27 = vmul.f32 %v9710_v22, %v3092_v18 }
 0x83d   :  { %v3054_v57 = vsub.f32 1.5, %v3053_v56 }
 0x83e   :  { %v3296_v39 = vmul.f32 0.7978846, %v3280_v10  ;;  %v3233_v4 = vmul.f32 %v9973_v11, %v9973_v11  ;;  %v3074_v2 = vsub.f32 1.5, %v3073_v8  ;;  %v9987_v38 = vadd.f32 %v9728_v6, %v3109_v27 }
 0x83f   :  { %v8018_v20 = vpop.eup %8017  ;;  %v3055_v59 = vmul.f32 %v8014_v5, %v3054_v57 }
 0x840   :  { %v3061_v33 = vmul.f32 %v8018_v20, %v2918_v17  ;;  %v3249_v15 = vmul.f32 %v3233_v4, %v9973_v11  ;;  %8019 = vtanh.f32 %v3296_v39  ;;  %vm3067_vm6 = vweird.f32 %v8018_v20 }
 0x841   :  { %v3059_v37 = vsel %vm3058_vm5, %v8014_v5, %v3055_v59  ;;  %v3075_v47 = vmul.f32 %v9965_v58, %v3074_v2  ;;  %vm3068_vm10 = vmor %vm3066_vm8, %vm3067_vm6 }
 0x842   :  { %v3093_v62 = vmul.f32 %v3059_v37, %v9881_v51  ;;  %v3062_v43 = vmul.f32 %v8018_v20, %v3061_v33  ;;  %v3265_v36 = vmul.f32 0.044715, %v3249_v15 }
 0x843   :  { %v3206_v24 = vpop.f32.mrf.mxu2  ;;  %v3079_v40 = vsel %vm3078_vm11, %v9965_v58, %v3075_v47 }
 0x844   :  { %v3063_v60 = vmul.f32 0.5, %v3062_v43  ;;  %v9982_v14 = vadd.f32 %v9890_v34, %v3206_v24  ;;  %v3110_v21 = vmul.f32 %v9710_v22, %v3093_v62  ;;  %v3281_v53 = vadd.f32 %v3265_v36, %v9973_v11 }
 0x845   :  { %v3095_v29 = vmul.f32 %v3079_v40, %v9884_v61 }
 0x846   :  { %v3064_v12 = vsub.f32 1.5, %v3063_v60  ;;  %v3234_v51 = vmul.f32 %v9982_v14, %v9982_v14  ;;  %v9992_v19 = vadd.f32 %v9728_v6, %v3110_v21  ;;  %v3297_v54 = vmul.f32 0.7978846, %v3281_v53  ;;  %v8020_v26 = vpop.eup %8019  ;;  %v10021_v53 = vld [vmem:[#allocation7] sm:$0x7f] }
 0x847   :  { %v3328_v52 = vadd.f32 1.0, %v8020_v26  ;;  %v3112_v59 = vmul.f32 %v9710_v22, %v3095_v29 }
 0x848   :  { %v3065_v5 = vmul.f32 %v8018_v20, %v3064_v12  ;;  %v3250_v25 = vmul.f32 %v3234_v51, %v9982_v14  ;;  %v3136_v1 = vpack.c.bf16 %v9992_v19, %v9987_v38  ;;  %8021 = vtanh.f32 %v3297_v54 }
 0x849   :  { %v3344_v18 = vmul.f32 0.5, %v3328_v52  ;;  %v10015_v2 = vadd.f32 %v9728_v6, %v3112_v59  ;;  %v10024_v12 = vperm.slane %v10021_v53, 3 }
 0x84a   :  { %v3069_v48 = vsel %vm3068_vm10, %v8018_v20, %v3065_v5  ;;  %v3266_v30 = vmul.f32 0.044715, %v3250_v25  ;;  %7646 = vmatmul.msk.bf16.gmra.mxu2 %vm223_vm0, %v3136_v1 }
 0x84b   :  { %v3208_v32 = vpop.f32.mrf.mxu2  ;;  %v3094_v17 = vmul.f32 %v3069_v48, %v9921_v7  ;;  %v3360_v7 = vmul.f32 %v3344_v18, %v9960_v16  ;;  %12257 = vst [vmem:[#allocation18_spill] sm:$0xff] %v10024_v12 }
 0x84c   :  { %v3282_v28 = vadd.f32 %v3266_v30, %v9982_v14  ;;  %v3209_v56 = vadd.f32 %v9890_v34, %v3208_v32 }
 0x84d   :  { %v3111_v4 = vmul.f32 %v9710_v22, %v3094_v17 }
 0x84e   :  { %v3298_v9 = vmul.f32 0.7978846, %v3282_v28  ;;  %v3235_v63 = vmul.f32 %v3209_v56, %v3209_v56  ;;  %v8022_v10 = vpop.eup %8021 }
 0x84f   :  { %v3329_v39 = vadd.f32 1.0, %v8022_v10  ;;  %v10012_v15 = vadd.f32 %v9728_v6, %v3111_v4 }
 0x850   :  { %v3251_v57 = vmul.f32 %v3235_v63, %v3209_v56  ;;  %8023 = vtanh.f32 %v3298_v9 }
 0x851   :  { %v3345_v20 = vmul.f32 0.5, %v3329_v39  ;;  %v3137_v16 = vpack.c.bf16 %v10015_v2, %v10012_v15 }
 0x852   :  { %v3267_v58 = vmul.f32 0.044715, %v3251_v57 }
 0x853   :  { %v3211_v8 = vpop.f32.mrf.mxu2  ;;  %v3361_v61 = vmul.f32 %v3345_v20, %v9973_v11 }
 0x854   :  { %v3283_v33 = vadd.f32 %v3267_v58, %v3209_v56  ;;  %v3212_v37 = vadd.f32 %v9890_v34, %v3211_v8 }
 0x855   :  { %v3373_v43 = vpack.c.bf16 %v3361_v61, %v3360_v7 }
 0x856   :  { %v3299_v27 = vmul.f32 0.7978846, %v3283_v33  ;;  %v3236_v62 = vmul.f32 %v3212_v37, %v3212_v37  ;;  %v8024_v36 = vpop.eup %8023 }
 0x857   :  { %7667 = vmatmul.msk.bf16.gmra.mxu3 %vm3403_vm13, %v3373_v43  ;;  %v3330_v11 = vadd.f32 1.0, %v8024_v36 }
 0x858   :  { %8025 = vtanh.f32 %v3299_v27  ;;  %v3252_v24 = vmul.f32 %v3236_v62, %v3212_v37 }
 0x859   :  { %v3346_v1 = vmul.f32 0.5, %v3330_v11 }
 0x85a   :  { %v3268_v60 = vmul.f32 0.044715, %v3252_v24  ;;  %7647 = vmatmul.msk.bf16.gmra.mxu2 %vm223_vm0, %v3137_v16 }
 0x85b   :  { %v3213_v21 = vpop.f32.mrf.mxu2  ;;  %v3362_v28 = vmul.f32 %v3346_v1, %v9982_v14 }
 0x85c   :  { %v3284_v51 = vadd.f32 %v3268_v60, %v3212_v37  ;;  %v3214_v47 = vadd.f32 %v9890_v34, %v3213_v21 }
 0x85e   :  { %v8026_v54 = vpop.eup %8025  ;;  %v3300_v26 = vmul.f32 0.7978846, %v3284_v51  ;;  %v3237_v5 = vmul.f32 %v3214_v47, %v3214_v47  ;;  %v3437_v25 = vpop.f32.mrf.mxu3 }
 0x85f   :  { %v3438_v48 = vadd.f32 %v3437_v25, %v10024_v12  ;;  %v3331_v30 = vadd.f32 1.0, %v8026_v54 }
 0x860   :  { %v3253_v40 = vmul.f32 %v3237_v5, %v3214_v47  ;;  %8027 = vtanh.f32 %v3300_v26 }
 0x861   :  { %v3477_v52 = vadd.f32 %v3438_v48, %v9741_v44  ;;  %v3347_v32 = vmul.f32 0.5, %v3331_v30 }
 0x862   :  { %v3269_v17 = vmul.f32 0.044715, %v3253_v40 }
 0x863   :  { %v3493_v29 = vsel %vm223_vm0, %v3477_v52, 0.0  ;;  %v3363_v9 = vmul.f32 %v3347_v32, %v3209_v56 }
 0x864   :  { %v3285_v63 = vadd.f32 %v3269_v17, %v3214_v47  ;;  %3494 = vadd.xlane.f32.xlu0 %v3493_v29 }
 0x865   :  { %v3374_v10 = vpack.c.bf16 %v3363_v9, %v3362_v28 }
 0x866   :  { %v3301_v18 = vmul.f32 0.7978846, %v3285_v63  ;;  %v3439_v57 = vpop.f32.mrf.mxu3  ;;  %v8028_v4 = vpop.eup %8027 }
 0x867   :  { %v3440_v39 = vadd.f32 %v3439_v57, %v10024_v12  ;;  %7668 = vmatmul.msk.bf16.gmra.mxu3 %vm3403_vm13, %v3374_v10  ;;  %v3332_v58 = vadd.f32 1.0, %v8028_v4 }
 0x868   :  { %8029 = vtanh.f32 %v3301_v18 }
 0x869   :  { %v10034_v44 = vadd.f32 %v3440_v39, %v9744_v45  ;;  %v3348_v20 = vmul.f32 0.5, %v3332_v58 }
 0x86b   :  { %v3496_v14 = vsel %vm223_vm0, %v10034_v44, 0.0  ;;  %v3364_v27 = vmul.f32 %v3348_v20, %v3212_v37 }
 0x86c   :  { %3497 = vadd.xlane.f32.xlu1 %v3496_v14 }
 0x86e   :  { %v8030_v56 = vpop.eup %8029 }
 0x86f   :  { %v3442_v59 = vpop.f32.mrf.mxu3  ;;  %v3333_v7 = vadd.f32 1.0, %v8030_v56 }
 0x870   :  { %v3443_v8 = vadd.f32 %v3442_v59, %v10024_v12 }
 0x871   :  { %v3349_v33 = vmul.f32 0.5, %v3333_v7 }
 0x872   :  { %v10040_v61 = vadd.f32 %v3443_v8, %v9812_v31 }
 0x873   :  { %v3365_v62 = vmul.f32 %v3349_v33, %v3214_v47 }
 0x874   :  { %v3499_v45 = vsel %vm223_vm0, %v10040_v61, 0.0 }
 0x875   :  { %3500 = vadd.xlane.f32.xlu2 %v3499_v45  ;;  %v3375_v43 = vpack.c.bf16 %v3365_v62, %v3364_v27 }
 0x877   :  { %v3444_v36 = vpop.f32.mrf.mxu3  ;;  %7669 = vmatmul.msk.bf16.gmra.mxu3 %vm3403_vm13, %v3375_v43 }
 0x878   :  { %v3445_v24 = vadd.f32 %v3444_v36, %v10024_v12 }
 0x87a   :  { %v10047_v16 = vadd.f32 %v3445_v24, %v9815_v13 }
 0x87c   :  { %v3502_v60 = vsel %vm223_vm0, %v10047_v16, 0.0 }
 0x87d   :  { %3503 = vadd.xlane.f32.xlu0 %v3502_v60 }
 0x87f   :  { %v3447_v31 = vpop.f32.mrf.mxu3 }
 0x880   :  { %v3448_v37 = vadd.f32 %v3447_v31, %v10024_v12 }
 0x882   :  { %v10053_v11 = vadd.f32 %v3448_v37, %v9828_v46 }
 0x884   :  { %v3505_v21 = vsel %vm223_vm0, %v10053_v11, 0.0 }
 0x885   :  { %3506 = vadd.xlane.f32.xlu1 %v3505_v21 }
 0x887   :  { %v3449_v51 = vpop.f32.mrf.mxu3 }
 0x888   :  { %v3450_v47 = vadd.f32 %v3449_v51, %v10024_v12 }
 0x88a   :  { %v10059_v13 = vadd.f32 %v3450_v47, %v9831_v55 }
 0x88c   :  { %v3508_v54 = vsel %vm223_vm0, %v10059_v13, 0.0 }
 0x88d   :  { %3509 = vadd.xlane.f32.xlu2 %v3508_v54 }
 0x8cd   :  { %v3216_v26 = vpop.f32.mrf.mxu2 }
 0x8ce   :  { %v3217_v5 = vadd.f32 %v9890_v34, %v3216_v26 }
 0x8d0   :  { %v3238_v25 = vmul.f32 %v3217_v5, %v3217_v5 }
 0x8d2   :  { %v3254_v46 = vmul.f32 %v3238_v25, %v3217_v5 }
 0x8d4   :  { %v3270_v1 = vmul.f32 0.044715, %v3254_v46 }
 0x8d5   :  { %v3218_v48 = vpop.f32.mrf.mxu2 }
 0x8d6   :  { %v3286_v30 = vadd.f32 %v3270_v1, %v3217_v5  ;;  %v3219_v40 = vadd.f32 %v9890_v34, %v3218_v48 }
 0x8d7   :  { %v3495_v32 = vpop.xlane.xlu0 %3494 }
 0x8d8   :  { %v3302_v17 = vmul.f32 0.7978846, %v3286_v30  ;;  %v3239_v28 = vmul.f32 %v3219_v40, %v3219_v40  ;;  %v3541_v55 = vmul.f32 %v3495_v32, %v9580_v35 }
 0x8da   :  { %v3255_v29 = vmul.f32 %v3239_v28, %v3219_v40  ;;  %v10066_v9 = vsub.f32 %v3477_v52, %v3541_v55  ;;  %v3452_v63 = vpop.f32.mrf.mxu3  ;;  %8031 = vtanh.f32 %v3302_v17 }
 0x8db   :  { %v3453_v18 = vadd.f32 %v3452_v63, %v10024_v12 }
 0x8dc   :  { %v3271_v10 = vmul.f32 0.044715, %v3255_v29  ;;  %v3573_v57 = vmul.f32 %v10066_v9, %v10066_v9 }
 0x8dd   :  { %v3221_v39 = vpop.f32.mrf.mxu2  ;;  %v10076_v56 = vadd.f32 %v3453_v18, %v9852_v49 }
 0x8de   :  { %v3287_v4 = vadd.f32 %v3271_v10, %v3219_v40  ;;  %v10072_v58 = vadd.f32 %v9890_v34, %v3221_v39  ;;  %v3589_v14 = vsel %vm223_vm0, %v3573_v57, 0.0 }
 0x8df   :  { %3590 = vadd.xlane.f32.xlu0 %v3589_v14  ;;  %v3498_v52 = vpop.xlane.xlu1 %3497  ;;  %v3511_v7 = vsel %vm223_vm0, %v10076_v56, 0.0 }
 0x8e0   :  { %v3303_v20 = vmul.f32 0.7978846, %v3287_v4  ;;  %v3240_v59 = vmul.f32 %v10072_v58, %v10072_v58  ;;  %v3542_v8 = vmul.f32 %v3498_v52, %v9580_v35  ;;  %3512 = vadd.xlane.f32.xlu2 %v3511_v7  ;;  %v8032_v33 = vpop.eup %8031 }
 0x8e1   :  { %v3334_v24 = vadd.f32 1.0, %v8032_v33 }
 0x8e2   :  { %8033 = vtanh.f32 %v3303_v20  ;;  %v3256_v27 = vmul.f32 %v3240_v59, %v10072_v58  ;;  %v10085_v62 = vsub.f32 %v10034_v44, %v3542_v8  ;;  %v3454_v49 = vpop.f32.mrf.mxu3 }
 0x8e3   :  { %v3455_v43 = vadd.f32 %v3454_v49, %v10024_v12  ;;  %v3350_v46 = vmul.f32 0.5, %v3334_v24 }
 0x8e4   :  { %v3272_v45 = vmul.f32 0.044715, %v3256_v27  ;;  %v3574_v36 = vmul.f32 %v10085_v62, %v10085_v62 }
 0x8e5   :  { %v3223_v60 = vpop.f32.mrf.mxu2  ;;  %v10093_v21 = vadd.f32 %v3455_v43, %v9855_v41  ;;  %v3366_v55 = vmul.f32 %v3350_v46, %v3217_v5 }
 0x8e6   :  { %v3288_v31 = vadd.f32 %v3272_v45, %v10072_v58  ;;  %v3224_v37 = vadd.f32 %v9890_v34, %v3223_v60  ;;  %v3592_v51 = vsel %vm223_vm0, %v3574_v36, 0.0 }
 0x8e7   :  { %3593 = vadd.xlane.f32.xlu1 %v3592_v51  ;;  %v3514_v26 = vsel %vm223_vm0, %v10093_v21, 0.0 }
 0x8e8   :  { %v8034_v44 = vpop.eup %8033  ;;  %v3304_v47 = vmul.f32 0.7978846, %v3288_v31  ;;  %v3241_v54 = vmul.f32 %v3224_v37, %v3224_v37  ;;  %v3501_v25 = vpop.xlane.xlu2 %3500  ;;  %3515 = vadd.xlane.f32.xlu0 %v3514_v26 }
 0x8e9   :  { %v3543_v1 = vmul.f32 %v3501_v25, %v9580_v35  ;;  %v3335_v48 = vadd.f32 1.0, %v8034_v44 }
 0x8ea   :  { %v3257_v30 = vmul.f32 %v3241_v54, %v3224_v37  ;;  %v3457_v41 = vpop.f32.mrf.mxu3  ;;  %8035 = vtanh.f32 %v3304_v47 }
 0x8eb   :  { %v10100_v34 = vsub.f32 %v10040_v61, %v3543_v1  ;;  %v3351_v32 = vmul.f32 0.5, %v3335_v48  ;;  %v3458_v28 = vadd.f32 %v3457_v41, %v10024_v12 }
 0x8ec   :  { %v3273_v17 = vmul.f32 0.044715, %v3257_v30 }
 0x8ed   :  { %v3575_v29 = vmul.f32 %v10100_v34, %v10100_v34  ;;  %v3367_v63 = vmul.f32 %v3351_v32, %v3219_v40  ;;  %v10106_v18 = vadd.f32 %v3458_v28, %v9914_v3 }
 0x8ee   :  { %v3289_v10 = vadd.f32 %v3273_v17, %v3224_v37 }
 0x8ef   :  { %v3595_v57 = vsel %vm223_vm0, %v3575_v29, 0.0  ;;  %v3376_v39 = vpack.c.bf16 %v3367_v63, %v3366_v55  ;;  %v3517_v14 = vsel %vm223_vm0, %v10106_v18, 0.0 }
 0x8f0   :  { %v3305_v61 = vmul.f32 0.7978846, %v3289_v10  ;;  %v3504_v4 = vpop.xlane.xlu0 %3503  ;;  %3596 = vadd.xlane.f32.xlu1 %v3595_v57  ;;  %3518 = vadd.xlane.f32.xlu0 %v3517_v14  ;;  %v8036_v5 = vpop.eup %8035 }
 0x8f1   :  { %v3544_v52 = vmul.f32 %v3504_v4, %v9580_v35  ;;  %7670 = vmatmul.msk.bf16.gmra.mxu3 %vm3403_vm13, %v3376_v39  ;;  %v3336_v59 = vadd.f32 1.0, %v8036_v5 }
 0x8f2   :  { %8037 = vtanh.f32 %v3305_v61  ;;  %v3459_v3 = vpop.f32.mrf.mxu3 }
 0x8f3   :  { %v10114_v40 = vsub.f32 %v10047_v16, %v3544_v52  ;;  %v3460_v20 = vadd.f32 %v3459_v3, %v10024_v12  ;;  %v3352_v16 = vmul.f32 0.5, %v3336_v59 }
 0x8f5   :  { %v3576_v7 = vmul.f32 %v10114_v40, %v10114_v40  ;;  %v10120_v8 = vadd.f32 %v3460_v20, %v9917_v23  ;;  %v3368_v51 = vmul.f32 %v3352_v16, %v10072_v58 }
 0x8f7   :  { %v3598_v33 = vsel %vm223_vm0, %v3576_v7, 0.0  ;;  %v3520_v49 = vsel %vm223_vm0, %v10120_v8, 0.0 }
 0x8f8   :  { %v8038_v27 = vpop.eup %8037  ;;  %3599 = vadd.xlane.f32.xlu2 %v3598_v33  ;;  %v3507_v45 = vpop.xlane.xlu1 %3506  ;;  %3521 = vadd.xlane.f32.xlu1 %v3520_v49 }
 0x8f9   :  { %v3545_v43 = vmul.f32 %v3507_v45, %v9580_v35  ;;  %v3337_v36 = vadd.f32 1.0, %v8038_v27 }
 0x8fa   :  { %v3462_v60 = vpop.f32.mrf.mxu3 }
 0x8fb   :  { %v10127_v24 = vsub.f32 %v10053_v11, %v3545_v43  ;;  %v3353_v31 = vmul.f32 0.5, %v3337_v36  ;;  %v3463_v23 = vadd.f32 %v3462_v60, %v10024_v12 }
 0x8fd   :  { %v3577_v44 = vmul.f32 %v10127_v24, %v10127_v24  ;;  %v3369_v47 = vmul.f32 %v3353_v31, %v3224_v37  ;;  %v10134_v54 = vadd.f32 %v3463_v23, %v9938_v50 }
 0x8ff   :  { %v3601_v26 = vsel %vm223_vm0, %v3577_v44, 0.0  ;;  %v3377_v25 = vpack.c.bf16 %v3369_v47, %v3368_v51  ;;  %v3523_v11 = vsel %vm223_vm0, %v10134_v54, 0.0 }
 0x900   :  { %v3510_v46 = vpop.xlane.xlu2 %3509  ;;  %3602 = vadd.xlane.f32.xlu2 %v3601_v26  ;;  %3524 = vadd.xlane.f32.xlu1 %v3523_v11  ;;  %v10177_v26 = vperm.slane %v10021_v53, 4 }
 0x901   :  { %v3546_v1 = vmul.f32 %v3510_v46, %v9580_v35  ;;  %7671 = vmatmul.msk.bf16.gmra.mxu3 %vm3403_vm13, %v3377_v25 }
 0x902   :  { %v3464_v37 = vpop.f32.mrf.mxu3  ;;  %12258 = vst [vmem:[#allocation19_spill] sm:$0xff] %v10177_v26 }
 0x903   :  { %v10142_v58 = vsub.f32 %v10059_v13, %v3546_v1  ;;  %v3465_v50 = vadd.f32 %v3464_v37, %v10024_v12 }
 0x905   :  { %v3578_v48 = vmul.f32 %v10142_v58, %v10142_v58  ;;  %v10148_v30 = vadd.f32 %v3465_v50, %v9941_v42 }
 0x907   :  { %v3604_v41 = vsel %vm223_vm0, %v3578_v48, 0.0  ;;  %v3526_v32 = vsel %vm223_vm0, %v10148_v30, 0.0 }
 0x908   :  { %3605 = vadd.xlane.f32.xlu0 %v3604_v41  ;;  %3527 = vadd.xlane.f32.xlu2 %v3526_v32 }
 0x952   :  { %v3591_v17 = vpop.xlane.xlu0 %3590 }
 0x953   :  { %v3637_v13 = vmul.f32 %v3591_v17, %v9580_v35  ;;  %v3513_v28 = vpop.xlane.xlu2 %3512 }
 0x954   :  { %v3547_v29 = vmul.f32 %v3513_v28, %v9580_v35  ;;  %v10187_v28 = vperm.slane %v10021_v53, 5 }
 0x955   :  { %v3653_v55 = vadd.f32 1e-12, %v3637_v13 }
 0x956   :  { %v10156_v63 = vsub.f32 %v10076_v56, %v3547_v29  ;;  %12259 = vst [vmem:[#allocation20_spill] sm:$0xff] %v10187_v28 }
 0x957   :  { %8039 = vrsqrt.f32 %v3653_v55  ;;  %vm3675_vm14 = vweird.f32 %v3653_v55 }
 0x958   :  { %v3579_v42 = vmul.f32 %v10156_v63, %v10156_v63 }
 0x95a   :  { %v3594_v10 = vpop.xlane.xlu1 %3593  ;;  %v3607_v57 = vsel %vm223_vm0, %v3579_v42, 0.0 }
 0x95b   :  { %v3638_v39 = vmul.f32 %v3594_v10, %v9580_v35  ;;  %v3516_v61 = vpop.xlane.xlu0 %3515  ;;  %3608 = vadd.xlane.f32.xlu0 %v3607_v57 }
 0x95c   :  { %v3548_v14 = vmul.f32 %v3516_v61, %v9580_v35 }
 0x95d   :  { %v8040_v4 = vpop.eup %8039  ;;  %v3654_v52 = vadd.f32 1e-12, %v3638_v39 }
 0x95e   :  { %v3670_v5 = vmul.f32 %v8040_v4, %v3653_v55  ;;  %v10164_v3 = vsub.f32 %v10093_v21, %v3548_v14  ;;  %vm3676_vm12 = vweird.f32 %v8040_v4 }
 0x95f   :  { %8041 = vrsqrt.f32 %v3654_v52  ;;  %vm3677_vm15 = vmor %vm3675_vm14, %vm3676_vm12  ;;  %vm3685_vm3 = vweird.f32 %v3654_v52 }
 0x960   :  { %v3671_v56 = vmul.f32 %v8040_v4, %v3670_v5  ;;  %v3580_v20 = vmul.f32 %v10164_v3, %v10164_v3 }
 0x962   :  { %v3672_v59 = vmul.f32 0.5, %v3671_v56  ;;  %v3610_v7 = vsel %vm223_vm0, %v3580_v20, 0.0 }
 0x963   :  { %v3597_v33 = vpop.xlane.xlu1 %3596  ;;  %v3519_v49 = vpop.xlane.xlu0 %3518  ;;  %3611 = vadd.xlane.f32.xlu1 %v3610_v7 }
 0x964   :  { %v3673_v27 = vsub.f32 1.5, %v3672_v59  ;;  %v3639_v45 = vmul.f32 %v3597_v33, %v9580_v35  ;;  %v3549_v43 = vmul.f32 %v3519_v49, %v9580_v35 }
 0x965   :  { %v8042_v16 = vpop.eup %8041 }
 0x966   :  { %v3674_v21 = vmul.f32 %v8040_v4, %v3673_v27  ;;  %v3680_v36 = vmul.f32 %v8042_v16, %v3654_v52  ;;  %v3655_v60 = vadd.f32 1e-12, %v3639_v45  ;;  %v10172_v31 = vsub.f32 %v10106_v18, %v3549_v43 }
 0x967   :  { %vm3686_vm2 = vweird.f32 %v8042_v16 }
 0x968   :  { %v3681_v23 = vmul.f32 %v8042_v16, %v3680_v36  ;;  %8043 = vrsqrt.f32 %v3655_v60  ;;  %v3678_v51 = vsel %vm3677_vm15, %v8040_v4, %v3674_v21  ;;  %v3581_v44 = vmul.f32 %v10172_v31, %v10172_v31  ;;  %vm3687_vm4 = vmor %vm3685_vm3, %vm3686_vm2 }
 0x969   :  { %v3829_v11 = vmul.f32 %v3678_v51, %v10066_v9  ;;  %vm3695_vm6 = vweird.f32 %v3655_v60 }
 0x96a   :  { %v3682_v47 = vmul.f32 0.5, %v3681_v23  ;;  %v3613_v46 = vsel %vm223_vm0, %v3581_v44, 0.0 }
 0x96b   :  { %v3600_v25 = vpop.xlane.xlu2 %3599  ;;  %3614 = vadd.xlane.f32.xlu2 %v3613_v46  ;;  %v3522_v37 = vpop.xlane.xlu1 %3521  ;;  %v3846_v9 = vmul.f32 %v10177_v26, %v3829_v11 }
 0x96c   :  { %v3683_v1 = vsub.f32 1.5, %v3682_v47  ;;  %v3640_v18 = vmul.f32 %v3600_v25, %v9580_v35  ;;  %v3550_v50 = vmul.f32 %v3522_v37, %v9580_v35 }
 0x96d   :  { %v10196_v4 = vadd.f32 %v10187_v28, %v3846_v9 }
 0x96e   :  { %v8044_v48 = vpop.eup %8043  ;;  %v3684_v41 = vmul.f32 %v8042_v16, %v3683_v1  ;;  %v3656_v32 = vadd.f32 1e-12, %v3640_v18  ;;  %v10184_v13 = vsub.f32 %v10120_v8, %v3550_v50 }
 0x96f   :  { %v3690_v17 = vmul.f32 %v8044_v48, %v3655_v60  ;;  %vm3696_vm5 = vweird.f32 %v8044_v48 }
 0x970   :  { %v3688_v55 = vsel %vm3687_vm4, %v8042_v16, %v3684_v41  ;;  %8045 = vrsqrt.f32 %v3656_v32  ;;  %v3582_v10 = vmul.f32 %v10184_v13, %v10184_v13  ;;  %vm10221_vm7 = vmor %vm3695_vm6, %vm3696_vm5  ;;  %vm3705_vm9 = vweird.f32 %v3656_v32 }
 0x971   :  { %v3830_v29 = vmul.f32 %v3688_v55, %v10085_v62  ;;  %v3691_v42 = vmul.f32 %v8044_v48, %v3690_v17 }
 0x972   :  { %v3616_v8 = vsel %vm223_vm0, %v3582_v10, 0.0 }
 0x973   :  { %v3847_v57 = vmul.f32 %v10177_v26, %v3830_v29  ;;  %v3692_v39 = vmul.f32 0.5, %v3691_v42  ;;  %v3603_v61 = vpop.xlane.xlu2 %3602  ;;  %3617 = vadd.xlane.f32.xlu0 %v3616_v8  ;;  %v3525_v14 = vpop.xlane.xlu1 %3524 }
 0x974   :  { %v3641_v53 = vmul.f32 %v3603_v61, %v9580_v35  ;;  %v3467_v52 = vpop.f32.mrf.mxu3  ;;  %v3551_v56 = vmul.f32 %v3525_v14, %v9580_v35 }
 0x975   :  { %v10200_v62 = vadd.f32 %v10187_v28, %v3847_v57  ;;  %v3693_v5 = vsub.f32 1.5, %v3692_v39  ;;  %v3468_v20 = vadd.f32 %v3467_v52, %v10024_v12 }
 0x976   :  { %v8046_v59 = vpop.eup %8045  ;;  %v10204_v7 = vadd.f32 1e-12, %v3641_v53  ;;  %v10212_v45 = vsub.f32 %v10134_v54, %v3551_v56 }
 0x977   :  { %v10208_v33 = vpack.c.bf16 %v10200_v62, %v10196_v4  ;;  %v3694_v27 = vmul.f32 %v8044_v48, %v3693_v5  ;;  %v3700_v49 = vmul.f32 %v8046_v59, %v3656_v32  ;;  %v10215_v16 = vadd.f32 %v3468_v20, %v9987_v38 }
 0x978   :  { %8047 = vrsqrt.f32 %v10204_v7  ;;  %v3583_v38 = vmul.f32 %v10212_v45, %v10212_v45  ;;  %vm3706_vm8 = vweird.f32 %v8046_v59  ;;  %vm3715_vm12 = vweird.f32 %v10204_v7 }
 0x979   :  { %v3701_v43 = vmul.f32 %v8046_v59, %v3700_v49  ;;  %7672 = vmatmul.msk.bf16.vlgmr.msrb.gmra.mxu0 %vm223_vm0, %v10208_v33  ;;  %7680 = vmatmul.msk.bf16.vlgmr.msrb.gmra.mxu1 %vm223_vm0, %v10208_v33  ;;  %v3529_v54 = vsel %vm223_vm0, %v10215_v16, 0.0  ;;  %v3698_v36 = vsel %vm10221_vm7, %v8044_v48, %v3694_v27  ;;  %vm3707_vm10 = vmor %vm3705_vm9, %vm3706_vm8 }
 0x97a   :  { %7688 = vmatmul.msk.bf16.vlgmr.msrb.gmra.mxu2 %vm223_vm0, %v10208_v33  ;;  %v3619_v47 = vsel %vm223_vm0, %v3583_v38, 0.0  ;;  %v3831_v37 = vmul.f32 %v3698_v36, %v10100_v34 }
 0x97b   :  { %v3702_v60 = vmul.f32 0.5, %v3701_v43  ;;  %v3606_v23 = vpop.xlane.xlu0 %3605  ;;  %v3528_v44 = vpop.xlane.xlu2 %3527  ;;  %3530 = vadd.xlane.f32.xlu0 %v3529_v54  ;;  %3620 = vadd.xlane.f32.xlu1 %v3619_v47 }
 0x97c   :  { %v3642_v51 = vmul.f32 %v3606_v23, %v9580_v35  ;;  %v3469_v25 = vpop.f32.mrf.mxu3  ;;  %v3552_v11 = vmul.f32 %v3528_v44, %v9580_v35  ;;  %v3848_v34 = vmul.f32 %v10177_v26, %v3831_v37 }
 0x97d   :  { %v3703_v46 = vsub.f32 1.5, %v3702_v60  ;;  %v3470_v1 = vadd.f32 %v3469_v25, %v10024_v12 }
 0x97e   :  { %v8048_v18 = vpop.eup %8047  ;;  %v3658_v50 = vadd.f32 1e-12, %v3642_v51  ;;  %v10240_v17 = vsub.f32 %v10148_v30, %v3552_v11  ;;  %v10255_v14 = vadd.f32 %v10187_v28, %v3848_v34 }
 0x97f   :  { %v3704_v48 = vmul.f32 %v8046_v59, %v3703_v46  ;;  %v3710_v41 = vmul.f32 %v8048_v18, %v10204_v7  ;;  %v10243_v9 = vadd.f32 %v3470_v1, %v9992_v19  ;;  %vm3716_vm11 = vweird.f32 %v8048_v18 }
 0x980   :  { %8049 = vrsqrt.f32 %v3658_v50  ;;  %v3584_v42 = vmul.f32 %v10240_v17, %v10240_v17  ;;  %vm3717_vm14 = vmor %vm3715_vm12, %vm3716_vm11  ;;  %vm3725_vm2 = vweird.f32 %v3658_v50 }
 0x981   :  { %v3708_v55 = vsel %vm3707_vm10, %v8046_v59, %v3704_v48  ;;  %v3711_v29 = vmul.f32 %v8048_v18, %v3710_v41  ;;  %v3532_v32 = vsel %vm223_vm0, %v10243_v9, 0.0 }
 0x982   :  { %v3832_v10 = vmul.f32 %v3708_v55, %v10114_v40  ;;  %v3622_v30 = vsel %vm223_vm0, %v3584_v42, 0.0 }
 0x983   :  { %v3712_v57 = vmul.f32 0.5, %v3711_v29  ;;  %3623 = vadd.xlane.f32.xlu2 %v3622_v30  ;;  %3533 = vadd.xlane.f32.xlu1 %v3532_v32 }
 0x984   :  { %v3849_v39 = vmul.f32 %v10177_v26, %v3832_v10  ;;  %v3472_v19 = vpop.f32.mrf.mxu3 }
 0x985   :  { %v3713_v61 = vsub.f32 1.5, %v3712_v57  ;;  %v3473_v8 = vadd.f32 %v3472_v19, %v10024_v12 }
 0x986   :  { %v8050_v53 = vpop.eup %8049  ;;  %v10258_v40 = vadd.f32 %v10187_v28, %v3849_v39 }
 0x987   :  { %v3714_v52 = vmul.f32 %v8048_v18, %v3713_v61  ;;  %v3720_v5 = vmul.f32 %v8050_v53, %v3658_v50  ;;  %v10261_v56 = vadd.f32 %v3473_v8, %v10012_v15  ;;  %vm3726_vm15 = vweird.f32 %v8050_v53 }
 0x988   :  { %v10265_v20 = vpack.c.bf16 %v10258_v40, %v10255_v14  ;;  %vm3727_vm3 = vmor %vm3725_vm2, %vm3726_vm15 }
 0x989   :  { %v3721_v59 = vmul.f32 %v8050_v53, %v3720_v5  ;;  %v3535_v27 = vsel %vm223_vm0, %v10261_v56, 0.0  ;;  %v3718_v49 = vsel %vm3717_vm14, %v8048_v18, %v3714_v52 }
 0x98a   :  { %7673 = vmatmul.msk.bf16.gmra.mxu0 %vm223_vm0, %v10265_v20  ;;  %7681 = vmatmul.msk.bf16.gmra.mxu1 %vm223_vm0, %v10265_v20  ;;  %v3833_v54 = vmul.f32 %v3718_v49, %v10127_v24 }
 0x98b   :  { %v3722_v15 = vmul.f32 0.5, %v3721_v59  ;;  %7689 = vmatmul.msk.bf16.gmra.mxu2 %vm223_vm0, %v10265_v20  ;;  %3536 = vadd.xlane.f32.xlu2 %v3535_v27 }
 0x98c   :  { %v3474_v43 = vpop.f32.mrf.mxu3  ;;  %v3850_v51 = vmul.f32 %v10177_v26, %v3833_v54 }
 0x98d   :  { %v3723_v21 = vsub.f32 1.5, %v3722_v15  ;;  %v3475_v7 = vadd.f32 %v3474_v43, %v10024_v12 }
 0x98e   :  { %v10287_v25 = vadd.f32 %v10187_v28, %v3850_v51 }
 0x98f   :  { %v3724_v38 = vmul.f32 %v8050_v53, %v3723_v21  ;;  %v10279_v36 = vadd.f32 %v3475_v7, %v10015_v2 }
 0x991   :  { %v3728_v60 = vsel %vm3727_vm3, %v8050_v53, %v3724_v38  ;;  %v3538_v23 = vsel %vm223_vm0, %v10279_v36, 0.0 }
 0x992   :  { %v3834_v44 = vmul.f32 %v3728_v60, %v10142_v58  ;;  %3539 = vadd.xlane.f32.xlu0 %v3538_v23 }
 0x994   :  { %v3851_v47 = vmul.f32 %v10177_v26, %v3834_v44 }
 0x996   :  { %v10290_v24 = vadd.f32 %v10187_v28, %v3851_v47 }
 0x998   :  { %v10294_v2 = vpack.c.bf16 %v10290_v24, %v10287_v25 }
 0x99a   :  { %7674 = vmatmul.msk.bf16.gmra.mxu0 %vm223_vm0, %v10294_v2  ;;  %7682 = vmatmul.msk.bf16.gmra.mxu1 %vm223_vm0, %v10294_v2 }
 0x99b   :  { %7690 = vmatmul.msk.bf16.gmra.mxu2 %vm223_vm0, %v10294_v2 }
 0x9ce   :  { %v3609_v58 = vpop.xlane.xlu0 %3608 }
 0x9cf   :  { %v3643_v46 = vmul.f32 %v3609_v58, %v9580_v35 }
 0x9d1   :  { %v3659_v11 = vadd.f32 1e-12, %v3643_v46 }
 0x9d3   :  { %8051 = vrsqrt.f32 %v3659_v11  ;;  %vm3735_vm5 = vweird.f32 %v3659_v11 }
 0x9d6   :  { %v3612_v1 = vpop.xlane.xlu1 %3611 }
 0x9d7   :  { %v3644_v18 = vmul.f32 %v3612_v1, %v9580_v35 }
 0x9d9   :  { %v8052_v37 = vpop.eup %8051  ;;  %v3660_v50 = vadd.f32 1e-12, %v3644_v18 }
 0x9da   :  { %v3730_v48 = vmul.f32 %v8052_v37, %v3659_v11  ;;  %vm3736_vm4 = vweird.f32 %v8052_v37 }
 0x9db   :  { %8053 = vrsqrt.f32 %v3660_v50  ;;  %vm3737_vm6 = vmor %vm3735_vm5, %vm3736_vm4  ;;  %vm3745_vm8 = vweird.f32 %v3660_v50 }
 0x9dc   :  { %v3731_v41 = vmul.f32 %v8052_v37, %v3730_v48 }
 0x9de   :  { %v3732_v55 = vmul.f32 0.5, %v3731_v41  ;;  %v3615_v29 = vpop.xlane.xlu2 %3614 }
 0x9df   :  { %v3645_v42 = vmul.f32 %v3615_v29, %v9580_v35 }
 0x9e0   :  { %v3733_v34 = vsub.f32 1.5, %v3732_v55 }
 0x9e1   :  { %v8054_v10 = vpop.eup %8053  ;;  %v3661_v32 = vadd.f32 1e-12, %v3645_v42 }
 0x9e2   :  { %v3734_v57 = vmul.f32 %v8052_v37, %v3733_v34  ;;  %v3740_v30 = vmul.f32 %v8054_v10, %v3660_v50  ;;  %vm3746_vm7 = vweird.f32 %v8054_v10 }
 0x9e3   :  { %8055 = vrsqrt.f32 %v3661_v32  ;;  %vm3747_vm9 = vmor %vm3745_vm8, %vm3746_vm7  ;;  %vm3755_vm11 = vweird.f32 %v3661_v32 }
 0x9e4   :  { %v3741_v39 = vmul.f32 %v8054_v10, %v3740_v30  ;;  %v3738_v19 = vsel %vm3737_vm6, %v8052_v37, %v3734_v57 }
 0x9e5   :  { %v3835_v59 = vmul.f32 %v3738_v19, %v10156_v63 }
 0x9e6   :  { %v3742_v61 = vmul.f32 0.5, %v3741_v39  ;;  %v3618_v8 = vpop.xlane.xlu0 %3617 }
 0x9e7   :  { %v3646_v53 = vmul.f32 %v3618_v8, %v9580_v35  ;;  %v3852_v7 = vmul.f32 %v10177_v26, %v3835_v59 }
 0x9e8   :  { %v3743_v52 = vsub.f32 1.5, %v3742_v61 }
 0x9e9   :  { %v8056_v5 = vpop.eup %8055  ;;  %v3662_v27 = vadd.f32 1e-12, %v3646_v53  ;;  %v10313_v46 = vadd.f32 %v10187_v28, %v3852_v7 }
 0x9ea   :  { %v3744_v49 = vmul.f32 %v8054_v10, %v3743_v52  ;;  %v3750_v15 = vmul.f32 %v8056_v5, %v3661_v32  ;;  %vm3756_vm10 = vweird.f32 %v8056_v5 }
 0x9eb   :  { %8057 = vrsqrt.f32 %v3662_v27  ;;  %vm3757_vm12 = vmor %vm3755_vm11, %vm3756_vm10  ;;  %vm3765_vm15 = vweird.f32 %v3662_v27 }
 0x9ec   :  { %v3748_v43 = vsel %vm3747_vm9, %v8054_v10, %v3744_v49  ;;  %v3751_v21 = vmul.f32 %v8056_v5, %v3750_v15 }
 0x9ed   :  { %v3836_v54 = vmul.f32 %v3748_v43, %v10164_v3 }
 0x9ee   :  { %v3752_v38 = vmul.f32 0.5, %v3751_v21  ;;  %v3531_v60 = vpop.xlane.xlu0 %3530  ;;  %v3621_v44 = vpop.xlane.xlu1 %3620 }
 0x9ef   :  { %v3853_v23 = vmul.f32 %v10177_v26, %v3836_v54  ;;  %v3553_v51 = vmul.f32 %v3531_v60, %v9580_v35  ;;  %v3647_v47 = vmul.f32 %v3621_v44, %v9580_v35 }
 0x9f0   :  { %v3753_v63 = vsub.f32 1.5, %v3752_v38 }
 0x9f1   :  { %v8058_v58 = vpop.eup %8057  ;;  %v10316_v11 = vadd.f32 %v10187_v28, %v3853_v23  ;;  %v10319_v3 = vsub.f32 %v10215_v16, %v3553_v51  ;;  %v10321_v37 = vadd.f32 1e-12, %v3647_v47 }
 0x9f2   :  { %v3754_v1 = vmul.f32 %v8056_v5, %v3753_v63  ;;  %v3760_v18 = vmul.f32 %v8058_v58, %v3662_v27  ;;  %vm3766_vm14 = vweird.f32 %v8058_v58 }
 0x9f3   :  { %v10325_v50 = vpack.c.bf16 %v10316_v11, %v10313_v46  ;;  %v3585_v48 = vmul.f32 %v10319_v3, %v10319_v3  ;;  %8059 = vrsqrt.f32 %v10321_v37  ;;  %vm3767_vm2 = vmor %vm3765_vm15, %vm3766_vm14  ;;  %vm3775_vm4 = vweird.f32 %v10321_v37 }
 0x9f4   :  { %v3761_v41 = vmul.f32 %v8058_v58, %v3760_v18  ;;  %v3758_v55 = vsel %vm3757_vm12, %v8056_v5, %v3754_v1  ;;  %v10347_v5 = vld [vmem:[#allocation5 + $0x2] ss:$0 sm:$0xff] }
 0x9f5   :  { %7675 = vmatmul.msk.bf16.gmra.mxu0 %vm223_vm0, %v10325_v50  ;;  %7683 = vmatmul.msk.bf16.gmra.mxu1 %vm223_vm0, %v10325_v50  ;;  %v3625_v16 = vsel %vm223_vm0, %v3585_v48, 0.0  ;;  %v3837_v30 = vmul.f32 %v3758_v55, %v10172_v31 }
 0x9f6   :  { %v3920_v29 = vpop.f32.mrf.mxu0  ;;  %v3969_v42 = vpop.f32.mrf.mxu1  ;;  %v3762_v34 = vmul.f32 0.5, %v3761_v41  ;;  %7691 = vmatmul.msk.bf16.gmra.mxu2 %vm223_vm0, %v10325_v50  ;;  %3626 = vadd.xlane.f32.xlu1 %v3625_v16 }
 0x9f7   :  { %v3624_v10 = vpop.xlane.xlu2 %3623  ;;  %v3534_v57 = vpop.xlane.xlu1 %3533  ;;  %v3970_v59 = vadd.f32 %v10347_v5, %v3969_v42  ;;  %v3854_v49 = vmul.f32 %v10177_v26, %v3837_v30  ;;  %v10372_v42 = vld [vmem:[#allocation5 + $0x4] ss:$0 sm:$0xff] }
 0x9f8   :  { %v3648_v32 = vmul.f32 %v3624_v10, %v9580_v35  ;;  %v3763_v39 = vsub.f32 1.5, %v3762_v34  ;;  %v3554_v19 = vmul.f32 %v3534_v57, %v9580_v35 }
 0x9f9   :  { %v10342_v8 = vpop.eup %8059  ;;  %v4074_v38 = vpack.c.bf16 %v3970_v59, %v3970_v59 }
 0x9fa   :  { %v10340_v61 = vadd.f32 1e-12, %v3648_v32  ;;  %v3764_v53 = vmul.f32 %v8058_v58, %v3763_v39  ;;  %v10345_v52 = vsub.f32 %v10243_v9, %v3554_v19  ;;  %v3770_v31 = vmul.f32 %v10342_v8, %v10321_v37 }
 0x9fb   :  { %vm3776_vm3 = vweird.f32 %v10342_v8 }
 0x9fc   :  { %8061 = vrsqrt.f32 %v10340_v61  ;;  %v3768_v15 = vsel %vm3767_vm2, %v8058_v58, %v3764_v53  ;;  %v3586_v27 = vmul.f32 %v10345_v52, %v10345_v52  ;;  %v3771_v21 = vmul.f32 %v10342_v8, %v3770_v31  ;;  %vm10388_vm5 = vmor %vm3775_vm4, %vm3776_vm3 }
 0x9fd   :  { %v4018_v43 = vpop.f32.mrf.mxu2  ;;  %v3838_v9 = vmul.f32 %v3768_v15, %v10184_v13  ;;  %v10363_v58 = vadd.f32 %v10187_v28, %v3854_v49  ;;  %v10365_v13 = vld [vmem:[#allocation5] ss:$0 sm:$0xff]  ;;  %vm3785_vm7 = vweird.f32 %v10340_v61 }
 0x9fe   :  { %v3922_v7 = vpop.f32.mrf.mxu0  ;;  %v3971_v54 = vpop.f32.mrf.mxu1  ;;  %v3628_v23 = vsel %vm223_vm0, %v3586_v27, 0.0  ;;  %v3772_v63 = vmul.f32 0.5, %v3771_v21  ;;  %v3921_v1 = vadd.f32 %v10365_v13, %v3920_v29  ;;  %v4019_v34 = vadd.f32 %v10372_v42, %v4018_v43 }
 0x9ff   :  { %v3537_v60 = vpop.xlane.xlu2 %3536  ;;  %v3972_v51 = vadd.f32 %v10347_v5, %v3971_v54  ;;  %v3855_v44 = vmul.f32 %v10177_v26, %v3838_v9  ;;  %3629 = vadd.xlane.f32.xlu2 %v3628_v23  ;;  %v3923_v18 = vadd.f32 %v10365_v13, %v3922_v7  ;;  %v4113_v29 = vunpack.c.l.b16 %v4074_v38 }
 0xa00   :  { %v3555_v47 = vmul.f32 %v3537_v60, %v9580_v35  ;;  %v3773_v16 = vsub.f32 1.5, %v3772_v63  ;;  %v4090_v43 = vpack.c.bf16 %v4019_v34, %v4019_v34  ;;  %v4058_v54 = vpack.c.bf16 %v3921_v1, %v3921_v1 }
 0xa01   :  { %v4075_v48 = vpack.c.bf16 %v3972_v51, %v3972_v51  ;;  %v10370_v55 = vadd.f32 %v10187_v28, %v3855_v44 }
 0xa02   :  { %v8062_v41 = vpop.eup %8061  ;;  %v10376_v10 = vsub.f32 %v10261_v56, %v3555_v47  ;;  %v3774_v39 = vmul.f32 %v10342_v8, %v3773_v16  ;;  %v4059_v56 = vpack.c.bf16 %v3923_v18, %v3923_v18  ;;  %v4785_v18 = vunpack.c.l.b16 %v4090_v43 }
 0xa03   :  { %12262 = vst [vmem:[#allocation21_spill] sm:$0xff] %v10370_v55  ;;  %v3780_v32 = vmul.f32 %v8062_v41, %v10340_v61  ;;  %v4114_v57 = vunpack.c.l.b16 %v4075_v48  ;;  %v10382_v30 = vpack.c.bf16 %v10370_v55, %v10363_v58  ;;  %vm3786_vm6 = vweird.f32 %v8062_v41 }
 0xa04   :  { %v3587_v19 = vmul.f32 %v10376_v10, %v10376_v10  ;;  %v3778_v21 = vsel %vm10388_vm5, %v10342_v8, %v3774_v39  ;;  %v4109_v47 = vunpack.c.l.b16 %v4059_v56  ;;  %v4108_v34 = vunpack.c.l.b16 %v4058_v54  ;;  %vm3787_vm8 = vmor %vm3785_vm7, %vm3786_vm6 }
 0xa05   :  { %v3781_v53 = vmul.f32 %v8062_v41, %v3780_v32  ;;  %v4115_v59 = vpack.c.b16 %v4114_v57, %v4113_v29  ;;  %v4020_v31 = vpop.f32.mrf.mxu2  ;;  %v3540_v49 = vpop.xlane.xlu0 %3539  ;;  %7676 = vmatmul.msk.bf16.gmra.mxu0 %vm223_vm0, %v10382_v30  ;;  %7684 = vmatmul.msk.bf16.gmra.mxu1 %vm223_vm0, %v10382_v30  ;;  %v3839_v8 = vmul.f32 %v3778_v21, %v10212_v45 }
 0xa06   :  { %v4021_v27 = vadd.f32 %v10372_v42, %v4020_v31  ;;  %v3631_v37 = vsel %vm223_vm0, %v3587_v19, 0.0  ;;  %v3556_v9 = vmul.f32 %v3540_v49, %v9580_v35  ;;  %7692 = vmatmul.msk.bf16.gmra.mxu2 %vm223_vm0, %v10382_v30  ;;  %v4110_v39 = vpack.c.b16 %v4109_v47, %v4108_v34 }
 0xa07   :  { %v3782_v7 = vmul.f32 0.5, %v3781_v53  ;;  %3632 = vadd.xlane.f32.xlu0 %v3631_v37  ;;  %v3925_v38 = vpop.f32.mrf.mxu0  ;;  %v3974_v60 = vpop.f32.mrf.mxu1  ;;  %v4120_v23 = vsel %vm483_vm1, %v4115_v59, 0  ;;  %v3856_v45 = vmul.f32 %v10177_v26, %v3839_v8 }
 0xa08   :  { %v4091_v51 = vpack.c.bf16 %v4021_v27, %v4021_v27  ;;  %v10406_v44 = vsub.f32 %v10279_v36, %v3556_v9  ;;  %4129 = vmatpush.bf16.xpose.msrb.mxu3 %v4120_v23  ;;  %v3975_v36 = vadd.f32 %v10347_v5, %v3974_v60  ;;  %v3926_v9 = vadd.f32 %v10365_v13, %v3925_v38 }
 0xa09   :  { %v3783_v63 = vsub.f32 1.5, %v3782_v7  ;;  %v10420_v15 = vadd.f32 %v10187_v28, %v3856_v45 }
 0xa0a   :  { %v4786_v1 = vunpack.c.l.b16 %v4091_v51  ;;  %v3588_v48 = vmul.f32 %v10406_v44, %v10406_v44  ;;  %v4076_v31 = vpack.c.bf16 %v3975_v36, %v3975_v36  ;;  %v4060_v38 = vpack.c.bf16 %v3926_v9, %v3926_v9 }
 0xa0b   :  { %v3784_v16 = vmul.f32 %v8062_v41, %v3783_v63  ;;  %12265 = vst [vmem:[#allocation22_spill] sm:$0xff] %v10420_v15 }
 0xa0c   :  { %v4787_v32 = vpack.c.b16 %v4786_v1, %v4785_v18  ;;  %v3634_v29 = vsel %vm223_vm0, %v3588_v48, 0.0  ;;  %v4143_v21 = vunpack.c.l.b16 %v4076_v31 }
 0xa0d   :  { %v3788_v57 = vsel %vm3787_vm8, %v8062_v41, %v3784_v16  ;;  %3635 = vadd.xlane.f32.xlu1 %v3634_v29 }
 0xa0e   :  { %v3840_v19 = vmul.f32 %v3788_v57, %v10240_v17  ;;  %v4023_v53 = vpop.f32.mrf.mxu2  ;;  %4799 = vmatpush.bf16.msra.mxu0 %v4787_v32  ;;  %v4138_v32 = vunpack.c.l.b16 %v4060_v38 }
 0xa0f   :  { %v3927_v56 = vpop.f32.mrf.mxu0  ;;  %v3976_v59 = vpop.f32.mrf.mxu1  ;;  %7696 = vmatmul.msk.bf16.vlgmr.msrb.gmra.mxu3 %vm483_vm1, %v4110_v39  ;;  %v4024_v27 = vadd.f32 %v10372_v42, %v4023_v53 }
 0xa10   :  { %v3857_v61 = vmul.f32 %v10177_v26, %v3840_v19  ;;  %v3977_v49 = vadd.f32 %v10347_v5, %v3976_v59  ;;  %v3928_v43 = vadd.f32 %v10365_v13, %v3927_v56 }
 0xa11   :  { %v4092_v51 = vpack.c.bf16 %v4024_v27, %v4024_v27 }
 0xa12   :  { %v10423_v41 = vadd.f32 %v10187_v28, %v3857_v61  ;;  %v4077_v17 = vpack.c.bf16 %v3977_v49, %v3977_v49  ;;  %v4061_v54 = vpack.c.bf16 %v3928_v43, %v3928_v43 }
 0xa13   :  { %v4813_v16 = vunpack.c.l.b16 %v4092_v51 }
 0xa14   :  { %12266 = vst [vmem:[#allocation23_spill] sm:$0xff] %v10423_v41  ;;  %v10429_v37 = vpack.c.bf16 %v10423_v41, %v10420_v15  ;;  %v4144_v7 = vunpack.c.l.b16 %v4077_v17  ;;  %v4139_v48 = vunpack.c.l.b16 %v4061_v54 }
 0xa16   :  { %v4145_v60 = vpack.c.b16 %v4144_v7, %v4143_v21  ;;  %7677 = vmatmul.msk.bf16.gmra.mxu0 %vm223_vm0, %v10429_v37  ;;  %7685 = vmatmul.msk.bf16.gmra.mxu1 %vm223_vm0, %v10429_v37  ;;  %v4025_v23 = vpop.f32.mrf.mxu2  ;;  %v4140_v57 = vpack.c.b16 %v4139_v48, %v4138_v32 }
 0xa17   :  { %v4026_v63 = vadd.f32 %v10372_v42, %v4025_v23  ;;  %7693 = vmatmul.msk.bf16.gmra.mxu2 %vm223_vm0, %v10429_v37  ;;  %v3930_v47 = vpop.f32.mrf.mxu0  ;;  %v3979_v8 = vpop.f32.mrf.mxu1 }
 0xa18   :  { %v4150_v18 = vsel %vm483_vm1, %v4145_v60, 0  ;;  %v3980_v36 = vadd.f32 %v10347_v5, %v3979_v8  ;;  %v3931_v49 = vadd.f32 %v10365_v13, %v3930_v47 }
 0xa19   :  { %v4093_v1 = vpack.c.bf16 %v4026_v63, %v4026_v63  ;;  %4159 = vmatpush.bf16.xpose.msra.mxu3 %v4150_v18 }
 0xa1a   :  { %v4078_v53 = vpack.c.bf16 %v3980_v36, %v3980_v36  ;;  %v4062_v60 = vpack.c.bf16 %v3931_v49, %v3931_v49 }
 0xa1b   :  { %v4814_v34 = vunpack.c.l.b16 %v4093_v1 }
 0xa1c   :  { %v4173_v43 = vunpack.c.l.b16 %v4078_v53  ;;  %v4168_v18 = vunpack.c.l.b16 %v4062_v60 }
 0xa1d   :  { %v4815_v29 = vpack.c.b16 %v4814_v34, %v4813_v16 }
 0xa1e   :  { %v4028_v39 = vpop.f32.mrf.mxu2 }
 0xa1f   :  { %4827 = vmatpush.bf16.msra.mxu1 %v4815_v29  ;;  %v3932_v45 = vpop.f32.mrf.mxu0  ;;  %v3981_v19 = vpop.f32.mrf.mxu1  ;;  %v4029_v31 = vadd.f32 %v10372_v42, %v4028_v39 }
 0xa20   :  { %v3982_v56 = vadd.f32 %v10347_v5, %v3981_v19  ;;  %7697 = vmatmul.msk.bf16.vlgmr.msra.gmra.mxu3 %vm483_vm1, %v4140_v57  ;;  %v3933_v59 = vadd.f32 %v10365_v13, %v3932_v45 }
 0xa21   :  { %v4094_v7 = vpack.c.bf16 %v4029_v31, %v4029_v31 }
 0xa22   :  { %v4079_v61 = vpack.c.bf16 %v3982_v56, %v3982_v56  ;;  %v4063_v27 = vpack.c.bf16 %v3933_v59, %v3933_v59 }
 0xa23   :  { %v4841_v8 = vunpack.c.l.b16 %v4094_v7 }
 0xa24   :  { %v4174_v17 = vunpack.c.l.b16 %v4079_v61  ;;  %v4169_v63 = vunpack.c.l.b16 %v4063_v27 }
 0xa26   :  { %v4175_v9 = vpack.c.b16 %v4174_v17, %v4173_v43  ;;  %v4030_v21 = vpop.f32.mrf.mxu2  ;;  %v4170_v48 = vpack.c.b16 %v4169_v63, %v4168_v18 }
 0xa27   :  { %v4031_v54 = vadd.f32 %v10372_v42, %v4030_v21 }
 0xa28   :  { %v4180_v23 = vsel %vm483_vm1, %v4175_v9, 0 }
 0xa29   :  { %v4095_v51 = vpack.c.bf16 %v4031_v54, %v4031_v54  ;;  %4189 = vmatpush.bf16.xpose.msrb.mxu3 %v4180_v23 }
 0xa2b   :  { %v4842_v38 = vunpack.c.l.b16 %v4095_v51 }
 0xa2d   :  { %v4843_v1 = vpack.c.b16 %v4842_v38, %v4841_v8 }
 0xa2f   :  { %4855 = vmatpush.bf16.msra.mxu2 %v4843_v1 }
 0xa30   :  { %7698 = vmatmul.msk.bf16.vlgmr.msrb.gmra.mxu3 %vm483_vm1, %v4170_v48 }
 0xa69   :  { %v3627_v47 = vpop.xlane.xlu1 %3626 }
 0xa6a   :  { %v3649_v16 = vmul.f32 %v3627_v47, %v9580_v35 }
 0xa6c   :  { %v3665_v34 = vadd.f32 1e-12, %v3649_v16 }
 0xa6e   :  { %8063 = vrsqrt.f32 %v3665_v34  ;;  %vm3795_vm10 = vweird.f32 %v3665_v34 }
 0xa72   :  { %v3630_v32 = vpop.xlane.xlu2 %3629  ;;  %v3935_v36 = vpop.f32.mrf.mxu0 }
 0xa73   :  { %v3650_v29 = vmul.f32 %v3630_v32, %v9580_v35  ;;  %v3984_v57 = vpop.f32.mrf.mxu1 }
 0xa74   :  { %v8064_v39 = vpop.eup %8063  ;;  %v3985_v59 = vadd.f32 %v10347_v5, %v3984_v57  ;;  %v3936_v57 = vadd.f32 %v10365_v13, %v3935_v36 }
 0xa75   :  { %v3790_v45 = vmul.f32 %v8064_v39, %v3665_v34  ;;  %v3666_v19 = vadd.f32 1e-12, %v3650_v29  ;;  %vm3796_vm9 = vweird.f32 %v8064_v39 }
 0xa76   :  { %v4080_v54 = vpack.c.bf16 %v3985_v59, %v3985_v59  ;;  %vm10461_vm11 = vmor %vm3795_vm10, %vm3796_vm9 }
 0xa77   :  { %v3791_v53 = vmul.f32 %v8064_v39, %v3790_v45  ;;  %8065 = vrsqrt.f32 %v3666_v19  ;;  %vm3805_vm14 = vweird.f32 %v3666_v19 }
 0xa78   :  { %v4203_v48 = vunpack.c.l.b16 %v4080_v54 }
 0xa79   :  { %v3792_v56 = vmul.f32 0.5, %v3791_v53  ;;  %v10452_v61 = vpop.f32.mrf.mxu2 }
 0xa7a   :  { %v3633_v31 = vpop.xlane.xlu0 %3632  ;;  %v3937_v43 = vpop.f32.mrf.mxu0 }
 0xa7b   :  { %v3651_v49 = vmul.f32 %v3633_v31, %v9580_v35  ;;  %v3793_v17 = vsub.f32 1.5, %v3792_v56  ;;  %v3986_v27 = vpop.f32.mrf.mxu1  ;;  %v3938_v38 = vadd.f32 %v10365_v13, %v3937_v43 }
 0xa7c   :  { %v3987_v21 = vadd.f32 %v10347_v5, %v3986_v27 }
 0xa7d   :  { %v10455_v9 = vadd.f32 1e-12, %v3651_v49  ;;  %v8066_v7 = vpop.eup %8065  ;;  %v3794_v60 = vmul.f32 %v8064_v39, %v3793_v17  ;;  %v4065_v49 = vpack.c.bf16 %v3938_v38, %v3938_v38 }
 0xa7e   :  { %v3800_v23 = vmul.f32 %v8066_v7, %v3666_v19  ;;  %v4081_v51 = vpack.c.bf16 %v3987_v21, %v3987_v21  ;;  %vm3806_vm12 = vweird.f32 %v8066_v7 }
 0xa7f   :  { %8067 = vrsqrt.f32 %v10455_v9  ;;  %v3798_v32 = vsel %vm10461_vm11, %v8064_v39, %v3794_v60  ;;  %v4064_v39 = vpack.c.bf16 %v3936_v57, %v3936_v57  ;;  %vm3807_vm15 = vmor %vm3805_vm14, %vm3806_vm12  ;;  %v4199_v60 = vunpack.c.l.b16 %v4065_v49 }
 0xa80   :  { %v3636_v63 = vpop.xlane.xlu1 %3635  ;;  %v3801_v8 = vmul.f32 %v8066_v7, %v3800_v23  ;;  %v4204_v47 = vunpack.c.l.b16 %v4081_v51  ;;  %v3841_v43 = vmul.f32 %v3798_v32, %v10319_v3  ;;  %vm3815_vm3 = vweird.f32 %v10455_v9 }
 0xa81   :  { %v3652_v18 = vmul.f32 %v3636_v63, %v9580_v35  ;;  %v10465_v16 = vpop.f32.mrf.mxu2 }
 0xa82   :  { %v3802_v29 = vmul.f32 0.5, %v3801_v8  ;;  %v3940_v45 = vpop.f32.mrf.mxu0  ;;  %v4205_v53 = vpack.c.b16 %v4204_v47, %v4203_v48  ;;  %v3858_v51 = vmul.f32 %v10177_v26, %v3841_v43 }
 0xa83   :  { %v10470_v34 = vadd.f32 1e-12, %v3652_v18  ;;  %v3989_v56 = vpop.f32.mrf.mxu1  ;;  %v4198_v18 = vunpack.c.l.b16 %v4064_v39 }
 0xa84   :  { %v3803_v31 = vsub.f32 1.5, %v3802_v29  ;;  %v4210_v36 = vsel %vm483_vm1, %v4205_v53, 0  ;;  %v3990_v23 = vadd.f32 %v10347_v5, %v3989_v56  ;;  %v10483_v53 = vadd.f32 %v10187_v28, %v3858_v51 }
 0xa85   :  { %v8068_v59 = vpop.eup %8067  ;;  %8069 = vrsqrt.f32 %v10470_v34  ;;  %4219 = vmatpush.bf16.xpose.msra.mxu3 %v4210_v36  ;;  %vm3825_vm6 = vweird.f32 %v10470_v34 }
 0xa86   :  { %v3810_v17 = vmul.f32 %v8068_v59, %v10455_v9  ;;  %v3804_v27 = vmul.f32 %v8066_v7, %v3803_v31  ;;  %vm3816_vm2 = vweird.f32 %v8068_v59  ;;  %v4082_v29 = vpack.c.bf16 %v3990_v23, %v3990_v23  ;;  %12269 = vst [vmem:[#allocation24_spill] sm:$0xff] %v10483_v53 }
 0xa87   :  { %vm10495_vm4 = vmor %vm3815_vm3, %vm3816_vm2 }
 0xa88   :  { %v3811_v21 = vmul.f32 %v8068_v59, %v3810_v17  ;;  %v3808_v54 = vsel %vm3807_vm15, %v8066_v7, %v3804_v27  ;;  %v4200_v7 = vpack.c.b16 %v4199_v60, %v4198_v18 }
 0xa89   :  { %v3842_v63 = vmul.f32 %v3808_v54, %v10345_v52  ;;  %v4038_v3 = vpop.f32.mrf.mxu2 }
 0xa8a   :  { %v3812_v8 = vmul.f32 0.5, %v3811_v21  ;;  %v3942_v1 = vpop.f32.mrf.mxu0  ;;  %v4039_v49 = vadd.f32 %v10372_v42, %v4038_v3  ;;  %v4233_v21 = vunpack.c.l.b16 %v4082_v29 }
 0xa8b   :  { %v8070_v38 = vpop.eup %8069  ;;  %v3859_v19 = vmul.f32 %v10177_v26, %v3842_v63  ;;  %v3991_v32 = vpop.f32.mrf.mxu1  ;;  %v3943_v9 = vadd.f32 %v10365_v13, %v3942_v1  ;;  %v3941_v63 = vadd.f32 %v10365_v13, %v3940_v45 }
 0xa8c   :  { %v3813_v48 = vsub.f32 1.5, %v3812_v8  ;;  %v3820_v47 = vmul.f32 %v8070_v38, %v10470_v34  ;;  %v3992_v57 = vadd.f32 %v10347_v5, %v3991_v32  ;;  %7699 = vmatmul.msk.bf16.vlgmr.msra.gmra.mxu3 %vm483_vm1, %v4200_v7  ;;  %vm3826_vm5 = vweird.f32 %v8070_v38 }
 0xa8d   :  { %v10486_v52 = vadd.f32 %v10187_v28, %v3859_v19  ;;  %v4098_v8 = vpack.c.bf16 %v4039_v49, %v4039_v49  ;;  %vm3827_vm7 = vmor %vm3825_vm6, %vm3826_vm5  ;;  %v4067_v32 = vpack.c.bf16 %v3943_v9, %v3943_v9 }
 0xa8e   :  { %v3814_v56 = vmul.f32 %v8068_v59, %v3813_v48  ;;  %v3821_v31 = vmul.f32 %v8070_v38, %v3820_v47  ;;  %v4083_v43 = vpack.c.bf16 %v3992_v57, %v3992_v57  ;;  %v8330_v57 = vld [vmem:[#allocation2] ss:$0 sm:$0xff] }
 0xa8f   :  { %12270 = vst [vmem:[#allocation25_spill] sm:$0xff] %v10486_v52  ;;  %v10493_v17 = vpack.c.bf16 %v10486_v52, %v10483_v53  ;;  %v4897_v49 = vunpack.c.l.b16 %v4098_v8 }
 0xa90   :  { %v3822_v39 = vmul.f32 0.5, %v3821_v31  ;;  %v3818_v36 = vsel %vm10495_vm4, %v8068_v59, %v3814_v56  ;;  %v4234_v54 = vunpack.c.l.b16 %v4083_v43 }
 0xa91   :  { %7678 = vmatmul.msk.bf16.gmra.mxu0 %vm223_vm0, %v10493_v17  ;;  %7686 = vmatmul.msk.bf16.gmra.mxu1 %vm223_vm0, %v10493_v17  ;;  %v4040_v23 = vpop.f32.mrf.mxu2  ;;  %v3843_v18 = vmul.f32 %v3818_v36, %v10376_v10  ;;  %v4066_v10 = vpack.c.bf16 %v3941_v63, %v3941_v63  ;;  %v4229_v36 = vunpack.c.l.b16 %v4067_v32 }
 0xa92   :  { %v3823_v60 = vsub.f32 1.5, %v3822_v39  ;;  %v4131_v51 = vpop.f32.mrf.mxu3  ;;  %v4235_v3 = vpack.c.b16 %v4234_v54, %v4233_v21  ;;  %v4041_v59 = vadd.f32 %v10372_v42, %v4040_v23  ;;  %7694 = vmatmul.msk.bf16.gmra.mxu2 %vm223_vm0, %v10493_v17 }
 0xa93   :  { %v3945_v19 = vpop.f32.mrf.mxu0  ;;  %v3994_v48 = vpop.f32.mrf.mxu1  ;;  %v4346_v47 = vmul.f32 0.25, %v4131_v51  ;;  %v3860_v34 = vmul.f32 %v10177_v26, %v3843_v18 }
 0xa94   :  { %v3824_v1 = vmul.f32 %v8070_v38, %v3823_v60  ;;  %v4099_v7 = vpack.c.bf16 %v4041_v59, %v4041_v59  ;;  %v4240_v45 = vsel %vm483_vm1, %v4235_v3, 0 }
 0xa95   :  { %4249 = vmatpush.bf16.xpose.msrb.mxu3 %v4240_v45  ;;  %v10514_v56 = vadd.f32 %v8330_v57, %v4346_v47  ;;  %v10526_v23 = vadd.f32 %v10187_v28, %v3860_v34 }
 0xa96   :  { %v3828_v29 = vsel %vm3827_vm7, %v8070_v38, %v3824_v1  ;;  %v4898_v43 = vunpack.c.l.b16 %v4099_v7  ;;  %v3995_v38 = vadd.f32 %v10347_v5, %v3994_v48 }
 0xa97   :  { %v3844_v31 = vmul.f32 %v3828_v29, %v10406_v44  ;;  %v4378_v27 = vsel %vm483_vm1, %v10514_v56, -inf  ;;  %v4228_v44 = vunpack.c.l.b16 %v4066_v10  ;;  %12274 = vst [vmem:[#allocation27_spill] sm:$0xff] %v10526_v23  ;;  %v3946_v29 = vadd.f32 %v10365_v13, %v3945_v19 }
 0xa98   :  { %v4899_v21 = vpack.c.b16 %v4898_v43, %v4897_v49  ;;  %4379 = vmax.xlane.f32.xlu1 %v4378_v27  ;;  %v4084_v8 = vpack.c.bf16 %v3995_v38, %v3995_v38 }
 0xa99   :  { %v3861_v39 = vmul.f32 %v10177_v26, %v3844_v31  ;;  %v4230_v63 = vpack.c.b16 %v4229_v36, %v4228_v44 }
 0xa9a   :  { %v4043_v9 = vpop.f32.mrf.mxu2  ;;  %v4133_v54 = vpop.f32.mrf.mxu3  ;;  %4911 = vmatpush.bf16.msrb.mxu0 %v4899_v21  ;;  %v4263_v47 = vunpack.c.l.b16 %v4084_v8  ;;  %v8331_v21 = vld [vmem:[#allocation2 + $0x1] ss:$0 sm:$0xff] }
 0xa9b   :  { %v10523_v60 = vadd.f32 %v10187_v28, %v3861_v39  ;;  %v3996_v51 = vpop.f32.mrf.mxu1  ;;  %v3947_v18 = vpop.f32.mrf.mxu0  ;;  %v4044_v1 = vadd.f32 %v10372_v42, %v4043_v9  ;;  %v4068_v9 = vpack.c.bf16 %v3946_v29, %v3946_v29 }
 0xa9c   :  { %v3997_v3 = vadd.f32 %v10347_v5, %v3996_v51  ;;  %7700 = vmatmul.msk.bf16.vlgmr.msrb.gmra.mxu3 %vm483_vm1, %v4230_v63  ;;  %v3948_v32 = vadd.f32 %v10365_v13, %v3947_v18  ;;  %v4347_v51 = vmul.f32 0.25, %v4133_v54 }
 0xa9d   :  { %12273 = vst [vmem:[#allocation26_spill] sm:$0xff] %v10523_v60  ;;  %v10531_v59 = vpack.c.bf16 %v10523_v60, %v10526_v23  ;;  %v4100_v31 = vpack.c.bf16 %v4044_v1, %v4044_v1  ;;  %v4258_v18 = vunpack.c.l.b16 %v4068_v9 }
 0xa9e   :  { %v4085_v48 = vpack.c.bf16 %v3997_v3, %v3997_v3  ;;  %v4069_v27 = vpack.c.bf16 %v3948_v32, %v3948_v32 }
 0xa9f   :  { %v4925_v44 = vunpack.c.l.b16 %v4100_v31 }
 0xaa0   :  { %v4264_v7 = vunpack.c.l.b16 %v4085_v48  ;;  %v4259_v8 = vunpack.c.l.b16 %v4069_v27 }
 0xaa1   :  { %7679 = vmatmul.msk.bf16.gmra.mxu0 %vm223_vm0, %v10531_v59  ;;  %7687 = vmatmul.msk.bf16.gmra.mxu1 %vm223_vm0, %v10531_v59 }
 0xaa2   :  { %v4045_v45 = vpop.f32.mrf.mxu2  ;;  %v4265_v10 = vpack.c.b16 %v4264_v7, %v4263_v47  ;;  %7695 = vmatmul.msk.bf16.gmra.mxu2 %vm223_vm0, %v10531_v59  ;;  %v10549_v47 = vadd.f32 %v8330_v57, %v4347_v51  ;;  %v4260_v32 = vpack.c.b16 %v4259_v8, %v4258_v18 }
 0xaa3   :  { %v4046_v49 = vadd.f32 %v10372_v42, %v4045_v45  ;;  %v4161_v43 = vpop.f32.mrf.mxu3 }
 0xaa4   :  { %v4348_v34 = vmul.f32 0.25, %v4161_v43  ;;  %v4270_v36 = vsel %vm483_vm1, %v4265_v10, 0  ;;  %v4381_v54 = vsel %vm483_vm1, %v10549_v47, -inf }
 0xaa5   :  { %v4101_v39 = vpack.c.bf16 %v4046_v49, %v4046_v49  ;;  %4279 = vmatpush.bf16.xpose.msra.mxu3 %v4270_v36 }
 0xaa6   :  { %v10545_v38 = vadd.f32 %v8331_v21, %v4348_v34 }
 0xaa7   :  { %v4926_v19 = vunpack.c.l.b16 %v4101_v39 }
 0xaa8   :  { %v4384_v63 = vsel %vm483_vm1, %v10545_v38, -inf }
 0xaa9   :  { %v4927_v3 = vpack.c.b16 %v4926_v19, %v4925_v44  ;;  %4385 = vmax.xlane.f32.xlu2 %v4384_v63 }
 0xaab   :  { %4939 = vmatpush.bf16.msrb.mxu1 %v4927_v3  ;;  %v4163_v1 = vpop.f32.mrf.mxu3 }
 0xaac   :  { %v4349_v48 = vmul.f32 0.25, %v4163_v1  ;;  %7701 = vmatmul.msk.bf16.vlgmr.msra.gmra.mxu3 %vm483_vm1, %v4260_v32 }
 0xaae   :  { %v4365_v7 = vadd.f32 %v8331_v21, %v4349_v48 }
 0xab0   :  { %v4387_v45 = vsel %vm483_vm1, %v4365_v7, -inf }
 0xab1   :  { %4388 = vmax.xlane.f32.xlu0 %v4387_v45  ;;  %4382 = vmax.xlane.f32.xlu2 %v4381_v54 }
 0xab3   :  { %v10555_v29 = vpop.f32.mrf.mxu3 }
 0xabb   :  { %v10557_v31 = vpop.f32.mrf.mxu3 }
 0xb0e   :  { %v3950_v10 = vpop.f32.mrf.mxu0  ;;  %v3999_v49 = vpop.f32.mrf.mxu1 }
 0xb0f   :  { %v10559_v43 = vpop.f32.mrf.mxu3  ;;  %v4000_v57 = vadd.f32 %v10347_v5, %v3999_v49  ;;  %v3951_v63 = vadd.f32 %v10365_v13, %v3950_v10 }
 0xb11   :  { %v4086_v36 = vpack.c.bf16 %v4000_v57, %v4000_v57  ;;  %v4070_v57 = vpack.c.bf16 %v3951_v63, %v3951_v63 }
 0xb13   :  { %v4293_v8 = vunpack.c.l.b16 %v4086_v36  ;;  %v4036_v36 = vadd.f32 %v10372_v42, %v10465_v16 }
 0xb15   :  { %v4048_v34 = vpop.f32.mrf.mxu2 }
 0xb16   :  { %v3952_v27 = vpop.f32.mrf.mxu0  ;;  %v4001_v39 = vpop.f32.mrf.mxu1  ;;  %v4049_v51 = vadd.f32 %v10372_v42, %v4048_v34 }
 0xb17   :  { %v4002_v21 = vadd.f32 %v10347_v5, %v4001_v39  ;;  %v3953_v9 = vadd.f32 %v10365_v13, %v3952_v27  ;;  %v10564_v19 = vpop.f32.mrf.mxu3 }
 0xb18   :  { %v4102_v32 = vpack.c.bf16 %v4049_v51, %v4049_v51 }
 0xb19   :  { %v4087_v44 = vpack.c.bf16 %v4002_v21, %v4002_v21  ;;  %v4071_v18 = vpack.c.bf16 %v3953_v9, %v3953_v9  ;;  %v4288_v9 = vunpack.c.l.b16 %v4070_v57  ;;  %v4097_v57 = vpack.c.bf16 %v4036_v36, %v4036_v36 }
 0xb1a   :  { %v4953_v34 = vunpack.c.l.b16 %v4102_v32 }
 0xb1b   :  { %v4294_v3 = vunpack.c.l.b16 %v4087_v44  ;;  %v4289_v21 = vunpack.c.l.b16 %v4071_v18  ;;  %v4034_v18 = vadd.f32 %v10372_v42, %v10452_v61 }
 0xb1d   :  { %v4295_v1 = vpack.c.b16 %v4294_v3, %v4293_v8  ;;  %v4050_v48 = vpop.f32.mrf.mxu2 }
 0xb1e   :  { %v4051_v45 = vadd.f32 %v10372_v42, %v4050_v48  ;;  %v3955_v54 = vpop.f32.mrf.mxu0  ;;  %v4004_v49 = vpop.f32.mrf.mxu1  ;;  %v10573_v48 = vld [vmem:[#allocation2 + $0x4] ss:$0 sm:$0xff] }
 0xb1f   :  { %v4300_v27 = vsel %vm483_vm1, %v4295_v1, 0  ;;  %v4251_v28 = vpop.f32.mrf.mxu3  ;;  %v4005_v44 = vadd.f32 %v10347_v5, %v4004_v49  ;;  %v4290_v1 = vpack.c.b16 %v4289_v21, %v4288_v9 }
 0xb20   :  { %v4103_v39 = vpack.c.bf16 %v4051_v45, %v4051_v45  ;;  %4309 = vmatpush.bf16.xpose.msrb.mxu3 %v4300_v27  ;;  %v4354_v10 = vmul.f32 0.25, %v4251_v28  ;;  %v4096_v27 = vpack.c.bf16 %v4034_v18, %v4034_v18 }
 0xb22   :  { %v4954_v26 = vunpack.c.l.b16 %v4103_v39  ;;  %v10576_v63 = vadd.f32 %v10573_v48, %v4354_v10  ;;  %v3956_v10 = vadd.f32 %v10365_v13, %v3955_v54  ;;  %v4869_v36 = vunpack.c.l.b16 %v4096_v27 }
 0xb24   :  { %v4389_v51 = vpop.xlane.xlu0 %4388  ;;  %v4955_v8 = vpack.c.b16 %v4954_v26, %v4953_v34  ;;  %v4402_v16 = vsel %vm483_vm1, %v10576_v63, -inf  ;;  %v4088_v26 = vpack.c.bf16 %v4005_v44, %v4005_v44  ;;  %v4870_v34 = vunpack.c.l.b16 %v4097_v57 }
 0xb25   :  { %v4429_v3 = vsub.f32 %v4365_v7, %v4389_v51  ;;  %v4053_v32 = vpop.f32.mrf.mxu2  ;;  %4403 = vmax.xlane.f32.xlu2 %v4402_v16 }
 0xb26   :  { %4967 = vmatpush.bf16.msrb.mxu2 %v4955_v8  ;;  %v3957_v45 = vpop.f32.mrf.mxu0  ;;  %v4006_v49 = vpop.f32.mrf.mxu1  ;;  %v4323_v9 = vunpack.c.l.b16 %v4088_v26  ;;  %v4054_v8 = vadd.f32 %v10372_v42, %v4053_v32  ;;  %v4871_v18 = vpack.c.b16 %v4870_v34, %v4869_v36 }
 0xb27   :  { %v4448_v28 = vmul.f32 1.442695, %v4429_v3  ;;  %v4007_v7 = vadd.f32 %v10347_v5, %v4006_v49  ;;  %7702 = vmatmul.msk.bf16.vlgmr.msrb.gmra.mxu3 %vm483_vm1, %v4290_v1  ;;  %v3958_v61 = vadd.f32 %v10365_v13, %v3957_v45  ;;  %v4253_v21 = vpop.f32.mrf.mxu3  ;;  %v4386_v13 = vpop.xlane.xlu2 %4385 }
 0xb28   :  { %v4104_v54 = vpack.c.bf16 %v4054_v8, %v4054_v8  ;;  %v4380_v32 = vpop.xlane.xlu1 %4379 }
 0xb29   :  { %8071 = vpow2.f32 %v4448_v28  ;;  %v4089_v39 = vpack.c.bf16 %v4007_v7, %v4007_v7  ;;  %v4073_v44 = vpack.c.bf16 %v3958_v61, %v3958_v61  ;;  %v4072_v28 = vpack.c.bf16 %v3956_v10, %v3956_v10  ;;  %v8333_v10 = vld [vmem:[#allocation2 + $0x5] ss:$0 sm:$0xff] }
 0xb2a   :  { %v4981_v34 = vunpack.c.l.b16 %v4104_v54 }
 0xb2b   :  { %v4324_v51 = vunpack.c.l.b16 %v4089_v39  ;;  %v4319_v26 = vunpack.c.l.b16 %v4073_v44  ;;  %v4318_v39 = vunpack.c.l.b16 %v4072_v28 }
 0xb2d   :  { %v4325_v3 = vpack.c.b16 %v4324_v51, %v4323_v9  ;;  %v4055_v16 = vpop.f32.mrf.mxu2  ;;  %v4428_v51 = vsub.f32 %v10545_v38, %v4386_v13  ;;  %v4320_v36 = vpack.c.b16 %v4319_v26, %v4318_v39 }
 0xb2e   :  { %v4056_v1 = vadd.f32 %v10372_v42, %v4055_v16  ;;  %v4426_v42 = vsub.f32 %v10514_v56, %v4380_v32 }
 0xb2f   :  { %v10587_v5 = vpop.eup %8071  ;;  %v4330_v45 = vsel %vm483_vm1, %v4325_v3, 0  ;;  %v4281_v7 = vpop.f32.mrf.mxu3  ;;  %v4355_v3 = vmul.f32 0.25, %v4253_v21 }
 0xb30   :  { %v4483_v49 = vsel %vm483_vm1, %v10587_v5, 0.0  ;;  %v4105_v57 = vpack.c.bf16 %v4056_v1, %v4056_v1  ;;  %4339 = vmatpush.bf16.xpose.msra.mxu3 %v4330_v45  ;;  %v4356_v61 = vmul.f32 0.25, %v4281_v7  ;;  %v4442_v44 = vmul.f32 1.442695, %v4426_v42  ;;  %v4383_v28 = vpop.xlane.xlu2 %4382 }
 0xb31   :  { %4484 = vadd.xlane.f32.xlu2 %v4483_v49  ;;  %v4446_v1 = vmul.f32 1.442695, %v4428_v51  ;;  %v4371_v56 = vadd.f32 %v10573_v48, %v4355_v3  ;;  %v4427_v38 = vsub.f32 %v10549_v47, %v4383_v28 }
 0xb32   :  { %v4982_v27 = vunpack.c.l.b16 %v4105_v57  ;;  %v4372_v9 = vadd.f32 %v8333_v10, %v4356_v61  ;;  %8073 = vpow2.f32 %v4442_v44 }
 0xb33   :  { %8075 = vpow2.f32 %v4446_v1  ;;  %v4405_v21 = vsel %vm483_vm1, %v4371_v56, -inf  ;;  %v4444_v54 = vmul.f32 1.442695, %v4427_v38 }
 0xb34   :  { %v4983_v8 = vpack.c.b16 %v4982_v27, %v4981_v34  ;;  %v4408_v16 = vsel %vm483_vm1, %v4372_v9, -inf  ;;  %v4353_v34 = vmul.f32 0.25, %v10564_v19 }
 0xb35   :  { %4409 = vmax.xlane.f32.xlu0 %v4408_v16  ;;  %8077 = vpow2.f32 %v4444_v54 }
 0xb37   :  { %7703 = vmatmul.msk.bf16.vlgmr.msra.gmra.mxu3 %vm483_vm1, %v4320_v36 }
 0xb38   :  { %4883 = vmatpush.bf16.msrb.mxu3 %v4871_v18  ;;  %v4283_v18 = vpop.f32.mrf.mxu3  ;;  %v10601_v57 = vpop.eup %8073 }
 0xb39   :  { %v4357_v45 = vmul.f32 0.25, %v4283_v18  ;;  %v10603_v32 = vpop.eup %8075  ;;  %v4474_v26 = vsel %vm483_vm1, %v10601_v57, 0.0 }
 0xb3a   :  { %v4480_v48 = vsel %vm483_vm1, %v10603_v32, 0.0 }
 0xb3b   :  { %v4373_v49 = vadd.f32 %v8333_v10, %v4357_v45  ;;  %v10609_v47 = vpop.eup %8077 }
 0xb3c   :  { %4995 = vmatpush.bf16.msra.mxu3 %v4983_v8  ;;  %v4477_v7 = vsel %vm483_vm1, %v10609_v47, 0.0  ;;  %v8334_v8 = vld [vmem:[#allocation2 + $0x3] ss:$0 sm:$0xff] }
 0xb3d   :  { %v4411_v13 = vsel %vm483_vm1, %v4373_v49, -inf  ;;  %4406 = vmax.xlane.f32.xlu0 %v4405_v21  ;;  %v10621_v16 = vadd.f32 %v8334_v8, %v4353_v34  ;;  %v4352_v34 = vmul.f32 0.25, %v10559_v43 }
 0xb3e   :  { %4412 = vmax.xlane.f32.xlu1 %v4411_v13 }
 0xb3f   :  { %v4399_v1 = vsel %vm483_vm1, %v10621_v16, -inf }
 0xb45   :  { %4475 = vadd.xlane.f32.xlu0 %v4474_v26 }
 0xb46   :  { %4481 = vadd.xlane.f32.xlu1 %v4480_v48 }
 0xb4e   :  { %4478 = vadd.xlane.f32.xlu1 %v4477_v7 }
 0xb98   :  { %v4404_v27 = vpop.xlane.xlu2 %4403 }
 0xb99   :  { %v4434_v61 = vsub.f32 %v10576_v63, %v4404_v27 }
 0xb9b   :  { %v4458_v39 = vmul.f32 1.442695, %v4434_v61 }
 0xb9d   :  { %8079 = vpow2.f32 %v4458_v39 }
 0xba3   :  { %v10614_v42 = vpop.eup %8079 }
 0xba4   :  { %v4498_v10 = vsel %vm483_vm1, %v10614_v42, 0.0  ;;  %v4485_v51 = vpop.xlane.xlu2 %4484 }
 0xba5   :  { %4499 = vadd.xlane.f32.xlu1 %v4498_v10  ;;  %8081 = vrcp.f32 %v4485_v51  ;;  %vm4572_vm9 = vweird.f32 %v4485_v51 }
 0xba8   :  { %v4410_v36 = vpop.xlane.xlu0 %4409 }
 0xba9   :  { %v4436_v44 = vsub.f32 %v4372_v9, %v4410_v36 }
 0xbaa   :  { %v10619_v3 = vpop.f32.mrf.mxu3 }
 0xbab   :  { %v4462_v63 = vmul.f32 1.442695, %v4436_v44  ;;  %v8082_v18 = vpop.eup %8081 }
 0xbac   :  { %v4568_v19 = vmul.f32 %v8082_v18, %v4485_v51  ;;  %vm4573_vm8 = vweird.f32 %v8082_v18 }
 0xbad   :  { %8083 = vpow2.f32 %v4462_v63  ;;  %4400 = vmax.xlane.f32.xlu1 %v4399_v1  ;;  %v4578_v1 = vand.u32 2147483648, %v4485_v51  ;;  %vm4574_vm10 = vmor %vm4572_vm9, %vm4573_vm8 }
 0xbae   :  { %v4569_v7 = vsub.f32 1.0, %v4568_v19 }
 0xbb0   :  { %v4407_v28 = vpop.xlane.xlu0 %4406  ;;  %v4570_v27 = vmul.f32 %v8082_v18, %v4569_v7  ;;  %v8335_v7 = vld [vmem:[#allocation2 + $0x7] ss:$0 sm:$0xff] }
 0xbb1   :  { %v4413_v45 = vpop.xlane.xlu1 %4412  ;;  %v4435_v38 = vsub.f32 %v4371_v56, %v4407_v28  ;;  %v4576_v28 = vand.u32 2147483647, %v4485_v51 }
 0xbb2   :  { %v4437_v21 = vsub.f32 %v4373_v49, %v4413_v45  ;;  %v10625_v13 = vpop.f32.mrf.mxu3  ;;  %v4571_v36 = vadd.f32 %v8082_v18, %v4570_v27  ;;  %v4579_v27 = vor.u32 1.1754944e-38, %v4578_v1 }
 0xbb3   :  { %v10627_v54 = vpop.eup %8083  ;;  %v4460_v48 = vmul.f32 1.442695, %v4435_v38  ;;  %v10643_v38 = vadd.f32 %v8334_v8, %v4352_v34  ;;  %vm4577_vm11 = vcmp.eq.f32.partialorder %v4576_v28, 8.507059e+37 }
 0xbb4   :  { %v4464_v26 = vmul.f32 1.442695, %v4437_v21  ;;  %v4504_v9 = vsel %vm483_vm1, %v10627_v54, 0.0  ;;  %v4575_v21 = vsel %vm4574_vm10, %v8082_v18, %v4571_v36 }
 0xbb5   :  { %8085 = vpow2.f32 %v4460_v48  ;;  %4505 = vadd.xlane.f32.xlu2 %v4504_v9  ;;  %v4580_v51 = vsel %vm4577_vm11, %v4579_v27, %v4575_v21  ;;  %v4396_v8 = vsel %vm483_vm1, %v10643_v38, -inf }
 0xbb6   :  { %8087 = vpow2.f32 %v4464_v26  ;;  %v4581_v27 = vmul.f32 %v10587_v5, %v4580_v51 }
 0xbb8   :  { %v10631_v61 = vpop.xlane.xlu0 %4475  ;;  %v4765_v51 = vpack.c.bf16 %v4581_v27, %v4581_v27 }
 0xbb9   :  { %v4482_v39 = vpop.xlane.xlu1 %4481  ;;  %8089 = vrcp.f32 %v10631_v61  ;;  %vm4527_vm15 = vweird.f32 %v10631_v61  ;;  %v4531_v21 = vand.u32 2147483647, %v10631_v61 }
 0xbba   :  { %v4341_v56 = vpop.f32.mrf.mxu3  ;;  %8091 = vrcp.f32 %v4482_v39  ;;  %v4563_v34 = vand.u32 2147483648, %v4482_v39  ;;  %v4561_v1 = vand.u32 2147483647, %v4482_v39  ;;  %vm4557_vm3 = vweird.f32 %v4482_v39 }
 0xbbb   :  { %v10634_v49 = vpop.eup %8085  ;;  %v4360_v44 = vmul.f32 0.25, %v4341_v56  ;;  %vm4532_vm6 = vcmp.eq.f32.partialorder %v4531_v21, 8.507059e+37 }
 0xbbc   :  { %v10637_v10 = vpop.eup %8087  ;;  %v4501_v63 = vsel %vm483_vm1, %v10634_v49, 0.0  ;;  %vm4562_vm5 = vcmp.eq.f32.partialorder %v4561_v1, 8.507059e+37 }
 0xbbd   :  { %4502 = vadd.xlane.f32.xlu2 %v4501_v63  ;;  %v4507_v19 = vsel %vm483_vm1, %v10637_v10, 0.0  ;;  %v10646_v9 = vadd.f32 %v8335_v7, %v4360_v44 }
 0xbbe   :  { %4508 = vadd.xlane.f32.xlu0 %v4507_v19  ;;  %v4533_v19 = vand.u32 2147483648, %v10631_v61 }
 0xbbf   :  { %v8090_v45 = vpop.eup %8089  ;;  %v4420_v36 = vsel %vm483_vm1, %v10646_v9, -inf }
 0xbc0   :  { %v8092_v43 = vpop.eup %8091  ;;  %v4523_v48 = vmul.f32 %v8090_v45, %v10631_v61  ;;  %vm4528_vm12 = vweird.f32 %v8090_v45 }
 0xbc1   :  { %v4479_v26 = vpop.xlane.xlu1 %4478  ;;  %v4553_v56 = vmul.f32 %v8092_v43, %v4482_v39  ;;  %vm4558_vm14 = vweird.f32 %v8092_v43  ;;  %vm10656_vm2 = vmor %vm4527_vm15, %vm4528_vm12 }
 0xbc2   :  { %8093 = vrcp.f32 %v4479_v26  ;;  %v4524_v63 = vsub.f32 1.0, %v4523_v48  ;;  %v4343_v12 = vpop.f32.mrf.mxu3  ;;  %vm4559_vm4 = vmor %vm4557_vm3, %vm4558_vm14  ;;  %vm4542_vm8 = vweird.f32 %v4479_v26 }
 0xbc3   :  { %v4554_v6 = vsub.f32 1.0, %v4553_v56  ;;  %v4361_v22 = vmul.f32 0.25, %v4343_v12  ;;  %v4564_v12 = vor.u32 1.1754944e-38, %v4563_v34  ;;  %v4546_v56 = vand.u32 2147483647, %v4479_v26 }
 0xbc4   :  { %v4525_v18 = vmul.f32 %v8090_v45, %v4524_v63 }
 0xbc5   :  { %v4555_v44 = vmul.f32 %v8092_v43, %v4554_v6  ;;  %4421 = vmax.xlane.f32.xlu2 %v4420_v36  ;;  %v4534_v36 = vor.u32 1.1754944e-38, %v4533_v19  ;;  %v10662_v61 = vadd.f32 %v8335_v7, %v4361_v22  ;;  %v4809_v22 = vunpack.c.l.b16 %v4765_v51 }
 0xbc6   :  { %v4526_v28 = vadd.f32 %v8090_v45, %v4525_v18  ;;  %4397 = vmax.xlane.f32.xlu0 %v4396_v8  ;;  %vm4547_vm10 = vcmp.eq.f32.partialorder %v4546_v56, 8.507059e+37 }
 0xbc7   :  { %v4556_v63 = vadd.f32 %v8092_v43, %v4555_v44  ;;  %v4548_v44 = vand.u32 2147483648, %v4479_v26  ;;  %v4423_v34 = vsel %vm483_vm1, %v10662_v61, -inf }
 0xbc8   :  { %v8094_v48 = vpop.eup %8093  ;;  %v4530_v6 = vsel %vm10656_vm2, %v8090_v45, %v4526_v28 }
 0xbc9   :  { %v4538_v18 = vmul.f32 %v8094_v48, %v4479_v26  ;;  %v4560_v60 = vsel %vm4559_vm4, %v8092_v43, %v4556_v63  ;;  %v4535_v23 = vsel %vm4532_vm6, %v4534_v36, %v4530_v6  ;;  %vm4543_vm7 = vweird.f32 %v8094_v48  ;;  %v8339_v6 = vld [vmem:[%s12207_s2 + $0x10] sm:$0xff] }
 0xbca   :  { %v4565_v8 = vsel %vm4562_vm5, %v4564_v12, %v4560_v60  ;;  %v4536_v43 = vmul.f32 %v10601_v57, %v4535_v23  ;;  %vm4544_vm9 = vmor %vm4542_vm8, %vm4543_vm7  ;;  %v4549_v7 = vor.u32 1.1754944e-38, %v4548_v44  ;;  %v8336_v23 = vld [vmem:[%s12207_s2 + $0x38] sm:$0xff] }
 0xbcb   :  { %v4539_v5 = vsub.f32 1.0, %v4538_v18  ;;  %v4566_v52 = vmul.f32 %v10603_v32, %v4565_v8 }
 0xbcc   :  { %v4762_v21 = vpack.c.bf16 %v4536_v43, %v4536_v43 }
 0xbcd   :  { %v4540_v39 = vmul.f32 %v8094_v48, %v4539_v5  ;;  %v4764_v45 = vpack.c.bf16 %v4566_v52, %v4566_v52 }
 0xbce   :  { %4424 = vmax.xlane.f32.xlu0 %v4423_v34  ;;  %v4780_v57 = vunpack.c.l.b16 %v4762_v21 }
 0xbcf   :  { %v4541_v19 = vadd.f32 %v8094_v48, %v4540_v39  ;;  %v4808_v60 = vunpack.c.l.b16 %v4764_v45  ;;  %v4350_v45 = vmul.f32 0.25, %v10555_v29 }
 0xbd1   :  { %v4545_v1 = vsel %vm4544_vm9, %v8094_v48, %v4541_v19  ;;  %v4810_v32 = vpack.c.b16 %v4809_v22, %v4808_v60  ;;  %v8337_v48 = vld [vmem:[%s12207_s2 + $0x30] sm:$0xff]  ;;  %v10689_v22 = vld [vmem:[#allocation2 + $0x2] ss:$0 sm:$0xff]  ;;  %v4359_v60 = vmul.f32 0.25, %v10625_v13 }
 0xbd2   :  { %v4550_v28 = vsel %vm4547_vm10, %v4549_v7, %v4545_v1 }
 0xbd3   :  { %v4551_v27 = vmul.f32 %v10609_v47, %v4550_v28  ;;  %7705 = vmatmul.msk.bf16.vlgmr.msra.gmra.mxu1 %vm483_vm1, %v4810_v32  ;;  %v8338_v47 = vld [vmem:[%s12207_s2 + $0x18] sm:$0xff] }
 0xbd4   :  { %5065 = vmatpush.bf16.msra.mxu1 %v8336_v23 }
 0xbd5   :  { %v4763_v52 = vpack.c.bf16 %v4551_v27, %v4551_v27 }
 0xbd7   :  { %v4781_v26 = vunpack.c.l.b16 %v4763_v52 }
 0xbd8   :  { %5066 = vmatpush.bf16.msra.mxu1 %v8337_v48 }
 0xbd9   :  { %v4782_v63 = vpack.c.b16 %v4781_v26, %v4780_v57  ;;  %v10707_v57 = vld [vmem:[#allocation2 + $0x6] ss:$0 sm:$0xff] }
 0xbda   :  { %v10710_v26 = vadd.f32 %v10707_v57, %v4359_v60 }
 0xbdb   :  { %7704 = vmatmul.msk.bf16.vlgmr.msra.gmra.mxu0 %vm483_vm1, %v4782_v63 }
 0xbdc   :  { %5016 = vmatpush.bf16.msra.mxu0 %v8338_v47 }
 0xbe0   :  { %5017 = vmatpush.bf16.msra.mxu0 %v8339_v6 }
 0xc18   :  { %v4500_v12 = vpop.xlane.xlu1 %4499 }
 0xc19   :  { %8095 = vrcp.f32 %v4500_v12  ;;  %v4653_v28 = vand.u32 2147483648, %v4500_v12  ;;  %vm4647_vm12 = vweird.f32 %v4500_v12  ;;  %v4651_v27 = vand.u32 2147483647, %v4500_v12 }
 0xc1b   :  { %v4654_v47 = vor.u32 1.1754944e-38, %v4653_v28  ;;  %vm4652_vm2 = vcmp.eq.f32.partialorder %v4651_v27, 8.507059e+37 }
 0xc1f   :  { %v8096_v8 = vpop.eup %8095 }
 0xc20   :  { %v4401_v18 = vpop.xlane.xlu1 %4400  ;;  %v4643_v51 = vmul.f32 %v8096_v8, %v4500_v12  ;;  %vm4648_vm11 = vweird.f32 %v8096_v8 }
 0xc21   :  { %v4433_v36 = vsub.f32 %v10621_v16, %v4401_v18  ;;  %v10692_v16 = vadd.f32 %v10689_v22, %v4350_v45  ;;  %vm10701_vm14 = vmor %vm4647_vm12, %vm4648_vm11 }
 0xc22   :  { %v4644_v39 = vsub.f32 1.0, %v4643_v51 }
 0xc23   :  { %v4456_v5 = vmul.f32 1.442695, %v4433_v36  ;;  %v4390_v23 = vsel %vm483_vm1, %v10692_v16, -inf }
 0xc24   :  { %v4645_v43 = vmul.f32 %v8096_v8, %v4644_v39 }
 0xc25   :  { %8097 = vpow2.f32 %v4456_v5 }
 0xc26   :  { %v4646_v32 = vadd.f32 %v8096_v8, %v4645_v43 }
 0xc28   :  { %v4506_v44 = vpop.xlane.xlu2 %4505  ;;  %v4650_v63 = vsel %vm10701_vm14, %v8096_v8, %v4646_v32  ;;  %v4417_v8 = vsel %vm483_vm1, %v10710_v26, -inf }
 0xc29   :  { %8099 = vrcp.f32 %v4506_v44  ;;  %v4681_v48 = vand.u32 2147483647, %v4506_v44  ;;  %v4683_v12 = vand.u32 2147483648, %v4506_v44  ;;  %vm4677_vm3 = vweird.f32 %v4506_v44 }
 0xc2a   :  { %v4655_v5 = vsel %vm4652_vm2, %v4654_v47, %v4650_v63 }
 0xc2b   :  { %v10684_v56 = vpop.eup %8097  ;;  %vm4682_vm5 = vcmp.eq.f32.partialorder %v4681_v48, 8.507059e+37 }
 0xc2c   :  { %v4495_v34 = vsel %vm483_vm1, %v10684_v56, 0.0 }
 0xc2d   :  { %4496 = vadd.xlane.f32.xlu2 %v4495_v34 }
 0xc2f   :  { %v8100_v19 = vpop.eup %8099 }
 0xc30   :  { %v4673_v7 = vmul.f32 %v8100_v19, %v4506_v44  ;;  %v10695_v1 = vpop.xlane.xlu2 %4502  ;;  %vm4678_vm15 = vweird.f32 %v8100_v19 }
 0xc31   :  { %8101 = vrcp.f32 %v10695_v1  ;;  %v10698_v29 = vpop.xlane.xlu0 %4508  ;;  %vm10714_vm4 = vmor %vm4677_vm3, %vm4678_vm15  ;;  %v4666_v28 = vand.u32 2147483647, %v10695_v1  ;;  %v4668_v27 = vand.u32 2147483648, %v10695_v1  ;;  %vm4662_vm8 = vweird.f32 %v10695_v1 }
 0xc32   :  { %v4674_v21 = vsub.f32 1.0, %v4673_v7  ;;  %8103 = vrcp.f32 %v10698_v29  ;;  %v4684_v7 = vor.u32 1.1754944e-38, %v4683_v12  ;;  %vm4692_vm10 = vweird.f32 %v10698_v29 }
 0xc33   :  { %v4669_v51 = vor.u32 1.1754944e-38, %v4668_v27  ;;  %vm4667_vm11 = vcmp.eq.f32.partialorder %v4666_v28, 8.507059e+37 }
 0xc34   :  { %v4675_v13 = vmul.f32 %v8100_v19, %v4674_v21 }
 0xc35   :  { %4391 = vmax.xlane.f32.xlu2 %v4390_v23 }
 0xc36   :  { %v4676_v6 = vadd.f32 %v8100_v19, %v4675_v13  ;;  %v4698_v13 = vand.u32 2147483648, %v10698_v29 }
 0xc37   :  { %v8102_v18 = vpop.eup %8101 }
 0xc38   :  { %v8104_v36 = vpop.eup %8103  ;;  %v4658_v39 = vmul.f32 %v8102_v18, %v10695_v1  ;;  %v4422_v45 = vpop.xlane.xlu2 %4421  ;;  %v4680_v34 = vsel %vm10714_vm4, %v8100_v19, %v4676_v6  ;;  %vm4663_vm6 = vweird.f32 %v8102_v18  ;;  %v4656_v6 = vmul.f32 %v10614_v42, %v4655_v5 }
 0xc39   :  { %v4688_v43 = vmul.f32 %v8104_v36, %v10698_v29  ;;  %v4440_v44 = vsub.f32 %v10646_v9, %v4422_v45  ;;  %v4398_v60 = vpop.xlane.xlu0 %4397  ;;  %v4685_v63 = vsel %vm4682_vm5, %v4684_v7, %v4680_v34  ;;  %vm4693_vm7 = vweird.f32 %v8104_v36  ;;  %vm4664_vm9 = vmor %vm4662_vm8, %vm4663_vm6 }
 0xc3a   :  { %v4659_v32 = vsub.f32 1.0, %v4658_v39  ;;  %v4432_v21 = vsub.f32 %v10643_v38, %v4398_v60  ;;  %v4696_v9 = vand.u32 2147483647, %v10698_v29  ;;  %v4686_v38 = vmul.f32 %v10627_v54, %v4685_v63  ;;  %vm4694_vm12 = vmor %vm4692_vm10, %vm4693_vm7 }
 0xc3b   :  { %v4689_v52 = vsub.f32 1.0, %v4688_v43  ;;  %v4470_v23 = vmul.f32 1.442695, %v4440_v44  ;;  %v4699_v34 = vor.u32 1.1754944e-38, %v4698_v13  ;;  %v4770_v5 = vpack.c.bf16 %v4656_v6, %v4656_v6 }
 0xc3c   :  { %v4660_v19 = vmul.f32 %v8102_v18, %v4659_v32  ;;  %v4454_v48 = vmul.f32 1.442695, %v4432_v21  ;;  %vm4697_vm14 = vcmp.eq.f32.partialorder %v4696_v9, 8.507059e+37  ;;  %v4772_v7 = vpack.c.bf16 %v4686_v38, %v4686_v38 }
 0xc3d   :  { %v4690_v47 = vmul.f32 %v8104_v36, %v4689_v52  ;;  %8105 = vpow2.f32 %v4470_v23  ;;  %4418 = vmax.xlane.f32.xlu2 %v4417_v8  ;;  %v4351_v32 = vmul.f32 0.25, %v10557_v31 }
 0xc3e   :  { %v4661_v12 = vadd.f32 %v8102_v18, %v4660_v19  ;;  %8107 = vpow2.f32 %v4454_v48  ;;  %v4920_v13 = vunpack.c.l.b16 %v4772_v7 }
 0xc3f   :  { %v4691_v39 = vadd.f32 %v8104_v36, %v4690_v47  ;;  %v10748_v63 = vadd.f32 %v10689_v22, %v4351_v32  ;;  %v4358_v47 = vmul.f32 0.25, %v10619_v3 }
 0xc40   :  { %v4665_v45 = vsel %vm4664_vm9, %v8102_v18, %v4661_v12 }
 0xc41   :  { %v4670_v43 = vsel %vm4667_vm11, %v4669_v51, %v4665_v45  ;;  %v4695_v8 = vsel %vm4694_vm12, %v8104_v36, %v4691_v39  ;;  %v4425_v42 = vpop.xlane.xlu0 %4424  ;;  %v4393_v48 = vsel %vm483_vm1, %v10748_v63, -inf  ;;  %v10760_v22 = vadd.f32 %v10707_v57, %v4358_v47 }
 0xc42   :  { %v4671_v1 = vmul.f32 %v10634_v49, %v4670_v43  ;;  %v4700_v44 = vsel %vm4697_vm14, %v4699_v34, %v4695_v8  ;;  %v4441_v54 = vsub.f32 %v10662_v61, %v4425_v42  ;;  %v4892_v61 = vunpack.c.l.b16 %v4770_v5 }
 0xc43   :  { %v10737_v60 = vpop.eup %8105  ;;  %v4701_v29 = vmul.f32 %v10637_v10, %v4700_v44  ;;  %v4414_v6 = vsel %vm483_vm1, %v10760_v22, -inf }
 0xc44   :  { %v10740_v18 = vpop.eup %8107  ;;  %v4771_v28 = vpack.c.bf16 %v4671_v1, %v4671_v1  ;;  %v4472_v21 = vmul.f32 1.442695, %v4441_v54  ;;  %v4516_v36 = vsel %vm483_vm1, %v10737_v60, 0.0 }
 0xc45   :  { %v4773_v27 = vpack.c.bf16 %v4701_v29, %v4701_v29  ;;  %4517 = vadd.xlane.f32.xlu0 %v4516_v36  ;;  %v4492_v49 = vsel %vm483_vm1, %v10740_v18, 0.0 }
 0xc46   :  { %v4893_v52 = vunpack.c.l.b16 %v4771_v28  ;;  %8109 = vpow2.f32 %v4472_v21  ;;  %4493 = vadd.xlane.f32.xlu1 %v4492_v49 }
 0xc47   :  { %v4921_v10 = vunpack.c.l.b16 %v4773_v27 }
 0xc48   :  { %v4894_v23 = vpack.c.b16 %v4893_v52, %v4892_v61 }
 0xc49   :  { %v4922_v31 = vpack.c.b16 %v4921_v10, %v4920_v13 }
 0xc4a   :  { %7708 = vmatmul.msk.bf16.vlgmr.msrb.gmra.mxu0 %vm483_vm1, %v4894_v23 }
 0xc4b   :  { %7709 = vmatmul.msk.bf16.vlgmr.msrb.gmra.mxu1 %vm483_vm1, %v4922_v31 }
 0xc4c   :  { %v10752_v19 = vpop.eup %8109 }
 0xc4d   :  { %4394 = vmax.xlane.f32.xlu0 %v4393_v48  ;;  %v4519_v9 = vsel %vm483_vm1, %v10752_v19, 0.0 }
 0xc4e   :  { %4520 = vadd.xlane.f32.xlu1 %v4519_v9 }
 0xc50   :  { %v10796_v1 = vpop.f32.mrf.mxu1 }
 0xc56   :  { %4415 = vmax.xlane.f32.xlu1 %v4414_v6 }
 0xc58   :  { %v10794_v5 = vpop.f32.mrf.mxu0  ;;  %v10813_v61 = vpop.f32.mrf.mxu1 }
 0xc5a   :  { %7712 = vmatmul.msk.bf16.vlgmr.msra.gmra.mxu0 %vm223_vm0, %v10208_v33 }
 0xc5b   :  { %7720 = vmatmul.msk.bf16.vlgmr.msra.gmra.mxu1 %vm223_vm0, %v10208_v33 }
 0xc60   :  { %v10811_v27 = vpop.f32.mrf.mxu0 }
 0xc6a   :  { %7713 = vmatmul.msk.bf16.gmra.mxu0 %vm223_vm0, %v10265_v20 }
 0xc6b   :  { %7721 = vmatmul.msk.bf16.gmra.mxu1 %vm223_vm0, %v10265_v20 }
 0xc7a   :  { %7714 = vmatmul.msk.bf16.gmra.mxu0 %vm223_vm0, %v10294_v2 }
 0xc7b   :  { %7722 = vmatmul.msk.bf16.gmra.mxu1 %vm223_vm0, %v10294_v2 }
 0xc8a   :  { %7715 = vmatmul.msk.bf16.gmra.mxu0 %vm223_vm0, %v10325_v50 }
 0xc8b   :  { %7723 = vmatmul.msk.bf16.gmra.mxu1 %vm223_vm0, %v10325_v50 }
 0xc9a   :  { %7716 = vmatmul.msk.bf16.gmra.mxu0 %vm223_vm0, %v10382_v30 }
 0xc9b   :  { %7724 = vmatmul.msk.bf16.gmra.mxu1 %vm223_vm0, %v10382_v30 }
 0xca0   :  { %v4497_v3 = vpop.xlane.xlu2 %4496 }
 0xca1   :  { %8111 = vrcp.f32 %v4497_v3  ;;  %v4638_v28 = vand.u32 2147483648, %v4497_v3  ;;  %vm4632_vm2 = vweird.f32 %v4497_v3  ;;  %v4636_v21 = vand.u32 2147483647, %v4497_v3 }
 0xca3   :  { %v4639_v10 = vor.u32 1.1754944e-38, %v4638_v28  ;;  %vm4637_vm4 = vcmp.eq.f32.partialorder %v4636_v21, 8.507059e+37 }
 0xca7   :  { %v8112_v51 = vpop.eup %8111 }
 0xca8   :  { %v4392_v57 = vpop.xlane.xlu2 %4391  ;;  %v4628_v39 = vmul.f32 %v8112_v51, %v4497_v3  ;;  %vm4633_vm15 = vweird.f32 %v8112_v51 }
 0xca9   :  { %v4430_v12 = vsub.f32 %v10692_v16, %v4392_v57  ;;  %vm4634_vm3 = vmor %vm4632_vm2, %vm4633_vm15 }
 0xcaa   :  { %7717 = vmatmul.msk.bf16.gmra.mxu0 %vm223_vm0, %v10429_v37  ;;  %v4629_v42 = vsub.f32 1.0, %v4628_v39 }
 0xcab   :  { %v4450_v38 = vmul.f32 1.442695, %v4430_v12  ;;  %7725 = vmatmul.msk.bf16.gmra.mxu1 %vm223_vm0, %v10429_v37 }
 0xcac   :  { %v4630_v44 = vmul.f32 %v8112_v51, %v4629_v42 }
 0xcad   :  { %8113 = vpow2.f32 %v4450_v38 }
 0xcae   :  { %v4631_v29 = vadd.f32 %v8112_v51, %v4630_v44 }
 0xcb0   :  { %v4419_v45 = vpop.xlane.xlu2 %4418  ;;  %v4635_v52 = vsel %vm4634_vm3, %v8112_v51, %v4631_v29 }
 0xcb1   :  { %v4439_v34 = vsub.f32 %v10710_v26, %v4419_v45  ;;  %v4640_v9 = vsel %vm4637_vm4, %v4639_v10, %v4635_v52 }
 0xcb2   :  { %v4641_v51 = vmul.f32 %v10684_v56, %v4640_v9 }
 0xcb3   :  { %v10790_v43 = vpop.eup %8113  ;;  %v4468_v8 = vmul.f32 1.442695, %v4439_v34 }
 0xcb4   :  { %v4486_v16 = vsel %vm483_vm1, %v10790_v43, 0.0  ;;  %v4769_v28 = vpack.c.bf16 %v4641_v51, %v4641_v51 }
 0xcb5   :  { %8115 = vpow2.f32 %v4468_v8  ;;  %4487 = vadd.xlane.f32.xlu0 %v4486_v16 }
 0xcb8   :  { %v10798_v54 = vpop.xlane.xlu0 %4517 }
 0xcb9   :  { %8117 = vrcp.f32 %v10798_v54  ;;  %v4494_v7 = vpop.xlane.xlu1 %4493  ;;  %vm4737_vm11 = vweird.f32 %v10798_v54 }
 0xcba   :  { %8119 = vrcp.f32 %v4494_v7  ;;  %7718 = vmatmul.msk.bf16.gmra.mxu0 %vm223_vm0, %v10493_v17  ;;  %v4621_v57 = vand.u32 2147483647, %v4494_v7  ;;  %v4623_v12 = vand.u32 2147483648, %v4494_v7  ;;  %vm4617_vm6 = vweird.f32 %v4494_v7 }
 0xcbb   :  { %v10803_v26 = vpop.eup %8115  ;;  %7726 = vmatmul.msk.bf16.gmra.mxu1 %vm223_vm0, %v10493_v17 }
 0xcbc   :  { %v4513_v32 = vsel %vm483_vm1, %v10803_v26, 0.0  ;;  %vm4622_vm8 = vcmp.eq.f32.partialorder %v4621_v57, 8.507059e+37  ;;  %v4741_v57 = vand.u32 2147483647, %v10798_v54 }
 0xcbd   :  { %4514 = vadd.xlane.f32.xlu0 %v4513_v32 }
 0xcbe   :  { %vm4742_vm3 = vcmp.eq.f32.partialorder %v4741_v57, 8.507059e+37 }
 0xcbf   :  { %v10809_v36 = vpop.eup %8117 }
 0xcc0   :  { %v8120_v49 = vpop.eup %8119  ;;  %v4395_v13 = vpop.xlane.xlu0 %4394  ;;  %v4733_v23 = vmul.f32 %v10809_v36, %v10798_v54  ;;  %vm4738_vm9 = vweird.f32 %v10809_v36 }
 0xcc1   :  { %v4613_v31 = vmul.f32 %v8120_v49, %v4494_v7  ;;  %v4431_v48 = vsub.f32 %v10748_v63, %v4395_v13  ;;  %v4521_v47 = vpop.xlane.xlu1 %4520  ;;  %vm4618_vm5 = vweird.f32 %v8120_v49  ;;  %v4624_v63 = vor.u32 1.1754944e-38, %v4623_v12  ;;  %vm10840_vm12 = vmor %vm4737_vm11, %vm4738_vm9 }
 0xcc2   :  { %8121 = vrcp.f32 %v4521_v47  ;;  %v4734_v38 = vsub.f32 1.0, %v4733_v23  ;;  %vm4619_vm7 = vmor %vm4617_vm6, %vm4618_vm5  ;;  %v4758_v10 = vand.u32 2147483648, %v4521_v47  ;;  %vm4752_vm14 = vweird.f32 %v4521_v47 }
 0xcc3   :  { %v4614_v6 = vsub.f32 1.0, %v4613_v31  ;;  %v4452_v3 = vmul.f32 1.442695, %v4431_v48 }
 0xcc4   :  { %v4735_v16 = vmul.f32 %v10809_v36, %v4734_v38  ;;  %v4759_v51 = vor.u32 1.1754944e-38, %v4758_v10  ;;  %v10859_v10 = vld [vmem:[#allocation5 + $0x3] ss:$0 sm:$0xff] }
 0xcc5   :  { %v4615_v39 = vmul.f32 %v8120_v49, %v4614_v6  ;;  %8123 = vpow2.f32 %v4452_v3  ;;  %v4865_v6 = vunpack.c.l.b16 %v4769_v28  ;;  %v10864_v3 = vld [vmem:[#allocation5 + $0x1] ss:$0 sm:$0xff] }
 0xcc7   :  { %v4616_v45 = vadd.f32 %v8120_v49, %v4615_v39  ;;  %v10819_v34 = vpop.f32.mrf.mxu0 }
 0xcc8   :  { %v8122_v8 = vpop.eup %8121  ;;  %v10821_v42 = vpop.f32.mrf.mxu1 }
 0xcc9   :  { %v4620_v44 = vsel %vm4619_vm7, %v8120_v49, %v4616_v45  ;;  %v4748_v29 = vmul.f32 %v8122_v8, %v4521_v47  ;;  %v4416_v32 = vpop.xlane.xlu1 %4415  ;;  %v4756_v49 = vand.u32 2147483647, %v4521_v47  ;;  %vm4753_vm10 = vweird.f32 %v8122_v8 }
 0xcca   :  { %v4625_v21 = vsel %vm4622_vm8, %v4624_v63, %v4620_v44  ;;  %v4438_v52 = vsub.f32 %v10760_v22, %v4416_v32  ;;  %7719 = vmatmul.msk.bf16.gmra.mxu0 %vm223_vm0, %v10531_v59  ;;  %v4736_v22 = vadd.f32 %v10809_v36, %v4735_v16  ;;  %vm4754_vm15 = vmor %vm4752_vm14, %vm4753_vm10 }
 0xccb   :  { %v10827_v56 = vpop.eup %8123  ;;  %v4626_v7 = vmul.f32 %v10740_v18, %v4625_v21  ;;  %v4749_v13 = vsub.f32 1.0, %v4748_v29  ;;  %7727 = vmatmul.msk.bf16.gmra.mxu1 %vm223_vm0, %v10531_v59  ;;  %v4743_v18 = vand.u32 2147483648, %v10798_v54  ;;  %vm4757_vm2 = vcmp.eq.f32.partialorder %v4756_v49, 8.507059e+37 }
 0xccc   :  { %v4466_v23 = vmul.f32 1.442695, %v4438_v52  ;;  %v4489_v31 = vsel %vm483_vm1, %v10827_v56, 0.0  ;;  %v4740_v63 = vsel %vm10840_vm12, %v10809_v36, %v4736_v22 }
 0xccd   :  { %v4768_v48 = vpack.c.bf16 %v4626_v7, %v4626_v7  ;;  %v4750_v9 = vmul.f32 %v8122_v8, %v4749_v13  ;;  %4490 = vadd.xlane.f32.xlu1 %v4489_v31  ;;  %v4744_v29 = vor.u32 1.1754944e-38, %v4743_v18 }
 0xcce   :  { %8125 = vpow2.f32 %v4466_v23 }
 0xccf   :  { %v4864_v12 = vunpack.c.l.b16 %v4768_v48  ;;  %v4751_v38 = vadd.f32 %v8122_v8, %v4750_v9  ;;  %v10845_v39 = vpop.f32.mrf.mxu0  ;;  %v4745_v47 = vsel %vm4742_vm3, %v4744_v29, %v4740_v63 }
 0xcd0   :  { %v10847_v45 = vpop.f32.mrf.mxu1  ;;  %v4746_v52 = vmul.f32 %v10737_v60, %v4745_v47 }
 0xcd1   :  { %v4866_v16 = vpack.c.b16 %v4865_v6, %v4864_v12  ;;  %v4755_v44 = vsel %vm4754_vm15, %v8122_v8, %v4751_v38 }
 0xcd2   :  { %v4760_v32 = vsel %vm4757_vm2, %v4759_v51, %v4755_v44  ;;  %v4776_v13 = vpack.c.bf16 %v4746_v52, %v4746_v52 }
 0xcd3   :  { %7707 = vmatmul.msk.bf16.vlgmr.msrb.gmra.mxu3 %vm483_vm1, %v4866_v16  ;;  %v4761_v28 = vmul.f32 %v10752_v19, %v4760_v32 }
 0xcd4   :  { %v10853_v54 = vpop.eup %8125  ;;  %v4976_v31 = vunpack.c.l.b16 %v4776_v13 }
 0xcd5   :  { %v4510_v21 = vsel %vm483_vm1, %v10853_v54, 0.0  ;;  %v4777_v8 = vpack.c.bf16 %v4761_v28, %v4761_v28 }
 0xcd6   :  { %4511 = vadd.xlane.f32.xlu2 %v4510_v21 }
 0xcd7   :  { %v5019_v36 = vpop.f32.mrf.mxu0  ;;  %v4977_v49 = vunpack.c.l.b16 %v4777_v8 }
 0xcd8   :  { %v5068_v7 = vpop.f32.mrf.mxu1  ;;  %v5020_v38 = vadd.f32 %v10864_v3, %v5019_v36 }
 0xcd9   :  { %v5069_v23 = vadd.f32 %v10859_v10, %v5068_v7  ;;  %v4978_v9 = vpack.c.b16 %v4977_v49, %v4976_v31 }
 0xcda   :  { %v5157_v32 = vpack.c.bf16 %v5020_v38, %v5020_v38 }
 0xcdb   :  { %v5173_v19 = vpack.c.bf16 %v5069_v23, %v5069_v23 }
 0xcdc   :  { %v5207_v21 = vunpack.c.l.b16 %v5157_v32 }
 0xcdd   :  { %v5212_v60 = vunpack.c.l.b16 %v5173_v19 }
 0xcdf   :  { %v5021_v22 = vpop.f32.mrf.mxu0 }
 0xce0   :  { %v5070_v48 = vpop.f32.mrf.mxu1  ;;  %v5022_v57 = vadd.f32 %v10864_v3, %v5021_v22 }
 0xce1   :  { %v5071_v6 = vadd.f32 %v10859_v10, %v5070_v48 }
 0xce2   :  { %v5158_v44 = vpack.c.bf16 %v5022_v57, %v5022_v57 }
 0xce3   :  { %v5174_v18 = vpack.c.bf16 %v5071_v6, %v5071_v6  ;;  %7711 = vmatmul.msk.bf16.vlgmr.msra.gmra.mxu3 %vm483_vm1, %v4978_v9 }
 0xce4   :  { %v5208_v47 = vunpack.c.l.b16 %v5158_v44 }
 0xce5   :  { %v5213_v12 = vunpack.c.l.b16 %v5174_v18 }
 0xce6   :  { %v5209_v8 = vpack.c.b16 %v5208_v47, %v5207_v21 }
 0xce7   :  { %v5214_v51 = vpack.c.b16 %v5213_v12, %v5212_v60  ;;  %v5024_v63 = vpop.f32.mrf.mxu0 }
 0xce8   :  { %v5073_v16 = vpop.f32.mrf.mxu1  ;;  %v5025_v48 = vadd.f32 %v10864_v3, %v5024_v63 }
 0xce9   :  { %v5219_v29 = vsel %vm483_vm1, %v5214_v51, 0  ;;  %v5074_v28 = vadd.f32 %v10859_v10, %v5073_v16 }
 0xcea   :  { %5228 = vmatpush.bf16.xpose.msrb.mxu3 %v5219_v29  ;;  %v5159_v57 = vpack.c.bf16 %v5025_v48, %v5025_v48 }
 0xceb   :  { %v5175_v13 = vpack.c.bf16 %v5074_v28, %v5074_v28 }
 0xcec   :  { %v5237_v51 = vunpack.c.l.b16 %v5159_v57 }
 0xced   :  { %v5242_v36 = vunpack.c.l.b16 %v5175_v13 }
 0xcef   :  { %v5026_v52 = vpop.f32.mrf.mxu0 }
 0xcf0   :  { %v5075_v7 = vpop.f32.mrf.mxu1  ;;  %v5027_v31 = vadd.f32 %v10864_v3, %v5026_v52 }
 0xcf1   :  { %v5076_v49 = vadd.f32 %v10859_v10, %v5075_v7 }
 0xcf2   :  { %v5160_v18 = vpack.c.bf16 %v5027_v31, %v5027_v31 }
 0xcf3   :  { %v5176_v23 = vpack.c.bf16 %v5076_v49, %v5076_v49  ;;  %7736 = vmatmul.msk.bf16.vlgmr.msrb.gmra.mxu3 %vm483_vm1, %v5209_v8 }
 0xcf4   :  { %v5238_v12 = vunpack.c.l.b16 %v5160_v18 }
 0xcf5   :  { %v5243_v22 = vunpack.c.l.b16 %v5176_v23 }
 0xcf6   :  { %v5239_v29 = vpack.c.b16 %v5238_v12, %v5237_v51 }
 0xcf7   :  { %v5244_v9 = vpack.c.b16 %v5243_v22, %v5242_v36  ;;  %v5029_v19 = vpop.f32.mrf.mxu0 }
 0xcf8   :  { %v5078_v6 = vpop.f32.mrf.mxu1  ;;  %v5030_v7 = vadd.f32 %v10864_v3, %v5029_v19 }
 0xcf9   :  { %v5249_v60 = vsel %vm483_vm1, %v5244_v9, 0  ;;  %v5079_v38 = vadd.f32 %v10859_v10, %v5078_v6 }
 0xcfa   :  { %5258 = vmatpush.bf16.xpose.msra.mxu3 %v5249_v60  ;;  %v5161_v31 = vpack.c.bf16 %v5030_v7, %v5030_v7 }
 0xcfb   :  { %v5177_v32 = vpack.c.bf16 %v5079_v38, %v5079_v38 }
 0xcfc   :  { %v5267_v9 = vunpack.c.l.b16 %v5161_v31 }
 0xcfd   :  { %v5272_v63 = vunpack.c.l.b16 %v5177_v32 }
 0xcff   :  { %v5031_v16 = vpop.f32.mrf.mxu0 }
 0xd00   :  { %v5080_v44 = vpop.f32.mrf.mxu1  ;;  %v5032_v21 = vadd.f32 %v10864_v3, %v5031_v16 }
 0xd01   :  { %v5081_v47 = vadd.f32 %v10859_v10, %v5080_v44 }
 0xd02   :  { %v5162_v23 = vpack.c.bf16 %v5032_v21, %v5032_v21 }
 0xd03   :  { %v5178_v28 = vpack.c.bf16 %v5081_v47, %v5081_v47  ;;  %7737 = vmatmul.msk.bf16.vlgmr.msra.gmra.mxu3 %vm483_vm1, %v5239_v29 }
 0xd04   :  { %v5268_v22 = vunpack.c.l.b16 %v5162_v23 }
 0xd05   :  { %v5273_v52 = vunpack.c.l.b16 %v5178_v28 }
 0xd06   :  { %v5269_v60 = vpack.c.b16 %v5268_v22, %v5267_v9 }
 0xd07   :  { %v5274_v8 = vpack.c.b16 %v5273_v52, %v5272_v63  ;;  %v5034_v13 = vpop.f32.mrf.mxu0 }
 0xd08   :  { %v5083_v49 = vpop.f32.mrf.mxu1  ;;  %v5035_v44 = vadd.f32 %v10864_v3, %v5034_v13 }
 0xd09   :  { %v5279_v36 = vsel %vm483_vm1, %v5274_v8, 0  ;;  %v5084_v48 = vadd.f32 %v10859_v10, %v5083_v49 }
 0xd0a   :  { %5288 = vmatpush.bf16.xpose.msrb.mxu3 %v5279_v36  ;;  %v5163_v21 = vpack.c.bf16 %v5035_v44, %v5035_v44 }
 0xd0b   :  { %v5179_v57 = vpack.c.bf16 %v5084_v48, %v5084_v48 }
 0xd0c   :  { %v5297_v8 = vunpack.c.l.b16 %v5163_v21 }
 0xd0d   :  { %v5302_v19 = vunpack.c.l.b16 %v5179_v57 }
 0xd0f   :  { %v5036_v6 = vpop.f32.mrf.mxu0 }
 0xd10   :  { %v5085_v18 = vpop.f32.mrf.mxu1  ;;  %v5037_v51 = vadd.f32 %v10864_v3, %v5036_v6 }
 0xd11   :  { %v5086_v12 = vadd.f32 %v10859_v10, %v5085_v18 }
 0xd12   :  { %v5164_v28 = vpack.c.bf16 %v5037_v51, %v5037_v51 }
 0xd13   :  { %v5180_v38 = vpack.c.bf16 %v5086_v12, %v5086_v12  ;;  %7738 = vmatmul.msk.bf16.vlgmr.msrb.gmra.mxu3 %vm483_vm1, %v5269_v60 }
 0xd14   :  { %v5298_v52 = vunpack.c.l.b16 %v5164_v28 }
 0xd15   :  { %v5303_v16 = vunpack.c.l.b16 %v5180_v38 }
 0xd16   :  { %v5299_v36 = vpack.c.b16 %v5298_v52, %v5297_v8 }
 0xd17   :  { %v5304_v29 = vpack.c.b16 %v5303_v16, %v5302_v19  ;;  %v5039_v32 = vpop.f32.mrf.mxu0 }
 0xd18   :  { %v5088_v47 = vpop.f32.mrf.mxu1  ;;  %v5040_v18 = vadd.f32 %v10864_v3, %v5039_v32 }
 0xd19   :  { %v5309_v63 = vsel %vm483_vm1, %v5304_v29, 0  ;;  %v5089_v7 = vadd.f32 %v10859_v10, %v5088_v47 }
 0xd1a   :  { %5318 = vmatpush.bf16.xpose.msra.mxu3 %v5309_v63  ;;  %v5165_v51 = vpack.c.bf16 %v5040_v18, %v5040_v18 }
 0xd1b   :  { %v5181_v31 = vpack.c.bf16 %v5089_v7, %v5089_v7 }
 0xd1c   :  { %v5327_v47 = vunpack.c.l.b16 %v5165_v51 }
 0xd1d   :  { %v5332_v13 = vunpack.c.l.b16 %v5181_v31 }
 0xd1f   :  { %v5041_v49 = vpop.f32.mrf.mxu0 }
 0xd20   :  { %v5090_v23 = vpop.f32.mrf.mxu1  ;;  %v5042_v9 = vadd.f32 %v10864_v3, %v5041_v49 }
 0xd21   :  { %v5091_v22 = vadd.f32 %v10859_v10, %v5090_v23 }
 0xd22   :  { %v5166_v38 = vpack.c.bf16 %v5042_v9, %v5042_v9 }
 0xd23   :  { %v5182_v48 = vpack.c.bf16 %v5091_v22, %v5091_v22  ;;  %7739 = vmatmul.msk.bf16.vlgmr.msra.gmra.mxu3 %vm483_vm1, %v5299_v36 }
 0xd24   :  { %v5328_v44 = vunpack.c.l.b16 %v5166_v38 }
 0xd25   :  { %v5333_v6 = vunpack.c.l.b16 %v5182_v48 }
 0xd26   :  { %v5329_v21 = vpack.c.b16 %v5328_v44, %v5327_v47 }
 0xd27   :  { %v5334_v60 = vpack.c.b16 %v5333_v6, %v5332_v13  ;;  %v5044_v57 = vpop.f32.mrf.mxu0 }
 0xd28   :  { %v5093_v12 = vpop.f32.mrf.mxu1  ;;  %v10893_v16 = vpop.xlane.xlu0 %4487  ;;  %v5045_v31 = vadd.f32 %v10864_v3, %v5044_v57 }
 0xd29   :  { %v5339_v19 = vsel %vm483_vm1, %v5334_v60, 0  ;;  %v5094_v29 = vadd.f32 %v10859_v10, %v5093_v12  ;;  %8127 = vrcp.f32 %v10893_v16  ;;  %vm4587_vm5 = vweird.f32 %v10893_v16 }
 0xd2a   :  { %5348 = vmatpush.bf16.xpose.msrb.mxu3 %v5339_v19  ;;  %v5167_v60 = vpack.c.bf16 %v5045_v31, %v5045_v31 }
 0xd2b   :  { %v5183_v32 = vpack.c.bf16 %v5094_v29, %v5094_v29 }
 0xd2c   :  { %v5357_v44 = vunpack.c.l.b16 %v5167_v60 }
 0xd2d   :  { %v5362_v49 = vunpack.c.l.b16 %v5183_v32 }
 0xd2f   :  { %v5046_v28 = vpop.f32.mrf.mxu0  ;;  %v8128_v8 = vpop.eup %8127 }
 0xd30   :  { %v5095_v63 = vpop.f32.mrf.mxu1  ;;  %v5047_v23 = vadd.f32 %v10864_v3, %v5046_v28  ;;  %v4583_v13 = vmul.f32 %v8128_v8, %v10893_v16  ;;  %v10903_v12 = vpop.xlane.xlu0 %4514  ;;  %vm4588_vm4 = vweird.f32 %v8128_v8 }
 0xd31   :  { %v5096_v52 = vadd.f32 %v10859_v10, %v5095_v63  ;;  %8129 = vrcp.f32 %v10903_v12  ;;  %vm10915_vm6 = vmor %vm4587_vm5, %vm4588_vm4  ;;  %vm4722_vm15 = vweird.f32 %v10903_v12 }
 0xd32   :  { %v5168_v6 = vpack.c.bf16 %v5047_v23, %v5047_v23  ;;  %v4584_v38 = vsub.f32 1.0, %v4583_v13  ;;  %v4593_v23 = vand.u32 2147483648, %v10893_v16  ;;  %v4591_v13 = vand.u32 2147483647, %v10893_v16 }
 0xd33   :  { %v5184_v7 = vpack.c.bf16 %v5096_v52, %v5096_v52  ;;  %7740 = vmatmul.msk.bf16.vlgmr.msrb.gmra.mxu3 %vm483_vm1, %v5329_v21 }
 0xd34   :  { %v5358_v19 = vunpack.c.l.b16 %v5168_v6  ;;  %v4585_v29 = vmul.f32 %v8128_v8, %v4584_v38  ;;  %vm4592_vm7 = vcmp.eq.f32.partialorder %v4591_v13, 8.507059e+37 }
 0xd35   :  { %v5363_v36 = vunpack.c.l.b16 %v5184_v7 }
 0xd36   :  { %v5359_v63 = vpack.c.b16 %v5358_v19, %v5357_v44 }
 0xd37   :  { %v5364_v22 = vpack.c.b16 %v5363_v36, %v5362_v49  ;;  %v5049_v48 = vpop.f32.mrf.mxu0  ;;  %v10909_v7 = vpop.eup %8129  ;;  %v4586_v49 = vadd.f32 %v8128_v8, %v4585_v29  ;;  %v4594_v29 = vor.u32 1.1754944e-38, %v4593_v23 }
 0xd38   :  { %v5098_v9 = vpop.f32.mrf.mxu1  ;;  %v5050_v60 = vadd.f32 %v10864_v3, %v5049_v48  ;;  %vm4723_vm12 = vweird.f32 %v10909_v7 }
 0xd39   :  { %v5369_v18 = vsel %vm483_vm1, %v5364_v22, 0  ;;  %v5099_v51 = vadd.f32 %v10859_v10, %v5098_v9  ;;  %v4590_v19 = vsel %vm10915_vm6, %v8128_v8, %v4586_v49  ;;  %vm10947_vm2 = vmor %vm4722_vm15, %vm4723_vm12 }
 0xd3a   :  { %5378 = vmatpush.bf16.xpose.msra.mxu3 %v5369_v18  ;;  %v4718_v18 = vmul.f32 %v10909_v7, %v10903_v12 }
 0xd3b   :  { %v5185_v21 = vpack.c.bf16 %v5099_v51, %v5099_v51 }
 0xd3c   :  { %v4719_v48 = vsub.f32 1.0, %v4718_v18 }
 0xd3d   :  { %v5392_v36 = vunpack.c.l.b16 %v5185_v21 }
 0xd3e   :  { %v4720_v13 = vmul.f32 %v10909_v7, %v4719_v48 }
 0xd3f   :  { %v5051_v57 = vpop.f32.mrf.mxu0 }
 0xd40   :  { %v5100_v47 = vpop.f32.mrf.mxu1  ;;  %v4491_v28 = vpop.xlane.xlu1 %4490  ;;  %v5052_v31 = vadd.f32 %v10864_v3, %v5051_v57  ;;  %v4721_v48 = vadd.f32 %v10909_v7, %v4720_v13 }
 0xd41   :  { %v5101_v32 = vadd.f32 %v10859_v10, %v5100_v47  ;;  %8131 = vrcp.f32 %v4491_v28  ;;  %v4606_v8 = vand.u32 2147483647, %v4491_v28  ;;  %vm4602_vm9 = vweird.f32 %v4491_v28 }
 0xd42   :  { %v5170_v47 = vpack.c.bf16 %v5052_v31, %v5052_v31 }
 0xd43   :  { %v5186_v52 = vpack.c.bf16 %v5101_v32, %v5101_v32  ;;  %7741 = vmatmul.msk.bf16.vlgmr.msra.gmra.mxu3 %vm483_vm1, %v5359_v63  ;;  %v4595_v32 = vsel %vm4592_vm7, %v4594_v29, %v4590_v19  ;;  %vm4607_vm11 = vcmp.eq.f32.partialorder %v4606_v8, 8.507059e+37 }
 0xd44   :  { %v5388_v23 = vunpack.c.l.b16 %v5170_v47  ;;  %v4596_v31 = vmul.f32 %v10790_v43, %v4595_v32  ;;  %v4728_v43 = vand.u32 2147483648, %v10903_v12 }
 0xd45   :  { %v5393_v22 = vunpack.c.l.b16 %v5186_v52  ;;  %v5169_v52 = vpack.c.bf16 %v5050_v60, %v5050_v60 }
 0xd46   :  { %v4766_v47 = vpack.c.bf16 %v4596_v31, %v4596_v31 }
 0xd47   :  { %v8132_v9 = vpop.eup %8131  ;;  %v5394_v38 = vpack.c.b16 %v5393_v22, %v5392_v36  ;;  %v5054_v44 = vpop.f32.mrf.mxu0  ;;  %v4608_v36 = vand.u32 2147483648, %v4491_v28 }
 0xd48   :  { %v4598_v51 = vmul.f32 %v8132_v9, %v4491_v28  ;;  %v5103_v57 = vpop.f32.mrf.mxu1  ;;  %vm4603_vm8 = vweird.f32 %v8132_v9  ;;  %v4836_v31 = vunpack.c.l.b16 %v4766_v47 }
 0xd49   :  { %v10924_v16 = vpop.xlane.xlu2 %4511  ;;  %v5399_v63 = vsel %vm483_vm1, %v5394_v38, 0  ;;  %v5104_v49 = vadd.f32 %v10859_v10, %v5103_v57  ;;  %v5387_v38 = vunpack.c.l.b16 %v5169_v52  ;;  %vm4604_vm10 = vmor %vm4602_vm9, %vm4603_vm8 }
 0xd4a   :  { %v4599_v21 = vsub.f32 1.0, %v4598_v51  ;;  %8133 = vrcp.f32 %v10924_v16  ;;  %5408 = vmatpush.bf16.xpose.msrb.mxu3 %v5399_v63  ;;  %v4609_v51 = vor.u32 1.1754944e-38, %v4608_v36  ;;  %v4711_v8 = vand.u32 2147483647, %v10924_v16 }
 0xd4b   :  { %v5187_v18 = vpack.c.bf16 %v5104_v49, %v5104_v49  ;;  %v5389_v29 = vpack.c.b16 %v5388_v23, %v5387_v38  ;;  %vm4707_vm3 = vweird.f32 %v10924_v16 }
 0xd4c   :  { %v4600_v22 = vmul.f32 %v8132_v9, %v4599_v21  ;;  %vm4712_vm5 = vcmp.eq.f32.partialorder %v4711_v8, 8.507059e+37 }
 0xd4e   :  { %v4601_v6 = vadd.f32 %v8132_v9, %v4600_v22  ;;  %v5422_v22 = vunpack.c.l.b16 %v5187_v18 }
 0xd4f   :  { %v5056_v32 = vpop.f32.mrf.mxu0 }
 0xd50   :  { %v8134_v63 = vpop.eup %8133  ;;  %v4605_v19 = vsel %vm4604_vm10, %v8132_v9, %v4601_v6  ;;  %v5105_v60 = vpop.f32.mrf.mxu1  ;;  %v5057_v23 = vadd.f32 %v10864_v3, %v5056_v32  ;;  %v4726_v6 = vand.u32 2147483647, %v10903_v12  ;;  %v4729_v12 = vor.u32 1.1754944e-38, %v4728_v43 }
 0xd51   :  { %v4610_v21 = vsel %vm4607_vm11, %v4609_v51, %v4605_v19  ;;  %v4703_v53 = vmul.f32 %v8134_v63, %v10924_v16  ;;  %v5106_v57 = vadd.f32 %v10859_v10, %v5105_v60  ;;  %v4713_v10 = vand.u32 2147483648, %v10924_v16 }
 0xd52   :  { %v4611_v28 = vmul.f32 %v10827_v56, %v4610_v21  ;;  %vm4708_vm14 = vweird.f32 %v8134_v63  ;;  %v5055_v51 = vadd.f32 %v10864_v3, %v5054_v44  ;;  %v4725_v60 = vsel %vm10947_vm2, %v10909_v7, %v4721_v48  ;;  %v8344_v7 = vld [vmem:[%s12207_s2 + $0x58] sm:$0xff] }
 0xd53   :  { %v4704_v9 = vsub.f32 1.0, %v4703_v53  ;;  %v5188_v52 = vpack.c.bf16 %v5106_v57, %v5106_v57  ;;  %7742 = vmatmul.msk.bf16.vlgmr.msrb.gmra.mxu3 %vm483_vm1, %v5389_v29  ;;  %vm4709_vm4 = vmor %vm4707_vm3, %vm4708_vm14  ;;  %v4714_v21 = vor.u32 1.1754944e-38, %v4713_v10  ;;  %v5172_v47 = vpack.c.bf16 %v5057_v23, %v5057_v23 }
 0xd54   :  { %v4767_v36 = vpack.c.bf16 %v4611_v28, %v4611_v28  ;;  %vm4727_vm6 = vcmp.eq.f32.partialorder %v4726_v6, 8.507059e+37  ;;  %v5171_v16 = vpack.c.bf16 %v5055_v51, %v5055_v51  ;;  %v8346_v6 = vld [vmem:[#allocation2] ss:$0 sm:$0xff] }
 0xd55   :  { %v4705_v49 = vmul.f32 %v8134_v63, %v4704_v9  ;;  %v5423_v56 = vunpack.c.l.b16 %v5188_v52  ;;  %v4730_v44 = vsel %vm4727_vm6, %v4729_v12, %v4725_v60  ;;  %v5418_v32 = vunpack.c.l.b16 %v5172_v47  ;;  %v8345_v52 = vld [vmem:[%s12207_s2 + $0x50] sm:$0xff] }
 0xd56   :  { %v4837_v53 = vunpack.c.l.b16 %v4767_v36  ;;  %v10943_v13 = vpop.f32.mrf.mxu3  ;;  %v5417_v9 = vunpack.c.l.b16 %v5171_v16 }
 0xd57   :  { %v4706_v19 = vadd.f32 %v8134_v63, %v4705_v49  ;;  %v5424_v18 = vpack.c.b16 %v5423_v56, %v5422_v22 }
 0xd58   :  { %v4838_v29 = vpack.c.b16 %v4837_v53, %v4836_v31  ;;  %v5419_v22 = vpack.c.b16 %v5418_v32, %v5417_v9 }
 0xd59   :  { %v4710_v57 = vsel %vm4709_vm4, %v8134_v63, %v4706_v19  ;;  %v5429_v28 = vsel %vm483_vm1, %v5424_v18, 0  ;;  %v4731_v63 = vmul.f32 %v10803_v26, %v4730_v44 }
 0xd5a   :  { %v4715_v3 = vsel %vm4712_vm5, %v4714_v21, %v4710_v57  ;;  %5438 = vmatpush.bf16.xpose.msra.mxu3 %v5429_v28  ;;  %7706 = vmatmul.msk.bf16.vlgmr.msra.gmra.mxu2 %vm483_vm1, %v4838_v29  ;;  %v8347_v21 = vld [vmem:[#allocation2 + $0x1] ss:$0 sm:$0xff] }
 0xd5b   :  { %5114 = vmatpush.bf16.msra.mxu2 %v8344_v7  ;;  %v4716_v43 = vmul.f32 %v10853_v54, %v4715_v3  ;;  %v4775_v8 = vpack.c.bf16 %v4731_v63, %v4731_v63 }
 0xd5d   :  { %v4774_v36 = vpack.c.bf16 %v4716_v43, %v4716_v43  ;;  %v4949_v49 = vunpack.c.l.b16 %v4775_v8  ;;  %v8348_v43 = vld [vmem:[#allocation2 + $0x2] ss:$0 sm:$0xff] }
 0xd5e   :  { %v10964_v48 = vpop.f32.mrf.mxu3 }
 0xd5f   :  { %5115 = vmatpush.bf16.msra.mxu2 %v8345_v52  ;;  %v4948_v10 = vunpack.c.l.b16 %v4774_v36 }
 0xd61   :  { %v4950_v54 = vpack.c.b16 %v4949_v49, %v4948_v10  ;;  %v8349_v10 = vld [vmem:[#allocation2 + $0x3] ss:$0 sm:$0xff] }
 0xd63   :  { %7743 = vmatmul.msk.bf16.vlgmr.msra.gmra.mxu3 %vm483_vm1, %v5419_v22 }
 0xd66   :  { %v10970_v23 = vpop.f32.mrf.mxu3 }
 0xd6a   :  { %7710 = vmatmul.msk.bf16.vlgmr.msrb.gmra.mxu2 %vm483_vm1, %v4950_v54 }
 0xd6e   :  { %v10973_v26 = vpop.f32.mrf.mxu3 }
 0xd76   :  { %v5230_v56 = vpop.f32.mrf.mxu3 }
 0xd77   :  { %v5445_v31 = vmul.f32 0.25, %v5230_v56 }
 0xd79   :  { %v5461_v53 = vadd.f32 %v8346_v6, %v5445_v31 }
 0xd7a   :  { %7728 = vmatmul.msk.bf16.vlgmr.msra.gmra.mxu2 %vm223_vm0, %v10208_v33 }
 0xd7b   :  { %v5477_v38 = vsel %vm483_vm1, %v5461_v53, -inf }
 0xd7c   :  { %5478 = vmax.xlane.f32.xlu1 %v5477_v38 }
 0xd7e   :  { %v5232_v51 = vpop.f32.mrf.mxu3 }
 0xd7f   :  { %v5446_v19 = vmul.f32 0.25, %v5232_v51 }
 0xd81   :  { %v5462_v18 = vadd.f32 %v8346_v6, %v5446_v19  ;;  %v8350_v19 = vld [vmem:[#allocation2 + $0x4] ss:$0 sm:$0xff] }
 0xd83   :  { %v5480_v60 = vsel %vm483_vm1, %v5462_v18, -inf }
 0xd84   :  { %5481 = vmax.xlane.f32.xlu2 %v5480_v60 }
 0xd86   :  { %v5260_v12 = vpop.f32.mrf.mxu3 }
 0xd87   :  { %v5447_v29 = vmul.f32 0.25, %v5260_v12 }
 0xd89   :  { %v10979_v57 = vadd.f32 %v8347_v21, %v5447_v29 }
 0xd8a   :  { %7729 = vmatmul.msk.bf16.gmra.mxu2 %vm223_vm0, %v10265_v20 }
 0xd8b   :  { %v5483_v33 = vsel %vm483_vm1, %v10979_v57, -inf }
 0xd8c   :  { %5484 = vmax.xlane.f32.xlu0 %v5483_v33 }
 0xd8e   :  { %v5262_v47 = vpop.f32.mrf.mxu3 }
 0xd8f   :  { %v5448_v28 = vmul.f32 0.25, %v5262_v47 }
 0xd91   :  { %v10985_v3 = vadd.f32 %v8347_v21, %v5448_v28 }
 0xd93   :  { %v5486_v44 = vsel %vm483_vm1, %v10985_v3, -inf }
 0xd94   :  { %5487 = vmax.xlane.f32.xlu1 %v5486_v44 }
 0xd96   :  { %v5290_v16 = vpop.f32.mrf.mxu3 }
 0xd97   :  { %v5449_v7 = vmul.f32 0.25, %v5290_v16 }
 0xd99   :  { %v10989_v32 = vadd.f32 %v8348_v43, %v5449_v7 }
 0xd9a   :  { %7730 = vmatmul.msk.bf16.gmra.mxu2 %vm223_vm0, %v10294_v2 }
 0xd9b   :  { %v5489_v20 = vsel %vm483_vm1, %v10989_v32, -inf }
 0xd9c   :  { %5490 = vmax.xlane.f32.xlu2 %v5489_v20 }
 0xd9e   :  { %v5292_v63 = vpop.f32.mrf.mxu3 }
 0xd9f   :  { %v5450_v9 = vmul.f32 0.25, %v5292_v63 }
 0xda1   :  { %v10995_v52 = vadd.f32 %v8348_v43, %v5450_v9 }
 0xda3   :  { %v5492_v36 = vsel %vm483_vm1, %v10995_v52, -inf }
 0xda4   :  { %5493 = vmax.xlane.f32.xlu0 %v5492_v36 }
 0xda6   :  { %v5320_v22 = vpop.f32.mrf.mxu3 }
 0xda7   :  { %v5451_v8 = vmul.f32 0.25, %v5320_v22 }
 0xda9   :  { %v10999_v49 = vadd.f32 %v8349_v10, %v5451_v8 }
 0xdaa   :  { %7731 = vmatmul.msk.bf16.gmra.mxu2 %vm223_vm0, %v10325_v50 }
 0xdab   :  { %v5495_v2 = vsel %vm483_vm1, %v10999_v49, -inf }
 0xdac   :  { %5496 = vmax.xlane.f32.xlu1 %v5495_v2 }
 0xdae   :  { %v5322_v54 = vpop.f32.mrf.mxu3 }
 0xdaf   :  { %v5452_v56 = vmul.f32 0.25, %v5322_v54 }
 0xdb1   :  { %v11005_v31 = vadd.f32 %v8349_v10, %v5452_v56  ;;  %v11038_v10 = vld [vmem:[#allocation5 + $0x5] ss:$0 sm:$0xff] }
 0xdb3   :  { %v5498_v6 = vsel %vm483_vm1, %v11005_v31, -inf }
 0xdb4   :  { %5499 = vmax.xlane.f32.xlu2 %v5498_v6 }
 0xdb6   :  { %v5350_v38 = vpop.f32.mrf.mxu3 }
 0xdb7   :  { %v5453_v51 = vmul.f32 0.25, %v5350_v38 }
 0xdb9   :  { %v11009_v60 = vadd.f32 %v8350_v19, %v5453_v51 }
 0xdba   :  { %7732 = vmatmul.msk.bf16.gmra.mxu2 %vm223_vm0, %v10382_v30 }
 0xdbb   :  { %v5501_v50 = vsel %vm483_vm1, %v11009_v60, -inf }
 0xdbc   :  { %5502 = vmax.xlane.f32.xlu2 %v5501_v50 }
 0xdbe   :  { %v5352_v21 = vpop.f32.mrf.mxu3 }
 0xdbf   :  { %v5454_v20 = vmul.f32 0.25, %v5352_v21 }
 0xdc1   :  { %v11033_v36 = vadd.f32 %v8350_v19, %v5454_v20 }
 0xdc3   :  { %v5504_v56 = vsel %vm483_vm1, %v11033_v36, -inf }
 0xdca   :  { %7733 = vmatmul.msk.bf16.gmra.mxu2 %vm223_vm0, %v10429_v37  ;;  %v5380_v37 = vpop.f32.mrf.mxu3 }
 0xdda   :  { %7734 = vmatmul.msk.bf16.gmra.mxu2 %vm223_vm0, %v10493_v17 }
 0xddd   :  { %v11019_v12 = vpop.f32.mrf.mxu2 }
 0xde5   :  { %v11021_v29 = vpop.f32.mrf.mxu2 }
 0xdea   :  { %7735 = vmatmul.msk.bf16.gmra.mxu2 %vm223_vm0, %v10531_v59 }
 0xded   :  { %v11025_v33 = vpop.f32.mrf.mxu2 }
 0xdef   :  { %v5479_v30 = vpop.xlane.xlu1 %5478 }
 0xdf0   :  { %v5525_v47 = vsub.f32 %v5461_v53, %v5479_v30  ;;  %v5382_v53 = vpop.f32.mrf.mxu3 }
 0xdf2   :  { %v5541_v28 = vmul.f32 1.442695, %v5525_v47 }
 0xdf4   :  { %8135 = vpow2.f32 %v5541_v28 }
 0xdf5   :  { %v11027_v44 = vpop.f32.mrf.mxu2 }
 0xdf7   :  { %v5482_v16 = vpop.xlane.xlu2 %5481 }
 0xdf8   :  { %v5526_v7 = vsub.f32 %v5462_v18, %v5482_v16  ;;  %v5410_v30 = vpop.f32.mrf.mxu3 }
 0xdfa   :  { %v11029_v17 = vpop.eup %8135  ;;  %v5543_v43 = vmul.f32 1.442695, %v5526_v7 }
 0xdfb   :  { %v5573_v63 = vsel %vm483_vm1, %v11029_v17, 0.0 }
 0xdfc   :  { %8137 = vpow2.f32 %v5543_v43  ;;  %5574 = vadd.xlane.f32.xlu0 %v5573_v63 }
 0xdfd   :  { %v5117_v59 = vpop.f32.mrf.mxu2 }
 0xdfe   :  { %v5118_v18 = vadd.f32 %v11038_v10, %v5117_v59 }
 0xdff   :  { %v5485_v9 = vpop.xlane.xlu0 %5484 }
 0xe00   :  { %v5527_v22 = vsub.f32 %v10979_v57, %v5485_v9  ;;  %v5189_v38 = vpack.c.bf16 %v5118_v18, %v5118_v18  ;;  %v5455_v18 = vmul.f32 0.25, %v5380_v37 }
 0xe02   :  { %v11036_v8 = vpop.eup %8137  ;;  %v5545_v2 = vmul.f32 1.442695, %v5527_v22  ;;  %v5884_v47 = vunpack.c.l.b16 %v5189_v38 }
 0xe03   :  { %v5576_v54 = vsel %vm483_vm1, %v11036_v8, 0.0 }
 0xe04   :  { %8139 = vpow2.f32 %v5545_v2  ;;  %5577 = vadd.xlane.f32.xlu1 %v5576_v54  ;;  %5505 = vmax.xlane.f32.xlu0 %v5504_v56  ;;  %v5412_v54 = vpop.f32.mrf.mxu3 }
 0xe05   :  { %v5119_v6 = vpop.f32.mrf.mxu2 }
 0xe06   :  { %v5120_v57 = vadd.f32 %v11038_v10, %v5119_v6 }
 0xe07   :  { %v5488_v51 = vpop.xlane.xlu1 %5487 }
 0xe08   :  { %v5190_v19 = vpack.c.bf16 %v5120_v57, %v5120_v57  ;;  %v5528_v50 = vsub.f32 %v10985_v3, %v5488_v51  ;;  %v8352_v57 = vld [vmem:[#allocation2 + $0x5] ss:$0 sm:$0xff] }
 0xe09   :  { %v11058_v51 = vadd.f32 %v8352_v57, %v5455_v18 }
 0xe0a   :  { %v11047_v21 = vpop.eup %8139  ;;  %v5885_v28 = vunpack.c.l.b16 %v5190_v19  ;;  %v5547_v16 = vmul.f32 1.442695, %v5528_v50 }
 0xe0b   :  { %v5579_v7 = vsel %vm483_vm1, %v11047_v21, 0.0 }
 0xe0c   :  { %v5886_v43 = vpack.c.b16 %v5885_v28, %v5884_v47  ;;  %8141 = vpow2.f32 %v5547_v16  ;;  %5580 = vadd.xlane.f32.xlu1 %v5579_v7  ;;  %v5456_v7 = vmul.f32 0.25, %v5382_v53 }
 0xe0d   :  { %v5122_v20 = vpop.f32.mrf.mxu2 }
 0xe0e   :  { %5898 = vmatpush.bf16.msrb.mxu0 %v5886_v43  ;;  %v5123_v3 = vadd.f32 %v11038_v10, %v5122_v20  ;;  %v5507_v20 = vsel %vm483_vm1, %v11058_v51, -inf  ;;  %v11067_v18 = vadd.f32 %v8352_v57, %v5456_v7 }
 0xe0f   :  { %v5491_v63 = vpop.xlane.xlu2 %5490 }
 0xe10   :  { %v5529_v59 = vsub.f32 %v10989_v32, %v5491_v63  ;;  %v5191_v6 = vpack.c.bf16 %v5123_v3, %v5123_v3  ;;  %v5458_v63 = vmul.f32 0.25, %v5412_v54 }
 0xe12   :  { %v11052_v9 = vpop.eup %8141  ;;  %v5549_v22 = vmul.f32 1.442695, %v5529_v59  ;;  %v5912_v37 = vunpack.c.l.b16 %v5191_v6 }
 0xe13   :  { %v5582_v2 = vsel %vm483_vm1, %v11052_v9, 0.0 }
 0xe14   :  { %8143 = vpow2.f32 %v5549_v22  ;;  %5583 = vadd.xlane.f32.xlu2 %v5582_v2  ;;  %v5440_v22 = vpop.f32.mrf.mxu3  ;;  %v8353_v2 = vld [vmem:[#allocation2 + $0x6] ss:$0 sm:$0xff] }
 0xe15   :  { %v5124_v56 = vpop.f32.mrf.mxu2 }
 0xe16   :  { %v5125_v38 = vadd.f32 %v11038_v10, %v5124_v56  ;;  %v11069_v56 = vadd.f32 %v8353_v2, %v5458_v63 }
 0xe17   :  { %v5494_v32 = vpop.xlane.xlu0 %5493 }
 0xe18   :  { %v5192_v19 = vpack.c.bf16 %v5125_v38, %v5125_v38  ;;  %v5530_v50 = vsub.f32 %v10995_v52, %v5494_v32  ;;  %v5457_v32 = vmul.f32 0.25, %v5410_v30  ;;  %v5516_v57 = vsel %vm483_vm1, %v11069_v56, -inf }
 0xe1a   :  { %v11061_v47 = vpop.eup %8143  ;;  %v5913_v28 = vunpack.c.l.b16 %v5192_v19  ;;  %v5551_v16 = vmul.f32 1.442695, %v5530_v50  ;;  %v5510_v50 = vsel %vm483_vm1, %v11067_v18, -inf  ;;  %v11082_v7 = vadd.f32 %v8353_v2, %v5457_v32 }
 0xe1b   :  { %v5585_v43 = vsel %vm483_vm1, %v11061_v47, 0.0 }
 0xe1c   :  { %v5914_v59 = vpack.c.b16 %v5913_v28, %v5912_v37  ;;  %8145 = vpow2.f32 %v5551_v16  ;;  %5586 = vadd.xlane.f32.xlu0 %v5585_v43  ;;  %5508 = vmax.xlane.f32.xlu2 %v5507_v20  ;;  %v5459_v37 = vmul.f32 0.25, %v5440_v22  ;;  %v8354_v43 = vld [vmem:[#allocation2 + $0x7] ss:$0 sm:$0xff]  ;;  %v5442_v63 = vpop.f32.mrf.mxu3 }
 0xe1d   :  { %v5127_v3 = vpop.f32.mrf.mxu2 }
 0xe1e   :  { %5926 = vmatpush.bf16.msrb.mxu1 %v5914_v59  ;;  %v5128_v38 = vadd.f32 %v11038_v10, %v5127_v3  ;;  %v11084_v20 = vadd.f32 %v8354_v43, %v5459_v37 }
 0xe1f   :  { %v5497_v52 = vpop.xlane.xlu1 %5496 }
 0xe20   :  { %v5531_v53 = vsub.f32 %v10999_v49, %v5497_v52  ;;  %v5193_v28 = vpack.c.bf16 %v5128_v38, %v5128_v38  ;;  %v5513_v38 = vsel %vm483_vm1, %v11082_v7, -inf }
 0xe22   :  { %v11072_v6 = vpop.eup %8145  ;;  %v5553_v54 = vmul.f32 1.442695, %v5531_v53  ;;  %v5940_v52 = vunpack.c.l.b16 %v5193_v28 }
 0xe23   :  { %v5588_v19 = vsel %vm483_vm1, %v11072_v6, 0.0 }
 0xe24   :  { %8147 = vpow2.f32 %v5553_v54  ;;  %5589 = vadd.xlane.f32.xlu1 %v5588_v19  ;;  %5511 = vmax.xlane.f32.xlu0 %v5510_v50  ;;  %v5460_v19 = vmul.f32 0.25, %v5442_v63  ;;  %v5519_v50 = vsel %vm483_vm1, %v11084_v20, -inf }
 0xe25   :  { %5517 = vmax.xlane.f32.xlu2 %v5516_v57  ;;  %v5129_v49 = vpop.f32.mrf.mxu2 }
 0xe26   :  { %v5130_v16 = vadd.f32 %v11038_v10, %v5129_v49  ;;  %v11095_v37 = vadd.f32 %v8354_v43, %v5460_v19 }
 0xe27   :  { %v5500_v30 = vpop.xlane.xlu2 %5499 }
 0xe28   :  { %v5194_v59 = vpack.c.bf16 %v5130_v16, %v5130_v16  ;;  %v5532_v3 = vsub.f32 %v11005_v31, %v5500_v30 }
 0xe2a   :  { %v11087_v22 = vpop.eup %8147  ;;  %v5941_v53 = vunpack.c.l.b16 %v5194_v59  ;;  %v5555_v54 = vmul.f32 1.442695, %v5532_v3  ;;  %v5522_v59 = vsel %vm483_vm1, %v11095_v37, -inf }
 0xe2b   :  { %v5591_v2 = vsel %vm483_vm1, %v11087_v22, 0.0 }
 0xe2c   :  { %v5942_v32 = vpack.c.b16 %v5941_v53, %v5940_v52  ;;  %8149 = vpow2.f32 %v5555_v54  ;;  %5514 = vmax.xlane.f32.xlu1 %v5513_v38  ;;  %5592 = vadd.xlane.f32.xlu0 %v5591_v2 }
 0xe2d   :  { %5520 = vmax.xlane.f32.xlu2 %v5519_v50  ;;  %v5132_v31 = vpop.f32.mrf.mxu2 }
 0xe2e   :  { %5954 = vmatpush.bf16.msrb.mxu2 %v5942_v32  ;;  %v5133_v16 = vadd.f32 %v11038_v10, %v5132_v31 }
 0xe2f   :  { %v5503_v57 = vpop.xlane.xlu2 %5502 }
 0xe30   :  { %v5533_v49 = vsub.f32 %v11009_v60, %v5503_v57  ;;  %v5195_v43 = vpack.c.bf16 %v5133_v16, %v5133_v16 }
 0xe32   :  { %v11098_v28 = vpop.eup %8149  ;;  %v5557_v30 = vmul.f32 1.442695, %v5533_v49  ;;  %v5968_v54 = vunpack.c.l.b16 %v5195_v43 }
 0xe33   :  { %v5594_v63 = vsel %vm483_vm1, %v11098_v28, 0.0 }
 0xe34   :  { %8151 = vpow2.f32 %v5557_v30  ;;  %5595 = vadd.xlane.f32.xlu1 %v5594_v63  ;;  %5523 = vmax.xlane.f32.xlu0 %v5522_v59 }
 0xe35   :  { %v5134_v3 = vpop.f32.mrf.mxu2 }
 0xe36   :  { %v5135_v52 = vadd.f32 %v11038_v10, %v5134_v3 }
 0xe38   :  { %v5196_v53 = vpack.c.bf16 %v5135_v52, %v5135_v52 }
 0xe3a   :  { %v11106_v60 = vpop.eup %8151  ;;  %v5969_v19 = vunpack.c.l.b16 %v5196_v53 }
 0xe3b   :  { %v5597_v38 = vsel %vm483_vm1, %v11106_v60, 0.0 }
 0xe3c   :  { %v5970_v2 = vpack.c.b16 %v5969_v19, %v5968_v54  ;;  %5598 = vadd.xlane.f32.xlu1 %v5597_v38 }
 0xe3d   :  { %v5137_v32 = vpop.f32.mrf.mxu2 }
 0xe3e   :  { %5982 = vmatpush.bf16.msrb.mxu3 %v5970_v2  ;;  %v5138_v50 = vadd.f32 %v11038_v10, %v5137_v32 }
 0xe40   :  { %v5197_v57 = vpack.c.bf16 %v5138_v50, %v5138_v50 }
 0xe42   :  { %v5996_v30 = vunpack.c.l.b16 %v5197_v57 }
 0xe45   :  { %v5139_v31 = vpop.f32.mrf.mxu2 }
 0xe46   :  { %v5140_v49 = vadd.f32 %v11038_v10, %v5139_v31 }
 0xe48   :  { %v5198_v16 = vpack.c.bf16 %v5140_v49, %v5140_v49 }
 0xe4a   :  { %v5997_v63 = vunpack.c.l.b16 %v5198_v16 }
 0xe4c   :  { %v5998_v59 = vpack.c.b16 %v5997_v63, %v5996_v30 }
 0xe4d   :  { %v5142_v3 = vpop.f32.mrf.mxu2 }
 0xe4e   :  { %6010 = vmatpush.bf16.msra.mxu0 %v5998_v59  ;;  %v5143_v43 = vadd.f32 %v11038_v10, %v5142_v3 }
 0xe50   :  { %v5199_v53 = vpack.c.bf16 %v5143_v43, %v5143_v43 }
 0xe52   :  { %v6024_v38 = vunpack.c.l.b16 %v5199_v53 }
 0xe55   :  { %v5144_v52 = vpop.f32.mrf.mxu2 }
 0xe56   :  { %v5145_v54 = vadd.f32 %v11038_v10, %v5144_v52 }
 0xe58   :  { %v5200_v19 = vpack.c.bf16 %v5145_v54, %v5145_v54 }
 0xe5a   :  { %v6025_v2 = vunpack.c.l.b16 %v5200_v19 }
 0xe5c   :  { %v6026_v32 = vpack.c.b16 %v6025_v2, %v6024_v38 }
 0xe5d   :  { %v5147_v41 = vpop.f32.mrf.mxu2 }
 0xe5e   :  { %6038 = vmatpush.bf16.msra.mxu1 %v6026_v32  ;;  %v5148_v50 = vadd.f32 %v11038_v10, %v5147_v41 }
 0xe60   :  { %v5201_v57 = vpack.c.bf16 %v5148_v50, %v5148_v50 }
 0xe62   :  { %v6052_v30 = vunpack.c.l.b16 %v5201_v57 }
 0xe65   :  { %v5149_v31 = vpop.f32.mrf.mxu2 }
 0xe66   :  { %v5150_v49 = vadd.f32 %v11038_v10, %v5149_v31 }
 0xe68   :  { %v5202_v16 = vpack.c.bf16 %v5150_v49, %v5150_v49 }
 0xe6a   :  { %v6053_v63 = vunpack.c.l.b16 %v5202_v16 }
 0xe6c   :  { %v6054_v59 = vpack.c.b16 %v6053_v63, %v6052_v30 }
 0xe6d   :  { %v5152_v3 = vpop.f32.mrf.mxu2 }
 0xe6e   :  { %6066 = vmatpush.bf16.msra.mxu2 %v6054_v59  ;;  %v5153_v52 = vadd.f32 %v11038_v10, %v5152_v3 }
 0xe6f   :  { %v5575_v43 = vpop.xlane.xlu0 %5574 }
 0xe70   :  { %8153 = vrcp.f32 %v5575_v43  ;;  %v5203_v19 = vpack.c.bf16 %v5153_v52, %v5153_v52  ;;  %v5632_v59 = vand.u32 2147483648, %v5575_v43  ;;  %vm5626_vm8 = vweird.f32 %v5575_v43 }
 0xe71   :  { %v5630_v52 = vand.u32 2147483647, %v5575_v43 }
 0xe72   :  { %v6080_v49 = vunpack.c.l.b16 %v5203_v19 }
 0xe73   :  { %vm5631_vm10 = vcmp.eq.f32.partialorder %v5630_v52, 8.507059e+37 }
 0xe75   :  { %v5154_v53 = vpop.f32.mrf.mxu2 }
 0xe76   :  { %v8154_v54 = vpop.eup %8153  ;;  %v5155_v38 = vadd.f32 %v11038_v10, %v5154_v53 }
 0xe77   :  { %v5622_v41 = vmul.f32 %v8154_v54, %v5575_v43  ;;  %v5506_v2 = vpop.xlane.xlu0 %5505  ;;  %v5578_v32 = vpop.xlane.xlu1 %5577  ;;  %vm5627_vm7 = vweird.f32 %v8154_v54 }
 0xe78   :  { %v5204_v50 = vpack.c.bf16 %v5155_v38, %v5155_v38  ;;  %v5534_v31 = vsub.f32 %v11033_v36, %v5506_v2  ;;  %8155 = vrcp.f32 %v5578_v32  ;;  %vm5628_vm9 = vmor %vm5626_vm8, %vm5627_vm7  ;;  %v5633_v36 = vor.u32 1.1754944e-38, %v5632_v59 }
 0xe79   :  { %v5623_v57 = vsub.f32 1.0, %v5622_v41  ;;  %vm5641_vm12 = vweird.f32 %v5578_v32 }
 0xe7a   :  { %v6081_v16 = vunpack.c.l.b16 %v5204_v50  ;;  %v5559_v30 = vmul.f32 1.442695, %v5534_v31  ;;  %v5647_v50 = vand.u32 2147483648, %v5578_v32 }
 0xe7b   :  { %v5624_v63 = vmul.f32 %v8154_v54, %v5623_v57  ;;  %v5645_v57 = vand.u32 2147483647, %v5578_v32 }
 0xe7c   :  { %v6082_v3 = vpack.c.b16 %v6081_v16, %v6080_v49  ;;  %8157 = vpow2.f32 %v5559_v30  ;;  %v5648_v16 = vor.u32 1.1754944e-38, %v5647_v50 }
 0xe7d   :  { %v5625_v15 = vadd.f32 %v8154_v54, %v5624_v63  ;;  %vm5646_vm15 = vcmp.eq.f32.partialorder %v5645_v57, 8.507059e+37 }
 0xe7e   :  { %v8156_v10 = vpop.eup %8155  ;;  %6094 = vmatpush.bf16.msra.mxu3 %v6082_v3 }
 0xe7f   :  { %v5629_v53 = vsel %vm5628_vm9, %v8154_v54, %v5625_v15  ;;  %v5637_v38 = vmul.f32 %v8156_v10, %v5578_v32  ;;  %v5581_v55 = vpop.xlane.xlu1 %5580  ;;  %vm5642_vm11 = vweird.f32 %v8156_v10 }
 0xe80   :  { %8159 = vrcp.f32 %v5581_v55  ;;  %v5634_v2 = vsel %vm5631_vm10, %v5633_v36, %v5629_v53  ;;  %vm5643_vm14 = vmor %vm5641_vm12, %vm5642_vm11  ;;  %vm5656_vm3 = vweird.f32 %v5581_v55 }
 0xe81   :  { %v5638_v19 = vsub.f32 1.0, %v5637_v38  ;;  %v5635_v49 = vmul.f32 %v11029_v17, %v5634_v2  ;;  %v5662_v17 = vand.u32 2147483648, %v5581_v55 }
 0xe82   :  { %v11119_v41 = vpop.eup %8157 }
 0xe83   :  { %v5639_v31 = vmul.f32 %v8156_v10, %v5638_v19  ;;  %v5600_v43 = vsel %vm483_vm1, %v11119_v41, 0.0  ;;  %v5861_v52 = vpack.c.bf16 %v5635_v49, %v5635_v49  ;;  %v5663_v49 = vor.u32 1.1754944e-38, %v5662_v17 }
 0xe84   :  { %5601 = vadd.xlane.f32.xlu2 %v5600_v43  ;;  %v5660_v43 = vand.u32 2147483647, %v5581_v55 }
 0xe85   :  { %v5640_v15 = vadd.f32 %v8156_v10, %v5639_v31  ;;  %v5879_v2 = vunpack.c.l.b16 %v5861_v52 }
 0xe86   :  { %v8160_v54 = vpop.eup %8159  ;;  %vm5661_vm5 = vcmp.eq.f32.partialorder %v5660_v43, 8.507059e+37 }
 0xe87   :  { %v5644_v30 = vsel %vm5643_vm14, %v8156_v10, %v5640_v15  ;;  %v5652_v63 = vmul.f32 %v8160_v54, %v5581_v55  ;;  %v5584_v59 = vpop.xlane.xlu2 %5583  ;;  %vm5657_vm2 = vweird.f32 %v8160_v54  ;;  %v8355_v55 = vld [vmem:[%s12209_s4 + $0x8] sm:$0xff] }
 0xe88   :  { %v5649_v3 = vsel %vm5646_vm15, %v5648_v16, %v5644_v30  ;;  %8161 = vrcp.f32 %v5584_v59  ;;  %vm5658_vm4 = vmor %vm5656_vm3, %vm5657_vm2  ;;  %v5677_v52 = vand.u32 2147483648, %v5584_v59  ;;  %vm5671_vm7 = vweird.f32 %v5584_v59 }
 0xe89   :  { %v5650_v53 = vmul.f32 %v11036_v8, %v5649_v3  ;;  %v5653_v38 = vsub.f32 1.0, %v5652_v63 }
 0xe8b   :  { %v5862_v36 = vpack.c.bf16 %v5650_v53, %v5650_v53  ;;  %v5654_v19 = vmul.f32 %v8160_v54, %v5653_v38 }
 0xe8d   :  { %v5880_v32 = vunpack.c.l.b16 %v5862_v36  ;;  %v5655_v31 = vadd.f32 %v8160_v54, %v5654_v19 }
 0xe8e   :  { %v8162_v50 = vpop.eup %8161 }
 0xe8f   :  { %v5881_v10 = vpack.c.b16 %v5880_v32, %v5879_v2  ;;  %v5659_v57 = vsel %vm5658_vm4, %v8160_v54, %v5655_v31  ;;  %v5667_v15 = vmul.f32 %v8162_v50, %v5584_v59  ;;  %v5587_v16 = vpop.xlane.xlu0 %5586  ;;  %v5509_v30 = vpop.xlane.xlu2 %5508  ;;  %vm5672_vm6 = vweird.f32 %v8162_v50 }
 0xe90   :  { %8163 = vrcp.f32 %v5587_v16  ;;  %v5535_v63 = vsub.f32 %v11058_v51, %v5509_v30  ;;  %v5664_v3 = vsel %vm5661_vm5, %v5663_v49, %v5659_v57  ;;  %v5675_v54 = vand.u32 2147483647, %v5584_v59  ;;  %vm5673_vm8 = vmor %vm5671_vm7, %vm5672_vm6 }
 0xe91   :  { %v5668_v8 = vsub.f32 1.0, %v5667_v15  ;;  %7744 = vmatmul.msk.bf16.vlgmr.msrb.gmra.mxu0 %vm483_vm1, %v5881_v10  ;;  %v5665_v36 = vmul.f32 %v11047_v21, %v5664_v3  ;;  %v5678_v51 = vor.u32 1.1754944e-38, %v5677_v52  ;;  %vm5686_vm10 = vweird.f32 %v5587_v16 }
 0xe92   :  { %6140 = vmatpush.bf16.msrb.mxu0 %v8355_v55  ;;  %v5561_v38 = vmul.f32 1.442695, %v5535_v63  ;;  %vm5676_vm9 = vcmp.eq.f32.partialorder %v5675_v54, 8.507059e+37  ;;  %v5690_v55 = vand.u32 2147483647, %v5587_v16 }
 0xe93   :  { %v5669_v53 = vmul.f32 %v8162_v50, %v5668_v8  ;;  %v5863_v30 = vpack.c.bf16 %v5665_v36, %v5665_v36 }
 0xe94   :  { %8165 = vpow2.f32 %v5561_v38  ;;  %vm5691_vm14 = vcmp.eq.f32.partialorder %v5690_v55, 8.507059e+37 }
 0xe95   :  { %v5670_v19 = vadd.f32 %v8162_v50, %v5669_v53  ;;  %v5692_v53 = vand.u32 2147483648, %v5587_v16  ;;  %v5907_v54 = vunpack.c.l.b16 %v5863_v30 }
 0xe96   :  { %v8164_v17 = vpop.eup %8163 }
 0xe97   :  { %v5674_v2 = vsel %vm5673_vm8, %v8162_v50, %v5670_v19  ;;  %v5682_v32 = vmul.f32 %v8164_v17, %v5587_v16  ;;  %v5512_v31 = vpop.xlane.xlu0 %5511  ;;  %v11131_v43 = vpop.xlane.xlu1 %5589  ;;  %vm5687_vm11 = vweird.f32 %v8164_v17 }
 0xe98   :  { %v5679_v10 = vsel %vm5676_vm9, %v5678_v51, %v5674_v2  ;;  %v5536_v57 = vsub.f32 %v11067_v18, %v5512_v31  ;;  %v5518_v15 = vpop.xlane.xlu2 %5517  ;;  %8167 = vrcp.f32 %v11131_v43  ;;  %vm5688_vm12 = vmor %vm5686_vm10, %vm5687_vm11  ;;  %v5693_v31 = vor.u32 1.1754944e-38, %v5692_v53 }
 0xe99   :  { %v5680_v21 = vmul.f32 %v11052_v9, %v5679_v10  ;;  %v5683_v59 = vsub.f32 1.0, %v5682_v32  ;;  %v5538_v49 = vsub.f32 %v11069_v56, %v5518_v15  ;;  %vm5701_vm2 = vweird.f32 %v11131_v43 }
 0xe9a   :  { %v5563_v8 = vmul.f32 1.442695, %v5536_v57  ;;  %v11137_v50 = vpop.eup %8165 }
 0xe9b   :  { %v5864_v63 = vpack.c.bf16 %v5680_v21, %v5680_v21  ;;  %v5684_v3 = vmul.f32 %v8164_v17, %v5683_v59  ;;  %v5567_v52 = vmul.f32 1.442695, %v5538_v49  ;;  %v5603_v18 = vsel %vm483_vm1, %v11137_v50, 0.0  ;;  %v8356_v59 = vld [vmem:[%s12209_s4] sm:$0xff] }
 0xe9c   :  { %8169 = vpow2.f32 %v5563_v8  ;;  %5604 = vadd.xlane.f32.xlu0 %v5603_v18 }
 0xe9d   :  { %v5908_v38 = vunpack.c.l.b16 %v5864_v63  ;;  %v5685_v9 = vadd.f32 %v8164_v17, %v5684_v3  ;;  %8171 = vpow2.f32 %v5567_v52 }
 0xe9e   :  { %v8168_v56 = vpop.eup %8167 }
 0xe9f   :  { %v5909_v36 = vpack.c.b16 %v5908_v38, %v5907_v54  ;;  %v5689_v19 = vsel %vm5688_vm12, %v8164_v17, %v5685_v9  ;;  %v5697_v51 = vmul.f32 %v8168_v56, %v11131_v43  ;;  %v11143_v2 = vpop.xlane.xlu0 %5592  ;;  %v5515_v32 = vpop.xlane.xlu1 %5514  ;;  %v5707_v17 = vand.u32 2147483648, %v11131_v43 }
 0xea0   :  { %v5521_v10 = vpop.xlane.xlu2 %5520  ;;  %8173 = vrcp.f32 %v11143_v2  ;;  %v5694_v16 = vsel %vm5691_vm14, %v5693_v31, %v5689_v19  ;;  %v5537_v21 = vsub.f32 %v11082_v7, %v5515_v32  ;;  %vm5702_vm15 = vweird.f32 %v8168_v56 }
 0xea1   :  { %v5698_v57 = vsub.f32 1.0, %v5697_v51  ;;  %v5539_v15 = vsub.f32 %v11084_v20, %v5521_v10  ;;  %7745 = vmatmul.msk.bf16.vlgmr.msrb.gmra.mxu1 %vm483_vm1, %v5909_v36  ;;  %v5705_v20 = vand.u32 2147483647, %v11131_v43  ;;  %v5695_v7 = vmul.f32 %v11061_v47, %v5694_v16  ;;  %vm5703_vm3 = vmor %vm5701_vm2, %vm5702_vm15 }
 0xea2   :  { %v11148_v30 = vpop.eup %8169  ;;  %6213 = vmatpush.bf16.msrb.mxu1 %v8356_v59  ;;  %v5565_v3 = vmul.f32 1.442695, %v5537_v21  ;;  %v5708_v54 = vor.u32 1.1754944e-38, %v5707_v17  ;;  %vm5716_vm5 = vweird.f32 %v11143_v2  ;;  %v5720_v17 = vand.u32 2147483647, %v11143_v2 }
 0xea3   :  { %v11155_v49 = vpop.eup %8171  ;;  %v5699_v8 = vmul.f32 %v8168_v56, %v5698_v57  ;;  %v5569_v63 = vmul.f32 1.442695, %v5539_v15  ;;  %v5606_v52 = vsel %vm483_vm1, %v11148_v30, 0.0  ;;  %vm5706_vm4 = vcmp.eq.f32.partialorder %v5705_v20, 8.507059e+37 }
 0xea4   :  { %v5612_v55 = vsel %vm483_vm1, %v11155_v49, 0.0  ;;  %5607 = vadd.xlane.f32.xlu1 %v5606_v52  ;;  %v5865_v47 = vpack.c.bf16 %v5695_v7, %v5695_v7  ;;  %v5722_v21 = vand.u32 2147483648, %v11143_v2  ;;  %vm5721_vm8 = vcmp.eq.f32.partialorder %v5720_v17, 8.507059e+37 }
 0xea5   :  { %v5700_v53 = vadd.f32 %v8168_v56, %v5699_v8  ;;  %8175 = vpow2.f32 %v5569_v63  ;;  %5613 = vadd.xlane.f32.xlu0 %v5612_v55 }
 0xea6   :  { %v8174_v18 = vpop.eup %8173  ;;  %8177 = vpow2.f32 %v5565_v3  ;;  %v5723_v7 = vor.u32 1.1754944e-38, %v5722_v21 }
 0xea7   :  { %v5704_v38 = vsel %vm5703_vm3, %v8168_v56, %v5700_v53  ;;  %v5712_v9 = vmul.f32 %v8174_v18, %v11143_v2  ;;  %v5524_v36 = vpop.xlane.xlu0 %5523  ;;  %v5596_v19 = vpop.xlane.xlu1 %5595  ;;  %vm5717_vm6 = vweird.f32 %v8174_v18 }
 0xea8   :  { %v5709_v51 = vsel %vm5706_vm4, %v5708_v54, %v5704_v38  ;;  %v5540_v32 = vsub.f32 %v11095_v37, %v5524_v36  ;;  %8179 = vrcp.f32 %v5596_v19  ;;  %vm5718_vm7 = vmor %vm5716_vm5, %vm5717_vm6  ;;  %v5737_v38 = vand.u32 2147483648, %v5596_v19 }
 0xea9   :  { %v5710_v43 = vmul.f32 %v11072_v6, %v5709_v51  ;;  %v5713_v31 = vsub.f32 1.0, %v5712_v9  ;;  %v5935_v6 = vunpack.c.l.b16 %v5865_v47  ;;  %v8357_v9 = vld [vmem:[#allocation8 + $0x8] sm:$0xff]  ;;  %v5735_v51 = vand.u32 2147483647, %v5596_v19 }
 0xeaa   :  { %v5571_v10 = vmul.f32 1.442695, %v5540_v32  ;;  %vm5731_vm10 = vweird.f32 %v5596_v19 }
 0xeab   :  { %v11167_v57 = vpop.eup %8175  ;;  %v5866_v15 = vpack.c.bf16 %v5710_v43, %v5710_v43  ;;  %v5714_v16 = vmul.f32 %v8174_v18, %v5713_v31  ;;  %v5738_v43 = vor.u32 1.1754944e-38, %v5737_v38  ;;  %v8358_v31 = vld [vmem:[#allocation8] sm:$0xff]  ;;  %vm5736_vm12 = vcmp.eq.f32.partialorder %v5735_v51, 8.507059e+37 }
 0xeac   :  { %v11170_v56 = vpop.eup %8177  ;;  %8181 = vpow2.f32 %v5571_v10  ;;  %v5615_v37 = vsel %vm483_vm1, %v11167_v57, 0.0 }
 0xead   :  { %v5936_v59 = vunpack.c.l.b16 %v5866_v15  ;;  %v5715_v8 = vadd.f32 %v8174_v18, %v5714_v16  ;;  %5616 = vadd.xlane.f32.xlu1 %v5615_v37  ;;  %v5609_v20 = vsel %vm483_vm1, %v11170_v56, 0.0 }
 0xeae   :  { %v8180_v63 = vpop.eup %8179  ;;  %5610 = vadd.xlane.f32.xlu2 %v5609_v20 }
 0xeaf   :  { %v5937_v3 = vpack.c.b16 %v5936_v59, %v5935_v6  ;;  %v5719_v52 = vsel %vm5718_vm7, %v8174_v18, %v5715_v8  ;;  %v5727_v55 = vmul.f32 %v8180_v63, %v5596_v19  ;;  %vm5732_vm9 = vweird.f32 %v8180_v63  ;;  %v8360_v19 = vld [vmem:[%s12213_s8 + $0x10] sm:$0xff]  ;;  %v8362_v8 = vld [vmem:[%s12213_s8] sm:$0xff]  ;;  %v5599_v20 = vpop.xlane.xlu1 %5598 }
 0xeb0   :  { %v5724_v54 = vsel %vm5721_vm8, %v5723_v7, %v5719_v52  ;;  %vm5733_vm11 = vmor %vm5731_vm10, %vm5732_vm9  ;;  %8183 = vrcp.f32 %v5599_v20  ;;  %vm5746_vm15 = vweird.f32 %v5599_v20  ;;  %v5750_v38 = vand.u32 2147483647, %v5599_v20 }
 0xeb1   :  { %v5728_v2 = vsub.f32 1.0, %v5727_v55  ;;  %7746 = vmatmul.msk.bf16.vlgmr.msrb.gmra.mxu2 %vm483_vm1, %v5937_v3  ;;  %v5725_v18 = vmul.f32 %v11087_v22, %v5724_v54  ;;  %v8359_v22 = vld [vmem:[%s12213_s8 + $0x18] sm:$0xff]  ;;  %v5752_v54 = vand.u32 2147483648, %v5599_v20 }
 0xeb2   :  { %v11179_v53 = vpop.eup %8181  ;;  %6709 = vmatpush.bf16.msrb.mxu2 %v8357_v9  ;;  %vm5751_vm3 = vcmp.eq.f32.partialorder %v5750_v38, 8.507059e+37 }
 0xeb3   :  { %v5729_v36 = vmul.f32 %v8180_v63, %v5728_v2  ;;  %v5618_v32 = vsel %vm483_vm1, %v11179_v53, 0.0  ;;  %v5867_v16 = vpack.c.bf16 %v5725_v18, %v5725_v18 }
 0xeb5   :  { %v5730_v47 = vadd.f32 %v8180_v63, %v5729_v36  ;;  %v5963_v37 = vunpack.c.l.b16 %v5867_v16 }
 0xeb6   :  { %5619 = vadd.xlane.f32.xlu2 %v5618_v32  ;;  %6710 = vmatpush.bf16.msrb.mxu2 %v8358_v31  ;;  %v5753_v32 = vor.u32 1.1754944e-38, %v5752_v54 }
 0xeb7   :  { %v5734_v10 = vsel %vm5733_vm11, %v8180_v63, %v5730_v47  ;;  %v8184_v63 = vpop.eup %8183 }
 0xeb8   :  { %v5739_v15 = vsel %vm5736_vm12, %v5738_v43, %v5734_v10  ;;  %v5742_v3 = vmul.f32 %v8184_v63, %v5599_v20  ;;  %vm5747_vm14 = vweird.f32 %v8184_v63 }
 0xeb9   :  { %v5740_v17 = vmul.f32 %v11098_v28, %v5739_v15  ;;  %v8361_v28 = vld [vmem:[%s12213_s8 + $0x8] sm:$0xff]  ;;  %vm5748_vm2 = vmor %vm5746_vm15, %vm5747_vm14 }
 0xeba   :  { %v5743_v52 = vsub.f32 1.0, %v5742_v3 }
 0xebb   :  { %v5868_v21 = vpack.c.bf16 %v5740_v17, %v5740_v17 }
 0xebc   :  { %v5744_v55 = vmul.f32 %v8184_v63, %v5743_v52 }
 0xebd   :  { %v5964_v6 = vunpack.c.l.b16 %v5868_v21 }
 0xebe   :  { %v5745_v2 = vadd.f32 %v8184_v63, %v5744_v55 }
 0xebf   :  { %v5965_v59 = vpack.c.b16 %v5964_v6, %v5963_v37 }
 0xec0   :  { %v5749_v36 = vsel %vm5748_vm2, %v8184_v63, %v5745_v2 }
 0xec1   :  { %7747 = vmatmul.msk.bf16.vlgmr.msrb.gmra.mxu3 %vm483_vm1, %v5965_v59  ;;  %v5754_v47 = vsel %vm5751_vm3, %v5753_v32, %v5749_v36 }
 0xec2   :  { %6932 = vmatpush.bf16.msrb.mxu3 %v8359_v22  ;;  %v5755_v15 = vmul.f32 %v11106_v60, %v5754_v47 }
 0xec4   :  { %v5869_v6 = vpack.c.bf16 %v5755_v15, %v5755_v15 }
 0xec6   :  { %6933 = vmatpush.bf16.msrb.mxu3 %v8360_v19  ;;  %v5991_v19 = vunpack.c.l.b16 %v5869_v6 }
 0xeca   :  { %6934 = vmatpush.bf16.msrb.mxu3 %v8361_v28 }
 0xece   :  { %6935 = vmatpush.bf16.msrb.mxu3 %v8362_v8 }
 0xef7   :  { %v5602_v7 = vpop.xlane.xlu2 %5601 }
 0xef8   :  { %8185 = vrcp.f32 %v5602_v7  ;;  %v5767_v43 = vand.u32 2147483648, %v5602_v7  ;;  %v5765_v10 = vand.u32 2147483647, %v5602_v7  ;;  %vm5761_vm5 = vweird.f32 %v5602_v7 }
 0xefa   :  { %v5768_v17 = vor.u32 1.1754944e-38, %v5767_v43  ;;  %vm5766_vm7 = vcmp.eq.f32.partialorder %v5765_v10, 8.507059e+37 }
 0xefe   :  { %v8186_v9 = vpop.eup %8185 }
 0xeff   :  { %v5757_v51 = vmul.f32 %v8186_v9, %v5602_v7  ;;  %vm5762_vm4 = vweird.f32 %v8186_v9 }
 0xf00   :  { %vm5763_vm6 = vmor %vm5761_vm5, %vm5762_vm4 }
 0xf01   :  { %v5758_v18 = vsub.f32 1.0, %v5757_v51 }
 0xf03   :  { %v5759_v31 = vmul.f32 %v8186_v9, %v5758_v18 }
 0xf05   :  { %v5760_v16 = vadd.f32 %v8186_v9, %v5759_v31 }
 0xf07   :  { %v5764_v21 = vsel %vm5763_vm6, %v8186_v9, %v5760_v16 }
 0xf08   :  { %v5769_v37 = vsel %vm5766_vm7, %v5768_v17, %v5764_v21 }
 0xf09   :  { %v5770_v59 = vmul.f32 %v11119_v41, %v5769_v37 }
 0xf0b   :  { %v5870_v22 = vpack.c.bf16 %v5770_v59, %v5770_v59 }
 0xf0d   :  { %v5992_v28 = vunpack.c.l.b16 %v5870_v22 }
 0xf0e   :  { %v5900_v63 = vpop.f32.mrf.mxu0 }
 0xf0f   :  { %v5993_v8 = vpack.c.b16 %v5992_v28, %v5991_v19  ;;  %v5605_v20 = vpop.xlane.xlu0 %5604 }
 0xf10   :  { %8187 = vrcp.f32 %v5605_v20  ;;  %v5782_v41 = vand.u32 2147483648, %v5605_v20  ;;  %vm5776_vm9 = vweird.f32 %v5605_v20  ;;  %v5780_v9 = vand.u32 2147483647, %v5605_v20 }
 0xf11   :  { %7748 = vmatmul.msk.bf16.vlgmr.msra.gmra.mxu0 %vm483_vm1, %v5993_v8 }
 0xf12   :  { %v5783_v10 = vor.u32 1.1754944e-38, %v5782_v41  ;;  %vm5781_vm11 = vcmp.eq.f32.partialorder %v5780_v9, 8.507059e+37 }
 0xf16   :  { %v8188_v60 = vpop.eup %8187  ;;  %v5902_v54 = vpop.f32.mrf.mxu0 }
 0xf17   :  { %v5772_v3 = vmul.f32 %v8188_v60, %v5605_v20  ;;  %v5608_v55 = vpop.xlane.xlu1 %5607  ;;  %vm5777_vm8 = vweird.f32 %v8188_v60  ;;  %v6101_v32 = vpack.c.bf16 %v5902_v54, %v5900_v63 }
 0xf18   :  { %v5614_v52 = vpop.xlane.xlu0 %5613  ;;  %vm11201_vm10 = vmor %vm5776_vm9, %vm5777_vm8  ;;  %v5797_v28 = vand.u32 2147483648, %v5608_v55  ;;  %v5795_v20 = vand.u32 2147483647, %v5608_v55  ;;  %vm5791_vm3 = vweird.f32 %v5608_v55 }
 0xf19   :  { %8189 = vrcp.f32 %v5614_v52  ;;  %v5773_v7 = vsub.f32 1.0, %v5772_v3  ;;  %v5825_v6 = vand.u32 2147483647, %v5614_v52  ;;  %v5827_v19 = vand.u32 2147483648, %v5614_v52 }
 0xf1a   :  { %8191 = vrcp.f32 %v5608_v55  ;;  %vm5821_vm15 = vweird.f32 %v5614_v52  ;;  %v5798_v9 = vor.u32 1.1754944e-38, %v5797_v28  ;;  %vm5796_vm6 = vcmp.eq.f32.partialorder %v5795_v20, 8.507059e+37 }
 0xf1b   :  { %v5774_v2 = vmul.f32 %v8188_v60, %v5773_v7  ;;  %vm11221_vm4 = vcmp.eq.f32.partialorder %v5825_v6, 8.507059e+37 }
 0xf1d   :  { %v5775_v38 = vadd.f32 %v8188_v60, %v5774_v2 }
 0xf1e   :  { %v11213_v21 = vpop.f32.mrf.mxu1 }
 0xf1f   :  { %v8190_v36 = vpop.eup %8189  ;;  %v5779_v47 = vsel %vm11201_vm10, %v8188_v60, %v5775_v38  ;;  %v5828_v38 = vor.u32 1.1754944e-38, %v5827_v19 }
 0xf20   :  { %v8192_v18 = vpop.eup %8191  ;;  %v5817_v43 = vmul.f32 %v8190_v36, %v5614_v52  ;;  %v11207_v31 = vpop.xlane.xlu1 %5616  ;;  %v5784_v37 = vsel %vm5781_vm11, %v5783_v10, %v5779_v47  ;;  %vm5822_vm12 = vweird.f32 %v8190_v36 }
 0xf21   :  { %v5787_v15 = vmul.f32 %v8192_v18, %v5608_v55  ;;  %v11209_v16 = vpop.xlane.xlu2 %5610  ;;  %8193 = vrcp.f32 %v11207_v31  ;;  %7752 = vmatmul.msk.bf16.vlgmr.msrb.gmra.mxu0 %vm483_vm1, %v6101_v32  ;;  %vm5792_vm14 = vweird.f32 %v8192_v18  ;;  %v5785_v63 = vmul.f32 %v11137_v50, %v5784_v37  ;;  %vm11217_vm2 = vmor %vm5821_vm15, %vm5822_vm12 }
 0xf22   :  { %v5818_v17 = vsub.f32 1.0, %v5817_v43  ;;  %8195 = vrcp.f32 %v11209_v16  ;;  %vm5793_vm5 = vmor %vm5791_vm3, %vm5792_vm14  ;;  %vm5806_vm7 = vweird.f32 %v11209_v16  ;;  %v5810_v37 = vand.u32 2147483647, %v11209_v16 }
 0xf23   :  { %v5788_v59 = vsub.f32 1.0, %v5787_v15  ;;  %v5871_v43 = vpack.c.bf16 %v5785_v63, %v5785_v63  ;;  %vm5836_vm10 = vweird.f32 %v11207_v31  ;;  %v5842_v20 = vand.u32 2147483648, %v11207_v31 }
 0xf24   :  { %v5819_v22 = vmul.f32 %v8190_v36, %v5818_v17  ;;  %vm5811_vm14 = vcmp.eq.f32.partialorder %v5810_v37, 8.507059e+37 }
 0xf25   :  { %v5789_v8 = vmul.f32 %v8192_v18, %v5788_v59  ;;  %v6019_v28 = vunpack.c.l.b16 %v5871_v43 }
 0xf26   :  { %v5820_v60 = vadd.f32 %v8190_v36, %v5819_v22  ;;  %v5930_v59 = vpop.f32.mrf.mxu1 }
 0xf27   :  { %v8194_v3 = vpop.eup %8193  ;;  %v5790_v2 = vadd.f32 %v8192_v18, %v5789_v8  ;;  %v5840_v8 = vand.u32 2147483647, %v11207_v31  ;;  %v6102_v41 = vpack.c.bf16 %v5930_v59, %v11213_v21 }
 0xf28   :  { %v8196_v54 = vpop.eup %8195  ;;  %v5832_v51 = vmul.f32 %v8194_v3, %v11207_v31  ;;  %v5824_v50 = vsel %vm11217_vm2, %v8190_v36, %v5820_v60  ;;  %v5812_v36 = vand.u32 2147483648, %v11209_v16  ;;  %vm5837_vm8 = vweird.f32 %v8194_v3 }
 0xf29   :  { %v5794_v52 = vsel %vm5793_vm5, %v8192_v18, %v5790_v2  ;;  %v5802_v32 = vmul.f32 %v8196_v54, %v11209_v16  ;;  %v5620_v47 = vpop.xlane.xlu2 %5619  ;;  %v5829_v6 = vsel %vm11221_vm4, %v5828_v38, %v5824_v50  ;;  %vm5807_vm9 = vweird.f32 %v8196_v54  ;;  %vm11239_vm11 = vmor %vm5836_vm10, %vm5837_vm8 }
 0xf2a   :  { %v5799_v55 = vsel %vm5796_vm6, %v5798_v9, %v5794_v52  ;;  %v5833_v10 = vsub.f32 1.0, %v5832_v51  ;;  %8197 = vrcp.f32 %v5620_v47  ;;  %v5830_v63 = vmul.f32 %v11155_v49, %v5829_v6  ;;  %vm5808_vm12 = vmor %vm5806_vm7, %vm5807_vm9 }
 0xf2b   :  { %v5800_v15 = vmul.f32 %v11148_v30, %v5799_v55  ;;  %v5803_v17 = vsub.f32 1.0, %v5802_v32  ;;  %v5813_v9 = vor.u32 1.1754944e-38, %v5812_v36  ;;  %v5843_v32 = vor.u32 1.1754944e-38, %v5842_v20 }
 0xf2c   :  { %v5834_v18 = vmul.f32 %v8194_v3, %v5833_v10  ;;  %v5874_v43 = vpack.c.bf16 %v5830_v63, %v5830_v63  ;;  %vm5841_vm15 = vcmp.eq.f32.partialorder %v5840_v8, 8.507059e+37  ;;  %v5857_v10 = vand.u32 2147483648, %v5620_v47 }
 0xf2d   :  { %v5872_v22 = vpack.c.bf16 %v5800_v15, %v5800_v15  ;;  %v5804_v19 = vmul.f32 %v8196_v54, %v5803_v17  ;;  %v5855_v37 = vand.u32 2147483647, %v5620_v47  ;;  %vm5851_vm3 = vweird.f32 %v5620_v47 }
 0xf2e   :  { %v5835_v30 = vadd.f32 %v8194_v3, %v5834_v18  ;;  %v5858_v59 = vor.u32 1.1754944e-38, %v5857_v10 }
 0xf2f   :  { %v6020_v60 = vunpack.c.l.b16 %v5872_v22  ;;  %v5805_v7 = vadd.f32 %v8196_v54, %v5804_v19  ;;  %vm5856_vm5 = vcmp.eq.f32.partialorder %v5855_v37, 8.507059e+37 }
 0xf30   :  { %v8198_v38 = vpop.eup %8197  ;;  %v5839_v31 = vsel %vm11239_vm11, %v8194_v3, %v5835_v30  ;;  %v6048_v3 = vunpack.c.l.b16 %v5874_v43 }
 0xf31   :  { %v6021_v51 = vpack.c.b16 %v6020_v60, %v6019_v28  ;;  %v5809_v50 = vsel %vm5808_vm12, %v8196_v54, %v5805_v7  ;;  %v5847_v49 = vmul.f32 %v8198_v38, %v5620_v47  ;;  %7753 = vmatmul.msk.bf16.gmra.mxu0 %vm483_vm1, %v6102_v41  ;;  %v5844_v16 = vsel %vm5841_vm15, %v5843_v32, %v5839_v31 }
 0xf32   :  { %v5814_v52 = vsel %vm5811_vm14, %v5813_v9, %v5809_v50  ;;  %vm5852_vm2 = vweird.f32 %v8198_v38  ;;  %v5845_v36 = vmul.f32 %v11167_v57, %v5844_v16  ;;  %v5002_v57 = vpack.c.bf16 %v10811_v27, %v10794_v5 }
 0xf33   :  { %v5815_v55 = vmul.f32 %v11170_v56, %v5814_v52  ;;  %v5848_v21 = vsub.f32 1.0, %v5847_v49  ;;  %7749 = vmatmul.msk.bf16.vlgmr.msra.gmra.mxu1 %vm483_vm1, %v6021_v51  ;;  %vm5853_vm4 = vmor %vm5851_vm3, %vm5852_vm2  ;;  %v5004_v5 = vpack.c.bf16 %v11021_v29, %v11019_v12  ;;  %v5005_v27 = vpack.c.bf16 %v10964_v48, %v10943_v13 }
 0xf34   :  { %v5956_v15 = vpop.f32.mrf.mxu2  ;;  %v5875_v28 = vpack.c.bf16 %v5845_v36, %v5845_v36  ;;  %v5006_v9 = vpack.c.bf16 %v10845_v39, %v10819_v34  ;;  %v5008_v13 = vpack.c.bf16 %v11027_v44, %v11025_v33  ;;  %v5009_v34 = vpack.c.bf16 %v10973_v26, %v10970_v23 }
 0xf35   :  { %v5873_v17 = vpack.c.bf16 %v5815_v55, %v5815_v55  ;;  %v5849_v54 = vmul.f32 %v8198_v38, %v5848_v21 }
 0xf36   :  { %v6075_v63 = vunpack.c.l.b16 %v5875_v28 }
 0xf37   :  { %v6047_v6 = vunpack.c.l.b16 %v5873_v17  ;;  %v5850_v18 = vadd.f32 %v8198_v38, %v5849_v54 }
 0xf39   :  { %v6049_v56 = vpack.c.b16 %v6048_v3, %v6047_v6  ;;  %v5854_v22 = vsel %vm5853_vm4, %v8198_v38, %v5850_v18  ;;  %v5003_v38 = vpack.c.bf16 %v10813_v61, %v10796_v1  ;;  %v5007_v61 = vpack.c.bf16 %v10847_v45, %v10821_v42 }
 0xf3a   :  { %v5859_v19 = vsel %vm5856_vm5, %v5858_v59, %v5854_v22 }
 0xf3b   :  { %v5860_v30 = vmul.f32 %v11179_v53, %v5859_v19  ;;  %7750 = vmatmul.msk.bf16.vlgmr.msra.gmra.mxu2 %vm483_vm1, %v6049_v56 }
 0xf3c   :  { %v5958_v8 = vpop.f32.mrf.mxu2 }
 0xf3d   :  { %v5876_v20 = vpack.c.bf16 %v5860_v30, %v5860_v30  ;;  %v6103_v60 = vpack.c.bf16 %v5958_v8, %v5956_v15 }
 0xf3f   :  { %v6076_v47 = vunpack.c.l.b16 %v5876_v20 }
 0xf41   :  { %v6077_v7 = vpack.c.b16 %v6076_v47, %v6075_v63  ;;  %7754 = vmatmul.msk.bf16.gmra.mxu0 %vm483_vm1, %v6103_v60 }
 0xf43   :  { %7751 = vmatmul.msk.bf16.vlgmr.msra.gmra.mxu3 %vm483_vm1, %v6077_v7  ;;  %7760 = vmatmul.msk.bf16.vlgmr.msrb.gmra.mxu1 %vm483_vm1, %v5002_v57 }
 0xf44   :  { %v5984_v2 = vpop.f32.mrf.mxu3 }
 0xf4c   :  { %v5986_v41 = vpop.f32.mrf.mxu3 }
 0xf4d   :  { %v6104_v53 = vpack.c.bf16 %v5986_v41, %v5984_v2 }
 0xf51   :  { %7755 = vmatmul.msk.bf16.gmra.mxu0 %vm483_vm1, %v6104_v53 }
 0xf53   :  { %7761 = vmatmul.msk.bf16.gmra.mxu1 %vm483_vm1, %v5003_v38 }
 0xf63   :  { %7762 = vmatmul.msk.bf16.gmra.mxu1 %vm483_vm1, %v5004_v5 }
 0xf73   :  { %7763 = vmatmul.msk.bf16.gmra.mxu1 %vm483_vm1, %v5005_v27 }
 0xf83   :  { %7764 = vmatmul.msk.bf16.gmra.mxu1 %vm483_vm1, %v5006_v9 }
 0xf8e   :  { %v6012_v1 = vpop.f32.mrf.mxu0 }
 0xf93   :  { %7765 = vmatmul.msk.bf16.gmra.mxu1 %vm483_vm1, %v5007_v61 }
 0xf96   :  { %v6014_v51 = vpop.f32.mrf.mxu0 }
 0xf97   :  { %v6105_v12 = vpack.c.bf16 %v6014_v51, %v6012_v1 }
 0xf99   :  { %7756 = vmatmul.msk.bf16.gmra.mxu0 %vm483_vm1, %v6105_v12 }
 0xf9e   :  { %v6142_v39 = vpop.f32.mrf.mxu0 }
 0xfa3   :  { %7766 = vmatmul.msk.bf16.gmra.mxu1 %vm483_vm1, %v5008_v13 }
 0xfa6   :  { %v6144_v45 = vpop.f32.mrf.mxu0 }
 0xfae   :  { %v6147_v43 = vpop.f32.mrf.mxu0 }
 0xfb0   :  { %v6040_v48 = vpop.f32.mrf.mxu1 }
 0xfb3   :  { %7767 = vmatmul.msk.bf16.gmra.mxu1 %vm483_vm1, %v5009_v34 }
 0xfb6   :  { %v6149_v54 = vpop.f32.mrf.mxu0 }
 0xfb8   :  { %v6042_v29 = vpop.f32.mrf.mxu1 }
 0xfb9   :  { %v6106_v42 = vpack.c.bf16 %v6042_v29, %v6040_v48 }
 0xfbb   :  { %7757 = vmatmul.msk.bf16.gmra.mxu0 %vm483_vm1, %v6106_v42 }
 0xfbe   :  { %v6068_v50 = vpop.f32.mrf.mxu2  ;;  %v6152_v22 = vpop.f32.mrf.mxu0 }
 0xfc0   :  { %v6215_v31 = vpop.f32.mrf.mxu1 }
 0xfc1   :  { %v6216_v49 = vadd.f32 %v6215_v31, %v6142_v39 }
 0xfc3   :  { %v6255_v52 = vadd.f32 %v6216_v49, %v10196_v4 }
 0xfc5   :  { %v6271_v33 = vadd.f32 %v6255_v52, %v9522_v0 }
 0xfc6   :  { %v6070_v44 = vpop.f32.mrf.mxu2  ;;  %v6096_v16 = vpop.f32.mrf.mxu3 }
 0xfc7   :  { %v6287_v32 = vsel %vm223_vm0, %v6271_v33, 0.0  ;;  %v6107_v26 = vpack.c.bf16 %v6070_v44, %v6068_v50  ;;  %v6154_v63 = vpop.f32.mrf.mxu0 }
 0xfc8   :  { %v6217_v23 = vpop.f32.mrf.mxu1  ;;  %6288 = vadd.xlane.f32.xlu0 %v6287_v32 }
 0xfc9   :  { %v6218_v55 = vadd.f32 %v6217_v23, %v6144_v45 }
 0xfcb   :  { %v6256_v21 = vadd.f32 %v6218_v55, %v10200_v62  ;;  %7758 = vmatmul.msk.bf16.gmra.mxu0 %vm483_vm1, %v6107_v26 }
 0xfcd   :  { %v6272_v10 = vadd.f32 %v6256_v21, %v9522_v0 }
 0xfce   :  { %v6098_v6 = vpop.f32.mrf.mxu3 }
 0xfcf   :  { %v6290_v15 = vsel %vm223_vm0, %v6272_v10, 0.0  ;;  %v6108_v18 = vpack.c.bf16 %v6098_v6, %v6096_v16  ;;  %v6157_v41 = vpop.f32.mrf.mxu0 }
 0xfd0   :  { %v6220_v4 = vpop.f32.mrf.mxu1  ;;  %6291 = vadd.xlane.f32.xlu1 %v6290_v15  ;;  %v12295_v15 = vld [vmem:[#allocation21_spill] sm:$0xff] }
 0xfd1   :  { %v6221_v17 = vadd.f32 %v6220_v4, %v6147_v43 }
 0xfd3   :  { %v6257_v37 = vadd.f32 %v6221_v17, %v10255_v14 }
 0xfd5   :  { %v11292_v3 = vadd.f32 %v6257_v37, %v9522_v0 }
 0xfd7   :  { %v6293_v62 = vsel %vm223_vm0, %v11292_v3, 0.0  ;;  %v6159_v9 = vpop.f32.mrf.mxu0 }
 0xfd8   :  { %v6222_v36 = vpop.f32.mrf.mxu1  ;;  %6294 = vadd.xlane.f32.xlu2 %v6293_v62 }
 0xfd9   :  { %v6223_v59 = vadd.f32 %v6222_v36, %v6149_v54 }
 0xfdb   :  { %v6258_v56 = vadd.f32 %v6223_v59, %v10258_v40  ;;  %7759 = vmatmul.msk.bf16.gmra.mxu0 %vm483_vm1, %v6108_v18 }
 0xfdd   :  { %v11299_v19 = vadd.f32 %v6258_v56, %v9522_v0 }
 0xfdf   :  { %v6296_v14 = vsel %vm223_vm0, %v11299_v19, 0.0 }
 0xfe0   :  { %v6225_v28 = vpop.f32.mrf.mxu1  ;;  %6297 = vadd.xlane.f32.xlu0 %v6296_v14 }
 0xfe1   :  { %v6226_v30 = vadd.f32 %v6225_v28, %v6152_v22  ;;  %v12296_v22 = vld [vmem:[#allocation22_spill] sm:$0xff] }
 0xfe3   :  { %v6259_v8 = vadd.f32 %v6226_v30, %v10287_v25 }
 0xfe5   :  { %v11305_v20 = vadd.f32 %v6259_v8, %v9522_v0 }
 0xfe7   :  { %v6299_v40 = vsel %vm223_vm0, %v11305_v20, 0.0 }
 0xfe8   :  { %v6227_v47 = vpop.f32.mrf.mxu1  ;;  %6300 = vadd.xlane.f32.xlu1 %v6299_v40 }
 0xfe9   :  { %v6228_v60 = vadd.f32 %v6227_v47, %v6154_v63 }
 0xfeb   :  { %v6260_v57 = vadd.f32 %v6228_v60, %v10290_v24 }
 0xfed   :  { %v11311_v7 = vadd.f32 %v6260_v57, %v9522_v0 }
 0xfef   :  { %v6302_v2 = vsel %vm223_vm0, %v11311_v7, 0.0 }
 0xff0   :  { %v6230_v25 = vpop.f32.mrf.mxu1  ;;  %6303 = vadd.xlane.f32.xlu2 %v6302_v2 }
 0xff1   :  { %v6231_v53 = vadd.f32 %v6230_v25, %v6157_v41  ;;  %v12297_v41 = vld [vmem:[#allocation23_spill] sm:$0xff] }
 0xff3   :  { %v6261_v38 = vadd.f32 %v6231_v53, %v10313_v46 }
 0xff5   :  { %v11317_v5 = vadd.f32 %v6261_v38, %v9522_v0 }
 0xff7   :  { %v6305_v27 = vsel %vm223_vm0, %v11317_v5, 0.0 }
 0xff8   :  { %6306 = vadd.xlane.f32.xlu2 %v6305_v27  ;;  %v6232_v24 = vpop.f32.mrf.mxu1 }
 0xff9   :  { %v6233_v13 = vadd.f32 %v6232_v24, %v6159_v9 }
 0xffb   :  { %v6262_v34 = vadd.f32 %v6233_v13, %v10316_v11 }
 0xffd   :  { %v11332_v52 = vadd.f32 %v6262_v34, %v9522_v0 }
 0xfff   :  { %v6308_v11 = vsel %vm223_vm0, %v11332_v52, 0.0 }
0x1000   :  { %v6235_v1 = vpop.f32.mrf.mxu1 }
0x1008   :  { %v6237_v39 = vpop.f32.mrf.mxu1 }
0x1010   :  { %v6240_v55 = vpop.f32.mrf.mxu1 }
0x1016   :  { %v6162_v61 = vpop.f32.mrf.mxu0 }
0x1017   :  { %v6236_v31 = vadd.f32 %v6235_v1, %v6162_v61 }
0x1018   :  { %v6242_v59 = vpop.f32.mrf.mxu1 }
0x1019   :  { %v6263_v44 = vadd.f32 %v6236_v31, %v10363_v58 }
0x101e   :  { %v6164_v42 = vpop.f32.mrf.mxu0 }
0x101f   :  { %v6238_v21 = vadd.f32 %v6237_v39, %v6164_v42 }
0x1020   :  { %v6245_v2 = vpop.f32.mrf.mxu1 }
0x1021   :  { %v6264_v4 = vadd.f32 %v6238_v21, %v12295_v15 }
0x1023   :  { %v11358_v18 = vadd.f32 %v6264_v4, %v9522_v0 }
0x1025   :  { %v6314_v30 = vsel %vm223_vm0, %v11358_v18, 0.0 }
0x1028   :  { %v6247_v39 = vpop.f32.mrf.mxu1 }
0x1038   :  { %v6167_v43 = vpop.f32.mrf.mxu0 }
0x1039   :  { %v6241_v62 = vadd.f32 %v6240_v55, %v6167_v43  ;;  %v12300_v55 = vld [vmem:[#allocation27_spill] sm:$0xff] }
0x103b   :  { %v6289_v51 = vpop.xlane.xlu0 %6288  ;;  %v6265_v14 = vadd.f32 %v6241_v62, %v12296_v22 }
0x103c   :  { %v6335_v12 = vmul.f32 %v6289_v51, %v9580_v35 }
0x103d   :  { %v11371_v47 = vadd.f32 %v6265_v14, %v9522_v0 }
0x103e   :  { %v11322_v48 = vsub.f32 %v6271_v33, %v6335_v12  ;;  %v12298_v12 = vld [vmem:[#allocation24_spill] sm:$0xff] }
0x103f   :  { %v6317_v53 = vsel %vm223_vm0, %v11371_v47, 0.0 }
0x1040   :  { %v6367_v46 = vmul.f32 %v11322_v48, %v11322_v48 }
0x1042   :  { %v6383_v29 = vsel %vm223_vm0, %v6367_v46, 0.0 }
0x1043   :  { %6384 = vadd.xlane.f32.xlu0 %v6383_v29  ;;  %v6292_v45 = vpop.xlane.xlu1 %6291 }
0x1044   :  { %v6336_v50 = vmul.f32 %v6292_v45, %v9580_v35 }
0x1046   :  { %v11329_v49 = vsub.f32 %v6272_v10, %v6336_v50  ;;  %v11345_v10 = vadd.f32 %v6263_v44, %v9522_v0 }
0x1048   :  { %v6368_v33 = vmul.f32 %v11329_v49, %v11329_v49  ;;  %v6311_v17 = vsel %vm223_vm0, %v11345_v10, 0.0 }
0x104a   :  { %v6386_v32 = vsel %vm223_vm0, %v6368_v33, 0.0  ;;  %v12299_v33 = vld [vmem:[#allocation25_spill] sm:$0xff] }
0x104b   :  { %v6295_v23 = vpop.xlane.xlu2 %6294  ;;  %6309 = vadd.xlane.f32.xlu0 %v6308_v11  ;;  %6387 = vadd.xlane.f32.xlu1 %v6386_v32 }
0x104c   :  { %v6337_v26 = vmul.f32 %v6295_v23, %v9580_v35  ;;  %v6250_v23 = vpop.f32.mrf.mxu1 }
0x104e   :  { %v11342_v16 = vsub.f32 %v11292_v3, %v6337_v26  ;;  %v6169_v3 = vpop.f32.mrf.mxu0 }
0x104f   :  { %v6243_v63 = vadd.f32 %v6242_v59, %v6169_v3 }
0x1050   :  { %v6369_v58 = vmul.f32 %v11342_v16, %v11342_v16 }
0x1051   :  { %v6266_v25 = vadd.f32 %v6243_v63, %v12297_v41 }
0x1052   :  { %v6389_v54 = vsel %vm223_vm0, %v6369_v58, 0.0 }
0x1053   :  { %6312 = vadd.xlane.f32.xlu0 %v6311_v17  ;;  %v6298_v37 = vpop.xlane.xlu0 %6297  ;;  %6390 = vadd.xlane.f32.xlu1 %v6389_v54  ;;  %v11384_v1 = vadd.f32 %v6266_v25, %v9522_v0 }
0x1054   :  { %v6338_v6 = vmul.f32 %v6298_v37, %v9580_v35 }
0x1055   :  { %v6320_v34 = vsel %vm223_vm0, %v11384_v1, 0.0 }
0x1056   :  { %v11355_v36 = vsub.f32 %v11299_v19, %v6338_v6  ;;  %v6172_v60 = vpop.f32.mrf.mxu0 }
0x1057   :  { %v6246_v24 = vadd.f32 %v6245_v2, %v6172_v60 }
0x1058   :  { %v6370_v56 = vmul.f32 %v11355_v36, %v11355_v36 }
0x1059   :  { %v6267_v13 = vadd.f32 %v6246_v24, %v12298_v12 }
0x105a   :  { %v6392_v28 = vsel %vm223_vm0, %v6370_v56, 0.0 }
0x105b   :  { %6393 = vadd.xlane.f32.xlu2 %v6392_v28  ;;  %6315 = vadd.xlane.f32.xlu1 %v6314_v30  ;;  %v6301_v8 = vpop.xlane.xlu1 %6300  ;;  %v11397_v50 = vadd.f32 %v6267_v13, %v9522_v0 }
0x105c   :  { %v6339_v19 = vmul.f32 %v6301_v8, %v9580_v35 }
0x105d   :  { %v6323_v32 = vsel %vm223_vm0, %v11397_v50, 0.0 }
0x105e   :  { %v11368_v40 = vsub.f32 %v11305_v20, %v6339_v19  ;;  %v6174_v51 = vpop.f32.mrf.mxu0 }
0x105f   :  { %v6248_v42 = vadd.f32 %v6247_v39, %v6174_v51 }
0x1060   :  { %v6371_v57 = vmul.f32 %v11368_v40, %v11368_v40 }
0x1061   :  { %v6268_v44 = vadd.f32 %v6248_v42, %v12299_v33 }
0x1062   :  { %v6395_v38 = vsel %vm223_vm0, %v6371_v57, 0.0 }
0x1063   :  { %v6304_v27 = vpop.xlane.xlu2 %6303  ;;  %6318 = vadd.xlane.f32.xlu1 %v6317_v53  ;;  %6396 = vadd.xlane.f32.xlu2 %v6395_v38 }
0x1064   :  { %v6340_v20 = vmul.f32 %v6304_v27, %v9580_v35 }
0x1066   :  { %v11381_v9 = vsub.f32 %v11311_v7, %v6340_v20  ;;  %v6177_v43 = vpop.f32.mrf.mxu0 }
0x1067   :  { %v6251_v26 = vadd.f32 %v6250_v23, %v6177_v43 }
0x1068   :  { %v6372_v61 = vmul.f32 %v11381_v9, %v11381_v9 }
0x1069   :  { %v6269_v21 = vadd.f32 %v6251_v26, %v12300_v55 }
0x106a   :  { %v6398_v46 = vsel %vm223_vm0, %v6372_v61, 0.0 }
0x106b   :  { %v6307_v29 = vpop.xlane.xlu2 %6306  ;;  %6399 = vadd.xlane.f32.xlu0 %v6398_v46  ;;  %6321 = vadd.xlane.f32.xlu2 %v6320_v34  ;;  %v11412_v15 = vadd.f32 %v6269_v21, %v9522_v0  ;;  %v12301_v46 = vld [vmem:[#allocation26_spill] sm:$0xff] }
0x106c   :  { %v6341_v7 = vmul.f32 %v6307_v29, %v9580_v35 }
0x106d   :  { %v6329_v4 = vsel %vm223_vm0, %v11412_v15, 0.0 }
0x106e   :  { %v11394_v45 = vsub.f32 %v11317_v5, %v6341_v7  ;;  %v11406_v5 = vadd.f32 %v6268_v44, %v9522_v0  ;;  %v6179_v19 = vpop.f32.mrf.mxu0 }
0x1070   :  { %v6373_v31 = vmul.f32 %v11394_v45, %v11394_v45  ;;  %v6326_v58 = vsel %vm223_vm0, %v11406_v5, 0.0 }
0x1072   :  { %v6401_v11 = vsel %vm223_vm0, %v6373_v31, 0.0 }
0x1073   :  { %6402 = vadd.xlane.f32.xlu0 %v6401_v11  ;;  %6324 = vadd.xlane.f32.xlu2 %v6323_v32 }
0x107b   :  { %6327 = vadd.xlane.f32.xlu0 %v6326_v58 }
0x1083   :  { %6330 = vadd.xlane.f32.xlu0 %v6329_v4 }
0x10b6   :  { %v6385_v17 = vpop.xlane.xlu0 %6384 }
0x10b7   :  { %v6431_v54 = vmul.f32 %v6385_v17, %v9580_v35 }
0x10b9   :  { %v6447_v37 = vadd.f32 1e-12, %v6431_v54  ;;  %v12302_v54 = vld [vmem:[#allocation16_spill] sm:$0xff] }
0x10bb   :  { %8199 = vrsqrt.f32 %v6447_v37  ;;  %vm6469_vm6 = vweird.f32 %v6447_v37 }
0x10be   :  { %v6310_v6 = vpop.xlane.xlu0 %6309  ;;  %v6388_v3 = vpop.xlane.xlu1 %6387 }
0x10bf   :  { %v6342_v62 = vmul.f32 %v6310_v6, %v9580_v35  ;;  %v6432_v59 = vmul.f32 %v6388_v3, %v9580_v35 }
0x10c1   :  { %v8200_v56 = vpop.eup %8199  ;;  %v11420_v22 = vsub.f32 %v11332_v52, %v6342_v62  ;;  %v6448_v14 = vadd.f32 1e-12, %v6432_v59  ;;  %v6252_v52 = vpop.f32.mrf.mxu1 }
0x10c2   :  { %v6464_v28 = vmul.f32 %v8200_v56, %v6447_v37  ;;  %v6253_v27 = vadd.f32 %v6252_v52, %v6179_v19  ;;  %vm6470_vm1 = vweird.f32 %v8200_v56 }
0x10c3   :  { %8201 = vrsqrt.f32 %v6448_v14  ;;  %v6374_v30 = vmul.f32 %v11420_v22, %v11420_v22  ;;  %vm6471_vm7 = vmor %vm6469_vm6, %vm6470_vm1  ;;  %vm6479_vm9 = vweird.f32 %v6448_v14 }
0x10c4   :  { %v6465_v8 = vmul.f32 %v8200_v56, %v6464_v28  ;;  %v6270_v34 = vadd.f32 %v6253_v27, %v12301_v46 }
0x10c5   :  { %v6404_v63 = vsel %vm223_vm0, %v6374_v30, 0.0 }
0x10c6   :  { %v6466_v60 = vmul.f32 0.5, %v6465_v8  ;;  %v6313_v57 = vpop.xlane.xlu0 %6312  ;;  %6405 = vadd.xlane.f32.xlu1 %v6404_v63  ;;  %v6391_v2 = vpop.xlane.xlu1 %6390  ;;  %v11441_v26 = vadd.f32 %v6270_v34, %v9522_v0  ;;  %v12303_v8 = vld [vmem:[#allocation17_spill] sm:$0xff] }
0x10c7   :  { %v6343_v41 = vmul.f32 %v6313_v57, %v9580_v35  ;;  %v6433_v25 = vmul.f32 %v6391_v2, %v9580_v35 }
0x10c8   :  { %v6467_v53 = vsub.f32 1.5, %v6466_v60 }
0x10c9   :  { %v8202_v38 = vpop.eup %8201  ;;  %v11428_v20 = vsub.f32 %v11345_v10, %v6343_v41  ;;  %v6449_v24 = vadd.f32 1e-12, %v6433_v25 }
0x10ca   :  { %v6468_v61 = vmul.f32 %v8200_v56, %v6467_v53  ;;  %v6474_v51 = vmul.f32 %v8202_v38, %v6448_v14  ;;  %vm6480_vm8 = vweird.f32 %v8202_v38 }
0x10cb   :  { %8203 = vrsqrt.f32 %v6449_v24  ;;  %v6375_v12 = vmul.f32 %v11428_v20, %v11428_v20  ;;  %vm6481_vm10 = vmor %vm6479_vm9, %vm6480_vm8  ;;  %vm6489_vm12 = vweird.f32 %v6449_v24 }
0x10cc   :  { %v6475_v13 = vmul.f32 %v8202_v38, %v6474_v51  ;;  %v6472_v29 = vsel %vm6471_vm7, %v8200_v56, %v6468_v61 }
0x10cd   :  { %v6407_v39 = vsel %vm223_vm0, %v6375_v12, 0.0  ;;  %v6623_v32 = vmul.f32 %v6472_v29, %v11322_v48 }
0x10ce   :  { %v6476_v7 = vmul.f32 0.5, %v6475_v13  ;;  %v6394_v42 = vpop.xlane.xlu2 %6393  ;;  %6408 = vadd.xlane.f32.xlu1 %v6407_v39  ;;  %v6316_v10 = vpop.xlane.xlu1 %6315 }
0x10cf   :  { %v6434_v31 = vmul.f32 %v6394_v42, %v9580_v35  ;;  %v6344_v33 = vmul.f32 %v6316_v10, %v9580_v35  ;;  %v6639_v37 = vmul.f32 %v6623_v32, %v12302_v54 }
0x10d0   :  { %v6477_v44 = vsub.f32 1.5, %v6476_v7 }
0x10d1   :  { %v8204_v11 = vpop.eup %8203  ;;  %v6450_v43 = vadd.f32 1e-12, %v6434_v31  ;;  %v11438_v23 = vsub.f32 %v11358_v18, %v6344_v33  ;;  %v6332_v18 = vsel %vm223_vm0, %v11441_v26, 0.0 }
0x10d2   :  { %v6478_v55 = vmul.f32 %v8202_v38, %v6477_v44  ;;  %v6484_v21 = vmul.f32 %v8204_v11, %v6449_v24  ;;  %vm6490_vm11 = vweird.f32 %v8204_v11 }
0x10d3   :  { %8205 = vrsqrt.f32 %v6450_v43  ;;  %v6376_v58 = vmul.f32 %v11438_v23, %v11438_v23  ;;  %vm6491_vm14 = vmor %vm6489_vm12, %vm6490_vm11  ;;  %vm6499_vm2 = vweird.f32 %v6450_v43 }
0x10d4   :  { %v6482_v4 = vsel %vm6481_vm10, %v8202_v38, %v6478_v55  ;;  %v6485_v17 = vmul.f32 %v8204_v11, %v6484_v21 }
0x10d5   :  { %v6624_v48 = vmul.f32 %v6482_v4, %v11329_v49  ;;  %v6410_v0 = vsel %vm223_vm0, %v6376_v58, 0.0  ;;  %v11454_v49 = vadd.f32 %v6639_v37, %v12303_v8 }
0x10d6   :  { %v6486_v6 = vmul.f32 0.5, %v6485_v17  ;;  %6333 = vadd.xlane.f32.xlu1 %v6332_v18  ;;  %v6397_v3 = vpop.xlane.xlu2 %6396  ;;  %6411 = vadd.xlane.f32.xlu2 %v6410_v0  ;;  %v6319_v62 = vpop.xlane.xlu1 %6318 }
0x10d7   :  { %v6640_v59 = vmul.f32 %v6624_v48, %v12302_v54  ;;  %v6435_v56 = vmul.f32 %v6397_v3, %v9580_v35  ;;  %v6345_v14 = vmul.f32 %v6319_v62, %v9580_v35 }
0x10d8   :  { %v6487_v28 = vsub.f32 1.5, %v6486_v6 }
0x10d9   :  { %v8206_v30 = vpop.eup %8205  ;;  %v11457_v19 = vadd.f32 %v6640_v59, %v12303_v8  ;;  %v6451_v63 = vadd.f32 1e-12, %v6435_v56  ;;  %v11460_v60 = vsub.f32 %v11371_v47, %v6345_v14 }
0x10da   :  { %v6488_v57 = vmul.f32 %v8204_v11, %v6487_v28  ;;  %v6494_v2 = vmul.f32 %v8206_v30, %v6450_v43  ;;  %vm6500_vm15 = vweird.f32 %v8206_v30 }
0x10db   :  { %v6671_v41 = vpack.c.bf16 %v11457_v19, %v11454_v49  ;;  %8207 = vrsqrt.f32 %v6451_v63  ;;  %v6377_v25 = vmul.f32 %v11460_v60, %v11460_v60  ;;  %vm6501_vm3 = vmor %vm6499_vm2, %vm6500_vm15  ;;  %vm6509_vm5 = vweird.f32 %v6451_v63 }
0x10dc   :  { %v6495_v52 = vmul.f32 %v8206_v30, %v6494_v2  ;;  %v6492_v38 = vsel %vm6491_vm14, %v8204_v11, %v6488_v57 }
0x10dd   :  { %7768 = vmatmul.msk.bf16.vlgmr.msrb.gmra.mxu2 %vm223_vm0, %v6671_v41  ;;  %v6413_v53 = vsel %vm223_vm0, %v6377_v25, 0.0  ;;  %v6625_v24 = vmul.f32 %v6492_v38, %v11342_v16 }
0x10de   :  { %v6496_v47 = vmul.f32 0.5, %v6495_v52  ;;  %v6400_v27 = vpop.xlane.xlu0 %6399  ;;  %v6322_v61 = vpop.xlane.xlu2 %6321  ;;  %6414 = vadd.xlane.f32.xlu2 %v6413_v53 }
0x10df   :  { %v6436_v51 = vmul.f32 %v6400_v27, %v9580_v35  ;;  %v6346_v12 = vmul.f32 %v6322_v61, %v9580_v35  ;;  %v6641_v16 = vmul.f32 %v6625_v24, %v12302_v54 }
0x10e0   :  { %v6497_v13 = vsub.f32 1.5, %v6496_v47 }
0x10e1   :  { %v8208_v46 = vpop.eup %8207  ;;  %v6452_v34 = vadd.f32 1e-12, %v6436_v51  ;;  %v11472_v39 = vsub.f32 %v11384_v1, %v6346_v12  ;;  %v11485_v17 = vadd.f32 %v6641_v16, %v12303_v8 }
0x10e2   :  { %v6498_v29 = vmul.f32 %v8206_v30, %v6497_v13  ;;  %v6504_v7 = vmul.f32 %v8208_v46, %v6451_v63  ;;  %vm6510_vm4 = vweird.f32 %v8208_v46 }
0x10e3   :  { %8209 = vrsqrt.f32 %v6452_v34  ;;  %v6378_v42 = vmul.f32 %v11472_v39, %v11472_v39  ;;  %vm6511_vm1 = vmor %vm6509_vm5, %vm6510_vm4  ;;  %vm6519_vm7 = vweird.f32 %v6452_v34 }
0x10e4   :  { %v6502_v10 = vsel %vm6501_vm3, %v8206_v30, %v6498_v29  ;;  %v6505_v31 = vmul.f32 %v8208_v46, %v6504_v7 }
0x10e5   :  { %v6626_v33 = vmul.f32 %v6502_v10, %v11355_v36  ;;  %v6416_v44 = vsel %vm223_vm0, %v6378_v42, 0.0 }
0x10e6   :  { %v6506_v11 = vmul.f32 0.5, %v6505_v31  ;;  %v6403_v32 = vpop.xlane.xlu0 %6402  ;;  %6417 = vadd.xlane.f32.xlu0 %v6416_v44  ;;  %v6325_v1 = vpop.xlane.xlu2 %6324 }
0x10e7   :  { %v6347_v43 = vmul.f32 %v6325_v1, %v9580_v35  ;;  %v6642_v55 = vmul.f32 %v6626_v33, %v12302_v54 }
0x10e8   :  { %v6507_v21 = vsub.f32 1.5, %v6506_v11 }
0x10e9   :  { %v8210_v58 = vpop.eup %8209  ;;  %v11482_v4 = vsub.f32 %v11397_v50, %v6347_v43  ;;  %v11488_v36 = vadd.f32 %v6642_v55, %v12303_v8 }
0x10ea   :  { %v6508_v37 = vmul.f32 %v8208_v46, %v6507_v21  ;;  %v6514_v48 = vmul.f32 %v8210_v58, %v6452_v34  ;;  %vm6520_vm6 = vweird.f32 %v8210_v58 }
0x10eb   :  { %v6672_v18 = vpack.c.bf16 %v11488_v36, %v11485_v17  ;;  %v6379_v0 = vmul.f32 %v11482_v4, %v11482_v4  ;;  %vm6521_vm8 = vmor %vm6519_vm7, %vm6520_vm6 }
0x10ec   :  { %v6515_v6 = vmul.f32 %v8210_v58, %v6514_v48  ;;  %v6512_v3 = vsel %vm6511_vm1, %v8208_v46, %v6508_v37 }
0x10ed   :  { %7769 = vmatmul.msk.bf16.gmra.mxu2 %vm223_vm0, %v6672_v18  ;;  %v6419_v50 = vsel %vm223_vm0, %v6379_v0, 0.0  ;;  %v6627_v28 = vmul.f32 %v6512_v3, %v11368_v40 }
0x10ee   :  { %v6516_v62 = vmul.f32 0.5, %v6515_v6  ;;  %v6328_v59 = vpop.xlane.xlu0 %6327  ;;  %6420 = vadd.xlane.f32.xlu1 %v6419_v50 }
0x10ef   :  { %v6348_v56 = vmul.f32 %v6328_v59, %v9580_v35  ;;  %v6643_v52 = vmul.f32 %v6627_v28, %v12302_v54 }
0x10f0   :  { %v6517_v14 = vsub.f32 1.5, %v6516_v62 }
0x10f1   :  { %v11499_v30 = vsub.f32 %v11406_v5, %v6348_v56  ;;  %v11512_v47 = vadd.f32 %v6643_v52, %v12303_v8 }
0x10f2   :  { %v6518_v63 = vmul.f32 %v8210_v58, %v6517_v14 }
0x10f3   :  { %v6380_v57 = vmul.f32 %v11499_v30, %v11499_v30 }
0x10f4   :  { %v6522_v2 = vsel %vm6521_vm8, %v8210_v58, %v6518_v63 }
0x10f5   :  { %v6628_v41 = vmul.f32 %v6522_v2, %v11381_v9  ;;  %v6422_v25 = vsel %vm223_vm0, %v6380_v57, 0.0 }
0x10f6   :  { %v6331_v53 = vpop.xlane.xlu0 %6330  ;;  %6423 = vadd.xlane.f32.xlu2 %v6422_v25 }
0x10f7   :  { %v6349_v40 = vmul.f32 %v6331_v53, %v9580_v35  ;;  %v6644_v5 = vmul.f32 %v6628_v41, %v12302_v54 }
0x10f9   :  { %v11509_v38 = vsub.f32 %v11412_v15, %v6349_v40  ;;  %v11515_v27 = vadd.f32 %v6644_v5, %v12303_v8  ;;  %v6437_v15 = vmul.f32 %v6403_v32, %v9580_v35 }
0x10fb   :  { %v6673_v9 = vpack.c.bf16 %v11515_v27, %v11512_v47  ;;  %v6381_v61 = vmul.f32 %v11509_v38, %v11509_v38  ;;  %v6453_v12 = vadd.f32 1e-12, %v6437_v15 }
0x10fd   :  { %7770 = vmatmul.msk.bf16.gmra.mxu2 %vm223_vm0, %v6673_v9  ;;  %v6425_v51 = vsel %vm223_vm0, %v6381_v61, 0.0  ;;  %8211 = vrsqrt.f32 %v6453_v12  ;;  %vm6529_vm10 = vweird.f32 %v6453_v12 }
0x10fe   :  { %6426 = vadd.xlane.f32.xlu0 %v6425_v51 }
0x1103   :  { %v8212_v13 = vpop.eup %8211 }
0x1104   :  { %v6524_v46 = vmul.f32 %v8212_v13, %v6453_v12  ;;  %vm6530_vm9 = vweird.f32 %v8212_v13 }
0x1105   :  { %vm6531_vm11 = vmor %vm6529_vm10, %vm6530_vm9 }
0x1106   :  { %v6525_v24 = vmul.f32 %v8212_v13, %v6524_v46 }
0x1108   :  { %v6526_v42 = vmul.f32 0.5, %v6525_v24 }
0x110a   :  { %v6527_v10 = vsub.f32 1.5, %v6526_v42 }
0x110c   :  { %v6528_v11 = vmul.f32 %v8212_v13, %v6527_v10 }
0x110e   :  { %v6532_v43 = vsel %vm6531_vm11, %v8212_v13, %v6528_v11 }
0x110f   :  { %v6629_v6 = vmul.f32 %v6532_v43, %v11394_v45  ;;  %v11555_v43 = vld [vmem:[%s12212_s7] ss:$0 sm:$0xff]  ;;  %s8528_s7 = smov [#allocation11]  }
0x1110   :  { %s7444_s27 = sshll.u32 %s8528_s7, 4  ;;  %s7445_s27 = int_to_ptr.vmem [resolvable:$true] %s7444_s27 }
0x1111   :  { %v6645_v45 = vmul.f32 %v6629_v6, %v12302_v54 }
0x1113   :  { %v11540_v5 = vadd.f32 %v6645_v45, %v12303_v8 }
0x1139   :  { %v6406_v34 = vpop.xlane.xlu1 %6405 }
0x113a   :  { %v6438_v29 = vmul.f32 %v6406_v34, %v9580_v35 }
0x113c   :  { %v6454_v7 = vadd.f32 1e-12, %v6438_v29 }
0x113e   :  { %8213 = vrsqrt.f32 %v6454_v7  ;;  %vm6539_vm14 = vweird.f32 %v6454_v7 }
0x1141   :  { %v6409_v31 = vpop.xlane.xlu1 %6408 }
0x1142   :  { %v6439_v33 = vmul.f32 %v6409_v31, %v9580_v35 }
0x1144   :  { %v8214_v44 = vpop.eup %8213  ;;  %v6455_v16 = vadd.f32 1e-12, %v6439_v33 }
0x1145   :  { %v6534_v32 = vmul.f32 %v8214_v44, %v6454_v7  ;;  %vm6540_vm12 = vweird.f32 %v8214_v44 }
0x1146   :  { %8215 = vrsqrt.f32 %v6455_v16  ;;  %vm6541_vm15 = vmor %vm6539_vm14, %vm6540_vm12  ;;  %vm6549_vm3 = vweird.f32 %v6455_v16 }
0x1147   :  { %v6535_v1 = vmul.f32 %v8214_v44, %v6534_v32 }
0x1149   :  { %v6536_v55 = vmul.f32 0.5, %v6535_v1  ;;  %v6412_v21 = vpop.xlane.xlu2 %6411  ;;  %v6334_v58 = vpop.xlane.xlu1 %6333 }
0x114a   :  { %v6440_v37 = vmul.f32 %v6412_v21, %v9580_v35  ;;  %v6350_v48 = vmul.f32 %v6334_v58, %v9580_v35 }
0x114b   :  { %v6537_v18 = vsub.f32 1.5, %v6536_v55 }
0x114c   :  { %v8216_v0 = vpop.eup %8215  ;;  %v6456_v50 = vadd.f32 1e-12, %v6440_v37  ;;  %v11530_v3 = vsub.f32 %v11441_v26, %v6350_v48 }
0x114d   :  { %v6538_v62 = vmul.f32 %v8214_v44, %v6537_v18  ;;  %v6544_v59 = vmul.f32 %v8216_v0, %v6455_v16  ;;  %vm6550_vm2 = vweird.f32 %v8216_v0 }
0x114e   :  { %8217 = vrsqrt.f32 %v6456_v50  ;;  %v6382_v56 = vmul.f32 %v11530_v3, %v11530_v3  ;;  %vm6551_vm4 = vmor %vm6549_vm3, %vm6550_vm2  ;;  %vm6559_vm1 = vweird.f32 %v6456_v50 }
0x114f   :  { %v6542_v14 = vsel %vm6541_vm15, %v8214_v44, %v6538_v62  ;;  %v6545_v28 = vmul.f32 %v8216_v0, %v6544_v59 }
0x1150   :  { %v6630_v63 = vmul.f32 %v6542_v14, %v11420_v22  ;;  %v6428_v57 = vsel %vm223_vm0, %v6382_v56, 0.0 }
0x1151   :  { %v6546_v2 = vmul.f32 0.5, %v6545_v28  ;;  %v6415_v41 = vpop.xlane.xlu2 %6414  ;;  %6429 = vadd.xlane.f32.xlu1 %v6428_v57 }
0x1152   :  { %v6441_v26 = vmul.f32 %v6415_v41, %v9580_v35  ;;  %v6646_v25 = vmul.f32 %v6630_v63, %v12302_v54 }
0x1153   :  { %v6547_v52 = vsub.f32 1.5, %v6546_v2 }
0x1154   :  { %v8218_v53 = vpop.eup %8217  ;;  %v6457_v40 = vadd.f32 1e-12, %v6441_v26  ;;  %v11543_v9 = vadd.f32 %v6646_v25, %v12303_v8 }
0x1155   :  { %v6548_v22 = vmul.f32 %v8216_v0, %v6547_v52  ;;  %v6554_v61 = vmul.f32 %v8218_v53, %v6456_v50  ;;  %vm6560_vm5 = vweird.f32 %v8218_v53 }
0x1156   :  { %8219 = vrsqrt.f32 %v6457_v40  ;;  %v6674_v51 = vpack.c.bf16 %v11543_v9, %v11540_v5  ;;  %vm6561_vm6 = vmor %vm6559_vm1, %vm6560_vm5  ;;  %vm6569_vm8 = vweird.f32 %v6457_v40 }
0x1157   :  { %v6555_v15 = vmul.f32 %v8218_v53, %v6554_v61  ;;  %v6552_v12 = vsel %vm6551_vm4, %v8216_v0, %v6548_v22 }
0x1158   :  { %7771 = vmatmul.msk.bf16.gmra.mxu2 %vm223_vm0, %v6674_v51  ;;  %v6631_v7 = vmul.f32 %v6552_v12, %v11428_v20 }
0x1159   :  { %v6556_v13 = vmul.f32 0.5, %v6555_v15  ;;  %v6418_v46 = vpop.xlane.xlu0 %6417 }
0x115a   :  { %v6442_v24 = vmul.f32 %v6418_v46, %v9580_v35  ;;  %v6647_v32 = vmul.f32 %v6631_v7, %v12302_v54 }
0x115b   :  { %v6557_v34 = vsub.f32 1.5, %v6556_v13 }
0x115c   :  { %v8220_v29 = vpop.eup %8219  ;;  %v6458_v42 = vadd.f32 1e-12, %v6442_v24  ;;  %v11565_v0 = vadd.f32 %v6647_v32, %v12303_v8 }
0x115d   :  { %v6558_v10 = vmul.f32 %v8218_v53, %v6557_v34  ;;  %v6564_v31 = vmul.f32 %v8220_v29, %v6457_v40  ;;  %vm6570_vm7 = vweird.f32 %v8220_v29 }
0x115e   :  { %8221 = vrsqrt.f32 %v6458_v42  ;;  %vm6571_vm9 = vmor %vm6569_vm8, %vm6570_vm7  ;;  %vm6579_vm11 = vweird.f32 %v6458_v42 }
0x115f   :  { %v6562_v33 = vsel %vm6561_vm6, %v8218_v53, %v6558_v10  ;;  %v6565_v44 = vmul.f32 %v8220_v29, %v6564_v31 }
0x1160   :  { %v6632_v16 = vmul.f32 %v6562_v33, %v11438_v23  ;;  %v6712_v11 = vpop.f32.mrf.mxu2 }
0x1161   :  { %v6566_v1 = vmul.f32 0.5, %v6565_v44  ;;  %v11558_v20 = vadd.f32 %v11555_v43, %v6712_v11  ;;  %v6421_v55 = vpop.xlane.xlu1 %6420 }
0x1162   :  { %v6443_v21 = vmul.f32 %v6421_v55, %v9580_v35  ;;  %v6648_v58 = vmul.f32 %v6632_v16, %v12302_v54 }
0x1163   :  { %v6567_v37 = vsub.f32 1.5, %v6566_v1  ;;  %v6752_v23 = vmul.f32 %v11558_v20, %v11558_v20 }
0x1164   :  { %v8222_v48 = vpop.eup %8221  ;;  %v6459_v18 = vadd.f32 1e-12, %v6443_v21  ;;  %v11568_v6 = vadd.f32 %v6648_v58, %v12303_v8 }
0x1165   :  { %v6568_v50 = vmul.f32 %v8220_v29, %v6567_v37  ;;  %v6574_v62 = vmul.f32 %v8222_v48, %v6458_v42  ;;  %v6768_v59 = vmul.f32 %v6752_v23, %v11558_v20  ;;  %vm6580_vm10 = vweird.f32 %v8222_v48 }
0x1166   :  { %8223 = vrsqrt.f32 %v6459_v18  ;;  %v6675_v56 = vpack.c.bf16 %v11568_v6, %v11565_v0  ;;  %vm6581_vm12 = vmor %vm6579_vm11, %vm6580_vm10  ;;  %vm6589_vm15 = vweird.f32 %v6459_v18 }
0x1167   :  { %v6575_v14 = vmul.f32 %v8222_v48, %v6574_v62  ;;  %v6784_v28 = vmul.f32 0.044715, %v6768_v59  ;;  %v6572_v57 = vsel %vm6571_vm9, %v8220_v29, %v6568_v50 }
0x1168   :  { %v6714_v63 = vpop.f32.mrf.mxu2  ;;  %7772 = vmatmul.msk.bf16.gmra.mxu2 %vm223_vm0, %v6675_v56  ;;  %v6633_v61 = vmul.f32 %v6572_v57, %v11460_v60 }
0x1169   :  { %v6576_v45 = vmul.f32 0.5, %v6575_v14  ;;  %v6800_v2 = vadd.f32 %v6784_v28, %v11558_v20  ;;  %v11576_v41 = vadd.f32 %v11555_v43, %v6714_v63  ;;  %v6424_v26 = vpop.xlane.xlu2 %6423 }
0x116a   :  { %v6444_v25 = vmul.f32 %v6424_v26, %v9580_v35  ;;  %v6649_v10 = vmul.f32 %v6633_v61, %v12302_v54 }
0x116b   :  { %v6577_v52 = vsub.f32 1.5, %v6576_v45  ;;  %v6816_v53 = vmul.f32 0.7978846, %v6800_v2  ;;  %v6753_v40 = vmul.f32 %v11576_v41, %v11576_v41 }
0x116c   :  { %v8224_v22 = vpop.eup %8223  ;;  %v6460_v51 = vadd.f32 1e-12, %v6444_v25 }
0x116d   :  { %v6578_v15 = vmul.f32 %v8222_v48, %v6577_v52  ;;  %v6584_v12 = vmul.f32 %v8224_v22, %v6459_v18  ;;  %v6769_v13 = vmul.f32 %v6753_v40, %v11576_v41  ;;  %vm6590_vm14 = vweird.f32 %v8224_v22 }
0x116e   :  { %8225 = vrsqrt.f32 %v6460_v51  ;;  %vm6591_vm2 = vmor %vm6589_vm15, %vm6590_vm14  ;;  %vm6599_vm4 = vweird.f32 %v6460_v51 }
0x116f   :  { %v6582_v46 = vsel %vm6581_vm12, %v8222_v48, %v6578_v15  ;;  %8227 = vtanh.f32 %v6816_v53  ;;  %v6585_v24 = vmul.f32 %v8224_v22, %v6584_v12  ;;  %v6785_v29 = vmul.f32 0.044715, %v6769_v13 }
0x1170   :  { %v6634_v34 = vmul.f32 %v6582_v46, %v11472_v39  ;;  %v6717_v7 = vpop.f32.mrf.mxu2  ;;  %v11593_v39 = vadd.f32 %v6649_v10, %v12303_v8 }
0x1171   :  { %v6586_v31 = vmul.f32 0.5, %v6585_v24  ;;  %v11586_v60 = vadd.f32 %v11555_v43, %v6717_v7  ;;  %v6801_v42 = vadd.f32 %v6785_v29, %v11576_v41 }
0x1172   :  { %v6650_v33 = vmul.f32 %v6634_v34, %v12302_v54 }
0x1173   :  { %v6587_v44 = vsub.f32 1.5, %v6586_v31  ;;  %v6754_v16 = vmul.f32 %v11586_v60, %v11586_v60  ;;  %v6817_v32 = vmul.f32 0.7978846, %v6801_v42 }
0x1174   :  { %v8226_v11 = vpop.eup %8225  ;;  %v11596_v1 = vadd.f32 %v6650_v33, %v12303_v8 }
0x1175   :  { %v8228_v55 = vpop.eup %8227  ;;  %v6588_v21 = vmul.f32 %v8224_v22, %v6587_v44  ;;  %v6594_v58 = vmul.f32 %v8226_v11, %v6460_v51  ;;  %v6770_v37 = vmul.f32 %v6754_v16, %v11586_v60  ;;  %8229 = vtanh.f32 %v6817_v32 }
0x1176   :  { %v6676_v23 = vpack.c.bf16 %v11596_v1, %v11593_v39  ;;  %v6848_v62 = vadd.f32 1.0, %v8228_v55  ;;  %vm6600_vm3 = vweird.f32 %v8226_v11 }
0x1177   :  { %v6595_v48 = vmul.f32 %v8226_v11, %v6594_v58  ;;  %v6786_v50 = vmul.f32 0.044715, %v6770_v37  ;;  %v6592_v56 = vsel %vm6591_vm2, %v8224_v22, %v6588_v21  ;;  %vm6601_vm5 = vmor %vm6599_vm4, %vm6600_vm3 }
0x1178   :  { %v6719_v59 = vpop.f32.mrf.mxu2  ;;  %7773 = vmatmul.msk.bf16.gmra.mxu2 %vm223_vm0, %v6676_v23  ;;  %v6635_v18 = vmul.f32 %v6592_v56, %v11482_v4  ;;  %v6864_v25 = vmul.f32 0.5, %v6848_v62 }
0x1179   :  { %v6596_v14 = vmul.f32 0.5, %v6595_v48  ;;  %v6802_v28 = vadd.f32 %v6786_v50, %v11586_v60  ;;  %v6720_v63 = vadd.f32 %v11555_v43, %v6719_v59 }
0x117a   :  { %v6651_v46 = vmul.f32 %v6635_v18, %v12302_v54  ;;  %v6880_v24 = vmul.f32 %v6864_v25, %v11558_v20 }
0x117b   :  { %v6597_v57 = vsub.f32 1.5, %v6596_v14  ;;  %v6818_v45 = vmul.f32 0.7978846, %v6802_v28  ;;  %v6755_v2 = vmul.f32 %v6720_v63, %v6720_v63  ;;  %v8230_v26 = vpop.eup %8229 }
0x117c   :  { %v6849_v52 = vadd.f32 1.0, %v8230_v26  ;;  %v11612_v42 = vadd.f32 %v6651_v46, %v12303_v8 }
0x117d   :  { %v6598_v53 = vmul.f32 %v8226_v11, %v6597_v57  ;;  %v6771_v40 = vmul.f32 %v6755_v2, %v6720_v63  ;;  %8231 = vtanh.f32 %v6818_v45 }
0x117e   :  { %v6865_v61 = vmul.f32 0.5, %v6849_v52 }
0x117f   :  { %v6602_v22 = vsel %vm6601_vm5, %v8226_v11, %v6598_v53  ;;  %v6787_v15 = vmul.f32 0.044715, %v6771_v40 }
0x1180   :  { %v6636_v12 = vmul.f32 %v6602_v22, %v11499_v30  ;;  %v6722_v13 = vpop.f32.mrf.mxu2  ;;  %v6881_v34 = vmul.f32 %v6865_v61, %v11576_v41 }
0x1181   :  { %v6803_v4 = vadd.f32 %v6787_v15, %v6720_v63  ;;  %v6723_v51 = vadd.f32 %v11555_v43, %v6722_v13  ;;  %v6427_v15 = vpop.xlane.xlu0 %6426 }
0x1182   :  { %v6652_v29 = vmul.f32 %v6636_v12, %v12302_v54  ;;  %v6896_v7 = vpack.c.bf16 %v6881_v34, %v6880_v24 }
0x1183   :  { %v6819_v10 = vmul.f32 0.7978846, %v6803_v4  ;;  %v6756_v31 = vmul.f32 %v6723_v51, %v6723_v51  ;;  %v8232_v33 = vpop.eup %8231 }
0x1184   :  { %v11615_v30 = vadd.f32 %v6652_v29, %v12303_v8  ;;  %7776 = vmatmul.msk.bf16.vlgmr.msrb.gmra.mxu3 %vm3403_vm13, %v6896_v7  ;;  %v6850_v16 = vadd.f32 1.0, %v8232_v33 }
0x1185   :  { %8233 = vtanh.f32 %v6819_v10  ;;  %v6772_v44 = vmul.f32 %v6756_v31, %v6723_v51 }
0x1186   :  { %v6677_v20 = vpack.c.bf16 %v11615_v30, %v11612_v42  ;;  %v6866_v23 = vmul.f32 0.5, %v6850_v16 }
0x1187   :  { %v6788_v41 = vmul.f32 0.044715, %v6772_v44 }
0x1188   :  { %v6724_v11 = vpop.f32.mrf.mxu2  ;;  %7774 = vmatmul.msk.bf16.gmra.mxu2 %vm223_vm0, %v6677_v20  ;;  %v6882_v56 = vmul.f32 %v6866_v23, %v11586_v60  ;;  %v6445_v60 = vmul.f32 %v6427_v15, %v9580_v35 }
0x1189   :  { %v6804_v32 = vadd.f32 %v6788_v41, %v6723_v51  ;;  %v6725_v55 = vadd.f32 %v11555_v43, %v6724_v11 }
0x118b   :  { %v8234_v21 = vpop.eup %8233  ;;  %v6820_v58 = vmul.f32 0.7978846, %v6804_v32  ;;  %v6757_v37 = vmul.f32 %v6725_v55, %v6725_v55 }
0x118c   :  { %v6851_v48 = vadd.f32 1.0, %v8234_v21 }
0x118d   :  { %v6773_v50 = vmul.f32 %v6757_v37, %v6725_v55  ;;  %8235 = vtanh.f32 %v6820_v58 }
0x118e   :  { %v6867_v62 = vmul.f32 0.5, %v6851_v48 }
0x118f   :  { %v6789_v59 = vmul.f32 0.044715, %v6773_v50 }
0x1190   :  { %v6883_v14 = vmul.f32 %v6867_v62, %v6720_v63  ;;  %v6461_v63 = vadd.f32 1e-12, %v6445_v60 }
0x1191   :  { %v6805_v28 = vadd.f32 %v6789_v59, %v6725_v55 }
0x1192   :  { %v6897_v57 = vpack.c.bf16 %v6883_v14, %v6882_v56  ;;  %vm6609_vm6 = vweird.f32 %v6461_v63 }
0x1193   :  { %v6821_v45 = vmul.f32 0.7978846, %v6805_v28  ;;  %v8236_v2 = vpop.eup %8235 }
0x1194   :  { %7777 = vmatmul.msk.bf16.gmra.mxu3 %vm3403_vm13, %v6897_v57  ;;  %v6852_v26 = vadd.f32 1.0, %v8236_v2 }
0x1195   :  { %8237 = vtanh.f32 %v6821_v45 }
0x1196   :  { %v6868_v25 = vmul.f32 0.5, %v6852_v26  ;;  %8239 = vrsqrt.f32 %v6461_v63 }
0x1198   :  { %v6884_v40 = vmul.f32 %v6868_v25, %v6723_v51 }
0x119b   :  { %v8238_v18 = vpop.eup %8237 }
0x119c   :  { %v6853_v52 = vadd.f32 1.0, %v8238_v18  ;;  %v8240_v12 = vpop.eup %8239 }
0x119d   :  { %v6604_v13 = vmul.f32 %v8240_v12, %v6461_v63  ;;  %vm6610_vm1 = vweird.f32 %v8240_v12 }
0x119e   :  { %v6869_v53 = vmul.f32 0.5, %v6853_v52  ;;  %vm6611_vm7 = vmor %vm6609_vm6, %vm6610_vm1 }
0x119f   :  { %v6605_v46 = vmul.f32 %v8240_v12, %v6604_v13 }
0x11a0   :  { %v6885_v61 = vmul.f32 %v6869_v53, %v6725_v55 }
0x11a1   :  { %v6606_v29 = vmul.f32 0.5, %v6605_v46 }
0x11a2   :  { %v6898_v22 = vpack.c.bf16 %v6885_v61, %v6884_v40 }
0x11a3   :  { %v6607_v7 = vsub.f32 1.5, %v6606_v29 }
0x11a4   :  { %7778 = vmatmul.msk.bf16.gmra.mxu3 %vm3403_vm13, %v6898_v22 }
0x11a5   :  { %v6608_v10 = vmul.f32 %v8240_v12, %v6607_v7 }
0x11a7   :  { %v6612_v44 = vsel %vm6611_vm7, %v8240_v12, %v6608_v10 }
0x11a8   :  { %v6637_v16 = vmul.f32 %v6612_v44, %v11509_v38 }
0x11aa   :  { %v6653_v58 = vmul.f32 %v6637_v16, %v12302_v54 }
0x11ac   :  { %v11633_v50 = vadd.f32 %v6653_v58, %v12303_v8 }
0x11c4   :  { %v6430_v24 = vpop.xlane.xlu1 %6429 }
0x11c5   :  { %v6446_v34 = vmul.f32 %v6430_v24, %v9580_v35 }
0x11c7   :  { %v6462_v4 = vadd.f32 1e-12, %v6446_v34 }
0x11c9   :  { %8241 = vrsqrt.f32 %v6462_v4  ;;  %vm6619_vm9 = vweird.f32 %v6462_v4 }
0x11cf   :  { %v8242_v51 = vpop.eup %8241 }
0x11d0   :  { %v6614_v31 = vmul.f32 %v8242_v51, %v6462_v4  ;;  %vm6620_vm8 = vweird.f32 %v8242_v51 }
0x11d1   :  { %vm6621_vm10 = vmor %vm6619_vm9, %vm6620_vm8 }
0x11d2   :  { %v6615_v33 = vmul.f32 %v8242_v51, %v6614_v31 }
0x11d4   :  { %v6616_v20 = vmul.f32 0.5, %v6615_v33 }
0x11d6   :  { %v6617_v41 = vsub.f32 1.5, %v6616_v20 }
0x11d8   :  { %v6618_v11 = vmul.f32 %v8242_v51, %v6617_v41 }
0x11da   :  { %v6622_v32 = vsel %vm6621_vm10, %v8242_v51, %v6618_v11 }
0x11db   :  { %v6638_v55 = vmul.f32 %v6622_v32, %v11530_v3  ;;  %v6727_v21 = vpop.f32.mrf.mxu2 }
0x11dc   :  { %v6728_v37 = vadd.f32 %v11555_v43, %v6727_v21 }
0x11dd   :  { %v6654_v23 = vmul.f32 %v6638_v55, %v12302_v54 }
0x11de   :  { %v6758_v48 = vmul.f32 %v6728_v37, %v6728_v37 }
0x11df   :  { %v11636_v62 = vadd.f32 %v6654_v23, %v12303_v8 }
0x11e0   :  { %v6774_v38 = vmul.f32 %v6758_v48, %v6728_v37 }
0x11e1   :  { %v6678_v59 = vpack.c.bf16 %v11636_v62, %v11633_v50 }
0x11e2   :  { %v6790_v56 = vmul.f32 0.044715, %v6774_v38 }
0x11e3   :  { %v6729_v3 = vpop.f32.mrf.mxu2  ;;  %7775 = vmatmul.msk.bf16.gmra.mxu2 %vm223_vm0, %v6678_v59 }
0x11e4   :  { %v6806_v14 = vadd.f32 %v6790_v56, %v6728_v37  ;;  %v6730_v28 = vadd.f32 %v11555_v43, %v6729_v3 }
0x11e6   :  { %v6822_v57 = vmul.f32 0.7978846, %v6806_v14  ;;  %v6759_v54 = vmul.f32 %v6730_v28, %v6730_v28 }
0x11e8   :  { %v6775_v45 = vmul.f32 %v6759_v54, %v6730_v28  ;;  %8243 = vtanh.f32 %v6822_v57 }
0x11ea   :  { %v6791_v2 = vmul.f32 0.044715, %v6775_v45 }
0x11eb   :  { %v6732_v26 = vpop.f32.mrf.mxu2 }
0x11ec   :  { %v6807_v18 = vadd.f32 %v6791_v2, %v6730_v28  ;;  %v6733_v8 = vadd.f32 %v11555_v43, %v6732_v26 }
0x11ee   :  { %v6823_v25 = vmul.f32 0.7978846, %v6807_v18  ;;  %v6760_v52 = vmul.f32 %v6733_v8, %v6733_v8  ;;  %v8244_v53 = vpop.eup %8243 }
0x11ef   :  { %v6854_v22 = vadd.f32 1.0, %v8244_v53 }
0x11f0   :  { %8245 = vtanh.f32 %v6823_v25  ;;  %v6776_v40 = vmul.f32 %v6760_v52, %v6733_v8 }
0x11f1   :  { %v6870_v24 = vmul.f32 0.5, %v6854_v22 }
0x11f2   :  { %v6792_v61 = vmul.f32 0.044715, %v6776_v40 }
0x11f3   :  { %v6734_v15 = vpop.f32.mrf.mxu2  ;;  %v6886_v51 = vmul.f32 %v6870_v24, %v6728_v37 }
0x11f4   :  { %v6808_v60 = vadd.f32 %v6792_v61, %v6733_v8  ;;  %v6735_v63 = vadd.f32 %v11555_v43, %v6734_v15 }
0x11f6   :  { %v8246_v12 = vpop.eup %8245  ;;  %v6824_v13 = vmul.f32 0.7978846, %v6808_v60  ;;  %v6761_v46 = vmul.f32 %v6735_v63, %v6735_v63 }
0x11f7   :  { %v6855_v34 = vadd.f32 1.0, %v8246_v12 }
0x11f8   :  { %v6777_v4 = vmul.f32 %v6761_v46, %v6735_v63  ;;  %8247 = vtanh.f32 %v6824_v13 }
0x11f9   :  { %v6871_v29 = vmul.f32 0.5, %v6855_v34 }
0x11fa   :  { %v6793_v7 = vmul.f32 0.044715, %v6777_v4 }
0x11fb   :  { %v6887_v10 = vmul.f32 %v6871_v29, %v6730_v28  ;;  %v6737_v31 = vpop.f32.mrf.mxu2 }
0x11fc   :  { %v6809_v33 = vadd.f32 %v6793_v7, %v6735_v63  ;;  %v6738_v44 = vadd.f32 %v11555_v43, %v6737_v31 }
0x11fd   :  { %v6899_v20 = vpack.c.bf16 %v6887_v10, %v6886_v51 }
0x11fe   :  { %v6825_v41 = vmul.f32 0.7978846, %v6809_v33  ;;  %v6762_v16 = vmul.f32 %v6738_v44, %v6738_v44  ;;  %v8248_v11 = vpop.eup %8247 }
0x11ff   :  { %7779 = vmatmul.msk.bf16.gmra.mxu3 %vm3403_vm13, %v6899_v20  ;;  %v6856_v21 = vadd.f32 1.0, %v8248_v11 }
0x1200   :  { %8249 = vtanh.f32 %v6825_v41  ;;  %v6778_v32 = vmul.f32 %v6762_v16, %v6738_v44 }
0x1201   :  { %v6872_v56 = vmul.f32 0.5, %v6856_v21 }
0x1202   :  { %v6794_v55 = vmul.f32 0.044715, %v6778_v32 }
0x1203   :  { %v6739_v58 = vpop.f32.mrf.mxu2  ;;  %v6888_v54 = vmul.f32 %v6872_v56, %v6733_v8 }
0x1204   :  { %v6810_v23 = vadd.f32 %v6794_v55, %v6738_v44  ;;  %v6740_v48 = vadd.f32 %v11555_v43, %v6739_v58 }
0x1206   :  { %v8250_v37 = vpop.eup %8249  ;;  %v6826_v38 = vmul.f32 0.7978846, %v6810_v23  ;;  %v6763_v59 = vmul.f32 %v6740_v48, %v6740_v48 }
0x1207   :  { %v6857_v3 = vadd.f32 1.0, %v8250_v37 }
0x1208   :  { %v6779_v14 = vmul.f32 %v6763_v59, %v6740_v48  ;;  %8251 = vtanh.f32 %v6826_v38  ;;  %v6937_v38 = vpop.f32.mrf.mxu3 }
0x1209   :  { %v6873_v28 = vmul.f32 0.5, %v6857_v3 }
0x120a   :  { %v6795_v57 = vmul.f32 0.044715, %v6779_v14 }
0x120b   :  { %v6889_v45 = vmul.f32 %v6873_v28, %v6735_v63  ;;  %v6742_v2 = vpop.f32.mrf.mxu2 }
0x120c   :  { %v6811_v26 = vadd.f32 %v6795_v57, %v6740_v48  ;;  %v6743_v18 = vadd.f32 %v11555_v43, %v6742_v2 }
0x120d   :  { %v6900_v25 = vpack.c.bf16 %v6889_v45, %v6888_v54 }
0x120e   :  { %v6827_v52 = vmul.f32 0.7978846, %v6811_v26  ;;  %v6764_v53 = vmul.f32 %v6743_v18, %v6743_v18  ;;  %v8252_v40 = vpop.eup %8251 }
0x120f   :  { %7780 = vmatmul.msk.bf16.gmra.mxu3 %vm3403_vm13, %v6900_v25  ;;  %v6858_v15 = vadd.f32 1.0, %v8252_v40 }
0x1210   :  { %8253 = vtanh.f32 %v6827_v52  ;;  %v6780_v61 = vmul.f32 %v6764_v53, %v6743_v18 }
0x1211   :  { %v6874_v24 = vmul.f32 0.5, %v6858_v15 }
0x1212   :  { %v6796_v22 = vmul.f32 0.044715, %v6780_v61 }
0x1213   :  { %v6744_v60 = vpop.f32.mrf.mxu2  ;;  %v6890_v51 = vmul.f32 %v6874_v24, %v6738_v44  ;;  %v11652_v44 = vpop.f32.mrf.mxu3 }
0x1214   :  { %v6812_v12 = vadd.f32 %v6796_v22, %v6743_v18  ;;  %v6745_v13 = vadd.f32 %v11555_v43, %v6744_v60 }
0x1216   :  { %v8254_v8 = vpop.eup %8253  ;;  %v6828_v63 = vmul.f32 0.7978846, %v6812_v12  ;;  %v6765_v46 = vmul.f32 %v6745_v13, %v6745_v13 }
0x1217   :  { %v6859_v34 = vadd.f32 1.0, %v8254_v8 }
0x1218   :  { %v6781_v4 = vmul.f32 %v6765_v46, %v6745_v13  ;;  %8255 = vtanh.f32 %v6828_v63 }
0x1219   :  { %v6875_v29 = vmul.f32 0.5, %v6859_v34 }
0x121a   :  { %v6797_v7 = vmul.f32 0.044715, %v6781_v4 }
0x121b   :  { %v6891_v10 = vmul.f32 %v6875_v29, %v6740_v48  ;;  %v11654_v48 = vpop.f32.mrf.mxu3 }
0x121c   :  { %v6813_v31 = vadd.f32 %v6797_v7, %v6745_v13 }
0x121d   :  { %v6901_v33 = vpack.c.bf16 %v6891_v10, %v6890_v51  ;;  %v12304_v10 = vld [vmem:[#allocation18_spill] sm:$0xff] }
0x121e   :  { %v6829_v20 = vmul.f32 0.7978846, %v6813_v31  ;;  %v8256_v41 = vpop.eup %8255 }
0x121f   :  { %7781 = vmatmul.msk.bf16.gmra.mxu3 %vm3403_vm13, %v6901_v33  ;;  %v6860_v16 = vadd.f32 1.0, %v8256_v41 }
0x1220   :  { %8257 = vtanh.f32 %v6829_v20 }
0x1221   :  { %v6876_v32 = vmul.f32 0.5, %v6860_v16 }
0x1223   :  { %v6892_v58 = vmul.f32 %v6876_v32, %v6743_v18  ;;  %v11656_v59 = vpop.f32.mrf.mxu3 }
0x1226   :  { %v8258_v11 = vpop.eup %8257 }
0x1227   :  { %v6861_v55 = vadd.f32 1.0, %v8258_v11 }
0x1229   :  { %v6877_v21 = vmul.f32 0.5, %v6861_v55 }
0x122b   :  { %v6893_v23 = vmul.f32 %v6877_v21, %v6745_v13  ;;  %v11660_v26 = vpop.f32.mrf.mxu3 }
0x122d   :  { %v6902_v37 = vpack.c.bf16 %v6893_v23, %v6892_v58 }
0x122f   :  { %7782 = vmatmul.msk.bf16.gmra.mxu3 %vm3403_vm13, %v6902_v37 }
0x1233   :  { %v6949_v22 = vpop.f32.mrf.mxu3 }
0x1266   :  { %v6747_v56 = vpop.f32.mrf.mxu2 }
0x1267   :  { %v6748_v3 = vadd.f32 %v11555_v43, %v6747_v56 }
0x1269   :  { %v6766_v14 = vmul.f32 %v6748_v3, %v6748_v3 }
0x126b   :  { %v6782_v28 = vmul.f32 %v6766_v14, %v6748_v3  ;;  %v6950_v14 = vadd.f32 %v6949_v22, %v12304_v10 }
0x126d   :  { %v6798_v57 = vmul.f32 0.044715, %v6782_v28 }
0x126e   :  { %v6749_v54 = vpop.f32.mrf.mxu2 }
0x126f   :  { %v6814_v45 = vadd.f32 %v6798_v57, %v6748_v3  ;;  %v6750_v2 = vadd.f32 %v11555_v43, %v6749_v54  ;;  %v11692_v57 = vadd.f32 %v6950_v14, %v11515_v27 }
0x1271   :  { %v6830_v18 = vmul.f32 0.7978846, %v6814_v45  ;;  %v6767_v25 = vmul.f32 %v6750_v2, %v6750_v2  ;;  %v7008_v54 = vsel %vm223_vm0, %v11692_v57, 0.0 }
0x1273   :  { %v6783_v52 = vmul.f32 %v6767_v25, %v6750_v2  ;;  %8259 = vtanh.f32 %v6830_v18 }
0x1275   :  { %v6799_v53 = vmul.f32 0.044715, %v6783_v52 }
0x1277   :  { %v6815_v40 = vadd.f32 %v6799_v53, %v6750_v2 }
0x1279   :  { %v6831_v61 = vmul.f32 0.7978846, %v6815_v40  ;;  %v8260_v15 = vpop.eup %8259 }
0x127a   :  { %v6862_v60 = vadd.f32 1.0, %v8260_v15 }
0x127b   :  { %8261 = vtanh.f32 %v6831_v61 }
0x127c   :  { %v6878_v13 = vmul.f32 0.5, %v6862_v60 }
0x127e   :  { %v6894_v24 = vmul.f32 %v6878_v13, %v6748_v3 }
0x1281   :  { %v8262_v12 = vpop.eup %8261 }
0x1282   :  { %v6863_v8 = vadd.f32 1.0, %v8262_v12  ;;  %v6952_v63 = vpop.f32.mrf.mxu3 }
0x1284   :  { %v6879_v46 = vmul.f32 0.5, %v6863_v8 }
0x1286   :  { %v6895_v43 = vmul.f32 %v6879_v46, %v6750_v2 }
0x1288   :  { %v6903_v34 = vpack.c.bf16 %v6895_v43, %v6894_v24 }
0x128a   :  { %v6954_v4 = vpop.f32.mrf.mxu3  ;;  %7783 = vmatmul.msk.bf16.gmra.mxu3 %vm3403_vm13, %v6903_v34 }
0x128b   :  { %v6955_v15 = vadd.f32 %v6954_v4, %v12304_v10  ;;  %v6945_v4 = vadd.f32 %v11656_v59, %v12304_v10 }
0x128d   :  { %v11729_v13 = vadd.f32 %v6955_v15, %v11543_v9 }
0x128f   :  { %v7014_v9 = vsel %vm223_vm0, %v11729_v13, 0.0 }
0x1292   :  { %v6957_v29 = vpop.f32.mrf.mxu3 }
0x1293   :  { %v6958_v27 = vadd.f32 %v6957_v29, %v12304_v10 }
0x129a   :  { %v6959_v7 = vpop.f32.mrf.mxu3 }
0x129b   :  { %v6960_v61 = vadd.f32 %v6959_v7, %v12304_v10 }
0x129d   :  { %v11724_v12 = vadd.f32 %v6960_v61, %v11568_v6  ;;  %v6943_v6 = vadd.f32 %v11654_v48, %v12304_v10  ;;  %v6940_v48 = vadd.f32 %v11652_v44, %v12304_v10 }
0x129f   :  { %v7020_v24 = vsel %vm223_vm0, %v11724_v12, 0.0 }
0x12a2   :  { %v6962_v51 = vpop.f32.mrf.mxu3 }
0x12a3   :  { %v6963_v31 = vadd.f32 %v6962_v51, %v12304_v10 }
0x12a5   :  { %v6987_v33 = vadd.f32 %v6963_v31, %v11593_v39  ;;  %v6953_v39 = vadd.f32 %v6952_v63, %v12304_v10  ;;  %v6948_v63 = vadd.f32 %v11660_v26, %v12304_v10  ;;  %v11746_v26 = vadd.f32 %v6943_v6, %v11485_v17 }
0x12a6   :  { %v11760_v17 = vadd.f32 %v6940_v48, %v11457_v19 }
0x12a7   :  { %v7023_v20 = vsel %vm223_vm0, %v6987_v33, 0.0  ;;  %v11743_v34 = vadd.f32 %v6948_v63, %v11512_v47  ;;  %v6999_v7 = vsel %vm223_vm0, %v11746_v26, 0.0  ;;  %v11757_v47 = vadd.f32 %v6945_v4, %v11488_v36 }
0x12a8   :  { %7024 = vadd.xlane.f32.xlu0 %v7023_v20 }
0x12a9   :  { %v7005_v29 = vsel %vm223_vm0, %v11743_v34, 0.0  ;;  %v7002_v31 = vsel %vm223_vm0, %v11757_v47, 0.0 }
0x12aa   :  { %v6964_v41 = vpop.f32.mrf.mxu3 }
0x12ab   :  { %v6965_v16 = vadd.f32 %v6964_v41, %v12304_v10 }
0x12ad   :  { %v11668_v11 = vadd.f32 %v6965_v16, %v11596_v1  ;;  %v11680_v1 = vadd.f32 %v6953_v39, %v11540_v5  ;;  %v6938_v5 = vadd.f32 %v6937_v38, %v12304_v10 }
0x12af   :  { %v7026_v32 = vsel %vm223_vm0, %v11668_v11, 0.0  ;;  %v7011_v28 = vsel %vm223_vm0, %v11680_v1, 0.0 }
0x12b0   :  { %7027 = vadd.xlane.f32.xlu1 %v7026_v32 }
0x12b2   :  { %v6967_v55 = vpop.f32.mrf.mxu3 }
0x12b3   :  { %v6968_v21 = vadd.f32 %v6967_v55, %v12304_v10 }
0x12b5   :  { %v11674_v58 = vadd.f32 %v6968_v21, %v11612_v42 }
0x12b7   :  { %v7029_v23 = vsel %vm223_vm0, %v11674_v58, 0.0 }
0x12b8   :  { %7030 = vadd.xlane.f32.xlu1 %v7029_v23 }
0x12ba   :  { %v6969_v37 = vpop.f32.mrf.mxu3 }
0x12bb   :  { %v6970_v56 = vadd.f32 %v6969_v37, %v12304_v10 }
0x12bd   :  { %v11684_v3 = vadd.f32 %v6970_v56, %v11615_v30  ;;  %v11698_v30 = vadd.f32 %v6938_v5, %v11454_v49  ;;  %v11710_v49 = vadd.f32 %v6958_v27, %v11565_v0 }
0x12bf   :  { %v7032_v42 = vsel %vm223_vm0, %v11684_v3, 0.0  ;;  %v6993_v45 = vsel %vm223_vm0, %v11698_v30, 0.0  ;;  %v7017_v22 = vsel %vm223_vm0, %v11710_v49, 0.0 }
0x12c0   :  { %7033 = vadd.xlane.f32.xlu2 %v7032_v42  ;;  %7012 = vadd.xlane.f32.xlu1 %v7011_v28 }
0x12c8   :  { %7009 = vadd.xlane.f32.xlu1 %v7008_v54 }
0x12d0   :  { %6994 = vadd.xlane.f32.xlu1 %v6993_v45 }
0x130d   :  { %v6972_v2 = vpop.f32.mrf.mxu3 }
0x130e   :  { %v6973_v18 = vadd.f32 %v6972_v2, %v12304_v10 }
0x1310   :  { %v11704_v25 = vadd.f32 %v6973_v18, %v11633_v50 }
0x1312   :  { %v7035_v38 = vsel %vm223_vm0, %v11704_v25, 0.0 }
0x1313   :  { %7036 = vadd.xlane.f32.xlu2 %v7035_v38 }
0x1315   :  { %v6974_v52 = vpop.f32.mrf.mxu3 }
0x1316   :  { %v6975_v53 = vadd.f32 %v6974_v52, %v12304_v10  ;;  %v6996_v10 = vsel %vm223_vm0, %v11760_v17, 0.0 }
0x1318   :  { %v11714_v40 = vadd.f32 %v6975_v53, %v11636_v62 }
0x131a   :  { %v7038_v50 = vsel %vm223_vm0, %v11714_v40, 0.0 }
0x131b   :  { %v7025_v60 = vpop.xlane.xlu0 %7024  ;;  %7039 = vadd.xlane.f32.xlu0 %v7038_v50  ;;  %7018 = vadd.xlane.f32.xlu2 %v7017_v22 }
0x131c   :  { %v7051_v0 = vmul.f32 %v7025_v60, %v9580_v35 }
0x131e   :  { %v11726_v62 = vsub.f32 %v6987_v33, %v7051_v0 }
0x1320   :  { %v7083_v8 = vmul.f32 %v11726_v62, %v11726_v62 }
0x1322   :  { %v7119_v46 = vsel %vm223_vm0, %v7083_v8, 0.0 }
0x1323   :  { %7120 = vadd.xlane.f32.xlu1 %v7119_v46  ;;  %7021 = vadd.xlane.f32.xlu0 %v7020_v24  ;;  %v7028_v43 = vpop.xlane.xlu1 %7027 }
0x1324   :  { %7015 = vadd.xlane.f32.xlu2 %v7014_v9  ;;  %v7052_v59 = vmul.f32 %v7028_v43, %v9580_v35 }
0x1326   :  { %v11766_v33 = vsub.f32 %v11668_v11, %v7052_v59 }
0x1328   :  { %v7084_v41 = vmul.f32 %v11766_v33, %v11766_v33 }
0x132a   :  { %v7122_v21 = vsel %vm223_vm0, %v7084_v41, 0.0 }
0x132b   :  { %7006 = vadd.xlane.f32.xlu0 %v7005_v29  ;;  %v7031_v51 = vpop.xlane.xlu1 %7030 }
0x132c   :  { %7000 = vadd.xlane.f32.xlu2 %v6999_v7  ;;  %v7053_v19 = vmul.f32 %v7031_v51, %v9580_v35 }
0x132e   :  { %v11781_v55 = vsub.f32 %v11674_v58, %v7053_v19 }
0x1330   :  { %v7085_v23 = vmul.f32 %v11781_v55, %v11781_v55 }
0x1333   :  { %v7034_v44 = vpop.xlane.xlu2 %7033  ;;  %7003 = vadd.xlane.f32.xlu0 %v7002_v31  ;;  %v7013_v16 = vpop.xlane.xlu1 %7012 }
0x1334   :  { %v7054_v36 = vmul.f32 %v7034_v44, %v9580_v35  ;;  %6997 = vadd.xlane.f32.xlu2 %v6996_v10  ;;  %v7047_v39 = vmul.f32 %v7013_v16, %v9580_v35 }
0x1336   :  { %v11772_v20 = vsub.f32 %v11684_v3, %v7054_v36  ;;  %v11788_v56 = vsub.f32 %v11680_v1, %v7047_v39  ;;  %v7125_v3 = vsel %vm223_vm0, %v7085_v23, 0.0 }
0x1338   :  { %v7086_v11 = vmul.f32 %v11772_v20, %v11772_v20  ;;  %v7079_v58 = vmul.f32 %v11788_v56, %v11788_v56 }
0x133a   :  { %v7128_v32 = vsel %vm223_vm0, %v7086_v11, 0.0  ;;  %v7107_v28 = vsel %vm223_vm0, %v7079_v58, 0.0 }
0x133b   :  { %7129 = vadd.xlane.f32.xlu0 %v7128_v32  ;;  %v7010_v37 = vpop.xlane.xlu1 %7009 }
0x133c   :  { %7123 = vadd.xlane.f32.xlu2 %v7122_v21  ;;  %v7046_v14 = vmul.f32 %v7010_v37, %v9580_v35 }
0x133e   :  { %v11795_v42 = vsub.f32 %v11692_v57, %v7046_v14 }
0x1340   :  { %v7078_v1 = vmul.f32 %v11795_v42, %v11795_v42 }
0x1342   :  { %v7104_v2 = vsel %vm223_vm0, %v7078_v1, 0.0 }
0x1343   :  { %v6995_v5 = vpop.xlane.xlu1 %6994 }
0x1344   :  { %7126 = vadd.xlane.f32.xlu2 %v7125_v3  ;;  %v7041_v54 = vmul.f32 %v6995_v5, %v9580_v35 }
0x1346   :  { %v11802_v45 = vsub.f32 %v11698_v30, %v7041_v54 }
0x1348   :  { %v7073_v18 = vmul.f32 %v11802_v45, %v11802_v45 }
0x134a   :  { %v7089_v57 = vsel %vm223_vm0, %v7073_v18, 0.0 }
0x134c   :  { %7108 = vadd.xlane.f32.xlu2 %v7107_v28 }
0x1354   :  { %7105 = vadd.xlane.f32.xlu2 %v7104_v2 }
0x135c   :  { %7090 = vadd.xlane.f32.xlu2 %v7089_v57 }
0x1386   :  { %v7037_v27 = vpop.xlane.xlu2 %7036 }
0x1387   :  { %v7055_v38 = vmul.f32 %v7037_v27, %v9580_v35 }
0x1389   :  { %v11810_v52 = vsub.f32 %v11704_v25, %v7055_v38 }
0x138b   :  { %v7087_v53 = vmul.f32 %v11810_v52, %v11810_v52 }
0x138d   :  { %v7131_v30 = vsel %vm223_vm0, %v7087_v53, 0.0 }
0x138e   :  { %v7040_v61 = vpop.xlane.xlu0 %7039  ;;  %7132 = vadd.xlane.f32.xlu0 %v7131_v30  ;;  %v7019_v50 = vpop.xlane.xlu2 %7018 }
0x138f   :  { %v7056_v22 = vmul.f32 %v7040_v61, %v9580_v35  ;;  %v7049_v15 = vmul.f32 %v7019_v50, %v9580_v35 }
0x1391   :  { %v11818_v60 = vsub.f32 %v11714_v40, %v7056_v22  ;;  %v11821_v0 = vsub.f32 %v11710_v49, %v7049_v15 }
0x1393   :  { %v7088_v25 = vmul.f32 %v11818_v60, %v11818_v60  ;;  %v7081_v8 = vmul.f32 %v11821_v0, %v11821_v0 }
0x1395   :  { %v7134_v63 = vsel %vm223_vm0, %v7088_v25, 0.0  ;;  %v7113_v46 = vsel %vm223_vm0, %v7081_v8, 0.0 }
0x1396   :  { %7135 = vadd.xlane.f32.xlu1 %v7134_v63  ;;  %v7022_v24 = vpop.xlane.xlu0 %7021  ;;  %7114 = vadd.xlane.f32.xlu0 %v7113_v46  ;;  %v7121_v14 = vpop.xlane.xlu1 %7120 }
0x1397   :  { %v7050_v6 = vmul.f32 %v7022_v24, %v9580_v35  ;;  %v7016_v40 = vpop.xlane.xlu2 %7015 }
0x1398   :  { %v7048_v9 = vmul.f32 %v7016_v40, %v9580_v35 }
0x1399   :  { %v11832_v49 = vsub.f32 %v11724_v12, %v7050_v6 }
0x139a   :  { %v11835_v43 = vsub.f32 %v11729_v13, %v7048_v9 }
0x139b   :  { %v7082_v4 = vmul.f32 %v11832_v49, %v11832_v49 }
0x139c   :  { %v7080_v29 = vmul.f32 %v11835_v43, %v11835_v43 }
0x139d   :  { %v7116_v48 = vsel %vm223_vm0, %v7082_v4, 0.0 }
0x139e   :  { %7117 = vadd.xlane.f32.xlu1 %v7116_v48  ;;  %v7007_v7 = vpop.xlane.xlu0 %7006  ;;  %v7110_v51 = vsel %vm223_vm0, %v7080_v29, 0.0 }
0x139f   :  { %v7045_v59 = vmul.f32 %v7007_v7, %v9580_v35  ;;  %7111 = vadd.xlane.f32.xlu0 %v7110_v51  ;;  %v7001_v12 = vpop.xlane.xlu2 %7000 }
0x13a0   :  { %v7043_v31 = vmul.f32 %v7001_v12, %v9580_v35 }
0x13a1   :  { %v11846_v13 = vsub.f32 %v11743_v34, %v7045_v59 }
0x13a2   :  { %v11849_v44 = vsub.f32 %v11746_v26, %v7043_v31 }
0x13a3   :  { %v7077_v10 = vmul.f32 %v11846_v13, %v11846_v13 }
0x13a4   :  { %v7075_v36 = vmul.f32 %v11849_v44, %v11849_v44 }
0x13a5   :  { %v7101_v19 = vsel %vm223_vm0, %v7077_v10, 0.0 }
0x13a6   :  { %7102 = vadd.xlane.f32.xlu1 %v7101_v19  ;;  %v7004_v41 = vpop.xlane.xlu0 %7003  ;;  %v7095_v16 = vsel %vm223_vm0, %v7075_v36, 0.0 }
0x13a7   :  { %v7044_v11 = vmul.f32 %v7004_v41, %v9580_v35  ;;  %7096 = vadd.xlane.f32.xlu0 %v7095_v16  ;;  %v6998_v34 = vpop.xlane.xlu2 %6997 }
0x13a8   :  { %v7042_v32 = vmul.f32 %v6998_v34, %v9580_v35 }
0x13a9   :  { %v11860_v26 = vsub.f32 %v11757_v47, %v7044_v11  ;;  %v7147_v47 = vmul.f32 %v7121_v14, %v9580_v35 }
0x13aa   :  { %v11863_v21 = vsub.f32 %v11760_v17, %v7042_v32 }
0x13ab   :  { %v7076_v39 = vmul.f32 %v11860_v26, %v11860_v26  ;;  %v7163_v5 = vadd.f32 1e-12, %v7147_v47 }
0x13ac   :  { %v7074_v23 = vmul.f32 %v11863_v21, %v11863_v21 }
0x13ad   :  { %v7098_v37 = vsel %vm223_vm0, %v7076_v39, 0.0  ;;  %8263 = vrsqrt.f32 %v7163_v5  ;;  %vm7275_vm11 = vweird.f32 %v7163_v5 }
0x13ae   :  { %7099 = vadd.xlane.f32.xlu1 %v7098_v37  ;;  %v7092_v3 = vsel %vm223_vm0, %v7074_v23, 0.0  ;;  %v7130_v28 = vpop.xlane.xlu0 %7129 }
0x13af   :  { %7093 = vadd.xlane.f32.xlu0 %v7092_v3  ;;  %v7124_v58 = vpop.xlane.xlu2 %7123  ;;  %v7150_v17 = vmul.f32 %v7130_v28, %v9580_v35 }
0x13b0   :  { %v7148_v54 = vmul.f32 %v7124_v58, %v9580_v35 }
0x13b1   :  { %v11874_v2 = vadd.f32 1e-12, %v7150_v17 }
0x13b2   :  { %v11876_v18 = vadd.f32 1e-12, %v7148_v54 }
0x13b3   :  { %v8264_v27 = vpop.eup %8263  ;;  %8265 = vrsqrt.f32 %v11874_v2  ;;  %vm7305_vm2 = vweird.f32 %v11874_v2 }
0x13b4   :  { %8267 = vrsqrt.f32 %v11876_v18  ;;  %v7270_v38 = vmul.f32 %v8264_v27, %v7163_v5  ;;  %vm7276_vm13 = vweird.f32 %v8264_v27  ;;  %vm7285_vm4 = vweird.f32 %v11876_v18 }
0x13b5   :  { %vm7277_vm12 = vmor %vm7275_vm11, %vm7276_vm13 }
0x13b6   :  { %v7271_v15 = vmul.f32 %v8264_v27, %v7270_v38 }
0x13b7   :  { %v7127_v1 = vpop.xlane.xlu2 %7126 }
0x13b8   :  { %v7149_v57 = vmul.f32 %v7127_v1, %v9580_v35  ;;  %v7272_v46 = vmul.f32 0.5, %v7271_v15 }
0x13b9   :  { %v11883_v61 = vpop.eup %8265 }
0x13ba   :  { %v11881_v53 = vadd.f32 1e-12, %v7149_v57  ;;  %v11886_v22 = vpop.eup %8267  ;;  %v7300_v25 = vmul.f32 %v11883_v61, %v11874_v2  ;;  %v7273_v48 = vsub.f32 1.5, %v7272_v46  ;;  %vm7306_vm14 = vweird.f32 %v11883_v61 }
0x13bb   :  { %v7280_v8 = vmul.f32 %v11886_v22, %v11876_v18  ;;  %vm7286_vm15 = vweird.f32 %v11886_v22  ;;  %vm11935_vm3 = vmor %vm7305_vm2, %vm7306_vm14 }
0x13bc   :  { %8269 = vrsqrt.f32 %v11881_v53  ;;  %v7301_v6 = vmul.f32 %v11883_v61, %v7300_v25  ;;  %v7274_v10 = vmul.f32 %v8264_v27, %v7273_v48  ;;  %vm11943_vm5 = vmor %vm7285_vm4, %vm7286_vm15  ;;  %vm7295_vm6 = vweird.f32 %v11881_v53 }
0x13bd   :  { %v7281_v9 = vmul.f32 %v11886_v22, %v7280_v8 }
0x13be   :  { %v7302_v59 = vmul.f32 0.5, %v7301_v6  ;;  %v7278_v37 = vsel %vm7277_vm12, %v8264_v27, %v7274_v10 }
0x13bf   :  { %v7109_v30 = vpop.xlane.xlu2 %7108  ;;  %v7282_v31 = vmul.f32 0.5, %v7281_v9  ;;  %v7339_v54 = vmul.f32 %v7278_v37, %v11726_v62 }
0x13c0   :  { %v7143_v50 = vmul.f32 %v7109_v30, %v9580_v35  ;;  %v7303_v41 = vsub.f32 1.5, %v7302_v59 }
0x13c1   :  { %v7283_v32 = vsub.f32 1.5, %v7282_v31 }
0x13c2   :  { %v11893_v63 = vadd.f32 1e-12, %v7143_v50  ;;  %v11895_v24 = vpop.eup %8269  ;;  %v7304_v5 = vmul.f32 %v11883_v61, %v7303_v41 }
0x13c3   :  { %v7290_v7 = vmul.f32 %v11895_v24, %v11881_v53  ;;  %v7284_v1 = vmul.f32 %v11886_v22, %v7283_v32  ;;  %vm7296_vm1 = vweird.f32 %v11895_v24 }
0x13c4   :  { %8271 = vrsqrt.f32 %v11893_v63  ;;  %v7308_v50 = vsel %vm11935_vm3, %v11883_v61, %v7304_v5  ;;  %vm11973_vm7 = vmor %vm7295_vm6, %vm7296_vm1  ;;  %vm7235_vm14 = vweird.f32 %v11893_v63 }
0x13c5   :  { %v7291_v19 = vmul.f32 %v11895_v24, %v7290_v7  ;;  %v7288_v8 = vsel %vm11943_vm5, %v11886_v22, %v7284_v1  ;;  %v7342_v7 = vmul.f32 %v7308_v50, %v11772_v20 }
0x13c6   :  { %v7340_v31 = vmul.f32 %v7288_v8, %v11766_v33  ;;  %v12312_v33 = vld [vmem:[#allocation20_spill] sm:$0xff] }
0x13c7   :  { %v7106_v4 = vpop.xlane.xlu2 %7105  ;;  %v7292_v58 = vmul.f32 0.5, %v7291_v19 }
0x13c8   :  { %v7142_v12 = vmul.f32 %v7106_v4, %v9580_v35  ;;  %v12309_v4 = vld [vmem:[#allocation19_spill] sm:$0xff] }
0x13c9   :  { %v7293_v62 = vsub.f32 1.5, %v7292_v58 }
0x13ca   :  { %v11907_v36 = vpop.eup %8271  ;;  %v11910_v16 = vadd.f32 1e-12, %v7142_v12 }
0x13cb   :  { %v7230_v3 = vmul.f32 %v11907_v36, %v11893_v63  ;;  %v7294_v59 = vmul.f32 %v11895_v24, %v7293_v62  ;;  %vm7236_vm8 = vweird.f32 %v11907_v36 }
0x13cc   :  { %vm12032_vm2 = vmor %vm7235_vm14, %vm7236_vm8  ;;  %vm7225_vm1 = vweird.f32 %v11910_v16 }
0x13cd   :  { %v7231_v57 = vmul.f32 %v11907_v36, %v7230_v3  ;;  %v7358_v3 = vmul.f32 %v7342_v7, %v12309_v4 }
0x13cf   :  { %v7091_v27 = vpop.xlane.xlu2 %7090  ;;  %v7232_v9 = vmul.f32 0.5, %v7231_v57 }
0x13d0   :  { %v7137_v46 = vmul.f32 %v7091_v27, %v9580_v35 }
0x13d1   :  { %v7233_v32 = vsub.f32 1.5, %v7232_v9 }
0x13d2   :  { %v11967_v41 = vadd.f32 1e-12, %v7137_v46 }
0x1401   :  { %v7133_v40 = vpop.xlane.xlu0 %7132 }
0x1402   :  { %v7151_v29 = vmul.f32 %v7133_v40, %v9580_v35 }
0x1404   :  { %v11903_v51 = vadd.f32 1e-12, %v7151_v29  ;;  %v7355_v29 = vmul.f32 %v7339_v54, %v12309_v4 }
0x1406   :  { %8273 = vrsqrt.f32 %v11903_v51  ;;  %v11979_v53 = vadd.f32 %v7355_v29, %v12312_v33  ;;  %vm7315_vm10 = vweird.f32 %v11903_v51 }
0x1407   :  { %8275 = vrsqrt.f32 %v11910_v16 }
0x1409   :  { %v7115_v11 = vpop.xlane.xlu0 %7114  ;;  %v7136_v34 = vpop.xlane.xlu1 %7135 }
0x140a   :  { %v7145_v39 = vmul.f32 %v7115_v11, %v9580_v35  ;;  %v7152_v23 = vmul.f32 %v7136_v34, %v9580_v35 }
0x140c   :  { %v11916_v14 = vpop.eup %8273  ;;  %v11918_v47 = vadd.f32 1e-12, %v7145_v39  ;;  %v11920_v28 = vadd.f32 1e-12, %v7152_v23  ;;  %v7298_v39 = vsel %vm11973_vm7, %v11895_v24, %v7294_v59 }
0x140d   :  { %v7310_v17 = vmul.f32 %v11916_v14, %v11903_v51  ;;  %v11952_v40 = vpop.eup %8275  ;;  %vm7316_vm9 = vweird.f32 %v11916_v14  ;;  %v7341_v27 = vmul.f32 %v7298_v39, %v11781_v55 }
0x140e   :  { %8277 = vrsqrt.f32 %v11918_v47  ;;  %v7220_v23 = vmul.f32 %v11952_v40, %v11910_v16  ;;  %vm12003_vm13 = vmor %vm7315_vm10, %vm7316_vm9  ;;  %vm7325_vm12 = vweird.f32 %v11920_v28  ;;  %vm7255_vm8 = vweird.f32 %v11918_v47 }
0x140f   :  { %v7311_v38 = vmul.f32 %v11916_v14, %v7310_v17  ;;  %8279 = vrsqrt.f32 %v11920_v28  ;;  %v7356_v17 = vmul.f32 %v7340_v31, %v12309_v4 }
0x1410   :  { %v7221_v50 = vmul.f32 %v11952_v40, %v7220_v23 }
0x1411   :  { %v7312_v15 = vmul.f32 0.5, %v7311_v38  ;;  %v7118_v25 = vpop.xlane.xlu1 %7117  ;;  %v11996_v38 = vmul.f32 %v11907_v36, %v7233_v32  ;;  %v12039_v31 = vadd.f32 %v7356_v17, %v12312_v33  ;;  %v7357_v32 = vmul.f32 %v7341_v27, %v12309_v4 }
0x1412   :  { %v7112_v6 = vpop.xlane.xlu0 %7111  ;;  %v7146_v18 = vmul.f32 %v7118_v25, %v9580_v35  ;;  %v7222_v39 = vmul.f32 0.5, %v7221_v50 }
0x1413   :  { %v7144_v61 = vmul.f32 %v7112_v6, %v9580_v35  ;;  %v7313_v10 = vsub.f32 1.5, %v7312_v15 }
0x1414   :  { %v11956_v48 = vpop.eup %8277  ;;  %v11961_v22 = vadd.f32 1e-12, %v7146_v18 }
0x1415   :  { %v8280_v12 = vpop.eup %8279  ;;  %v11965_v19 = vadd.f32 1e-12, %v7144_v61  ;;  %v7250_v11 = vmul.f32 %v11956_v48, %v11918_v47  ;;  %v7314_v58 = vmul.f32 %v11916_v14, %v7313_v10  ;;  %v7238_v10 = vsel %vm12032_vm2, %v11907_v36, %v11996_v38 }
0x1416   :  { %v7320_v20 = vmul.f32 %v8280_v12, %v11920_v28  ;;  %8281 = vrsqrt.f32 %v11961_v22  ;;  %vm7326_vm11 = vweird.f32 %v8280_v12  ;;  %vm7256_vm3 = vweird.f32 %v11956_v48 }
0x1417   :  { %8283 = vrsqrt.f32 %v11965_v19  ;;  %v7251_v54 = vmul.f32 %v11956_v48, %v7250_v11  ;;  %v7318_v51 = vsel %vm12003_vm13, %v11916_v14, %v7314_v58  ;;  %vm7327_vm15 = vmor %vm7325_vm12, %vm7326_vm11  ;;  %v12026_v14 = vadd.f32 %v7358_v3, %v12312_v33 }
0x1418   :  { %v7321_v37 = vmul.f32 %v8280_v12, %v7320_v20  ;;  %8285 = vrsqrt.f32 %v11967_v41  ;;  %v7343_v7 = vmul.f32 %v7318_v51, %v11810_v52  ;;  %vm7265_vm5 = vweird.f32 %v11961_v22  ;;  %vm12089_vm9 = vmor %vm7255_vm8, %vm7256_vm3 }
0x1419   :  { %v7103_v5 = vpop.xlane.xlu1 %7102  ;;  %v7252_v6 = vmul.f32 0.5, %v7251_v54  ;;  %vm7245_vm10 = vweird.f32 %v11965_v19  ;;  %vm7226_vm11 = vweird.f32 %v11952_v40 }
0x141a   :  { %v7322_v24 = vmul.f32 0.5, %v7321_v37  ;;  %v7097_v1 = vpop.xlane.xlu0 %7096  ;;  %v7141_v57 = vmul.f32 %v7103_v5, %v9580_v35  ;;  %v7359_v54 = vmul.f32 %v7343_v7, %v12309_v4  ;;  %vm12140_vm2 = vmor %vm7225_vm1, %vm7226_vm11  ;;  %vm7175_vm11 = vweird.f32 %v11967_v41 }
0x141b   :  { %v7139_v30 = vmul.f32 %v7097_v1, %v9580_v35  ;;  %v7253_v23 = vsub.f32 1.5, %v7252_v6 }
0x141c   :  { %v12000_v62 = vpop.eup %8281  ;;  %v7323_v15 = vsub.f32 1.5, %v7322_v24  ;;  %v12007_v25 = vadd.f32 1e-12, %v7141_v57 }
0x141d   :  { %v12009_v55 = vpop.eup %8283  ;;  %v7260_v8 = vmul.f32 %v12000_v62, %v11961_v22  ;;  %v12017_v46 = vadd.f32 1e-12, %v7139_v30  ;;  %vm7266_vm4 = vweird.f32 %v12000_v62  ;;  %v7254_v38 = vmul.f32 %v11956_v48, %v7253_v23  ;;  %v7817_v23 = vld [vmem:[#allocation10 + $0x8] sm:$0xff] }
0x141e   :  { %v7324_v18 = vmul.f32 %v8280_v12, %v7323_v15  ;;  %v7240_v9 = vmul.f32 %v12009_v55, %v11965_v19  ;;  %8287 = vrsqrt.f32 %v12007_v25  ;;  %v12028_v28 = vpop.eup %8285  ;;  %vm7246_vm6 = vweird.f32 %v12009_v55  ;;  %vm12076_vm7 = vmor %vm7265_vm5, %vm7266_vm4  ;;  %7430 = vmatpush.bf16.msra.mxu1 %v7817_v23 }
0x141f   :  { %v7261_v61 = vmul.f32 %v12000_v62, %v7260_v8  ;;  %8289 = vrsqrt.f32 %v12017_v46  ;;  %v7170_v3 = vmul.f32 %v12028_v28, %v11967_v41  ;;  %v7223_v22 = vsub.f32 1.5, %v7222_v39  ;;  %vm12102_vm13 = vmor %vm7245_vm10, %vm7246_vm6 }
0x1420   :  { %v7328_v59 = vsel %vm7327_vm15, %v8280_v12, %v7324_v18  ;;  %v7241_v63 = vmul.f32 %v12009_v55, %v7240_v9  ;;  %v7375_v9 = vadd.f32 %v7359_v54, %v12312_v33  ;;  %v7373_v19 = vadd.f32 %v7357_v32, %v12312_v33 }
0x1421   :  { %v7344_v11 = vmul.f32 %v7328_v59, %v11818_v60  ;;  %v7262_v20 = vmul.f32 0.5, %v7261_v61  ;;  %v7100_v34 = vpop.xlane.xlu1 %7099  ;;  %v7171_v47 = vmul.f32 %v12028_v28, %v7170_v3  ;;  %v7224_v32 = vmul.f32 %v11952_v40, %v7223_v22  ;;  %v7816_v3 = vld [vmem:[#allocation10] sm:$0xff] }
0x1422   :  { %v7242_v52 = vmul.f32 0.5, %v7241_v63  ;;  %v7094_v12 = vpop.xlane.xlu0 %7093  ;;  %v7140_v37 = vmul.f32 %v7100_v34, %v9580_v35  ;;  %vm7215_vm14 = vweird.f32 %v12007_v25  ;;  %vm7195_vm4 = vweird.f32 %v12017_v46  ;;  %7431 = vmatpush.bf16.msra.mxu1 %v7816_v3  ;;  %v8364_v3 = vld [vmem:[#allocation7] sm:$0x7f] }
0x1423   :  { %v7263_v58 = vsub.f32 1.5, %v7262_v20  ;;  %v7138_v36 = vmul.f32 %v7094_v12, %v9580_v35  ;;  %v7360_v35 = vmul.f32 %v7344_v11, %v12309_v4  ;;  %vm7176_vm6 = vweird.f32 %v12028_v28 }
0x1424   :  { %v12052_v5 = vpop.eup %8287  ;;  %v7243_v60 = vsub.f32 1.5, %v7242_v52  ;;  %v12055_v17 = vadd.f32 1e-12, %v7140_v37  ;;  %v7172_v37 = vmul.f32 0.5, %v7171_v47 }
0x1425   :  { %v12058_v24 = vpop.eup %8289  ;;  %v7264_v1 = vmul.f32 %v12000_v62, %v7263_v58  ;;  %v7210_v57 = vmul.f32 %v12052_v5, %v12007_v25  ;;  %v12063_v27 = vadd.f32 1e-12, %v7138_v36  ;;  %v7376_v61 = vadd.f32 %v7360_v35, %v12312_v33 }
0x1426   :  { %v7190_v30 = vmul.f32 %v12058_v24, %v12017_v46  ;;  %8291 = vrsqrt.f32 %v12055_v17  ;;  %v7244_v50 = vmul.f32 %v12009_v55, %v7243_v60  ;;  %vm7216_vm12 = vweird.f32 %v12052_v5 }
0x1427   :  { %v7211_v15 = vmul.f32 %v12052_v5, %v7210_v57  ;;  %8293 = vrsqrt.f32 %v12063_v27  ;;  %v7268_v51 = vsel %vm12076_vm7, %v12000_v62, %v7264_v1  ;;  %v7258_v62 = vsel %vm12089_vm9, %v11956_v48, %v7254_v38  ;;  %vm12127_vm15 = vmor %vm7215_vm14, %vm7216_vm12 }
0x1428   :  { %v7191_v8 = vmul.f32 %v12058_v24, %v7190_v30  ;;  %v7248_v59 = vsel %vm12102_vm13, %v12009_v55, %v7244_v50  ;;  %v7338_v63 = vmul.f32 %v7268_v51, %v11832_v49  ;;  %v7393_v20 = vpack.c.bf16 %v7376_v61, %v7375_v9  ;;  %vm7177_vm12 = vmor %vm7175_vm11, %vm7176_vm6 }
0x1429   :  { %v7212_v18 = vmul.f32 0.5, %v7211_v15  ;;  %v7335_v48 = vmul.f32 %v7238_v10, %v11788_v56  ;;  %v7337_v55 = vmul.f32 %v7258_v62, %v11821_v0  ;;  %v7336_v56 = vmul.f32 %v7248_v59, %v11835_v43 }
0x142a   :  { %v7192_v7 = vmul.f32 0.5, %v7191_v8  ;;  %7394 = vmatpush.bf16.msra.mxu0 %v7393_v20  ;;  %v7392_v36 = vpack.c.bf16 %v12026_v14, %v7373_v19  ;;  %v7391_v60 = vpack.c.bf16 %v12039_v31, %v11979_v53  ;;  %v7354_v43 = vmul.f32 %v7338_v63, %v12309_v4 }
0x142b   :  { %v7213_v11 = vsub.f32 1.5, %v7212_v18  ;;  %vm7196_vm3 = vweird.f32 %v12058_v24  ;;  %v7228_v31 = vsel %vm12140_vm2, %v11952_v40, %v7224_v32  ;;  %v7353_v16 = vmul.f32 %v7337_v55, %v12309_v4 }
0x142c   :  { %v12111_v34 = vpop.eup %8291  ;;  %v7193_v39 = vsub.f32 1.5, %v7192_v7  ;;  %v7351_v57 = vmul.f32 %v7335_v48, %v12309_v4  ;;  %v7173_v35 = vsub.f32 1.5, %v7172_v37  ;;  %v7352_v30 = vmul.f32 %v7336_v56, %v12309_v4  ;;  %vm12157_vm5 = vmor %vm7195_vm4, %vm7196_vm3 }
0x142d   :  { %v12116_v52 = vpop.eup %8293  ;;  %v7214_v49 = vmul.f32 %v12052_v5, %v7213_v11  ;;  %v7200_v12 = vmul.f32 %v12111_v34, %v12055_v17  ;;  %vm7206_vm1 = vweird.f32 %v12111_v34  ;;  %v7370_v2 = vadd.f32 %v7354_v43, %v12312_v33 }
0x142e   :  { %v7180_v10 = vmul.f32 %v12116_v52, %v12063_v27  ;;  %v7194_v54 = vmul.f32 %v12058_v24, %v7193_v39  ;;  %7395 = vmatpush.bf16.msra.mxu0 %v7392_v36  ;;  %vm7186_vm7 = vweird.f32 %v12116_v52  ;;  %v7334_v22 = vmul.f32 %v7228_v31, %v11795_v42 }
0x142f   :  { %v7201_v0 = vmul.f32 %v12111_v34, %v7200_v12  ;;  %v7218_v14 = vsel %vm12127_vm15, %v12052_v5, %v7214_v49  ;;  %vm7205_vm8 = vweird.f32 %v12055_v17  ;;  %v7174_v8 = vmul.f32 %v12028_v28, %v7173_v35 }
0x1430   :  { %v7181_v53 = vmul.f32 %v12116_v52, %v7180_v10  ;;  %v7333_v50 = vmul.f32 %v7218_v14, %v11846_v13  ;;  %v7198_v46 = vsel %vm12157_vm5, %v12058_v24, %v7194_v54  ;;  %v7369_v13 = vadd.f32 %v7353_v16, %v12312_v33  ;;  %vm7207_vm10 = vmor %vm7205_vm8, %vm7206_vm1 }
0x1431   :  { %v7202_v1 = vmul.f32 0.5, %v7201_v0  ;;  %vm7185_vm9 = vweird.f32 %v12063_v27  ;;  %v7368_v24 = vadd.f32 %v7352_v30, %v12312_v33  ;;  %v7331_v18 = vmul.f32 %v7198_v46, %v11849_v44 }
0x1432   :  { %v7182_v38 = vmul.f32 0.5, %v7181_v53  ;;  %7396 = vmatpush.bf16.msra.mxu0 %v7391_v60  ;;  %vm7187_vm13 = vmor %vm7185_vm9, %vm7186_vm7  ;;  %v7390_v9 = vpack.c.bf16 %v7370_v2, %v7369_v13  ;;  %v7349_v17 = vmul.f32 %v7333_v50, %v12309_v4  ;;  %v7367_v27 = vadd.f32 %v7351_v57, %v12312_v33 }
0x1433   :  { %v7203_v40 = vsub.f32 1.5, %v7202_v1  ;;  %v7350_v44 = vmul.f32 %v7334_v22, %v12309_v4  ;;  %v7178_v62 = vsel %vm7177_vm12, %v12028_v28, %v7174_v8  ;;  %v7377_v7 = vlaneseq }
0x1434   :  { %v7183_v15 = vsub.f32 1.5, %v7182_v38  ;;  %v7389_v41 = vpack.c.bf16 %v7368_v24, %v7367_v27  ;;  %v7365_v59 = vadd.f32 %v7349_v17, %v12312_v33  ;;  %v7329_v63 = vmul.f32 %v7178_v62, %v11802_v45 }
0x1435   :  { %v7204_v51 = vmul.f32 %v12111_v34, %v7203_v40  ;;  %v7366_v11 = vadd.f32 %v7350_v44, %v12312_v33  ;;  %v8527_v12 = vmov 1.0|1.0  }
0x1436   :  { %v7184_v6 = vmul.f32 %v12116_v52, %v7183_v15  ;;  %7397 = vmatpush.bf16.msra.mxu0 %v7390_v9  ;;  %v7345_v23 = vmul.f32 %v7329_v63, %v12309_v4 }
0x1437   :  { %v7208_v42 = vsel %vm7207_vm10, %v12111_v34, %v7204_v51  ;;  %v7378_v34 = vshrl.u32 %v7377_v7, 7  ;;  %v7388_v48 = vpack.c.bf16 %v7366_v11, %v7365_v59 }
0x1438   :  { %v7188_v61 = vsel %vm7187_vm13, %v12116_v52, %v7184_v6  ;;  %v7332_v47 = vmul.f32 %v7208_v42, %v11860_v26  ;;  %v7347_v26 = vmul.f32 %v7331_v18, %v12309_v4  ;;  %v7380_v52 = vand.u32 127, %v7377_v7 }
0x1439   :  { %v7330_v19 = vmul.f32 %v7188_v61, %v11863_v21  ;;  %v7381_v32 = vmul.u32 16, %v7378_v34  ;;  %v7361_v45 = vadd.f32 %v7345_v23, %v12312_v33 }
0x143a   :  { %v7348_v29 = vmul.f32 %v7332_v47, %v12309_v4  ;;  %7398 = vmatpush.bf16.msra.mxu0 %v7389_v41  ;;  %v7363_v28 = vadd.f32 %v7347_v26, %v12312_v33 }
0x143b   :  { %v7346_v39 = vmul.f32 %v7330_v19, %v12309_v4  ;;  %vm7382_vm14 = vcmp.eq.s32.totalorder %v7380_v52, %v7381_v32  ;;  %v7408_v4 = vperm.slane %v8364_v3, 6 }
0x143c   :  { %v7364_v20 = vadd.f32 %v7348_v29, %v12312_v33  ;;  %vm7785_vm15 = vmpackc.low %vm7382_vm14, %vm7382_vm14 }
0x143d   :  { %v7362_v55 = vadd.f32 %v7346_v39, %v12312_v33 }
0x143e   :  { %7399 = vmatpush.bf16.msra.mxu0 %v7388_v48  ;;  %v7387_v21 = vpack.c.bf16 %v7364_v20, %v7363_v28 }
0x143f   :  { %v7386_v49 = vpack.c.bf16 %v7362_v55, %v7361_v45 }
0x1442   :  { %7400 = vmatpush.bf16.msra.mxu0 %v7387_v21 }
0x1446   :  { %7401 = vmatpush.bf16.msra.mxu0 %v7386_v49 }
0x1449   :  { %7786 = vmatmul.msk.bf16.vlgmr.msra.gmra.mxu0 %vm7785_vm15, %v8527_v12 }
0x14c6   :  { %v7403_v37 = vpop.f32.mrf.mxu0 }
0x14c7   :  { %v7407_v56 = vpack.c.bf16 %v7403_v37, %v7403_v37 }
0x14c9   :  { %7795 = vmatmul.msk.bf16.vlgmr.msra.gmra.mxu1 %vm223_vm0, %v7407_v56 }
0x14ce   :  { %v7405_v10 = vpop.f32.mrf.mxu0 }
0x1546   :  { %v7433_v58 = vpop.f32.mrf.mxu1 }
0x1547   :  { %v7434_v0 = vadd.f32 %v7433_v58, %v7408_v4 }
0x1549   :  { %8295 = vtanh.f32 %v7434_v0 }
0x154e   :  { %v7435_v33 = vpop.f32.mrf.mxu1 }
0x154f   :  { %v8296_v36 = vpop.eup %8295 }
0x1550   :  { %7438 = vst.msk [vmem:[#allocation11] sm:$0xff] %vm223_vm0, %v8296_v36 }
0x1551   :  { %7449 = dma.vmem_to_hbm [thread:$0]  %s7445_s27, 128, %s7447_s29, [#allocation4]  }
0x1552   :  { %8515 = dma.done.wait [#allocation4], 128  }
0x1553   :  { %8516 = vsyncadd [#allocation4], 4294967168 }
0x1554   :  { %7454 = vsyncpa [#allocation3], 1 }
0x1555   :  { %7455 = vsyncpa [#allocation6], 1 }
0x1556   :  { %7456 = vsyncpa [#allocation9], 1 }
0x1557   :  { %7457 = vsyncpa [#allocation4], 1 }

</bundles_post_ra>
